<compile_context>
chip_gen: v5e
topology: v5e:2x2
jax: 0.10.0
libtpu: 0.0.40
codegen_flags: <defaults>
</compile_context>

<pallas_src>
import jax
import jax.numpy as jnp
import numpy as np
from jax import lax
from jax.experimental import pallas as pl
from jax.experimental.pallas import tpu as pltpu


# ----------------------------------------------------------------------------
# helpers
# ----------------------------------------------------------------------------
def _bn_train(h, gamma, beta, eps):
    """BatchNorm1d in training mode: batch stats, biased variance (per column)."""
    mean = jnp.mean(h, axis=0, keepdims=True)
    var = jnp.mean((h - mean) ** 2, axis=0, keepdims=True)
    return (h - mean) * lax.rsqrt(var + eps) * gamma + beta


# ----------------------------------------------------------------------------
# Fused kernel: encoder + classifier + softmax + ALL domain heads, one step.
# ----------------------------------------------------------------------------
def mada_fused_kernel(x_ref, w1_ref, b1_ref, g1_ref, be1_ref,
                      w2_ref, b2_ref, g2_ref, be2_ref,
                      wc_ref, bc_ref,
                      bd1_ref, gd_ref, bed_ref, wd2_ref, bd2_ref,
                      wd1_hbm,                       # (H2, n_classes*H2) in HBM
                      c_ref, d_ref,
                      wd1_vmem, dma_sem):
    B = x_ref.shape[0]
    n_classes = c_ref.shape[1]
    H2 = wd1_vmem.shape[0]
    N = wd1_vmem.shape[1]                            # n_classes * H2

    # Start streaming the big concatenated head-weight slab into VMEM now so the
    # DMA overlaps with the encoder / classifier / softmax compute below.
    wd1_cp = pltpu.make_async_copy(wd1_hbm, wd1_vmem, dma_sem)
    wd1_cp.start()

    x = x_ref[...].astype(jnp.bfloat16)

    # Linear(in_dim, 1024) + BN(eps=0.8) + LeakyReLU(0.01)
    h1 = jnp.dot(x, w1_ref[...], preferred_element_type=jnp.float32) + b1_ref[...]
    h1 = _bn_train(h1, g1_ref[...], be1_ref[...], 0.8)
    h1 = jnp.where(h1 >= 0, h1, 0.01 * h1)

    # Linear(1024, 512) + BN(eps=1e-5) + LeakyReLU(0.01)
    h2 = jnp.dot(h1.astype(jnp.bfloat16), w2_ref[...],
                 preferred_element_type=jnp.float32) + b2_ref[...]
    h2 = _bn_train(h2, g2_ref[...], be2_ref[...], 1e-5)
    feat = jnp.where(h2 >= 0, h2, 0.01 * h2)          # (B, 512)

    # Classifier: Linear(512, n_classes)
    c = jnp.dot(feat, wc_ref[...], preferred_element_type=jnp.float32) + bc_ref[...]
    c_ref[...] = c

    # Exact softmax over the class axis (shared by every domain head).
    cmax = jnp.max(c, axis=1, keepdims=True)
    e = jnp.exp(c - cmax)
    probs = e / jnp.sum(e, axis=1, keepdims=True)     # (B, n_classes)

    # ---- all domain heads at once ------------------------------------------
    # (p_k * feat) @ Wd1_k == p_k * (feat @ Wd1_k): one lane-dense MXU matmul
    # over the concatenated head weights, then per-head scaling by probs[:, k].
    wd1_cp.wait()
    raw = jnp.dot(feat.astype(jnp.bfloat16), wd1_vmem[...],
                  preferred_element_type=jnp.float32)            # (B, N)

    col = lax.broadcasted_iota(jnp.int32, (B, N), 1)
    pk_expand = jnp.zeros((B, N), jnp.float32)
    for k in range(n_classes):                                    # static loop
        in_head = (col >= k * H2) & (col < (k + 1) * H2)
        pk_expand = pk_expand + jnp.where(in_head, probs[:, k:k + 1], 0.0)

    # Linear bias, BN(eps=1e-5) and LeakyReLU(0.2) are per-column, so they run
    # vectorized on the whole concatenated slab.
    h = pk_expand * raw + bd1_ref[...]
    h = _bn_train(h, gd_ref[...], bed_ref[...], 1e-5)
    h = jnp.where(h >= 0, h, 0.2 * h)

    # Per-head Linear(512, 1) as a VPU multiply + per-chunk lane reduction.
    prod = h * wd2_ref[...]                                        # (B, N)
    col_c = lax.broadcasted_iota(jnp.int32, (B, n_classes), 1)
    d = jnp.zeros((B, n_classes), jnp.float32)
    for k in range(n_classes):                                     # static loop
        dk = jnp.sum(prod[:, k * H2:(k + 1) * H2], axis=1, keepdims=True)  # (B,1)
        d = d + jnp.where(col_c == k, dk, 0.0)
    d_ref[...] = d + bd2_ref[...]


# ----------------------------------------------------------------------------
# Wrapper
# ----------------------------------------------------------------------------
def mada_forward(x, params):
    B, in_dim = x.shape
    H1 = params["w1"].shape[1]
    H2 = params["w2"].shape[1]
    n_classes = params["wc"].shape[1]
    N = n_classes * H2

    # Stream the large weight matrices as bf16 (f32 accumulation in-kernel).
    w1 = params["w1"].astype(jnp.bfloat16)
    w2 = params["w2"].astype(jnp.bfloat16)

    # Concatenate per-class head params along the output axis (host-side).
    # wd1_cat[:, k*H2:(k+1)*H2] == wd1[k]
    wd1_cat = jnp.transpose(params["wd1"], (1, 0, 2)).reshape(H2, N)
    wd1_cat = wd1_cat.astype(jnp.bfloat16)
    bd1_cat = params["bd1"].reshape(1, N)
    gd_cat = params["gd"].reshape(1, N)
    bed_cat = params["bed"].reshape(1, N)
    wd2_cat = params["wd2"].reshape(1, N)
    bd2_cat = params["bd2"].reshape(1, n_classes)

    def full(shape):
        n = len(shape)
        return pl.BlockSpec(shape, lambda i, _n=n: (0,) * _n)

    c_out, d_out = pl.pallas_call(
        mada_fused_kernel,
        out_shape=(
            jax.ShapeDtypeStruct((B, n_classes), jnp.float32),
            jax.ShapeDtypeStruct((B, n_classes), jnp.float32),
        ),
        grid_spec=pltpu.PrefetchScalarGridSpec(
            num_scalar_prefetch=0,
            grid=(1,),
            in_specs=[
                full((B, in_dim)),                                  # x
                full((in_dim, H1)), full((1, H1)),                  # w1, b1
                full((1, H1)), full((1, H1)),                       # g1, be1
                full((H1, H2)), full((1, H2)),                      # w2, b2
                full((1, H2)), full((1, H2)),                       # g2, be2
                full((H2, n_classes)), full((1, n_classes)),        # wc, bc
                full((1, N)),                                       # bd1_cat
                full((1, N)),                                       # gd_cat
                full((1, N)),                                       # bed_cat
                full((1, N)),                                       # wd2_cat
                full((1, n_classes)),                               # bd2_cat
                pl.BlockSpec(memory_space=pl.ANY),                  # wd1_cat (HBM)
            ],
            out_specs=(full((B, n_classes)), full((B, n_classes))),
            scratch_shapes=[
                pltpu.VMEM((H2, N), jnp.bfloat16),                  # wd1 landing buf
                pltpu.SemaphoreType.DMA(()),                        # its DMA sem
            ],
        ),
        compiler_params=pltpu.CompilerParams(
            dimension_semantics=("arbitrary",)),
    )(x,
      w1, params["b1"], params["g1"], params["be1"],
      w2, params["b2"], params["g2"], params["be2"],
      params["wc"], params["bc"],
      bd1_cat, gd_cat, bed_cat, wd2_cat, bd2_cat,
      wd1_cat)

    # list of per-class (B, 1) outputs, mirroring the PyTorch module
    d_output_multi = jnp.split(d_out, n_classes, axis=1)
    return c_out, d_output_multi


# ----------------------------------------------------------------------------
# Pure-JAX reference (f32, HIGHEST precision) for validation only
# ----------------------------------------------------------------------------
def reference_forward(x, params):
    hi = jax.lax.Precision.HIGHEST

    def bn(h, g, b, eps):
        m = jnp.mean(h, axis=0, keepdims=True)
        v = jnp.mean((h - m) ** 2, axis=0, keepdims=True)
        return (h - m) / jnp.sqrt(v + eps) * g + b

    h1 = jnp.dot(x, params["w1"], precision=hi) + params["b1"]
    h1 = bn(h1, params["g1"], params["be1"], 0.8)
    h1 = jnp.where(h1 >= 0, h1, 0.01 * h1)
    h2 = jnp.dot(h1, params["w2"], precision=hi) + params["b2"]
    h2 = bn(h2, params["g2"], params["be2"], 1e-5)
    feat = jnp.where(h2 >= 0, h2, 0.01 * h2)
    c = jnp.dot(feat, params["wc"], precision=hi) + params["bc"]
    p = jax.nn.softmax(c, axis=1)
    d_list = []
    n_classes = c.shape[1]
    for k in range(n_classes):
        wf = p[:, k:k + 1] * feat
        h = jnp.dot(wf, params["wd1"][k], precision=hi) + params["bd1"][k]
        h = bn(h, params["gd"][k], params["bed"][k], 1e-5)
        h = jnp.where(h >= 0, h, 0.2 * h)
        d_list.append(jnp.dot(h, params["wd2"][k].T, precision=hi) + params["bd2"][k])
    return c, d_list


# ----------------------------------------------------------------------------
# Main
# ----------------------------------------------------------------------------
if __name__ == "__main__":
    B, in_dim, n_classes = 8, 64, 4
    H1, H2 = 1024, 512

    key = jax.random.PRNGKey(0)
    ks = jax.random.split(key, 12)

    def rinit(k, shape, scale=0.02):
        return (scale * jax.random.normal(k, shape)).astype(jnp.float32)

    params = {
        # encoder
        "w1": rinit(ks[0], (in_dim, H1)),
        "b1": rinit(ks[1], (1, H1)),
        "g1": jnp.ones((1, H1), jnp.float32),
        "be1": jnp.zeros((1, H1), jnp.float32),
        "w2": rinit(ks[2], (H1, H2)),
        "b2": rinit(ks[3], (1, H2)),
        "g2": jnp.ones((1, H2), jnp.float32),
        "be2": jnp.zeros((1, H2), jnp.float32),
        # classifier
        "wc": rinit(ks[4], (H2, n_classes)),
        "bc": rinit(ks[5], (1, n_classes)),
        # per-class domain classifiers (stacked along leading class axis)
        "wd1": rinit(ks[6], (n_classes, H2, H2)),
        "bd1": rinit(ks[7], (n_classes, 1, H2)),
        "gd": jnp.ones((n_classes, 1, H2), jnp.float32),
        "bed": jnp.zeros((n_classes, 1, H2), jnp.float32),
        "wd2": rinit(ks[8], (n_classes, 1, H2)),   # row-vector form of (512,1)
        "bd2": rinit(ks[9], (n_classes, 1, 1)),
    }

    x = jax.random.normal(ks[10], (B, in_dim), dtype=jnp.float32)

    c_out, d_outs = mada_forward(x, params)
    c_out = jax.block_until_ready(c_out)
    d_outs = [jax.block_until_ready(d) for d in d_outs]

    # sanity check against pure-JAX f32 reference (kernel streams bf16 weights)
    c_ref, d_ref = reference_forward(x, params)
    np.testing.assert_allclose(np.asarray(c_out), np.asarray(c_ref),
                               rtol=1e-2, atol=1e-2)
    for a, b in zip(d_outs, d_ref):
        np.testing.assert_allclose(np.asarray(a), np.asarray(b),
                                   rtol=1e-2, atol=1e-2)

    assert c_out.shape == (B, n_classes)
    assert len(d_outs) == n_classes and all(d.shape == (B, 1) for d in d_outs)
    print("KERNEL_OK")
</pallas_src>

<mosaic_0001>
module attributes {stable_mosaic.version = 11 : i64} {
  func.func @mada_fused_kernel(%arg0: i32, %arg1: memref<8x64xf32, #tpu.memory_space<vmem>>, %arg2: memref<64x1024xbf16, #tpu.memory_space<vmem>>, %arg3: memref<1x1024xf32, #tpu.memory_space<vmem>>, %arg4: memref<1x1024xf32, #tpu.memory_space<vmem>>, %arg5: memref<1x1024xf32, #tpu.memory_space<vmem>>, %arg6: memref<1024x512xbf16, #tpu.memory_space<vmem>>, %arg7: memref<1x512xf32, #tpu.memory_space<vmem>>, %arg8: memref<1x512xf32, #tpu.memory_space<vmem>>, %arg9: memref<1x512xf32, #tpu.memory_space<vmem>>, %arg10: memref<512x4xf32, #tpu.memory_space<vmem>>, %arg11: memref<1x4xf32, #tpu.memory_space<vmem>>, %arg12: memref<1x2048xf32, #tpu.memory_space<vmem>>, %arg13: memref<1x2048xf32, #tpu.memory_space<vmem>>, %arg14: memref<1x2048xf32, #tpu.memory_space<vmem>>, %arg15: memref<1x2048xf32, #tpu.memory_space<vmem>>, %arg16: memref<1x4xf32, #tpu.memory_space<vmem>>, %arg17: memref<512x2048xbf16, #tpu.memory_space<any>>, %arg18: memref<8x4xf32, #tpu.memory_space<vmem>>, %arg19: memref<8x4xf32, #tpu.memory_space<vmem>>, %arg20: memref<512x2048xbf16, #tpu.memory_space<vmem>>, %arg21: memref<!tpu.dma_semaphore, #tpu.memory_space<semaphore_mem>>) attributes {dimension_semantics = [#tpu.dimension_semantics<arbitrary>], iteration_bounds = array<i64: 1>, scalar_prefetch = 0 : i64, scratch_operands = 2 : i64, tpu.core_type = #tpu.core_type<tc>, window_params = [{pipeline_mode = #tpu.pipeline_mode<synchronous>, transform_indices = @transform_0, window_bounds = array<i64: 8, 64>}, {pipeline_mode = #tpu.pipeline_mode<synchronous>, transform_indices = @transform_1, window_bounds = array<i64: 64, 1024>}, {pipeline_mode = #tpu.pipeline_mode<synchronous>, transform_indices = @transform_2, window_bounds = array<i64: 1, 1024>}, {pipeline_mode = #tpu.pipeline_mode<synchronous>, transform_indices = @transform_3, window_bounds = array<i64: 1, 1024>}, {pipeline_mode = #tpu.pipeline_mode<synchronous>, transform_indices = @transform_4, window_bounds = array<i64: 1, 1024>}, {pipeline_mode = #tpu.pipeline_mode<synchronous>, transform_indices = @transform_5, window_bounds = array<i64: 1024, 512>}, {pipeline_mode = #tpu.pipeline_mode<synchronous>, transform_indices = @transform_6, window_bounds = array<i64: 1, 512>}, {pipeline_mode = #tpu.pipeline_mode<synchronous>, transform_indices = @transform_7, window_bounds = array<i64: 1, 512>}, {pipeline_mode = #tpu.pipeline_mode<synchronous>, transform_indices = @transform_8, window_bounds = array<i64: 1, 512>}, {pipeline_mode = #tpu.pipeline_mode<synchronous>, transform_indices = @transform_9, window_bounds = array<i64: 512, 4>}, {pipeline_mode = #tpu.pipeline_mode<synchronous>, transform_indices = @transform_10, window_bounds = array<i64: 1, 4>}, {pipeline_mode = #tpu.pipeline_mode<synchronous>, transform_indices = @transform_11, window_bounds = array<i64: 1, 2048>}, {pipeline_mode = #tpu.pipeline_mode<synchronous>, transform_indices = @transform_12, window_bounds = array<i64: 1, 2048>}, {pipeline_mode = #tpu.pipeline_mode<synchronous>, transform_indices = @transform_13, window_bounds = array<i64: 1, 2048>}, {pipeline_mode = #tpu.pipeline_mode<synchronous>, transform_indices = @transform_14, window_bounds = array<i64: 1, 2048>}, {pipeline_mode = #tpu.pipeline_mode<synchronous>, transform_indices = @transform_15, window_bounds = array<i64: 1, 4>}, {}, {pipeline_mode = #tpu.pipeline_mode<synchronous>, transform_indices = @transform_17, window_bounds = array<i64: 8, 4>}, {pipeline_mode = #tpu.pipeline_mode<synchronous>, transform_indices = @transform_18, window_bounds = array<i64: 8, 4>}]} {
    tpu.enqueue_dma source(%arg17 : memref<512x2048xbf16, #tpu.memory_space<any>>) target(%arg20 : memref<512x2048xbf16, #tpu.memory_space<vmem>>) target_semaphore(%arg21 : memref<!tpu.dma_semaphore, #tpu.memory_space<semaphore_mem>>)
    %c0 = arith.constant 0 : index
    %c0_0 = arith.constant 0 : index
    %0 = vector.load %arg1[%c0, %c0_0] : memref<8x64xf32, #tpu.memory_space<vmem>>, vector<8x64xf32>
    %1 = arith.truncf %0 : vector<8x64xf32> to vector<8x64xbf16>
    %c0_1 = arith.constant 0 : index
    %c0_2 = arith.constant 0 : index
    %2 = vector.load %arg2[%c0_1, %c0_2] : memref<64x1024xbf16, #tpu.memory_space<vmem>>, vector<64x1024xbf16>
    %cst = arith.constant dense<0.000000e+00> : vector<8x1024xf32>
    %3 = tpu.matmul %1, %2, %cst {dimension_numbers = #tpu.dot_dimension_numbers<[1], [0], [0], [1], [0, 0, 1, 1], [], []>} : vector<8x64xbf16>, vector<64x1024xbf16>, vector<8x1024xf32> -> vector<8x1024xf32>
    %c0_3 = arith.constant 0 : index
    %c0_4 = arith.constant 0 : index
    %4 = vector.load %arg3[%c0_3, %c0_4] : memref<1x1024xf32, #tpu.memory_space<vmem>>, vector<1x1024xf32>
    %5 = vector.broadcast %4 : vector<1x1024xf32> to vector<8x1024xf32>
    %6 = arith.addf %3, %5 : vector<8x1024xf32>
    %c0_5 = arith.constant 0 : index
    %c0_6 = arith.constant 0 : index
    %7 = vector.load %arg4[%c0_5, %c0_6] : memref<1x1024xf32, #tpu.memory_space<vmem>>, vector<1x1024xf32>
    %c0_7 = arith.constant 0 : index
    %c0_8 = arith.constant 0 : index
    %8 = vector.load %arg5[%c0_7, %c0_8] : memref<1x1024xf32, #tpu.memory_space<vmem>>, vector<1x1024xf32>
    %cst_9 = arith.constant dense<0.000000e+00> : vector<1024xf32>
    %9 = vector.multi_reduction <add>, %6, %cst_9 [0] : vector<8x1024xf32> to vector<1024xf32>
    %10 = vector.shape_cast %9 : vector<1024xf32> to vector<1x1024xf32>
    %cst_10 = arith.constant 8.000000e+00 : f32
    %11 = vector.broadcast %cst_10 : f32 to vector<1x1024xf32>
    %12 = arith.divf %10, %11 : vector<1x1024xf32>
    %13 = vector.broadcast %12 : vector<1x1024xf32> to vector<8x1024xf32>
    %14 = arith.subf %6, %13 : vector<8x1024xf32>
    %15 = arith.mulf %14, %14 : vector<8x1024xf32>
    %cst_11 = arith.constant dense<0.000000e+00> : vector<1024xf32>
    %16 = vector.multi_reduction <add>, %15, %cst_11 [0] : vector<8x1024xf32> to vector<1024xf32>
    %17 = vector.shape_cast %16 : vector<1024xf32> to vector<1x1024xf32>
    %cst_12 = arith.constant 8.000000e+00 : f32
    %18 = vector.broadcast %cst_12 : f32 to vector<1x1024xf32>
    %19 = arith.divf %17, %18 : vector<1x1024xf32>
    %20 = vector.broadcast %12 : vector<1x1024xf32> to vector<8x1024xf32>
    %21 = arith.subf %6, %20 : vector<8x1024xf32>
    %cst_13 = arith.constant 8.000000e-01 : f32
    %22 = vector.broadcast %cst_13 : f32 to vector<1x1024xf32>
    %23 = arith.addf %19, %22 : vector<1x1024xf32>
    %24 = math.rsqrt %23 : vector<1x1024xf32>
    %25 = vector.broadcast %24 : vector<1x1024xf32> to vector<8x1024xf32>
    %26 = arith.mulf %21, %25 : vector<8x1024xf32>
    %27 = vector.broadcast %7 : vector<1x1024xf32> to vector<8x1024xf32>
    %28 = arith.mulf %26, %27 : vector<8x1024xf32>
    %29 = vector.broadcast %8 : vector<1x1024xf32> to vector<8x1024xf32>
    %30 = arith.addf %28, %29 : vector<8x1024xf32>
    %cst_14 = arith.constant 0.000000e+00 : f32
    %31 = vector.broadcast %cst_14 : f32 to vector<8x1024xf32>
    %32 = arith.cmpf oge, %30, %31 : vector<8x1024xf32>
    %cst_15 = arith.constant 0.00999999977 : f32
    %33 = vector.broadcast %cst_15 : f32 to vector<8x1024xf32>
    %34 = arith.mulf %33, %30 : vector<8x1024xf32>
    %35 = arith.select %32, %30, %34 : vector<8x1024xi1>, vector<8x1024xf32>
    %36 = arith.truncf %35 : vector<8x1024xf32> to vector<8x1024xbf16>
    %c0_16 = arith.constant 0 : index
    %c0_17 = arith.constant 0 : index
    %37 = vector.load %arg6[%c0_16, %c0_17] : memref<1024x512xbf16, #tpu.memory_space<vmem>>, vector<1024x512xbf16>
    %cst_18 = arith.constant dense<0.000000e+00> : vector<8x512xf32>
    %38 = tpu.matmul %36, %37, %cst_18 {dimension_numbers = #tpu.dot_dimension_numbers<[1], [0], [0], [1], [0, 0, 1, 1], [], []>} : vector<8x1024xbf16>, vector<1024x512xbf16>, vector<8x512xf32> -> vector<8x512xf32>
    %c0_19 = arith.constant 0 : index
    %c0_20 = arith.constant 0 : index
    %39 = vector.load %arg7[%c0_19, %c0_20] : memref<1x512xf32, #tpu.memory_space<vmem>>, vector<1x512xf32>
    %40 = vector.broadcast %39 : vector<1x512xf32> to vector<8x512xf32>
    %41 = arith.addf %38, %40 : vector<8x512xf32>
    %c0_21 = arith.constant 0 : index
    %c0_22 = arith.constant 0 : index
    %42 = vector.load %arg8[%c0_21, %c0_22] : memref<1x512xf32, #tpu.memory_space<vmem>>, vector<1x512xf32>
    %c0_23 = arith.constant 0 : index
    %c0_24 = arith.constant 0 : index
    %43 = vector.load %arg9[%c0_23, %c0_24] : memref<1x512xf32, #tpu.memory_space<vmem>>, vector<1x512xf32>
    %cst_25 = arith.constant dense<0.000000e+00> : vector<512xf32>
    %44 = vector.multi_reduction <add>, %41, %cst_25 [0] : vector<8x512xf32> to vector<512xf32>
    %45 = vector.shape_cast %44 : vector<512xf32> to vector<1x512xf32>
    %cst_26 = arith.constant 8.000000e+00 : f32
    %46 = vector.broadcast %cst_26 : f32 to vector<1x512xf32>
    %47 = arith.divf %45, %46 : vector<1x512xf32>
    %48 = vector.broadcast %47 : vector<1x512xf32> to vector<8x512xf32>
    %49 = arith.subf %41, %48 : vector<8x512xf32>
    %50 = arith.mulf %49, %49 : vector<8x512xf32>
    %cst_27 = arith.constant dense<0.000000e+00> : vector<512xf32>
    %51 = vector.multi_reduction <add>, %50, %cst_27 [0] : vector<8x512xf32> to vector<512xf32>
    %52 = vector.shape_cast %51 : vector<512xf32> to vector<1x512xf32>
    %cst_28 = arith.constant 8.000000e+00 : f32
    %53 = vector.broadcast %cst_28 : f32 to vector<1x512xf32>
    %54 = arith.divf %52, %53 : vector<1x512xf32>
    %55 = vector.broadcast %47 : vector<1x512xf32> to vector<8x512xf32>
    %56 = arith.subf %41, %55 : vector<8x512xf32>
    %cst_29 = arith.constant 9.99999974E-6 : f32
    %57 = vector.broadcast %cst_29 : f32 to vector<1x512xf32>
    %58 = arith.addf %54, %57 : vector<1x512xf32>
    %59 = math.rsqrt %58 : vector<1x512xf32>
    %60 = vector.broadcast %59 : vector<1x512xf32> to vector<8x512xf32>
    %61 = arith.mulf %56, %60 : vector<8x512xf32>
    %62 = vector.broadcast %42 : vector<1x512xf32> to vector<8x512xf32>
    %63 = arith.mulf %61, %62 : vector<8x512xf32>
    %64 = vector.broadcast %43 : vector<1x512xf32> to vector<8x512xf32>
    %65 = arith.addf %63, %64 : vector<8x512xf32>
    %cst_30 = arith.constant 0.000000e+00 : f32
    %66 = vector.broadcast %cst_30 : f32 to vector<8x512xf32>
    %67 = arith.cmpf oge, %65, %66 : vector<8x512xf32>
    %cst_31 = arith.constant 0.00999999977 : f32
    %68 = vector.broadcast %cst_31 : f32 to vector<8x512xf32>
    %69 = arith.mulf %68, %65 : vector<8x512xf32>
    %70 = arith.select %67, %65, %69 : vector<8x512xi1>, vector<8x512xf32>
    %c0_32 = arith.constant 0 : index
    %c0_33 = arith.constant 0 : index
    %71 = vector.load %arg10[%c0_32, %c0_33] : memref<512x4xf32, #tpu.memory_space<vmem>>, vector<512x4xf32>
    %cst_34 = arith.constant dense<0.000000e+00> : vector<8x4xf32>
    %72 = tpu.matmul %70, %71, %cst_34 {dimension_numbers = #tpu.dot_dimension_numbers<[1], [0], [0], [1], [0, 0, 1, 1], [], []>} : vector<8x512xf32>, vector<512x4xf32>, vector<8x4xf32> -> vector<8x4xf32>
    %c0_35 = arith.constant 0 : index
    %c0_36 = arith.constant 0 : index
    %73 = vector.load %arg11[%c0_35, %c0_36] : memref<1x4xf32, #tpu.memory_space<vmem>>, vector<1x4xf32>
    %74 = vector.broadcast %73 : vector<1x4xf32> to vector<8x4xf32>
    %75 = arith.addf %72, %74 : vector<8x4xf32>
    %c0_37 = arith.constant 0 : index
    %c0_38 = arith.constant 0 : index
    %76 = vector.load %arg18[%c0_37, %c0_38] : memref<8x4xf32, #tpu.memory_space<vmem>>, vector<8x4xf32>
    tpu.vector_store %arg18[%c0_37, %c0_38], %75 {strides = array<i32>} : memref<8x4xf32, #tpu.memory_space<vmem>>, vector<8x4xf32>,
    %cst_39 = arith.constant dense<0xFF800000> : vector<8xf32>
    %77 = vector.multi_reduction <maximumf>, %75, %cst_39 [1] : vector<8x4xf32> to vector<8xf32>
    %78 = vector.shape_cast %77 : vector<8xf32> to vector<8x1xf32>
    %79 = vector.broadcast %78 : vector<8x1xf32> to vector<8x4xf32>
    %80 = arith.subf %75, %79 : vector<8x4xf32>
    %81 = math.exp %80 : vector<8x4xf32>
    %cst_40 = arith.constant dense<0.000000e+00> : vector<8xf32>
    %82 = vector.multi_reduction <add>, %81, %cst_40 [1] : vector<8x4xf32> to vector<8xf32>
    %83 = vector.shape_cast %82 : vector<8xf32> to vector<8x1xf32>
    %84 = vector.broadcast %83 : vector<8x1xf32> to vector<8x4xf32>
    %85 = arith.divf %81, %84 : vector<8x4xf32>
    tpu.wait_dma2 semaphore(%arg21 : memref<!tpu.dma_semaphore, #tpu.memory_space<semaphore_mem>>) src(%arg17 : memref<512x2048xbf16, #tpu.memory_space<any>>) dst(%arg20 : memref<512x2048xbf16, #tpu.memory_space<vmem>>)
    %86 = arith.truncf %70 : vector<8x512xf32> to vector<8x512xbf16>
    %c0_41 = arith.constant 0 : index
    %c0_42 = arith.constant 0 : index
    %87 = vector.load %arg20[%c0_41, %c0_42] : memref<512x2048xbf16, #tpu.memory_space<vmem>>, vector<512x2048xbf16>
    %cst_43 = arith.constant dense<0.000000e+00> : vector<8x2048xf32>
    %88 = tpu.matmul %86, %87, %cst_43 {dimension_numbers = #tpu.dot_dimension_numbers<[1], [0], [0], [1], [0, 0, 1, 1], [], []>} : vector<8x512xbf16>, vector<512x2048xbf16>, vector<8x2048xf32> -> vector<8x2048xf32>
    %89 = tpu.iota {dimensions = array<i32: 1>} : vector<8x2048xi32>
    %cst_44 = arith.constant 0.000000e+00 : f32
    %90 = vector.broadcast %cst_44 : f32 to vector<8x2048xf32>
    %c0_i32 = arith.constant 0 : i32
    %91 = vector.broadcast %c0_i32 : i32 to vector<8x2048xi32>
    %92 = arith.cmpi sge, %89, %91 : vector<8x2048xi32>
    %c512_i32 = arith.constant 512 : i32
    %93 = vector.broadcast %c512_i32 : i32 to vector<8x2048xi32>
    %94 = arith.cmpi slt, %89, %93 : vector<8x2048xi32>
    %95 = arith.andi %92, %94 : vector<8x2048xi1>
    %96 = vector.extract_strided_slice %85 {offsets = [0, 0], sizes = [8, 1], strides = [1, 1]} : vector<8x4xf32> to vector<8x1xf32>
    %cst_45 = arith.constant 0.000000e+00 : f32
    %97 = vector.shape_cast %96 : vector<8x1xf32> to vector<8x1xf32>
    %98 = vector.broadcast %97 : vector<8x1xf32> to vector<8x2048xf32>
    %99 = vector.broadcast %cst_45 : f32 to vector<8x2048xf32>
    %100 = arith.select %95, %98, %99 : vector<8x2048xi1>, vector<8x2048xf32>
    %101 = arith.addf %90, %100 : vector<8x2048xf32>
    %c512_i32_46 = arith.constant 512 : i32
    %102 = vector.broadcast %c512_i32_46 : i32 to vector<8x2048xi32>
    %103 = arith.cmpi sge, %89, %102 : vector<8x2048xi32>
    %c1024_i32 = arith.constant 1024 : i32
    %104 = vector.broadcast %c1024_i32 : i32 to vector<8x2048xi32>
    %105 = arith.cmpi slt, %89, %104 : vector<8x2048xi32>
    %106 = arith.andi %103, %105 : vector<8x2048xi1>
    %107 = vector.extract_strided_slice %85 {offsets = [0, 1], sizes = [8, 1], strides = [1, 1]} : vector<8x4xf32> to vector<8x1xf32>
    %cst_47 = arith.constant 0.000000e+00 : f32
    %108 = vector.shape_cast %107 : vector<8x1xf32> to vector<8x1xf32>
    %109 = vector.broadcast %108 : vector<8x1xf32> to vector<8x2048xf32>
    %110 = vector.broadcast %cst_47 : f32 to vector<8x2048xf32>
    %111 = arith.select %106, %109, %110 : vector<8x2048xi1>, vector<8x2048xf32>
    %112 = arith.addf %101, %111 : vector<8x2048xf32>
    %c1024_i32_48 = arith.constant 1024 : i32
    %113 = vector.broadcast %c1024_i32_48 : i32 to vector<8x2048xi32>
    %114 = arith.cmpi sge, %89, %113 : vector<8x2048xi32>
    %c1536_i32 = arith.constant 1536 : i32
    %115 = vector.broadcast %c1536_i32 : i32 to vector<8x2048xi32>
    %116 = arith.cmpi slt, %89, %115 : vector<8x2048xi32>
    %117 = arith.andi %114, %116 : vector<8x2048xi1>
    %118 = vector.extract_strided_slice %85 {offsets = [0, 2], sizes = [8, 1], strides = [1, 1]} : vector<8x4xf32> to vector<8x1xf32>
    %cst_49 = arith.constant 0.000000e+00 : f32
    %119 = vector.shape_cast %118 : vector<8x1xf32> to vector<8x1xf32>
    %120 = vector.broadcast %119 : vector<8x1xf32> to vector<8x2048xf32>
    %121 = vector.broadcast %cst_49 : f32 to vector<8x2048xf32>
    %122 = arith.select %117, %120, %121 : vector<8x2048xi1>, vector<8x2048xf32>
    %123 = arith.addf %112, %122 : vector<8x2048xf32>
    %c1536_i32_50 = arith.constant 1536 : i32
    %124 = vector.broadcast %c1536_i32_50 : i32 to vector<8x2048xi32>
    %125 = arith.cmpi sge, %89, %124 : vector<8x2048xi32>
    %c2048_i32 = arith.constant 2048 : i32
    %126 = vector.broadcast %c2048_i32 : i32 to vector<8x2048xi32>
    %127 = arith.cmpi slt, %89, %126 : vector<8x2048xi32>
    %128 = arith.andi %125, %127 : vector<8x2048xi1>
    %129 = vector.extract_strided_slice %85 {offsets = [0, 3], sizes = [8, 1], strides = [1, 1]} : vector<8x4xf32> to vector<8x1xf32>
    %cst_51 = arith.constant 0.000000e+00 : f32
    %130 = vector.shape_cast %129 : vector<8x1xf32> to vector<8x1xf32>
    %131 = vector.broadcast %130 : vector<8x1xf32> to vector<8x2048xf32>
    %132 = vector.broadcast %cst_51 : f32 to vector<8x2048xf32>
    %133 = arith.select %128, %131, %132 : vector<8x2048xi1>, vector<8x2048xf32>
    %134 = arith.addf %123, %133 : vector<8x2048xf32>
    %135 = arith.mulf %134, %88 : vector<8x2048xf32>
    %c0_52 = arith.constant 0 : index
    %c0_53 = arith.constant 0 : index
    %136 = vector.load %arg12[%c0_52, %c0_53] : memref<1x2048xf32, #tpu.memory_space<vmem>>, vector<1x2048xf32>
    %137 = vector.broadcast %136 : vector<1x2048xf32> to vector<8x2048xf32>
    %138 = arith.addf %135, %137 : vector<8x2048xf32>
    %c0_54 = arith.constant 0 : index
    %c0_55 = arith.constant 0 : index
    %139 = vector.load %arg13[%c0_54, %c0_55] : memref<1x2048xf32, #tpu.memory_space<vmem>>, vector<1x2048xf32>
    %c0_56 = arith.constant 0 : index
    %c0_57 = arith.constant 0 : index
    %140 = vector.load %arg14[%c0_56, %c0_57] : memref<1x2048xf32, #tpu.memory_space<vmem>>, vector<1x2048xf32>
    %cst_58 = arith.constant dense<0.000000e+00> : vector<2048xf32>
    %141 = vector.multi_reduction <add>, %138, %cst_58 [0] : vector<8x2048xf32> to vector<2048xf32>
    %142 = vector.shape_cast %141 : vector<2048xf32> to vector<1x2048xf32>
    %cst_59 = arith.constant 8.000000e+00 : f32
    %143 = vector.broadcast %cst_59 : f32 to vector<1x2048xf32>
    %144 = arith.divf %142, %143 : vector<1x2048xf32>
    %145 = vector.broadcast %144 : vector<1x2048xf32> to vector<8x2048xf32>
    %146 = arith.subf %138, %145 : vector<8x2048xf32>
    %147 = arith.mulf %146, %146 : vector<8x2048xf32>
    %cst_60 = arith.constant dense<0.000000e+00> : vector<2048xf32>
    %148 = vector.multi_reduction <add>, %147, %cst_60 [0] : vector<8x2048xf32> to vector<2048xf32>
    %149 = vector.shape_cast %148 : vector<2048xf32> to vector<1x2048xf32>
    %cst_61 = arith.constant 8.000000e+00 : f32
    %150 = vector.broadcast %cst_61 : f32 to vector<1x2048xf32>
    %151 = arith.divf %149, %150 : vector<1x2048xf32>
    %152 = vector.broadcast %144 : vector<1x2048xf32> to vector<8x2048xf32>
    %153 = arith.subf %138, %152 : vector<8x2048xf32>
    %cst_62 = arith.constant 9.99999974E-6 : f32
    %154 = vector.broadcast %cst_62 : f32 to vector<1x2048xf32>
    %155 = arith.addf %151, %154 : vector<1x2048xf32>
    %156 = math.rsqrt %155 : vector<1x2048xf32>
    %157 = vector.broadcast %156 : vector<1x2048xf32> to vector<8x2048xf32>
    %158 = arith.mulf %153, %157 : vector<8x2048xf32>
    %159 = vector.broadcast %139 : vector<1x2048xf32> to vector<8x2048xf32>
    %160 = arith.mulf %158, %159 : vector<8x2048xf32>
    %161 = vector.broadcast %140 : vector<1x2048xf32> to vector<8x2048xf32>
    %162 = arith.addf %160, %161 : vector<8x2048xf32>
    %cst_63 = arith.constant 0.000000e+00 : f32
    %163 = vector.broadcast %cst_63 : f32 to vector<8x2048xf32>
    %164 = arith.cmpf oge, %162, %163 : vector<8x2048xf32>
    %cst_64 = arith.constant 2.000000e-01 : f32
    %165 = vector.broadcast %cst_64 : f32 to vector<8x2048xf32>
    %166 = arith.mulf %165, %162 : vector<8x2048xf32>
    %167 = arith.select %164, %162, %166 : vector<8x2048xi1>, vector<8x2048xf32>
    %c0_65 = arith.constant 0 : index
    %c0_66 = arith.constant 0 : index
    %168 = vector.load %arg15[%c0_65, %c0_66] : memref<1x2048xf32, #tpu.memory_space<vmem>>, vector<1x2048xf32>
    %169 = vector.broadcast %168 : vector<1x2048xf32> to vector<8x2048xf32>
    %170 = arith.mulf %167, %169 : vector<8x2048xf32>
    %171 = tpu.iota {dimensions = array<i32: 1>} : vector<8x4xi32>
    %cst_67 = arith.constant 0.000000e+00 : f32
    %172 = vector.broadcast %cst_67 : f32 to vector<8x4xf32>
    %173 = vector.extract_strided_slice %170 {offsets = [0, 0], sizes = [8, 512], strides = [1, 1]} : vector<8x2048xf32> to vector<8x512xf32>
    %cst_68 = arith.constant dense<0.000000e+00> : vector<8xf32>
    %174 = vector.multi_reduction <add>, %173, %cst_68 [1] : vector<8x512xf32> to vector<8xf32>
    %175 = vector.shape_cast %174 : vector<8xf32> to vector<8x1xf32>
    %c0_i32_69 = arith.constant 0 : i32
    %176 = vector.broadcast %c0_i32_69 : i32 to vector<8x4xi32>
    %177 = arith.cmpi eq, %171, %176 : vector<8x4xi32>
    %cst_70 = arith.constant 0.000000e+00 : f32
    %178 = vector.shape_cast %175 : vector<8x1xf32> to vector<8x1xf32>
    %179 = vector.broadcast %178 : vector<8x1xf32> to vector<8x4xf32>
    %180 = vector.broadcast %cst_70 : f32 to vector<8x4xf32>
    %181 = arith.select %177, %179, %180 : vector<8x4xi1>, vector<8x4xf32>
    %182 = arith.addf %172, %181 : vector<8x4xf32>
    %183 = vector.extract_strided_slice %170 {offsets = [0, 512], sizes = [8, 512], strides = [1, 1]} : vector<8x2048xf32> to vector<8x512xf32>
    %cst_71 = arith.constant dense<0.000000e+00> : vector<8xf32>
    %184 = vector.multi_reduction <add>, %183, %cst_71 [1] : vector<8x512xf32> to vector<8xf32>
    %185 = vector.shape_cast %184 : vector<8xf32> to vector<8x1xf32>
    %c1_i32 = arith.constant 1 : i32
    %186 = vector.broadcast %c1_i32 : i32 to vector<8x4xi32>
    %187 = arith.cmpi eq, %171, %186 : vector<8x4xi32>
    %cst_72 = arith.constant 0.000000e+00 : f32
    %188 = vector.shape_cast %185 : vector<8x1xf32> to vector<8x1xf32>
    %189 = vector.broadcast %188 : vector<8x1xf32> to vector<8x4xf32>
    %190 = vector.broadcast %cst_72 : f32 to vector<8x4xf32>
    %191 = arith.select %187, %189, %190 : vector<8x4xi1>, vector<8x4xf32>
    %192 = arith.addf %182, %191 : vector<8x4xf32>
    %193 = vector.extract_strided_slice %170 {offsets = [0, 1024], sizes = [8, 512], strides = [1, 1]} : vector<8x2048xf32> to vector<8x512xf32>
    %cst_73 = arith.constant dense<0.000000e+00> : vector<8xf32>
    %194 = vector.multi_reduction <add>, %193, %cst_73 [1] : vector<8x512xf32> to vector<8xf32>
    %195 = vector.shape_cast %194 : vector<8xf32> to vector<8x1xf32>
    %c2_i32 = arith.constant 2 : i32
    %196 = vector.broadcast %c2_i32 : i32 to vector<8x4xi32>
    %197 = arith.cmpi eq, %171, %196 : vector<8x4xi32>
    %cst_74 = arith.constant 0.000000e+00 : f32
    %198 = vector.shape_cast %195 : vector<8x1xf32> to vector<8x1xf32>
    %199 = vector.broadcast %198 : vector<8x1xf32> to vector<8x4xf32>
    %200 = vector.broadcast %cst_74 : f32 to vector<8x4xf32>
    %201 = arith.select %197, %199, %200 : vector<8x4xi1>, vector<8x4xf32>
    %202 = arith.addf %192, %201 : vector<8x4xf32>
    %203 = vector.extract_strided_slice %170 {offsets = [0, 1536], sizes = [8, 512], strides = [1, 1]} : vector<8x2048xf32> to vector<8x512xf32>
    %cst_75 = arith.constant dense<0.000000e+00> : vector<8xf32>
    %204 = vector.multi_reduction <add>, %203, %cst_75 [1] : vector<8x512xf32> to vector<8xf32>
    %205 = vector.shape_cast %204 : vector<8xf32> to vector<8x1xf32>
    %c3_i32 = arith.constant 3 : i32
    %206 = vector.broadcast %c3_i32 : i32 to vector<8x4xi32>
    %207 = arith.cmpi eq, %171, %206 : vector<8x4xi32>
    %cst_76 = arith.constant 0.000000e+00 : f32
    %208 = vector.shape_cast %205 : vector<8x1xf32> to vector<8x1xf32>
    %209 = vector.broadcast %208 : vector<8x1xf32> to vector<8x4xf32>
    %210 = vector.broadcast %cst_76 : f32 to vector<8x4xf32>
    %211 = arith.select %207, %209, %210 : vector<8x4xi1>, vector<8x4xf32>
    %212 = arith.addf %202, %211 : vector<8x4xf32>
    %c0_77 = arith.constant 0 : index
    %c0_78 = arith.constant 0 : index
    %213 = vector.load %arg16[%c0_77, %c0_78] : memref<1x4xf32, #tpu.memory_space<vmem>>, vector<1x4xf32>
    %214 = vector.broadcast %213 : vector<1x4xf32> to vector<8x4xf32>
    %215 = arith.addf %212, %214 : vector<8x4xf32>
    %c0_79 = arith.constant 0 : index
    %c0_80 = arith.constant 0 : index
    %216 = vector.load %arg19[%c0_79, %c0_80] : memref<8x4xf32, #tpu.memory_space<vmem>>, vector<8x4xf32>
    tpu.vector_store %arg19[%c0_79, %c0_80], %215 {strides = array<i32>} : memref<8x4xf32, #tpu.memory_space<vmem>>, vector<8x4xf32>,
    return
  }
  func.func @transform_0(%arg0: i32) -> (i32, i32) {
    %c0_i32 = arith.constant 0 : i32
    %c0_i32_0 = arith.constant 0 : i32
    %c0_i32_1 = arith.constant 0 : i32
    return %c0_i32, %c0_i32_0 : i32, i32
  }
  func.func @transform_1(%arg0: i32) -> (i32, i32) {
    %c0_i32 = arith.constant 0 : i32
    %c0_i32_0 = arith.constant 0 : i32
    %c0_i32_1 = arith.constant 0 : i32
    return %c0_i32, %c0_i32_0 : i32, i32
  }
  func.func @transform_2(%arg0: i32) -> (i32, i32) {
    %c0_i32 = arith.constant 0 : i32
    %c0_i32_0 = arith.constant 0 : i32
    %c0_i32_1 = arith.constant 0 : i32
    return %c0_i32, %c0_i32_0 : i32, i32
  }
  func.func @transform_3(%arg0: i32) -> (i32, i32) {
    %c0_i32 = arith.constant 0 : i32
    %c0_i32_0 = arith.constant 0 : i32
    %c0_i32_1 = arith.constant 0 : i32
    return %c0_i32, %c0_i32_0 : i32, i32
  }
  func.func @transform_4(%arg0: i32) -> (i32, i32) {
    %c0_i32 = arith.constant 0 : i32
    %c0_i32_0 = arith.constant 0 : i32
    %c0_i32_1 = arith.constant 0 : i32
    return %c0_i32, %c0_i32_0 : i32, i32
  }
  func.func @transform_5(%arg0: i32) -> (i32, i32) {
    %c0_i32 = arith.constant 0 : i32
    %c0_i32_0 = arith.constant 0 : i32
    %c0_i32_1 = arith.constant 0 : i32
    return %c0_i32, %c0_i32_0 : i32, i32
  }
  func.func @transform_6(%arg0: i32) -> (i32, i32) {
    %c0_i32 = arith.constant 0 : i32
    %c0_i32_0 = arith.constant 0 : i32
    %c0_i32_1 = arith.constant 0 : i32
    return %c0_i32, %c0_i32_0 : i32, i32
  }
  func.func @transform_7(%arg0: i32) -> (i32, i32) {
    %c0_i32 = arith.constant 0 : i32
    %c0_i32_0 = arith.constant 0 : i32
    %c0_i32_1 = arith.constant 0 : i32
    return %c0_i32, %c0_i32_0 : i32, i32
  }
  func.func @transform_8(%arg0: i32) -> (i32, i32) {
    %c0_i32 = arith.constant 0 : i32
    %c0_i32_0 = arith.constant 0 : i32
    %c0_i32_1 = arith.constant 0 : i32
    return %c0_i32, %c0_i32_0 : i32, i32
  }
  func.func @transform_9(%arg0: i32) -> (i32, i32) {
    %c0_i32 = arith.constant 0 : i32
    %c0_i32_0 = arith.constant 0 : i32
    %c0_i32_1 = arith.constant 0 : i32
    return %c0_i32, %c0_i32_0 : i32, i32
  }
  func.func @transform_10(%arg0: i32) -> (i32, i32) {
    %c0_i32 = arith.constant 0 : i32
    %c0_i32_0 = arith.constant 0 : i32
    %c0_i32_1 = arith.constant 0 : i32
    return %c0_i32, %c0_i32_0 : i32, i32
  }
  func.func @transform_11(%arg0: i32) -> (i32, i32) {
    %c0_i32 = arith.constant 0 : i32
    %c0_i32_0 = arith.constant 0 : i32
    %c0_i32_1 = arith.constant 0 : i32
    return %c0_i32, %c0_i32_0 : i32, i32
  }
  func.func @transform_12(%arg0: i32) -> (i32, i32) {
    %c0_i32 = arith.constant 0 : i32
    %c0_i32_0 = arith.constant 0 : i32
    %c0_i32_1 = arith.constant 0 : i32
    return %c0_i32, %c0_i32_0 : i32, i32
  }
  func.func @transform_13(%arg0: i32) -> (i32, i32) {
    %c0_i32 = arith.constant 0 : i32
    %c0_i32_0 = arith.constant 0 : i32
    %c0_i32_1 = arith.constant 0 : i32
    return %c0_i32, %c0_i32_0 : i32, i32
  }
  func.func @transform_14(%arg0: i32) -> (i32, i32) {
    %c0_i32 = arith.constant 0 : i32
    %c0_i32_0 = arith.constant 0 : i32
    %c0_i32_1 = arith.constant 0 : i32
    return %c0_i32, %c0_i32_0 : i32, i32
  }
  func.func @transform_15(%arg0: i32) -> (i32, i32) {
    %c0_i32 = arith.constant 0 : i32
    %c0_i32_0 = arith.constant 0 : i32
    %c0_i32_1 = arith.constant 0 : i32
    return %c0_i32, %c0_i32_0 : i32, i32
  }
  func.func @transform_17(%arg0: i32) -> (i32, i32) {
    %c0_i32 = arith.constant 0 : i32
    %c0_i32_0 = arith.constant 0 : i32
    %c0_i32_1 = arith.constant 0 : i32
    return %c0_i32, %c0_i32_0 : i32, i32
  }
  func.func @transform_18(%arg0: i32) -> (i32, i32) {
    %c0_i32 = arith.constant 0 : i32
    %c0_i32_0 = arith.constant 0 : i32
    %c0_i32_1 = arith.constant 0 : i32
    return %c0_i32, %c0_i32_0 : i32, i32
  }
}

</mosaic_0001>

<bundles_post_ra>
// kernel: tpu_custom_call.1
= control target key start
LH: loop header
LB: loop body
LE: loop exit
PB: predicated region body
PF: predicated region fallthrough
CT: control target
= control target key end

     0   :  { %s14217_s0 = inlined_call_operand.hbm [shape: f32[8,64], index: 0, kind: input, shape index: {}]   ;;  %s14218_s1 = inlined_call_operand.hbm [shape: bf16[64,1024], index: 1, kind: input, shape index: {}]   ;;  %s14219_s2 = inlined_call_operand.hbm [shape: f32[1,1024], index: 2, kind: input, shape index: {}]   ;;  %s14220_s3 = inlined_call_operand.hbm [shape: f32[1,1024], index: 3, kind: input, shape index: {}]   ;;  %s14221_s4 = inlined_call_operand.hbm [shape: f32[1,1024], index: 4, kind: input, shape index: {}]   ;;  %s14222_s5 = inlined_call_operand.hbm [shape: bf16[1024,512], index: 5, kind: input, shape index: {}]   ;;  %s14223_s6 = inlined_call_operand.hbm [shape: f32[1,512], index: 6, kind: input, shape index: {}]   ;;  %s14224_s7 = inlined_call_operand.hbm [shape: f32[1,512], index: 7, kind: input, shape index: {}]   ;;  %s14225_s8 = inlined_call_operand.hbm [shape: f32[1,512], index: 8, kind: input, shape index: {}]   ;;  %s14226_s9 = inlined_call_operand.vmem [shape: f32[512,4], index: 9, kind: input, shape index: {}]   ;;  %s14227_s10 = inlined_call_operand.hbm [shape: f32[1,4], index: 10, kind: input, shape index: {}]   ;;  %s14228_s11 = inlined_call_operand.hbm [shape: f32[1,2048], index: 11, kind: input, shape index: {}]   ;;  %s14229_s12 = inlined_call_operand.hbm [shape: f32[1,2048], index: 12, kind: input, shape index: {}]   ;;  %s14230_s13 = inlined_call_operand.hbm [shape: f32[1,2048], index: 13, kind: input, shape index: {}]   ;;  %s14231_s14 = inlined_call_operand.hbm [shape: f32[1,2048], index: 14, kind: input, shape index: {}]   ;;  %s14232_s15 = inlined_call_operand.hbm [shape: f32[1,4], index: 15, kind: input, shape index: {}]   ;;  %s14233_s16 = inlined_call_operand.hbm [shape: bf16[512,2048], index: 16, kind: input, shape index: {}]   ;;  %s14234_s17 = inlined_call_operand.vmem [shape: f32[8,4], index: 17, kind: output, shape index: {0}]   ;;  %s14235_s18 = inlined_call_operand.vmem [shape: f32[8,4], index: 18, kind: output, shape index: {1}]  }
   0x1   :  { %14236 = sst [smem:[#allocation40_spill]] %s14217_s0 }
   0x2   :  { %14237 = sst [smem:[#allocation41_spill]] %s14218_s1 }
   0x3   :  { %14238 = sst [smem:[#allocation42_spill]] %s14219_s2 }
   0x4   :  { %14239 = sst [smem:[#allocation43_spill]] %s14235_s18 }
   0x5   :  { %24 = vsyncpa [#allocation5], 0 }
   0x6   :  { %25 = vsyncpa [#allocation7], 0 }
   0x7   :  { %26 = vsyncpa [#allocation10], 0 }
   0x8   :  { %27 = vsyncpa [#allocation13], 0 }
   0x9   :  { %28 = vsyncpa [#allocation16], 0 }
   0xa   :  { %29 = vsyncpa [#allocation19], 0 }
   0xb   :  { %30 = vsyncpa [#allocation22], 0  ;;  %s14240_s29 = sld [smem:[#allocation41_spill]] }
  0x11   :  { %s47_s30 = sshll.u32 %s14240_s29, 4  ;;  %s48_s30 = int_to_ptr.hbm [resolvable:$true] %s47_s30 }
  0x12   :  { %31 = vsyncpa [#allocation25], 0  ;;  %s12756_s0 = smov [#allocation6]   ;;  %s72_s21 = sshll.u32 %s14220_s3, 4  ;;  %s73_s21 = int_to_ptr.hbm [resolvable:$true] %s72_s21 }
  0x13   :  { %s49_s19 = sshll.u32 %s12756_s0, 4  ;;  %s12757_s22 = smov 512   ;;  %s50_s19 = int_to_ptr.vmem [resolvable:$true] %s49_s19 }
  0x14   :  { %s12758_s2 = smov 32   ;;  %s12759_s23 = smov [#allocation9]  }
  0x15   :  { %55 = dma.hbm_to_vmem [thread:$0]  %s48_s30, 4096, %s50_s19, [#allocation7], %s12757_s22, %s12757_s22, %s12758_s2  }
  0x16   :  { %s74_s24 = sshll.u32 %s12759_s23, 4  ;;  %s93_s27 = sshll.u32 %s14222_s5, 4  ;;  %s75_s24 = int_to_ptr.vmem [resolvable:$true] %s74_s24  ;;  %s94_s27 = int_to_ptr.hbm [resolvable:$true] %s93_s27 }
  0x17   :  { %77 = dma.hbm_to_vmem [thread:$0]  %s73_s21, 128, %s75_s24, [#allocation10]  }
  0x18   :  { %s12760_s28 = smov [#allocation12]   ;;  %s118_s3 = sshll.u32 %s14224_s7, 4  ;;  %s119_s3 = int_to_ptr.hbm [resolvable:$true] %s118_s3 }
  0x19   :  { %s95_s29 = sshll.u32 %s12760_s28, 4  ;;  %s12761_s1 = smov 256   ;;  %s96_s29 = int_to_ptr.vmem [resolvable:$true] %s95_s29 }
  0x1a   :  { %s12762_s20 = smov 16   ;;  %s12763_s30 = smov [#allocation15]  }
  0x1b   :  { %101 = dma.hbm_to_vmem [thread:$0]  %s94_s27, 32768, %s96_s29, [#allocation13], %s12761_s1, %s12761_s1, %s12762_s20  }
  0x1c   :  { %s120_s19 = sshll.u32 %s12763_s30, 4  ;;  %s142_s5 = sshll.u32 %s14227_s10, 4  ;;  %s121_s19 = int_to_ptr.vmem [resolvable:$true] %s120_s19  ;;  %s143_s5 = int_to_ptr.hbm [resolvable:$true] %s142_s5 }
  0x1d   :  { %123 = dma.hbm_to_vmem [thread:$0]  %s119_s3, 64, %s121_s19, [#allocation16]  }
  0x1e   :  { %s164_s24 = sshll.u32 %s14229_s12, 4  ;;  %s12764_s25 = smov [#allocation18]   ;;  %s165_s24 = int_to_ptr.hbm [resolvable:$true] %s164_s24 }
  0x1f   :  { %s144_s18 = sshll.u32 %s12764_s25, 4  ;;  %s12765_s7 = smov [#allocation21]   ;;  %s145_s18 = int_to_ptr.vmem [resolvable:$true] %s144_s18 }
  0x20   :  { %147 = dma.hbm_to_vmem [thread:$0]  %s143_s5, 16, %s145_s18, [#allocation19]  }
  0x21   :  { %s166_s26 = sshll.u32 %s12765_s7, 4  ;;  %s186_s29 = sshll.u32 %s14231_s14, 4  ;;  %s167_s26 = int_to_ptr.vmem [resolvable:$true] %s166_s26  ;;  %s187_s29 = int_to_ptr.hbm [resolvable:$true] %s186_s29 }
  0x22   :  { %169 = dma.hbm_to_vmem [thread:$0]  %s165_s24, 256, %s167_s26, [#allocation22]  }
  0x23   :  { %s14241_s3 = sld [smem:[#allocation40_spill]]  ;;  %s12766_s20 = smov [#allocation24]  }
  0x24   :  { %s188_s12 = sshll.u32 %s12766_s20, 4  ;;  %s12767_s30 = smov [#allocation4]   ;;  %s189_s12 = int_to_ptr.vmem [resolvable:$true] %s188_s12 }
  0x25   :  { %191 = dma.hbm_to_vmem [thread:$0]  %s187_s29, 256, %s189_s12, [#allocation25]  }
  0x26   :  { %s39_s19 = sshll.u32 %s12767_s30, 4  ;;  %s14242_s5 = sld [smem:[#allocation42_spill]]  ;;  %s40_s19 = int_to_ptr.vmem [resolvable:$true] %s39_s19 }
  0x27   :  { %s83_s24 = sshll.u32 %s14221_s4, 4  ;;  %s12768_s25 = smov [#allocation8]   ;;  %s84_s24 = int_to_ptr.hbm [resolvable:$true] %s83_s24 }
  0x28   :  { %s63_s18 = sshll.u32 %s12768_s25, 4  ;;  %s12769_s7 = smov [#allocation11]   ;;  %s64_s18 = int_to_ptr.vmem [resolvable:$true] %s63_s18 }
  0x29   :  { %s37_s1 = sshll.u32 %s14241_s3, 4  ;;  %s85_s26 = sshll.u32 %s12769_s7, 4  ;;  %s38_s1 = int_to_ptr.hbm [resolvable:$true] %s37_s1  ;;  %s86_s26 = int_to_ptr.vmem [resolvable:$true] %s85_s26 }
  0x2a   :  { %42 = dma.hbm_to_vmem [thread:$0]  %s38_s1, 128, %s40_s19, [#allocation5]  }
  0x2b   :  { %s107_s29 = sshll.u32 %s14223_s6, 4  ;;  %s129_s3 = sshll.u32 %s14225_s8, 4  ;;  %s108_s29 = int_to_ptr.hbm [resolvable:$true] %s107_s29  ;;  %s130_s3 = int_to_ptr.hbm [resolvable:$true] %s129_s3 }
  0x2c   :  { %s61_s21 = sshll.u32 %s14242_s5, 4  ;;  %s12770_s1 = smov [#allocation14]   ;;  %s62_s21 = int_to_ptr.hbm [resolvable:$true] %s61_s21 }
  0x2d   :  { %66 = dma.hbm_to_vmem [thread:$0]  %s62_s21, 128, %s64_s18, [#allocation7]  }
  0x2e   :  { %88 = dma.hbm_to_vmem [thread:$0]  %s84_s24, 128, %s86_s26, [#allocation10]  }
  0x2f   :  { %s109_s4 = sshll.u32 %s12770_s1, 4  ;;  %s12771_s20 = smov [#allocation17]   ;;  %s110_s4 = int_to_ptr.vmem [resolvable:$true] %s109_s4 }
  0x30   :  { %112 = dma.hbm_to_vmem [thread:$0]  %s108_s29, 64, %s110_s4, [#allocation13]  }
  0x31   :  { %s131_s12 = sshll.u32 %s12771_s20, 4  ;;  %s153_s22 = sshll.u32 %s14228_s11, 4  ;;  %s132_s12 = int_to_ptr.vmem [resolvable:$true] %s131_s12  ;;  %s154_s22 = int_to_ptr.hbm [resolvable:$true] %s153_s22 }
  0x32   :  { %134 = dma.hbm_to_vmem [thread:$0]  %s130_s3, 64, %s132_s12, [#allocation16]  }
  0x33   :  { %s175_s5 = sshll.u32 %s14230_s13, 4  ;;  %s12772_s21 = smov [#allocation20]   ;;  %s176_s5 = int_to_ptr.hbm [resolvable:$true] %s175_s5 }
  0x34   :  { %s155_s8 = sshll.u32 %s12772_s21, 4  ;;  %s12773_s14 = smov [#allocation23]   ;;  %s156_s8 = int_to_ptr.vmem [resolvable:$true] %s155_s8 }
  0x35   :  { %158 = dma.hbm_to_vmem [thread:$0]  %s154_s22, 256, %s156_s8, [#allocation19]  }
  0x36   :  { %s177_s23 = sshll.u32 %s12773_s14, 4  ;;  %s197_s18 = sshll.u32 %s14232_s15, 4  ;;  %s178_s23 = int_to_ptr.vmem [resolvable:$true] %s177_s23  ;;  %s198_s18 = int_to_ptr.hbm [resolvable:$true] %s197_s18 }
  0x37   :  { %180 = dma.hbm_to_vmem [thread:$0]  %s176_s5, 256, %s178_s23, [#allocation22]  }
  0x38   :  { %s12774_s11 = smov [#allocation26]  }
  0x39   :  { %s199_s7 = sshll.u32 %s12774_s11, 4  ;;  %s200_s7 = int_to_ptr.vmem [resolvable:$true] %s199_s7 }
  0x3a   :  { %202 = dma.hbm_to_vmem [thread:$0]  %s198_s18, 16, %s200_s7, [#allocation25]  }
  0x3b   :  { %12738 = dma.done.wait [#allocation5], 128  }
  0x3c   :  { %12739 = vsyncadd [#allocation5], 4294967168 }
  0x3d   :  { %12740 = dma.done.wait [#allocation7], 4224  }
  0x3e   :  { %12741 = vsyncadd [#allocation7], 4294963072 }
  0x3f   :  { %12742 = dma.done.wait [#allocation10], 256  }
  0x40   :  { %12743 = vsyncadd [#allocation10], 4294967040 }
  0x41   :  { %12744 = dma.done.wait [#allocation13], 32832  }
  0x42   :  { %12745 = vsyncadd [#allocation13], 4294934464 }
  0x43   :  { %12746 = dma.done.wait [#allocation16], 128  }
  0x44   :  { %12747 = vsyncadd [#allocation16], 4294967168 }
  0x45   :  { %12748 = dma.done.wait [#allocation19], 272  }
  0x46   :  { %12749 = vsyncadd [#allocation19], 4294967024 }
  0x47   :  { %12750 = dma.done.wait [#allocation22], 512  }
  0x48   :  { %12751 = vsyncadd [#allocation22], 4294966784 }
  0x49   :  { %12752 = dma.done.wait [#allocation25], 272  }
  0x4a   :  { %12753 = vsyncadd [#allocation25], 4294967024  ;;  %v8344_v0 = vld [vmem:[#allocation6 + $0xc0] sm:$0xf]  ;;  %v11479_v2 = vld [vmem:[#allocation6 + $0xc4] sm:$0xf] }
  0x4b   :  { %v11483_v1 = vld [vmem:[#allocation6 + $0xdc] sm:$0xf0]  ;;  %v8346_v4 = vld [vmem:[#allocation6 + $0xe0] sm:$0xf0]  ;;  %v8352_v5 = vld [vmem:[#allocation6 + $0xc8] sm:$0xf] }
  0x4c   :  { %v8345_v3 = vor.u32 %v11483_v1, %v8344_v0  ;;  %v11484_v6 = vld [vmem:[#allocation6 + $0xe4] sm:$0xf0]  ;;  %v8349_v7 = vor.u32 %v11479_v2, %v8346_v4  ;;  %v11480_v9 = vld [vmem:[#allocation6 + $0xcc] sm:$0xf]  ;;  %v8312_v11 = vld [vmem:[#allocation6 + $0x80] sm:$0xf] }
  0x4d   :  { %v8353_v8 = vor.u32 %v11484_v6, %v8352_v5  ;;  %v8354_v10 = vld [vmem:[#allocation6 + $0xe8] sm:$0xf0]  ;;  %v11475_v13 = vld [vmem:[#allocation6 + $0x9c] sm:$0xf0]  ;;  %v11471_v14 = vld [vmem:[#allocation6 + $0x84] sm:$0xf] }
  0x4e   :  { %497 = vmatpush.bf16.msra.mxu0 %v8345_v3  ;;  %v8357_v12 = vor.u32 %v11480_v9, %v8354_v10  ;;  %v8314_v15 = vld [vmem:[#allocation6 + $0xa0] sm:$0xf0]  ;;  %510 = vmatpush.bf16.msra.mxu1 %v8349_v7  ;;  %v8313_v16 = vor.u32 %v11475_v13, %v8312_v11  ;;  %v8320_v18 = vld [vmem:[#allocation6 + $0x88] sm:$0xf]  ;;  %v11472_v20 = vld [vmem:[#allocation6 + $0x8c] sm:$0xf] }
  0x4f   :  { %523 = vmatpush.bf16.msra.mxu2 %v8353_v8  ;;  %v8317_v17 = vor.u32 %v11471_v14, %v8314_v15  ;;  %v11476_v19 = vld [vmem:[#allocation6 + $0xa4] sm:$0xf0]  ;;  %v8322_v22 = vld [vmem:[#allocation6 + $0xa8] sm:$0xf0]  ;;  %v8280_v23 = vld [vmem:[#allocation6 + $0x40] sm:$0xf] }
  0x50   :  { %536 = vmatpush.bf16.msra.mxu3 %v8357_v12  ;;  %v8321_v21 = vor.u32 %v11476_v19, %v8320_v18  ;;  %v11467_v24 = vld [vmem:[#allocation6 + $0x5c] sm:$0xf0]  ;;  %v8325_v25 = vor.u32 %v11472_v20, %v8322_v22  ;;  %v11463_v26 = vld [vmem:[#allocation6 + $0x44] sm:$0xf]  ;;  %v8288_v28 = vld [vmem:[#allocation6 + $0x48] sm:$0xf] }
  0x51   :  { %v8282_v27 = vld [vmem:[#allocation6 + $0x60] sm:$0xf0]  ;;  %v8281_v29 = vor.u32 %v11467_v24, %v8280_v23  ;;  %v11468_v30 = vld [vmem:[#allocation6 + $0x64] sm:$0xf0]  ;;  %v11464_v31 = vld [vmem:[#allocation6 + $0x4c] sm:$0xf] }
  0x52   :  { %498 = vmatpush.bf16.msra.mxu0 %v8313_v16  ;;  %v8290_v32 = vld [vmem:[#allocation6 + $0x68] sm:$0xf0]  ;;  %511 = vmatpush.bf16.msra.mxu1 %v8317_v17  ;;  %v8285_v33 = vor.u32 %v11463_v26, %v8282_v27  ;;  %v8289_v34 = vor.u32 %v11468_v30, %v8288_v28  ;;  %v8248_v35 = vld [vmem:[#allocation6] sm:$0xf]  ;;  %v11455_v37 = vld [vmem:[#allocation6 + $0x4] sm:$0xf] }
  0x53   :  { %524 = vmatpush.bf16.msra.mxu2 %v8321_v21  ;;  %v11459_v36 = vld [vmem:[#allocation6 + $0x1c] sm:$0xf0]  ;;  %v8293_v38 = vor.u32 %v11464_v31, %v8290_v32  ;;  %v8250_v39 = vld [vmem:[#allocation6 + $0x20] sm:$0xf0]  ;;  %v8256_v40 = vld [vmem:[#allocation6 + $0x8] sm:$0xf] }
  0x54   :  { %537 = vmatpush.bf16.msra.mxu3 %v8325_v25  ;;  %v11460_v41 = vld [vmem:[#allocation6 + $0x24] sm:$0xf0]  ;;  %v11456_v42 = vld [vmem:[#allocation6 + $0xc] sm:$0xf]  ;;  %v277_v44 = vld [vmem:[#allocation4] sm:$0xff]  ;;  %v8249_v45 = vor.u32 %v11459_v36, %v8248_v35  ;;  %v8253_v49 = vor.u32 %v11455_v37, %v8250_v39  ;;  %vm489_vm0 = vcmask 523264  }
  0x55   :  { %v8258_v43 = vld [vmem:[#allocation6 + $0x28] sm:$0xf0]  ;;  %v8360_v46 = vld [vmem:[#allocation6 + $0xd0] sm:$0xf]  ;;  %v11481_v48 = vld [vmem:[#allocation6 + $0xd4] sm:$0xf]  ;;  %v8257_v50 = vor.u32 %v11460_v41, %v8256_v40  ;;  %v12921_v57 = vpack.c.bf16 %v277_v44, %v277_v44 }
  0x56   :  { %499 = vmatpush.bf16.msra.mxu0 %v8281_v29  ;;  %v11485_v47 = vld [vmem:[#allocation6 + $0xec] sm:$0xf0]  ;;  %512 = vmatpush.bf16.msra.mxu1 %v8285_v33  ;;  %v8362_v51 = vld [vmem:[#allocation6 + $0xf0] sm:$0xf0]  ;;  %v8261_v52 = vor.u32 %v11456_v42, %v8258_v43  ;;  %v8368_v54 = vld [vmem:[#allocation6 + $0xd8] sm:$0xf] }
  0x57   :  { %525 = vmatpush.bf16.msra.mxu2 %v8289_v34  ;;  %v8361_v53 = vor.u32 %v11485_v47, %v8360_v46  ;;  %v11486_v55 = vld [vmem:[#allocation6 + $0xf4] sm:$0xf0]  ;;  %v11482_v56 = vld [vmem:[#allocation6 + $0xdc] sm:$0xf]  ;;  %v8365_v58 = vor.u32 %v11481_v48, %v8362_v51  ;;  %v8328_v60 = vld [vmem:[#allocation6 + $0x90] sm:$0xf] }
  0x58   :  { %538 = vmatpush.bf16.msra.mxu3 %v8293_v38  ;;  %v8370_v59 = vld [vmem:[#allocation6 + $0xf8] sm:$0xf0]  ;;  %v11477_v61 = vld [vmem:[#allocation6 + $0xac] sm:$0xf0]  ;;  %v11473_v62 = vld [vmem:[#allocation6 + $0x94] sm:$0xf]  ;;  %v8369_v0 = vor.u32 %v11486_v55, %v8368_v54 }
  0x59   :  { %v8330_v63 = vld [vmem:[#allocation6 + $0xb0] sm:$0xf0]  ;;  %v8373_v1 = vor.u32 %v11482_v56, %v8370_v59  ;;  %v8329_v2 = vor.u32 %v11477_v61, %v8328_v60  ;;  %v8336_v3 = vld [vmem:[#allocation6 + $0x98] sm:$0xf]  ;;  %v11474_v5 = vld [vmem:[#allocation6 + $0x9c] sm:$0xf] }
  0x5a   :  { %500 = vmatpush.bf16.msra.mxu0 %v8249_v45  ;;  %513 = vmatpush.bf16.msra.mxu1 %v8253_v49  ;;  %v11478_v4 = vld [vmem:[#allocation6 + $0xb4] sm:$0xf0]  ;;  %v8333_v6 = vor.u32 %v11473_v62, %v8330_v63  ;;  %v8338_v7 = vld [vmem:[#allocation6 + $0xb8] sm:$0xf0]  ;;  %v8296_v8 = vld [vmem:[#allocation6 + $0x50] sm:$0xf] }
  0x5b   :  { %526 = vmatpush.bf16.msra.mxu2 %v8257_v50  ;;  %v11469_v9 = vld [vmem:[#allocation6 + $0x6c] sm:$0xf0]  ;;  %v11465_v10 = vld [vmem:[#allocation6 + $0x54] sm:$0xf]  ;;  %v8337_v12 = vor.u32 %v11478_v4, %v8336_v3  ;;  %v8304_v13 = vld [vmem:[#allocation6 + $0x58] sm:$0xf]  ;;  %v8341_v14 = vor.u32 %v11474_v5, %v8338_v7 }
  0x5c   :  { %539 = vmatpush.bf16.msra.mxu3 %v8261_v52  ;;  %v8298_v11 = vld [vmem:[#allocation6 + $0x70] sm:$0xf0]  ;;  %v8297_v15 = vor.u32 %v11469_v9, %v8296_v8  ;;  %v11470_v16 = vld [vmem:[#allocation6 + $0x74] sm:$0xf0]  ;;  %v11466_v17 = vld [vmem:[#allocation6 + $0x5c] sm:$0xf] }
  0x5d   :  { %8374 = vmatmul.msk.bf16.vlgmr.msra.gmra.mxu0 %vm489_vm0, %v12921_v57  ;;  %8375 = vmatmul.msk.bf16.vlgmr.msra.gmra.mxu1 %vm489_vm0, %v12921_v57  ;;  %v8306_v18 = vld [vmem:[#allocation6 + $0x78] sm:$0xf0]  ;;  %v8301_v19 = vor.u32 %v11465_v10, %v8298_v11  ;;  %v8264_v20 = vld [vmem:[#allocation6 + $0x10] sm:$0xf]  ;;  %v11457_v22 = vld [vmem:[#allocation6 + $0x14] sm:$0xf]  ;;  %v8305_v24 = vor.u32 %v11470_v16, %v8304_v13 }
  0x5e   :  { %549 = vmatpush.bf16.msrb.mxu0 %v8361_v53  ;;  %562 = vmatpush.bf16.msrb.mxu1 %v8365_v58  ;;  %v11461_v21 = vld [vmem:[#allocation6 + $0x2c] sm:$0xf0]  ;;  %v8266_v23 = vld [vmem:[#allocation6 + $0x30] sm:$0xf0]  ;;  %v8309_v25 = vor.u32 %v11466_v17, %v8306_v18  ;;  %v8272_v27 = vld [vmem:[#allocation6 + $0x18] sm:$0xf] }
  0x5f   :  { %8376 = vmatmul.msk.bf16.vlgmr.msra.gmra.mxu2 %vm489_vm0, %v12921_v57  ;;  %8377 = vmatmul.msk.bf16.vlgmr.msra.gmra.mxu3 %vm489_vm0, %v12921_v57  ;;  %v8265_v26 = vor.u32 %v11461_v21, %v8264_v20  ;;  %v11462_v28 = vld [vmem:[#allocation6 + $0x34] sm:$0xf0]  ;;  %v8269_v29 = vor.u32 %v11457_v22, %v8266_v23  ;;  %v11458_v30 = vld [vmem:[#allocation6 + $0x1c] sm:$0xf]  ;;  %v11517_v35 = vld [vmem:[#allocation12 + $0xec] sm:$0xf0] }
  0x60   :  { %575 = vmatpush.bf16.msrb.mxu2 %v8369_v0  ;;  %588 = vmatpush.bf16.msrb.mxu3 %v8373_v1  ;;  %v8274_v31 = vld [vmem:[#allocation6 + $0x38] sm:$0xf0]  ;;  %v8273_v32 = vor.u32 %v11462_v28, %v8272_v27  ;;  %v8496_v34 = vld [vmem:[#allocation12 + $0xe0] sm:$0xf]  ;;  %v11549_v38 = vld [vmem:[#allocation12 + $0x1ec] sm:$0xf0] }
  0x61   :  { %v8277_v33 = vor.u32 %v11458_v30, %v8274_v31  ;;  %v8497_v36 = vor.u32 %v11517_v35, %v8496_v34  ;;  %v8624_v37 = vld [vmem:[#allocation12 + $0x1e0] sm:$0xf]  ;;  %v11513_v41 = vld [vmem:[#allocation12 + $0xcc] sm:$0xf0]  ;;  %v12775_v54 = vmov 8.0   ;;  %v12939_v8 = vld [vmem:[#allocation8] sm:$0xff] }
  0x62   :  { %550 = vmatpush.bf16.msrb.mxu0 %v8329_v2  ;;  %563 = vmatpush.bf16.msrb.mxu1 %v8333_v6  ;;  %v8625_v39 = vor.u32 %v11549_v38, %v8624_v37  ;;  %v8480_v40 = vld [vmem:[#allocation12 + $0xc0] sm:$0xf]  ;;  %v11545_v44 = vld [vmem:[#allocation12 + $0x1cc] sm:$0xf0]  ;;  %12281 = vrcp.f32 %v12775_v54  ;;  %v313_v10 = vperm.slane %v12939_v8, 0  ;;  %v314_v11 = vperm.slane %v12939_v8, 1 }
  0x63   :  { %v8608_v42 = vld [vmem:[#allocation12 + $0x1c0] sm:$0xf]  ;;  %v8481_v43 = vor.u32 %v11513_v41, %v8480_v40  ;;  %v11581_v47 = vld [vmem:[#allocation12 + $0x2ec] sm:$0xf0]  ;;  %v315_v20 = vperm.slane %v12939_v8, 2  ;;  %v316_v22 = vperm.slane %v12939_v8, 3 }
  0x64   :  { %576 = vmatpush.bf16.msrb.mxu2 %v8337_v12  ;;  %589 = vmatpush.bf16.msrb.mxu3 %v8341_v14  ;;  %v8609_v45 = vor.u32 %v11545_v44, %v8608_v42  ;;  %v8752_v46 = vld [vmem:[#allocation12 + $0x2e0] sm:$0xf]  ;;  %v11613_v50 = vld [vmem:[#allocation12 + $0x3ec] sm:$0xf0]  ;;  %s271_s21 = sshll.u32 %s14233_s16, 4  ;;  %s12776_s8 = smov [#allocation2]   ;;  %s272_s21 = int_to_ptr.hbm [resolvable:$true] %s271_s21 }
  0x65   :  { %v8880_v48 = vld [vmem:[#allocation12 + $0x3e0] sm:$0xf]  ;;  %v8753_v49 = vor.u32 %v11581_v47, %v8752_v46  ;;  %v11509_v53 = vld [vmem:[#allocation12 + $0xac] sm:$0xf0]  ;;  %s273_s14 = sshll.u32 %s12776_s8, 4  ;;  %s274_s14 = int_to_ptr.vmem [resolvable:$true] %s273_s14 }
  0x66   :  { %551 = vmatpush.bf16.msrb.mxu0 %v8297_v15  ;;  %564 = vmatpush.bf16.msrb.mxu1 %v8301_v19  ;;  %v8881_v51 = vor.u32 %v11613_v50, %v8880_v48  ;;  %v8464_v52 = vld [vmem:[#allocation12 + $0xa0] sm:$0xf]  ;;  %v11577_v60 = vld [vmem:[#allocation12 + $0x2cc] sm:$0xf0]  ;;  %276 = dma.hbm_to_vmem [thread:$0]  %s272_s21, 65536, %s274_s14, [#allocation3] }
  0x67   :  { %v8465_v55 = vor.u32 %v11509_v53, %v8464_v52  ;;  %v8592_v56 = vld [vmem:[#allocation12 + $0x1a0] sm:$0xf]  ;;  %v11609_v63 = vld [vmem:[#allocation12 + $0x3cc] sm:$0xf0] }
  0x68   :  { %577 = vmatpush.bf16.msrb.mxu2 %v8305_v24  ;;  %590 = vmatpush.bf16.msrb.mxu3 %v8309_v25  ;;  %v8736_v59 = vld [vmem:[#allocation12 + $0x2c0] sm:$0xf]  ;;  %v11505_v2 = vld [vmem:[#allocation12 + $0x8c] sm:$0xf0]  ;;  %v12282_v7 = vpop.eup %12281 }
  0x69   :  { %v8864_v61 = vld [vmem:[#allocation12 + $0x3c0] sm:$0xf]  ;;  %v8737_v62 = vor.u32 %v11577_v60, %v8736_v59  ;;  %v11537_v5 = vld [vmem:[#allocation12 + $0x18c] sm:$0xf0]  ;;  %v648_v9 = vmul.f32 8.0, %v12282_v7  ;;  %vm652_vm1 = vweird.f32 %v12282_v7 }
  0x6a   :  { %552 = vmatpush.bf16.msrb.mxu0 %v8265_v26  ;;  %565 = vmatpush.bf16.msrb.mxu1 %v8269_v29  ;;  %v8865_v0 = vor.u32 %v11609_v63, %v8864_v61  ;;  %v8448_v1 = vld [vmem:[#allocation12 + $0x80] sm:$0xf]  ;;  %v11573_v35 = vld [vmem:[#allocation12 + $0x2ac] sm:$0xf0]  ;;  %v318_v61 = vperm.slane %v12939_v8, 5 }
  0x6b   :  { %v8576_v3 = vld [vmem:[#allocation12 + $0x180] sm:$0xf]  ;;  %v8449_v4 = vor.u32 %v11505_v2, %v8448_v1  ;;  %v649_v12 = vsub.f32 1.0, %v648_v9  ;;  %v11605_v40 = vld [vmem:[#allocation12 + $0x3ac] sm:$0xf0] }
  0x6c   :  { %578 = vmatpush.bf16.msrb.mxu2 %v8273_v32  ;;  %591 = vmatpush.bf16.msrb.mxu3 %v8277_v33  ;;  %v8577_v6 = vor.u32 %v11537_v5, %v8576_v3  ;;  %v8720_v34 = vld [vmem:[#allocation12 + $0x2a0] sm:$0xf]  ;;  %v11501_v46 = vld [vmem:[#allocation12 + $0x6c] sm:$0xf0] }
  0x6d   :  { %8378 = vmatmul.msk.bf16.vlgmr.msrb.gmra.mxu0 %vm489_vm0, %v12921_v57  ;;  %8379 = vmatmul.msk.bf16.vlgmr.msrb.gmra.mxu1 %vm489_vm0, %v12921_v57  ;;  %v650_v18 = vmul.f32 %v12282_v7, %v649_v12  ;;  %v11533_v52 = vld [vmem:[#allocation12 + $0x16c] sm:$0xf0] }
  0x6e   :  { %2458 = vmatpush.bf16.msra.mxu0 %v8497_v36  ;;  %2471 = vmatpush.bf16.msra.mxu1 %v8625_v39  ;;  %v8848_v36 = vld [vmem:[#allocation12 + $0x3a0] sm:$0xf]  ;;  %v8721_v39 = vor.u32 %v11573_v35, %v8720_v34  ;;  %v11601_v63 = vld [vmem:[#allocation12 + $0x38c] sm:$0xf0] }
  0x6f   :  { %8380 = vmatmul.msk.bf16.vlgmr.msrb.gmra.mxu2 %vm489_vm0, %v12921_v57  ;;  %8381 = vmatmul.msk.bf16.vlgmr.msrb.gmra.mxu3 %vm489_vm0, %v12921_v57  ;;  %v11541_v57 = vld [vmem:[#allocation12 + $0x1ac] sm:$0xf0]  ;;  %v651_v25 = vadd.f32 %v12282_v7, %v650_v18  ;;  %v8849_v44 = vor.u32 %v11605_v40, %v8848_v36  ;;  %v8400_v35 = vld [vmem:[#allocation12 + $0x20] sm:$0xf] }
  0x70   :  { %2484 = vmatpush.bf16.msra.mxu2 %v8753_v49  ;;  %2497 = vmatpush.bf16.msra.mxu3 %v8881_v51  ;;  %v8593_v58 = vor.u32 %v11541_v57, %v8592_v56  ;;  %v317_v49 = vperm.slane %v12939_v8, 4  ;;  %v8560_v51 = vld [vmem:[#allocation12 + $0x160] sm:$0xf]  ;;  %v11569_v57 = vld [vmem:[#allocation12 + $0x28c] sm:$0xf0] }
  0x71   :  { %v12959_v42 = vsel %vm652_vm1, %v12282_v7, %v651_v25  ;;  %v8704_v56 = vld [vmem:[#allocation12 + $0x280] sm:$0xf]  ;;  %v11497_v5 = vld [vmem:[#allocation12 + $0x4c] sm:$0xf0] }
  0x72   :  { %2459 = vmatpush.bf16.msra.mxu0 %v8481_v43  ;;  %2472 = vmatpush.bf16.msra.mxu1 %v8609_v45  ;;  %v8432_v45 = vld [vmem:[#allocation12 + $0x60] sm:$0xf]  ;;  %v11493_v36 = vld [vmem:[#allocation12 + $0x2c] sm:$0xf0] }
  0x73   :  { %v8433_v50 = vor.u32 %v11501_v46, %v8432_v45  ;;  %v8528_v40 = vld [vmem:[#allocation12 + $0x120] sm:$0xf] }
  0x74   :  { %2485 = vmatpush.bf16.msra.mxu2 %v8737_v62  ;;  %2498 = vmatpush.bf16.msra.mxu3 %v8865_v0  ;;  %v8705_v62 = vor.u32 %v11569_v57, %v8704_v56 }
  0x76   :  { %2460 = vmatpush.bf16.msra.mxu0 %v8465_v55  ;;  %2473 = vmatpush.bf16.msra.mxu1 %v8593_v58  ;;  %v8561_v55 = vor.u32 %v11533_v52, %v8560_v51  ;;  %v8832_v58 = vld [vmem:[#allocation12 + $0x380] sm:$0xf] }
  0x77   :  { %v8833_v3 = vor.u32 %v11601_v63, %v8832_v58 }
  0x78   :  { %2486 = vmatpush.bf16.msra.mxu2 %v8721_v39  ;;  %2499 = vmatpush.bf16.msra.mxu3 %v8849_v44  ;;  %v8401_v39 = vor.u32 %v11493_v36, %v8400_v35 }
  0x7a   :  { %2461 = vmatpush.bf16.msra.mxu0 %v8449_v4  ;;  %2474 = vmatpush.bf16.msra.mxu1 %v8577_v6  ;;  %v8416_v4 = vld [vmem:[#allocation12 + $0x40] sm:$0xf] }
  0x7b   :  { %v8417_v12 = vor.u32 %v11497_v5, %v8416_v4 }
  0x7c   :  { %2487 = vmatpush.bf16.msra.mxu2 %v8705_v62  ;;  %2500 = vmatpush.bf16.msra.mxu3 %v8833_v3 }
  0x7e   :  { %2462 = vmatpush.bf16.msra.mxu0 %v8433_v50  ;;  %2475 = vmatpush.bf16.msra.mxu1 %v8561_v55 }
  0x82   :  { %2463 = vmatpush.bf16.msra.mxu0 %v8417_v12 }
  0x86   :  { %2464 = vmatpush.bf16.msra.mxu0 %v8401_v39 }
  0xda   :  { %v502_v13 = vpop.f32.mrf.mxu0  ;;  %v515_v15 = vpop.f32.mrf.mxu1 }
  0xdb   :  { %v12943_v14 = vadd.f32 %v502_v13, %v313_v10  ;;  %v12945_v16 = vadd.f32 %v515_v15, %v314_v11  ;;  %v319_v11 = vperm.slane %v12939_v8, 6  ;;  %v8544_v13 = vld [vmem:[#allocation12 + $0x140] sm:$0xf]  ;;  %v11529_v15 = vld [vmem:[#allocation12 + $0x14c] sm:$0xf0] }
  0xdd   :  { %v599_v17 = vrot.slane %v12943_v14, 4  ;;  %v605_v19 = vrot.slane %v12945_v16, 4 }
  0xdf   :  { %v600_v21 = vadd.f32 %v599_v17, %v12943_v14  ;;  %v606_v23 = vadd.f32 %v605_v19, %v12945_v16 }
  0xe1   :  { %v601_v24 = vrot.slane %v600_v21, 2  ;;  %v607_v27 = vrot.slane %v606_v23, 2 }
  0xe2   :  { %v528_v26 = vpop.f32.mrf.mxu2  ;;  %v541_v29 = vpop.f32.mrf.mxu3 }
  0xe3   :  { %v12953_v28 = vadd.f32 %v528_v26, %v315_v20  ;;  %v504_v30 = vpop.f32.mrf.mxu0  ;;  %v602_v31 = vadd.f32 %v601_v24, %v600_v21  ;;  %v12955_v32 = vadd.f32 %v541_v29, %v316_v22  ;;  %v517_v33 = vpop.f32.mrf.mxu1  ;;  %v608_v37 = vadd.f32 %v607_v27, %v606_v23  ;;  %v8688_v22 = vld [vmem:[#allocation12 + $0x260] sm:$0xf]  ;;  %v11565_v23 = vld [vmem:[#allocation12 + $0x26c] sm:$0xf0] }
  0xe4   :  { %v8545_v21 = vor.u32 %v11529_v15, %v8544_v13  ;;  %v8816_v24 = vld [vmem:[#allocation12 + $0x360] sm:$0xf]  ;;  %v8689_v29 = vor.u32 %v11565_v23, %v8688_v22  ;;  %v11597_v30 = vld [vmem:[#allocation12 + $0x36c] sm:$0xf0] }
  0xe5   :  { %v611_v38 = vrot.slane %v12953_v28, 4  ;;  %v603_v41 = vrot.slane %v602_v31, 1  ;;  %v617_v43 = vrot.slane %v12955_v32, 4  ;;  %v609_v47 = vrot.slane %v608_v37, 1 }
  0xe6   :  { %2476 = vmatpush.bf16.msra.mxu1 %v8545_v21  ;;  %v8817_v34 = vor.u32 %v11597_v30, %v8816_v24  ;;  %2488 = vmatpush.bf16.msra.mxu2 %v8689_v29 }
  0xe7   :  { %v612_v48 = vadd.f32 %v611_v38, %v12953_v28  ;;  %v604_v53 = vadd.f32 %v603_v41, %v602_v31  ;;  %v618_v54 = vadd.f32 %v617_v43, %v12955_v32  ;;  %v610_v59 = vadd.f32 %v609_v47, %v608_v37  ;;  %v11525_v41 = vld [vmem:[#allocation12 + $0x12c] sm:$0xf0]  ;;  %v8672_v47 = vld [vmem:[#allocation12 + $0x240] sm:$0xf] }
  0xe8   :  { %2501 = vmatpush.bf16.msra.mxu3 %v8817_v34  ;;  %v8529_v46 = vor.u32 %v11525_v41, %v8528_v40 }
  0xe9   :  { %v613_v60 = vrot.slane %v612_v48, 2  ;;  %v654_v0 = vmul.f32 %v12959_v42, %v604_v53  ;;  %v619_v1 = vrot.slane %v618_v54, 2  ;;  %v655_v6 = vmul.f32 %v12959_v42, %v610_v59 }
  0xea   :  { %v530_v2 = vpop.f32.mrf.mxu2  ;;  %v543_v9 = vpop.f32.mrf.mxu3  ;;  %2477 = vmatpush.bf16.msra.mxu1 %v8529_v46 }
  0xeb   :  { %v614_v7 = vadd.f32 %v613_v60, %v612_v48  ;;  %v554_v10 = vpop.f32.mrf.mxu0  ;;  %v12970_v17 = vsub.f32 %v12943_v14, %v654_v0  ;;  %v620_v18 = vadd.f32 %v619_v1, %v618_v54  ;;  %v567_v20 = vpop.f32.mrf.mxu1  ;;  %v12975_v25 = vsub.f32 %v12945_v16, %v655_v6  ;;  %v11561_v48 = vld [vmem:[#allocation12 + $0x24c] sm:$0xf0] }
  0xec   :  { %v12972_v19 = vadd.f32 %v554_v10, %v317_v49  ;;  %v12977_v27 = vadd.f32 %v567_v20, %v318_v61  ;;  %v8673_v52 = vor.u32 %v11561_v48, %v8672_v47  ;;  %v320_v9 = vperm.slane %v12939_v8, 7 }
  0xed   :  { %v615_v26 = vrot.slane %v614_v7, 1  ;;  %v670_v14 = vmul.f32 %v12970_v17, %v12970_v17  ;;  %v621_v31 = vrot.slane %v620_v18, 1  ;;  %v671_v16 = vmul.f32 %v12975_v25, %v12975_v25 }
  0xee   :  { %v623_v33 = vrot.slane %v12972_v19, 4  ;;  %v629_v38 = vrot.slane %v12977_v27, 4  ;;  %2489 = vmatpush.bf16.msra.mxu2 %v8673_v52  ;;  %v8384_v52 = vld [vmem:[#allocation12] sm:$0xf] }
  0xef   :  { %v616_v37 = vadd.f32 %v615_v26, %v614_v7  ;;  %v678_v43 = vrot.slane %v670_v14, 4  ;;  %v622_v44 = vadd.f32 %v621_v31, %v620_v18  ;;  %v684_v49 = vrot.slane %v671_v16, 4 }
  0xf0   :  { %v624_v45 = vadd.f32 %v623_v33, %v12972_v19  ;;  %v630_v51 = vadd.f32 %v629_v38, %v12977_v27 }
  0xf1   :  { %v656_v50 = vmul.f32 %v12959_v42, %v616_v37  ;;  %v679_v53 = vadd.f32 %v678_v43, %v670_v14  ;;  %v657_v54 = vmul.f32 %v12959_v42, %v622_v44  ;;  %v685_v57 = vadd.f32 %v684_v49, %v671_v16 }
  0xf2   :  { %v625_v55 = vrot.slane %v624_v45, 2  ;;  %v580_v56 = vpop.f32.mrf.mxu2  ;;  %v631_v59 = vrot.slane %v630_v51, 2  ;;  %v593_v61 = vpop.f32.mrf.mxu3 }
  0xf3   :  { %v12990_v58 = vsub.f32 %v12953_v28, %v656_v50  ;;  %v12992_v60 = vadd.f32 %v580_v56, %v319_v11  ;;  %v556_v62 = vpop.f32.mrf.mxu0  ;;  %v680_v63 = vrot.slane %v679_v53, 2  ;;  %v12995_v0 = vsub.f32 %v12955_v32, %v657_v54  ;;  %v569_v1 = vpop.f32.mrf.mxu1  ;;  %v11593_v50 = vld [vmem:[#allocation12 + $0x34c] sm:$0xf0] }
  0xf4   :  { %v686_v2 = vrot.slane %v685_v57, 2  ;;  %v626_v4 = vadd.f32 %v625_v55, %v624_v45  ;;  %v632_v5 = vadd.f32 %v631_v59, %v630_v51  ;;  %v13004_v29 = vadd.f32 %v593_v61, %v320_v9  ;;  %v8800_v45 = vld [vmem:[#allocation12 + $0x340] sm:$0xf]  ;;  %v11521_v62 = vld [vmem:[#allocation12 + $0x10c] sm:$0xf0] }
  0xf5   :  { %v672_v3 = vmul.f32 %v12990_v58, %v12990_v58  ;;  %v681_v6 = vadd.f32 %v680_v63, %v679_v53  ;;  %v673_v28 = vmul.f32 %v12995_v0, %v12995_v0  ;;  %v635_v7 = vrot.slane %v12992_v60, 4  ;;  %v8512_v61 = vld [vmem:[#allocation12 + $0x100] sm:$0xf] }
  0xf6   :  { %v687_v10 = vadd.f32 %v686_v2, %v685_v57  ;;  %v627_v12 = vrot.slane %v626_v4, 1  ;;  %v633_v32 = vrot.slane %v632_v5, 1  ;;  %v641_v44 = vrot.slane %v13004_v29, 4 }
  0xf7   :  { %v690_v11 = vrot.slane %v672_v3, 4  ;;  %v682_v13 = vrot.slane %v681_v6, 1  ;;  %v696_v15 = vrot.slane %v673_v28, 4  ;;  %v636_v22 = vadd.f32 %v635_v7, %v12992_v60  ;;  %v13032_v7 = vld [vmem:[#allocation11] sm:$0xff] }
  0xf8   :  { %v688_v18 = vrot.slane %v687_v10, 1  ;;  %v628_v21 = vadd.f32 %v627_v12, %v626_v4  ;;  %v634_v26 = vadd.f32 %v633_v32, %v632_v5  ;;  %v642_v59 = vadd.f32 %v641_v44, %v13004_v29  ;;  %v11557_v44 = vld [vmem:[#allocation12 + $0x22c] sm:$0xf0] }
  0xf9   :  { %v691_v20 = vadd.f32 %v690_v11, %v672_v3  ;;  %v683_v23 = vadd.f32 %v682_v13, %v681_v6  ;;  %v697_v24 = vadd.f32 %v696_v15, %v673_v28  ;;  %v637_v39 = vrot.slane %v636_v22, 2  ;;  %v13030_v28 = vld [vmem:[#allocation9] sm:$0xff] }
  0xfa   :  { %v582_v30 = vpop.f32.mrf.mxu2  ;;  %v689_v14 = vadd.f32 %v688_v18, %v687_v10  ;;  %v658_v8 = vmul.f32 %v12959_v42, %v628_v21  ;;  %v595_v33 = vpop.f32.mrf.mxu3  ;;  %v659_v36 = vmul.f32 %v12959_v42, %v634_v26  ;;  %v8801_v2 = vor.u32 %v11593_v50, %v8800_v45  ;;  %v9008_v26 = vld [vmem:[#allocation12 + $0x4e0] sm:$0xf] }
  0xfb   :  { %v692_v31 = vrot.slane %v691_v20, 2  ;;  %v726_v34 = vmul.f32 %v683_v23, %v12959_v42  ;;  %v698_v35 = vrot.slane %v697_v24, 2  ;;  %v638_v49 = vadd.f32 %v637_v39, %v636_v22  ;;  %v11645_v30 = vld [vmem:[#allocation12 + $0x4ec] sm:$0xf0] }
  0xfc   :  { %v727_v16 = vmul.f32 %v689_v14, %v12959_v42  ;;  %v13011_v38 = vsub.f32 %v12972_v19, %v658_v8  ;;  %v13016_v43 = vsub.f32 %v12977_v27, %v659_v36  ;;  %v11489_v27 = vld [vmem:[#allocation12 + $0xc] sm:$0xf0]  ;;  %2502 = vmatpush.bf16.msra.mxu3 %v8801_v2  ;;  %v8513_v11 = vor.u32 %v11521_v62, %v8512_v61 }
  0xfd   :  { %v693_v37 = vadd.f32 %v692_v31, %v691_v20  ;;  %v13013_v40 = vadd.f32 0.8, %v726_v34  ;;  %v699_v41 = vadd.f32 %v698_v35, %v697_v24  ;;  %v639_v57 = vrot.slane %v638_v49, 1  ;;  %v9136_v34 = vld [vmem:[#allocation12 + $0x5e0] sm:$0xf] }
  0xfe   :  { %v13019_v46 = vadd.f32 0.8, %v727_v16  ;;  %v674_v48 = vmul.f32 %v13011_v38, %v13011_v38  ;;  %v675_v51 = vmul.f32 %v13016_v43, %v13016_v43  ;;  %v8385_v3 = vor.u32 %v11489_v27, %v8384_v52  ;;  %2478 = vmatpush.bf16.msra.mxu1 %v8513_v11  ;;  %v11677_v35 = vld [vmem:[#allocation12 + $0x5ec] sm:$0xf0] }
  0xff   :  { %v694_v47 = vrot.slane %v693_v37, 1  ;;  %12283 = vrsqrt.f32 %v13013_v40  ;;  %v700_v19 = vrot.slane %v699_v41, 1  ;;  %v640_v6 = vadd.f32 %v639_v57, %v638_v49 }
 0x100   :  { %12285 = vrsqrt.f32 %v13019_v46  ;;  %v702_v54 = vrot.slane %v674_v48, 4  ;;  %v708_v56 = vrot.slane %v675_v51, 4  ;;  %2465 = vmatpush.bf16.msra.mxu0 %v8385_v3  ;;  %v643_v18 = vrot.slane %v642_v59, 2 }
 0x101   :  { %v695_v53 = vadd.f32 %v694_v47, %v693_v37  ;;  %v701_v55 = vadd.f32 %v700_v19, %v699_v41  ;;  %v660_v15 = vmul.f32 %v12959_v42, %v640_v6  ;;  %v831_v22 = vperm.slane %v13030_v28, 0  ;;  %v8656_v41 = vld [vmem:[#allocation12 + $0x220] sm:$0xf] }
 0x102   :  { %v703_v1 = vadd.f32 %v702_v54, %v674_v48  ;;  %v709_v5 = vadd.f32 %v708_v56, %v675_v51  ;;  %v856_v23 = vperm.slane %v13032_v7, 0  ;;  %v832_v31 = vperm.slane %v13030_v28, 1 }
 0x103   :  { %v728_v63 = vmul.f32 %v695_v53, %v12959_v42  ;;  %v729_v4 = vmul.f32 %v701_v55, %v12959_v42  ;;  %v857_v16 = vperm.slane %v13032_v7, 1  ;;  %v13056_v37 = vsub.f32 %v12992_v60, %v660_v15 }
 0x104   :  { %v704_v10 = vrot.slane %v703_v1, 2  ;;  %v710_v13 = vrot.slane %v709_v5, 2  ;;  %v644_v39 = vadd.f32 %v643_v18, %v642_v59  ;;  %v9009_v49 = vor.u32 %v11645_v30, %v9008_v26 }
 0x105   :  { %v13034_v9 = vadd.f32 0.8, %v728_v63  ;;  %v13036_v12 = vpop.eup %12283  ;;  %v13038_v32 = vadd.f32 0.8, %v729_v4  ;;  %v833_v19 = vperm.slane %v13030_v28, 2  ;;  %v676_v51 = vmul.f32 %v13056_v37, %v13056_v37 }
 0x106   :  { %v13041_v20 = vpop.eup %12285  ;;  %v743_v21 = vmul.f32 %v13036_v12, %v13013_v40  ;;  %v705_v8 = vadd.f32 %v704_v10, %v703_v1  ;;  %v711_v33 = vadd.f32 %v710_v13, %v709_v5  ;;  %v9137_v52 = vor.u32 %v11677_v35, %v9136_v34  ;;  %2510 = vmatpush.bf16.msrb.mxu0 %v9009_v49  ;;  %v8992_v35 = vld [vmem:[#allocation12 + $0x4c0] sm:$0xf] }
 0x107   :  { %12287 = vrsqrt.f32 %v13034_v9  ;;  %v753_v24 = vmul.f32 %v13041_v20, %v13019_v46  ;;  %v834_v53 = vperm.slane %v13030_v28, 3  ;;  %v8657_v55 = vor.u32 %v11557_v44, %v8656_v41 }
 0x108   :  { %12289 = vrsqrt.f32 %v13038_v32  ;;  %v744_v14 = vmul.f32 %v13036_v12, %v743_v21  ;;  %v706_v47 = vrot.slane %v705_v8, 1  ;;  %v712_v48 = vrot.slane %v711_v33, 1  ;;  %2523 = vmatpush.bf16.msrb.mxu1 %v9137_v52  ;;  %v11553_v52 = vld [vmem:[#allocation12 + $0x20c] sm:$0xf0] }
 0x109   :  { %v754_v36 = vmul.f32 %v13041_v20, %v753_v24  ;;  %v714_v61 = vrot.slane %v676_v51, 4  ;;  %v645_v62 = vrot.slane %v644_v39, 1  ;;  %v858_v63 = vperm.slane %v13032_v7, 2  ;;  %2490 = vmatpush.bf16.msra.mxu2 %v8657_v55 }
 0x10a   :  { %v745_v45 = vmul.f32 0.5, %v744_v14  ;;  %v707_v60 = vadd.f32 %v706_v47, %v705_v8  ;;  %v713_v54 = vadd.f32 %v712_v48, %v711_v33  ;;  %v859_v2 = vperm.slane %v13032_v7, 3  ;;  %v8784_v14 = vld [vmem:[#allocation12 + $0x320] sm:$0xf]  ;;  %v11589_v8 = vld [vmem:[#allocation12 + $0x32c] sm:$0xf0] }
 0x10b   :  { %v755_v50 = vmul.f32 0.5, %v754_v36  ;;  %vm748_vm2 = vweird.f32 %v13013_v40  ;;  %vm749_vm3 = vweird.f32 %v13036_v12  ;;  %v715_v13 = vadd.f32 %v714_v61, %v676_v51  ;;  %v11641_v36 = vld [vmem:[#allocation12 + $0x4cc] sm:$0xf0]  ;;  %v8640_v51 = vld [vmem:[#allocation12 + $0x200] sm:$0xf] }
 0x10c   :  { %v746_v57 = vsub.f32 1.5, %v745_v45  ;;  %v730_v3 = vmul.f32 %v707_v60, %v12959_v42  ;;  %v731_v6 = vmul.f32 %v713_v54, %v12959_v42  ;;  %v646_v24 = vadd.f32 %v645_v62, %v644_v39  ;;  %vm13093_vm6 = vmor %vm748_vm2, %vm749_vm3  ;;  %v9120_v45 = vld [vmem:[#allocation12 + $0x5c0] sm:$0xf]  ;;  %v11673_v47 = vld [vmem:[#allocation12 + $0x5cc] sm:$0xf0] }
 0x10d   :  { %v13061_v27 = vpop.eup %12287  ;;  %v756_v4 = vsub.f32 1.5, %v755_v50  ;;  %vm758_vm4 = vweird.f32 %v13019_v46  ;;  %v835_v30 = vperm.slane %v13030_v28, 4  ;;  %vm759_vm5 = vweird.f32 %v13041_v20  ;;  %v8768_v46 = vld [vmem:[#allocation12 + $0x300] sm:$0xf] }
 0x10e   :  { %v13064_v56 = vpop.eup %12289  ;;  %v763_v59 = vmul.f32 %v13061_v27, %v13034_v9  ;;  %v13078_v11 = vadd.f32 0.8, %v730_v3  ;;  %v747_v15 = vmul.f32 %v13036_v12, %v746_v57  ;;  %v13081_v21 = vadd.f32 0.8, %v731_v6  ;;  %vm13109_vm9 = vmor %vm758_vm4, %vm759_vm5  ;;  %v9104_v39 = vld [vmem:[#allocation12 + $0x5a0] sm:$0xf] }
 0x10f   :  { %v773_v1 = vmul.f32 %v13064_v56, %v13038_v32  ;;  %v757_v33 = vmul.f32 %v13041_v20, %v756_v4  ;;  %vm768_vm7 = vweird.f32 %v13034_v9  ;;  %vm778_vm8 = vweird.f32 %v13038_v32 }
 0x110   :  { %v764_v5 = vmul.f32 %v13061_v27, %v763_v59  ;;  %12291 = vrsqrt.f32 %v13078_v11  ;;  %v836_v41 = vperm.slane %v13030_v28, 5  ;;  %v716_v44 = vrot.slane %v715_v13, 2 }
 0x111   :  { %v774_v10 = vmul.f32 %v13064_v56, %v773_v1  ;;  %12293 = vrsqrt.f32 %v13081_v21  ;;  %v751_v48 = vsel %vm13093_vm6, %v13036_v12, %v747_v15  ;;  %v860_v40 = vperm.slane %v13032_v7, 4  ;;  %v11585_v1 = vld [vmem:[#allocation12 + $0x30c] sm:$0xf0] }
 0x112   :  { %v765_v18 = vmul.f32 0.5, %v764_v5  ;;  %v661_v50 = vmul.f32 %v12959_v42, %v646_v24  ;;  %vm769_vm10 = vweird.f32 %v13061_v27  ;;  %v717_v12 = vadd.f32 %v716_v44, %v715_v13  ;;  %v9264_v13 = vld [vmem:[#allocation12 + $0x6e0] sm:$0xf]  ;;  %v11709_v15 = vld [vmem:[#allocation12 + $0x6ec] sm:$0xf0] }
 0x113   :  { %v775_v26 = vmul.f32 0.5, %v774_v10  ;;  %v8785_v55 = vor.u32 %v11589_v8, %v8784_v14  ;;  %v761_v57 = vsel %vm13109_vm9, %v13041_v20, %v757_v33  ;;  %v8993_v61 = vor.u32 %v11641_v36, %v8992_v35  ;;  %vm13131_vm11 = vmor %vm768_vm7, %vm769_vm10  ;;  %v11741_v14 = vld [vmem:[#allocation12 + $0x7ec] sm:$0xf0]  ;;  %v8976_v8 = vld [vmem:[#allocation12 + $0x4a0] sm:$0xf] }
 0x114   :  { %v766_v34 = vsub.f32 1.5, %v765_v18  ;;  %v13119_v59 = vsub.f32 %v13004_v29, %v661_v50  ;;  %v9121_v62 = vor.u32 %v11673_v47, %v9120_v45  ;;  %v822_v4 = vmul.f32 %v751_v48, %v12970_v17  ;;  %v11637_v36 = vld [vmem:[#allocation12 + $0x4ac] sm:$0xf0] }
 0x115   :  { %v776_v49 = vsub.f32 1.5, %v775_v26  ;;  %v861_v5 = vperm.slane %v13032_v7, 5  ;;  %v718_v6 = vrot.slane %v717_v12, 1  ;;  %2503 = vmatpush.bf16.msra.mxu3 %v8785_v55  ;;  %v8641_v10 = vor.u32 %v11553_v52, %v8640_v51  ;;  %2511 = vmatpush.bf16.msrb.mxu0 %v8993_v61  ;;  %v9392_v26 = vld [vmem:[#allocation12 + $0x7e0] sm:$0xf] }
 0x116   :  { %v767_v54 = vmul.f32 %v13061_v27, %v766_v34  ;;  %v13121_v3 = vpop.eup %12291  ;;  %vm779_vm12 = vweird.f32 %v13064_v56  ;;  %v677_v24 = vmul.f32 %v13119_v59, %v13119_v59  ;;  %2524 = vmatpush.bf16.msrb.mxu1 %v9121_v62  ;;  %v13142_v9 = vmul.f32 %v761_v57, %v12975_v25  ;;  %v11669_v44 = vld [vmem:[#allocation12 + $0x5ac] sm:$0xf0]  ;;  %v9248_v25 = vld [vmem:[#allocation12 + $0x6c0] sm:$0xf] }
 0x117   :  { %v13125_v18 = vpop.eup %12293  ;;  %v777_v20 = vmul.f32 %v13064_v56, %v776_v49  ;;  %v783_v17 = vmul.f32 %v13121_v3, %v13078_v11  ;;  %v719_v35 = vadd.f32 %v718_v6, %v717_v12  ;;  %2491 = vmatpush.bf16.msra.mxu2 %v8641_v10  ;;  %vm788_vm13 = vweird.f32 %v13078_v11  ;;  %v11705_v49 = vld [vmem:[#allocation12 + $0x6cc] sm:$0xf0]  ;;  %vm13157_vm14 = vmor %vm778_vm8, %vm779_vm12  ;;  %v8960_v55 = vld [vmem:[#allocation12 + $0x480] sm:$0xf] }
 0x118   :  { %v771_v33 = vsel %vm13131_vm11, %v13061_v27, %v767_v54  ;;  %v793_v34 = vmul.f32 %v13125_v18, %v13081_v21  ;;  %v720_v47 = vrot.slane %v677_v24, 4  ;;  %v8769_v48 = vor.u32 %v11585_v1, %v8768_v46  ;;  %v9376_v54 = vld [vmem:[#allocation12 + $0x7c0] sm:$0xf]  ;;  %v11737_v12 = vld [vmem:[#allocation12 + $0x7cc] sm:$0xf0] }
 0x119   :  { %v784_v45 = vmul.f32 %v13121_v3, %v783_v17  ;;  %v847_v50 = vmul.f32 %v831_v22, %v822_v4  ;;  %v732_v52 = vmul.f32 %v719_v35, %v12959_v42  ;;  %v9265_v60 = vor.u32 %v11709_v15, %v9264_v13  ;;  %v11633_v62 = vld [vmem:[#allocation12 + $0x48c] sm:$0xf0]  ;;  %v9088_v46 = vld [vmem:[#allocation12 + $0x580] sm:$0xf] }
 0x11a   :  { %v794_v51 = vmul.f32 %v13125_v18, %v793_v34  ;;  %v824_v57 = vmul.f32 %v771_v33, %v12990_v58  ;;  %v781_v22 = vsel %vm13157_vm14, %v13064_v56, %v777_v20  ;;  %v721_v32 = vadd.f32 %v720_v47, %v677_v24  ;;  %2504 = vmatpush.bf16.msra.mxu3 %v8769_v48  ;;  %v11665_v13 = vld [vmem:[#allocation12 + $0x58c] sm:$0xf0]  ;;  %v9232_v17 = vld [vmem:[#allocation12 + $0x6a0] sm:$0xf] }
 0x11b   :  { %v785_v61 = vmul.f32 0.5, %v784_v45  ;;  %v13167_v4 = vadd.f32 0.8, %v732_v52  ;;  %2536 = vmatpush.bf16.msrb.mxu2 %v9265_v60  ;;  %v9393_v6 = vor.u32 %v11741_v14, %v9392_v26  ;;  %v8977_v10 = vor.u32 %v11637_v36, %v8976_v8  ;;  %v11701_v33 = vld [vmem:[#allocation12 + $0x6ac] sm:$0xf0] }
 0x11c   :  { %v795_v1 = vmul.f32 0.5, %v794_v51  ;;  %vm789_vm15 = vweird.f32 %v13121_v3  ;;  %v722_v58 = vrot.slane %v721_v32, 2  ;;  %v9105_v29 = vor.u32 %v11669_v44, %v9104_v39  ;;  %v9360_v34 = vld [vmem:[#allocation12 + $0x7a0] sm:$0xf]  ;;  %v11733_v36 = vld [vmem:[#allocation12 + $0x7ac] sm:$0xf0] }
 0x11d   :  { %v786_v15 = vsub.f32 1.5, %v785_v61  ;;  %v825_v56 = vmul.f32 %v781_v22, %v12995_v0  ;;  %12295 = vrsqrt.f32 %v13167_v4  ;;  %2512 = vmatpush.bf16.msrb.mxu0 %v8977_v10  ;;  %v9249_v24 = vor.u32 %v11705_v49, %v9248_v25  ;;  %v8944_v45 = vld [vmem:[#allocation12 + $0x460] sm:$0xf]  ;;  %v11629_v39 = vld [vmem:[#allocation12 + $0x46c] sm:$0xf0]  ;;  %vm13177_vm0 = vmor %vm788_vm13, %vm789_vm15 }
 0x11e   :  { %v796_v20 = vsub.f32 1.5, %v795_v1  ;;  %2549 = vmatpush.bf16.msrb.mxu3 %v9393_v6  ;;  %v723_v14 = vadd.f32 %v722_v58, %v721_v32  ;;  %2525 = vmatpush.bf16.msrb.mxu1 %v9105_v29  ;;  %v9377_v8 = vor.u32 %v11737_v12, %v9376_v54  ;;  %v8961_v35 = vor.u32 %v11633_v62, %v8960_v55  ;;  %v9072_v25 = vld [vmem:[#allocation12 + $0x560] sm:$0xf]  ;;  %v11661_v49 = vld [vmem:[#allocation12 + $0x56c] sm:$0xf0] }
 0x11f   :  { %v787_v26 = vmul.f32 %v13121_v3, %v786_v15  ;;  %vm799_vm1 = vweird.f32 %v13125_v18  ;;  %2537 = vmatpush.bf16.msrb.mxu2 %v9249_v24  ;;  %v9089_v47 = vor.u32 %v11665_v13, %v9088_v46  ;;  %v9233_v48 = vor.u32 %v11701_v33, %v9232_v17  ;;  %v9216_v60 = vld [vmem:[#allocation12 + $0x680] sm:$0xf]  ;;  %v11697_v54 = vld [vmem:[#allocation12 + $0x68c] sm:$0xf0] }
 0x120   :  { %v797_v44 = vmul.f32 %v13125_v18, %v796_v20  ;;  %v872_v27 = vadd.f32 %v856_v23, %v847_v50  ;;  %v848_v11 = vmul.f32 %v832_v31, %v13142_v9  ;;  %v724_v52 = vrot.slane %v723_v14, 1  ;;  %v9344_v50 = vld [vmem:[#allocation12 + $0x780] sm:$0xf]  ;;  %v11729_v22 = vld [vmem:[#allocation12 + $0x78c] sm:$0xf0] }
 0x121   :  { %v791_v51 = vsel %vm13177_vm0, %v13121_v3, %v787_v26  ;;  %v849_v12 = vmul.f32 %v833_v19, %v824_v57  ;;  %vm798_vm2 = vweird.f32 %v13081_v21  ;;  %2513 = vmatpush.bf16.msrb.mxu0 %v8961_v35  ;;  %v9361_v55 = vor.u32 %v11733_v36, %v9360_v34  ;;  %v8928_v61 = vld [vmem:[#allocation12 + $0x440] sm:$0xf]  ;;  %v11625_v57 = vld [vmem:[#allocation12 + $0x44c] sm:$0xf0] }
 0x122   :  { %2550 = vmatpush.bf16.msrb.mxu3 %v9377_v8  ;;  %v8945_v23 = vor.u32 %v11629_v39, %v8944_v45  ;;  %vm13196_vm3 = vmor %vm798_vm2, %vm799_vm1  ;;  %v837_v3 = vperm.slane %v13030_v28, 6  ;;  %v862_v9 = vperm.slane %v13032_v7, 6  ;;  %v725_v19 = vadd.f32 %v724_v52, %v723_v14  ;;  %2526 = vmatpush.bf16.msrb.mxu1 %v9089_v47  ;;  %v9056_v32 = vld [vmem:[#allocation12 + $0x540] sm:$0xf]  ;;  %v11657_v13 = vld [vmem:[#allocation12 + $0x54c] sm:$0xf0] }
 0x123   :  { %v9073_v21 = vor.u32 %v11661_v49, %v9072_v25  ;;  %v13202_v62 = vpop.eup %12295  ;;  %v850_v46 = vmul.f32 %v834_v53, %v825_v56  ;;  %v826_v1 = vmul.f32 %v791_v51, %v13011_v38  ;;  %v801_v6 = vsel %vm13196_vm3, %v13125_v18, %v797_v44  ;;  %2538 = vmatpush.bf16.msrb.mxu2 %v9233_v48  ;;  %v9200_v15 = vld [vmem:[#allocation12 + $0x660] sm:$0xf]  ;;  %v11693_v58 = vld [vmem:[#allocation12 + $0x66c] sm:$0xf0] }
 0x124   :  { %v9217_v10 = vor.u32 %v11697_v54, %v9216_v60  ;;  %v873_v29 = vadd.f32 %v857_v16, %v848_v11  ;;  %v803_v17 = vmul.f32 %v13202_v62, %v13167_v4  ;;  %v733_v33 = vmul.f32 %v725_v19, %v12959_v42  ;;  %v13215_v53 = vld [vmem:[#allocation12 + $0x760] sm:$0xf]  ;;  %v11725_v38 = vld [vmem:[#allocation12 + $0x76c] sm:$0xf0] }
 0x125   :  { %v8912_v56 = vld [vmem:[#allocation12 + $0x420] sm:$0xf]  ;;  %vm880_vm4 = vcmp.ge.f32.partialorder %v872_v27, 0.0  ;;  %v13219_v18 = vadd.f32 %v858_v63, %v849_v12  ;;  %2514 = vmatpush.bf16.msrb.mxu0 %v8945_v23  ;;  %v9345_v20 = vor.u32 %v11729_v22, %v9344_v50  ;;  %v8929_v24 = vor.u32 %v11625_v57, %v8928_v61  ;;  %v11621_v34 = vld [vmem:[#allocation12 + $0x42c] sm:$0xf0] }
 0x126   :  { %2551 = vmatpush.bf16.msrb.mxu3 %v9361_v55  ;;  %v13221_v16 = vld [vmem:[#allocation12 + $0x520] sm:$0xf]  ;;  %v888_v26 = vmul.f32 0.01, %v872_v27  ;;  %v827_v14 = vmul.f32 %v801_v6, %v13016_v43  ;;  %v804_v8 = vmul.f32 %v13202_v62, %v803_v17  ;;  %v13225_v35 = vadd.f32 0.8, %v733_v33  ;;  %2527 = vmatpush.bf16.msrb.mxu1 %v9073_v21 }
 0x127   :  { %v9057_v36 = vor.u32 %v11657_v13, %v9056_v32  ;;  %v11653_v45 = vld [vmem:[#allocation12 + $0x52c] sm:$0xf0]  ;;  %v13227_v39 = vld [vmem:[#allocation12 + $0x640] sm:$0xf]  ;;  %v13231_v63 = vadd.f32 %v859_v2, %v850_v46  ;;  %v851_v0 = vmul.f32 %v835_v30, %v826_v1  ;;  %2539 = vmatpush.bf16.msrb.mxu2 %v9217_v10  ;;  %v9201_v44 = vor.u32 %v11693_v58, %v9200_v15  ;;  %v11515_v50 = vld [vmem:[#allocation12 + $0xe4] sm:$0xf] }
 0x128   :  { %v11689_v47 = vld [vmem:[#allocation12 + $0x64c] sm:$0xf0]  ;;  %v13235_v43 = vld [vmem:[#allocation12 + $0x740] sm:$0xf]  ;;  %v896_v25 = vsel %vm880_vm4, %v872_v27, %v888_v26  ;;  %v805_v49 = vmul.f32 0.5, %v804_v8  ;;  %vm808_vm5 = vweird.f32 %v13167_v4  ;;  %12297 = vrsqrt.f32 %v13225_v35 }
 0x129   :  { %v13237_v48 = vld [vmem:[#allocation12 + $0x74c] sm:$0xf0]  ;;  %v13242_v11 = vld [vmem:[#allocation12 + $0x400] sm:$0xf]  ;;  %v13248_v30 = vpack.c.bf16 %v896_v25, %v896_v25  ;;  %2515 = vmatpush.bf16.msrb.mxu0 %v8929_v24  ;;  %v9329_v52 = vor.u32 %v11725_v38, %v13215_v53  ;;  %v8913_v60 = vor.u32 %v11621_v34, %v8912_v56  ;;  %vm881_vm6 = vcmp.ge.f32.partialorder %v873_v29, 0.0 }
 0x12a   :  { %v13244_v2 = vld [vmem:[#allocation12 + $0x40c] sm:$0xf0]  ;;  %v13246_v51 = vld [vmem:[#allocation12 + $0x500] sm:$0xf]  ;;  %2552 = vmatpush.bf16.msrb.mxu3 %v9345_v20  ;;  %v889_v27 = vmul.f32 0.01, %v873_v29  ;;  %v852_v12 = vmul.f32 %v836_v41, %v827_v14  ;;  %vm809_vm7 = vweird.f32 %v13202_v62  ;;  %2528 = vmatpush.bf16.msrb.mxu1 %v9057_v36  ;;  %v9041_v23 = vor.u32 %v11653_v45, %v13221_v16 }
 0x12b   :  { %v13251_v54 = vld [vmem:[#allocation12 + $0x50c] sm:$0xf0]  ;;  %v806_v55 = vsub.f32 1.5, %v805_v49  ;;  %2466 = vmatmul.bf16.vlgmr.msra.gmra.mxu0 %v13248_v30  ;;  %v8498_v22 = vld [vmem:[#allocation12 + $0xf0] sm:$0xf0]  ;;  %v13260_v61 = vadd.f32 %v860_v40, %v851_v0  ;;  %2540 = vmatpush.bf16.msrb.mxu2 %v9201_v44  ;;  %v9185_v31 = vor.u32 %v11689_v47, %v13227_v39  ;;  %v9313_v41 = vor.u32 %v13237_v48, %v13235_v43  ;;  %vm13274_vm9 = vmor %vm808_vm5, %vm809_vm7 }
 0x12c   :  { %v897_v19 = vsel %vm881_vm6, %v873_v29, %v889_v27  ;;  %v11547_v21 = vld [vmem:[#allocation12 + $0x1e4] sm:$0xf]  ;;  %v8626_v57 = vld [vmem:[#allocation12 + $0x1f0] sm:$0xf0]  ;;  %v9168_v32 = vld [vmem:[#allocation12 + $0x620] sm:$0xf]  ;;  %v8897_v13 = vor.u32 %v13244_v2, %v13242_v11  ;;  %v9025_v15 = vor.u32 %v13251_v54, %v13246_v51  ;;  %v8501_v33 = vor.u32 %v11515_v50, %v8498_v22 }
 0x12d   :  { %v807_v46 = vmul.f32 %v13202_v62, %v806_v55  ;;  %v13266_v1 = vpack.c.bf16 %v897_v19, %v897_v19  ;;  %v11685_v6 = vld [vmem:[#allocation12 + $0x62c] sm:$0xf0]  ;;  %vm882_vm8 = vcmp.ge.f32.partialorder %v13219_v18, 0.0  ;;  %v890_v40 = vmul.f32 0.01, %v13219_v18  ;;  %2516 = vmatpush.bf16.msrb.mxu0 %v8913_v60 }
 0x12e   :  { %2553 = vmatpush.bf16.msrb.mxu3 %v9329_v52  ;;  %v9296_v58 = vld [vmem:[#allocation12 + $0x720] sm:$0xf]  ;;  %vm883_vm10 = vcmp.ge.f32.partialorder %v13231_v63, 0.0  ;;  %v891_v29 = vmul.f32 0.01, %v13231_v63  ;;  %v13284_v17 = vpop.eup %12297  ;;  %2529 = vmatpush.bf16.msrb.mxu1 %v9041_v23  ;;  %v8629_v53 = vor.u32 %v11547_v21, %v8626_v57  ;;  %v9169_v26 = vor.u32 %v11685_v6, %v9168_v32 }
 0x12f   :  { %v811_v4 = vsel %vm13274_vm9, %v13202_v62, %v807_v46  ;;  %v11717_v38 = vld [vmem:[#allocation12 + $0x72c] sm:$0xf0]  ;;  %v11511_v56 = vld [vmem:[#allocation12 + $0xc4] sm:$0xf]  ;;  %v8482_v20 = vld [vmem:[#allocation12 + $0xd0] sm:$0xf0]  ;;  %v898_v24 = vsel %vm882_vm8, %v13219_v18, %v890_v40  ;;  %v813_v16 = vmul.f32 %v13284_v17, %v13225_v35  ;;  %2541 = vmatpush.bf16.msrb.mxu2 %v9185_v31  ;;  %2479 = vmatmul.bf16.vlgmr.msra.gmra.mxu1 %v13266_v1  ;;  %vm819_vm12 = vweird.f32 %v13284_v17 }
 0x130   :  { %v828_v34 = vmul.f32 %v811_v4, %v13056_v37  ;;  %v11543_v62 = vld [vmem:[#allocation12 + $0x1c4] sm:$0xf]  ;;  %v8610_v14 = vld [vmem:[#allocation12 + $0x1d0] sm:$0xf0]  ;;  %v9152_v8 = vld [vmem:[#allocation12 + $0x600] sm:$0xf]  ;;  %v13298_v36 = vadd.f32 %v861_v5, %v852_v12  ;;  %v13300_v18 = vpack.c.bf16 %v898_v24, %v898_v24  ;;  %v899_v37 = vsel %vm883_vm10, %v13231_v63, %v891_v29 }
 0x131   :  { %v11681_v45 = vld [vmem:[#allocation12 + $0x60c] sm:$0xf0]  ;;  %v9280_v39 = vld [vmem:[#allocation12 + $0x700] sm:$0xf]  ;;  %v814_v44 = vmul.f32 %v13284_v17, %v813_v16  ;;  %2517 = vmatpush.bf16.msrb.mxu0 %v8897_v13  ;;  %v9297_v47 = vor.u32 %v11717_v38, %v9296_v58  ;;  %v13306_v43 = vpack.c.bf16 %v899_v37, %v899_v37  ;;  %v11579_v48 = vld [vmem:[#allocation12 + $0x2e4] sm:$0xf]  ;;  %v8485_v49 = vor.u32 %v11511_v56, %v8482_v20 }
 0x132   :  { %v11713_v0 = vld [vmem:[#allocation12 + $0x70c] sm:$0xf0]  ;;  %2554 = vmatpush.bf16.msrb.mxu3 %v9313_v41  ;;  %v8754_v25 = vld [vmem:[#allocation12 + $0x2f0] sm:$0xf0]  ;;  %vm884_vm11 = vcmp.ge.f32.partialorder %v13260_v61, 0.0  ;;  %v853_v5 = vmul.f32 %v837_v3, %v828_v34  ;;  %2530 = vmatpush.bf16.msrb.mxu1 %v9025_v15  ;;  %v8613_v52 = vor.u32 %v11543_v62, %v8610_v14  ;;  %v9153_v60 = vor.u32 %v11681_v45, %v9152_v8 }
 0x133   :  { %v11611_v11 = vld [vmem:[#allocation12 + $0x3e4] sm:$0xf]  ;;  %v8882_v2 = vld [vmem:[#allocation12 + $0x3f0] sm:$0xf0]  ;;  %v892_v63 = vmul.f32 0.01, %v13260_v61  ;;  %2542 = vmatpush.bf16.msrb.mxu2 %v9169_v26  ;;  %2505 = vmatmul.bf16.vlgmr.msra.gmra.mxu3 %v13306_v43  ;;  %v8757_v12 = vor.u32 %v11579_v48, %v8754_v25  ;;  %v9281_v31 = vor.u32 %v11713_v0, %v9280_v39  ;;  %vm818_vm14 = vweird.f32 %v13225_v35 }
 0x134   :  { %v815_v51 = vmul.f32 0.5, %v814_v44  ;;  %v11507_v54 = vld [vmem:[#allocation12 + $0xa4] sm:$0xf]  ;;  %v8466_v27 = vld [vmem:[#allocation12 + $0xb0] sm:$0xf0]  ;;  %2492 = vmatmul.bf16.vlgmr.msra.gmra.mxu2 %v13300_v18  ;;  %v878_v21 = vadd.f32 %v862_v9, %v853_v5  ;;  %v8885_v57 = vor.u32 %v11611_v11, %v8882_v2  ;;  %vm885_vm13 = vcmp.ge.f32.partialorder %v13298_v36, 0.0  ;;  %vm820_vm15 = vmor %vm818_vm14, %vm819_vm12 }
 0x135   :  { %2562 = vmatpush.bf16.msra.mxu0 %v8501_v33  ;;  %v11539_v3 = vld [vmem:[#allocation12 + $0x1a4] sm:$0xf]  ;;  %v8594_v55 = vld [vmem:[#allocation12 + $0x1b0] sm:$0xf0]  ;;  %v900_v50 = vsel %vm884_vm11, %v13260_v61, %v892_v63  ;;  %v893_v19 = vmul.f32 0.01, %v13298_v36  ;;  %v8469_v32 = vor.u32 %v11507_v54, %v8466_v27 }
 0x136   :  { %2575 = vmatpush.bf16.msra.mxu1 %v8629_v53  ;;  %v11575_v23 = vld [vmem:[#allocation12 + $0x2c4] sm:$0xf]  ;;  %v816_v22 = vsub.f32 1.5, %v815_v51  ;;  %2555 = vmatpush.bf16.msrb.mxu3 %v9297_v47  ;;  %v8738_v41 = vld [vmem:[#allocation12 + $0x2d0] sm:$0xf0]  ;;  %v8597_v61 = vor.u32 %v11539_v3, %v8594_v55  ;;  %v13324_v15 = vpack.c.bf16 %v900_v50, %v900_v50  ;;  %v838_v9 = vperm.slane %v13030_v28, 7 }
 0x137   :  { %v11607_v46 = vld [vmem:[#allocation12 + $0x3c4] sm:$0xf]  ;;  %2543 = vmatpush.bf16.msrb.mxu2 %v9153_v60  ;;  %v8866_v40 = vld [vmem:[#allocation12 + $0x3d0] sm:$0xf0]  ;;  %v8741_v58 = vor.u32 %v11575_v23, %v8738_v41  ;;  %v863_v35 = vperm.slane %v13032_v7, 7  ;;  %v901_v56 = vsel %vm885_vm13, %v13298_v36, %v893_v19  ;;  %vm886_vm0 = vcmp.ge.f32.partialorder %v878_v21, 0.0 }
 0x138   :  { %v817_v6 = vmul.f32 %v13284_v17, %v816_v22  ;;  %v11503_v10 = vld [vmem:[#allocation12 + $0x84] sm:$0xf]  ;;  %v8450_v13 = vld [vmem:[#allocation12 + $0x90] sm:$0xf0]  ;;  %v8869_v28 = vor.u32 %v11607_v46, %v8866_v40  ;;  %v894_v26 = vmul.f32 0.01, %v878_v21  ;;  %v13336_v36 = vpack.c.bf16 %v901_v56, %v901_v56 }
 0x139   :  { %2563 = vmatpush.bf16.msra.mxu0 %v8485_v49  ;;  %v11535_v29 = vld [vmem:[#allocation12 + $0x184] sm:$0xf]  ;;  %v8578_v4 = vld [vmem:[#allocation12 + $0x190] sm:$0xf0]  ;;  %v8453_v24 = vor.u32 %v11503_v10, %v8450_v13 }
 0x13a   :  { %2576 = vmatpush.bf16.msra.mxu1 %v8613_v52  ;;  %v821_v33 = vsel %vm820_vm15, %v13284_v17, %v817_v6  ;;  %2556 = vmatpush.bf16.msrb.mxu3 %v9281_v31  ;;  %v11571_v53 = vld [vmem:[#allocation12 + $0x2a4] sm:$0xf]  ;;  %v8722_v38 = vld [vmem:[#allocation12 + $0x2b0] sm:$0xf0]  ;;  %v8581_v17 = vor.u32 %v11535_v29, %v8578_v4  ;;  %v902_v5 = vsel %vm886_vm0, %v878_v21, %v894_v26 }
 0x13b   :  { %2588 = vmatpush.bf16.msra.mxu2 %v8757_v12  ;;  %v829_v20 = vmul.f32 %v821_v33, %v13119_v59  ;;  %v11603_v34 = vld [vmem:[#allocation12 + $0x3a4] sm:$0xf]  ;;  %v8850_v16 = vld [vmem:[#allocation12 + $0x3b0] sm:$0xf0]  ;;  %2518 = vmatmul.bf16.vlgmr.msrb.gmra.mxu0 %v13324_v15  ;;  %v8725_v8 = vor.u32 %v11571_v53, %v8722_v38  ;;  %v13340_v54 = vpack.c.bf16 %v902_v5, %v902_v5 }
 0x13c   :  { %v11499_v7 = vld [vmem:[#allocation12 + $0x64] sm:$0xf]  ;;  %v8434_v62 = vld [vmem:[#allocation12 + $0x70] sm:$0xf0]  ;;  %v8853_v39 = vor.u32 %v11603_v34, %v8850_v16 }
 0x13d   :  { %2564 = vmatpush.bf16.msra.mxu0 %v8469_v32  ;;  %v854_v14 = vmul.f32 %v838_v9, %v829_v20  ;;  %v11531_v59 = vld [vmem:[#allocation12 + $0x164] sm:$0xf]  ;;  %v8562_v45 = vld [vmem:[#allocation12 + $0x170] sm:$0xf0]  ;;  %v8437_v47 = vor.u32 %v11499_v7, %v8434_v62 }
 0x13e   :  { %2601 = vmatpush.bf16.msra.mxu3 %v8885_v57  ;;  %2577 = vmatpush.bf16.msra.mxu1 %v8597_v61  ;;  %v11567_v0 = vld [vmem:[#allocation12 + $0x284] sm:$0xf]  ;;  %v8706_v37 = vld [vmem:[#allocation12 + $0x290] sm:$0xf0]  ;;  %v8565_v49 = vor.u32 %v11531_v59, %v8562_v45 }
 0x13f   :  { %2589 = vmatpush.bf16.msra.mxu2 %v8741_v58  ;;  %v879_v44 = vadd.f32 %v863_v35, %v854_v14  ;;  %v11599_v48 = vld [vmem:[#allocation12 + $0x384] sm:$0xf]  ;;  %v8834_v25 = vld [vmem:[#allocation12 + $0x390] sm:$0xf0]  ;;  %2531 = vmatmul.bf16.vlgmr.msrb.gmra.mxu1 %v13336_v36  ;;  %v8709_v51 = vor.u32 %v11567_v0, %v8706_v37 }
 0x140   :  { %v11495_v11 = vld [vmem:[#allocation12 + $0x44] sm:$0xf]  ;;  %v8418_v2 = vld [vmem:[#allocation12 + $0x50] sm:$0xf0]  ;;  %v8837_v3 = vor.u32 %v11599_v48, %v8834_v25 }
 0x141   :  { %2565 = vmatpush.bf16.msra.mxu0 %v8453_v24  ;;  %v11527_v63 = vld [vmem:[#allocation12 + $0x144] sm:$0xf]  ;;  %v8546_v52 = vld [vmem:[#allocation12 + $0x150] sm:$0xf0]  ;;  %vm887_vm1 = vcmp.ge.f32.partialorder %v879_v44, 0.0  ;;  %v8421_v55 = vor.u32 %v11495_v11, %v8418_v2 }
 0x142   :  { %2602 = vmatpush.bf16.msra.mxu3 %v8869_v28  ;;  %2578 = vmatpush.bf16.msra.mxu1 %v8581_v17  ;;  %v895_v60 = vmul.f32 0.01, %v879_v44  ;;  %v11563_v27 = vld [vmem:[#allocation12 + $0x264] sm:$0xf]  ;;  %v8690_v12 = vld [vmem:[#allocation12 + $0x270] sm:$0xf0]  ;;  %v8549_v22 = vor.u32 %v11527_v63, %v8546_v52 }
 0x143   :  { %2590 = vmatpush.bf16.msra.mxu2 %v8725_v8  ;;  %v11595_v50 = vld [vmem:[#allocation12 + $0x364] sm:$0xf]  ;;  %v8818_v41 = vld [vmem:[#allocation12 + $0x370] sm:$0xf0]  ;;  %v8693_v57 = vor.u32 %v11563_v27, %v8690_v12 }
 0x144   :  { %v903_v23 = vsel %vm887_vm1, %v879_v44, %v895_v60  ;;  %v11491_v19 = vld [vmem:[#allocation12 + $0x24] sm:$0xf]  ;;  %v8402_v21 = vld [vmem:[#allocation12 + $0x30] sm:$0xf0]  ;;  %2544 = vmatmul.bf16.vlgmr.msrb.gmra.mxu2 %v13340_v54  ;;  %v8821_v40 = vor.u32 %v11595_v50, %v8818_v41 }
 0x145   :  { %2566 = vmatpush.bf16.msra.mxu0 %v8437_v47  ;;  %v13342_v31 = vpack.c.bf16 %v903_v23, %v903_v23  ;;  %v11523_v32 = vld [vmem:[#allocation12 + $0x124] sm:$0xf]  ;;  %v8530_v46 = vld [vmem:[#allocation12 + $0x130] sm:$0xf0]  ;;  %v8405_v10 = vor.u32 %v11491_v19, %v8402_v21 }
 0x146   :  { %2603 = vmatpush.bf16.msra.mxu3 %v8853_v39  ;;  %2579 = vmatpush.bf16.msra.mxu1 %v8565_v49  ;;  %v11559_v6 = vld [vmem:[#allocation12 + $0x244] sm:$0xf]  ;;  %v8674_v61 = vld [vmem:[#allocation12 + $0x250] sm:$0xf0]  ;;  %v8533_v29 = vor.u32 %v11523_v32, %v8530_v46 }
 0x147   :  { %2591 = vmatpush.bf16.msra.mxu2 %v8709_v51  ;;  %2557 = vmatmul.bf16.vlgmr.msrb.gmra.mxu3 %v13342_v31  ;;  %v11591_v13 = vld [vmem:[#allocation12 + $0x344] sm:$0xf]  ;;  %v8802_v9 = vld [vmem:[#allocation12 + $0x350] sm:$0xf0]  ;;  %v8677_v53 = vor.u32 %v11559_v6, %v8674_v61 }
 0x148   :  { %v11487_v58 = vld [vmem:[#allocation12 + $0x4] sm:$0xf]  ;;  %v8386_v4 = vld [vmem:[#allocation12 + $0x10] sm:$0xf0]  ;;  %v8805_v16 = vor.u32 %v11591_v13, %v8802_v9 }
 0x149   :  { %2567 = vmatpush.bf16.msra.mxu0 %v8421_v55  ;;  %v11519_v33 = vld [vmem:[#allocation12 + $0x104] sm:$0xf]  ;;  %v8514_v35 = vld [vmem:[#allocation12 + $0x110] sm:$0xf0]  ;;  %v8389_v26 = vor.u32 %v11487_v58, %v8386_v4 }
 0x14a   :  { %2604 = vmatpush.bf16.msra.mxu3 %v8837_v3  ;;  %2580 = vmatpush.bf16.msra.mxu1 %v8549_v22  ;;  %v11643_v38 = vld [vmem:[#allocation12 + $0x4e4] sm:$0xf]  ;;  %v9010_v56 = vld [vmem:[#allocation12 + $0x4f0] sm:$0xf0]  ;;  %v8517_v17 = vor.u32 %v11519_v33, %v8514_v35 }
 0x14b   :  { %2592 = vmatpush.bf16.msra.mxu2 %v8693_v57  ;;  %v11675_v20 = vld [vmem:[#allocation12 + $0x5e4] sm:$0xf]  ;;  %v9138_v28 = vld [vmem:[#allocation12 + $0x5f0] sm:$0xf0]  ;;  %v9013_v7 = vor.u32 %v11643_v38, %v9010_v56 }
 0x14c   :  { %v11555_v24 = vld [vmem:[#allocation12 + $0x224] sm:$0xf]  ;;  %v8658_v34 = vld [vmem:[#allocation12 + $0x230] sm:$0xf0]  ;;  %v9141_v8 = vor.u32 %v11675_v20, %v9138_v28 }
 0x14d   :  { %2568 = vmatpush.bf16.msra.mxu0 %v8405_v10  ;;  %v11587_v62 = vld [vmem:[#allocation12 + $0x324] sm:$0xf]  ;;  %v8786_v14 = vld [vmem:[#allocation12 + $0x330] sm:$0xf0]  ;;  %v8661_v59 = vor.u32 %v11555_v24, %v8658_v34 }
 0x14e   :  { %2605 = vmatpush.bf16.msra.mxu3 %v8821_v40  ;;  %2581 = vmatpush.bf16.msra.mxu1 %v8533_v29  ;;  %v11639_v45 = vld [vmem:[#allocation12 + $0x4c4] sm:$0xf]  ;;  %v8994_v39 = vld [vmem:[#allocation12 + $0x4d0] sm:$0xf0]  ;;  %v8789_v48 = vor.u32 %v11587_v62, %v8786_v14 }
 0x14f   :  { %2593 = vmatpush.bf16.msra.mxu2 %v8677_v53  ;;  %v11671_v0 = vld [vmem:[#allocation12 + $0x5c4] sm:$0xf]  ;;  %v9122_v37 = vld [vmem:[#allocation12 + $0x5d0] sm:$0xf0]  ;;  %v8997_v49 = vor.u32 %v11639_v45, %v8994_v39 }
 0x150   :  { %v11551_v44 = vld [vmem:[#allocation12 + $0x204] sm:$0xf]  ;;  %v8642_v47 = vld [vmem:[#allocation12 + $0x210] sm:$0xf0]  ;;  %v9125_v51 = vor.u32 %v11671_v0, %v9122_v37 }
 0x151   :  { %2569 = vmatpush.bf16.msra.mxu0 %v8389_v26  ;;  %v11707_v25 = vld [vmem:[#allocation12 + $0x6e4] sm:$0xf]  ;;  %v9266_v5 = vld [vmem:[#allocation12 + $0x6f0] sm:$0xf0]  ;;  %v8645_v52 = vor.u32 %v11551_v44, %v8642_v47 }
 0x152   :  { %2606 = vmatpush.bf16.msra.mxu3 %v8805_v16  ;;  %2582 = vmatpush.bf16.msra.mxu1 %v8517_v17  ;;  %v11583_v11 = vld [vmem:[#allocation12 + $0x304] sm:$0xf]  ;;  %v8770_v2 = vld [vmem:[#allocation12 + $0x310] sm:$0xf0]  ;;  %v9269_v3 = vor.u32 %v11707_v25, %v9266_v5 }
 0x153   :  { %v11739_v63 = vld [vmem:[#allocation12 + $0x7e4] sm:$0xf]  ;;  %2594 = vmatpush.bf16.msra.mxu2 %v8661_v59  ;;  %v9394_v60 = vld [vmem:[#allocation12 + $0x7f0] sm:$0xf0]  ;;  %v8773_v50 = vor.u32 %v11583_v11, %v8770_v2 }
 0x154   :  { %v11635_v27 = vld [vmem:[#allocation12 + $0x4a4] sm:$0xf]  ;;  %v8978_v12 = vld [vmem:[#allocation12 + $0x4b0] sm:$0xf0]  ;;  %2570 = vmatmul.bf16.vlgmr.msra.gmra.mxu0 %v13248_v30  ;;  %v9397_v19 = vor.u32 %v11739_v63, %v9394_v60 }
 0x155   :  { %2614 = vmatpush.bf16.msrb.mxu0 %v9013_v7  ;;  %v11667_v55 = vld [vmem:[#allocation12 + $0x5a4] sm:$0xf]  ;;  %v9106_v23 = vld [vmem:[#allocation12 + $0x5b0] sm:$0xf0]  ;;  %2583 = vmatmul.bf16.vlgmr.msra.gmra.mxu1 %v13266_v1  ;;  %v8981_v21 = vor.u32 %v11635_v27, %v8978_v12 }
 0x156   :  { %2627 = vmatpush.bf16.msrb.mxu1 %v9141_v8  ;;  %2607 = vmatpush.bf16.msra.mxu3 %v8789_v48  ;;  %v11703_v22 = vld [vmem:[#allocation12 + $0x6c4] sm:$0xf]  ;;  %v9250_v41 = vld [vmem:[#allocation12 + $0x6d0] sm:$0xf0]  ;;  %v9109_v32 = vor.u32 %v11667_v55, %v9106_v23 }
 0x157   :  { %v11735_v57 = vld [vmem:[#allocation12 + $0x7c4] sm:$0xf]  ;;  %2595 = vmatpush.bf16.msra.mxu2 %v8645_v52  ;;  %v9378_v46 = vld [vmem:[#allocation12 + $0x7d0] sm:$0xf0]  ;;  %v9253_v40 = vor.u32 %v11703_v22, %v9250_v41 }
 0x158   :  { %v11631_v6 = vld [vmem:[#allocation12 + $0x484] sm:$0xf]  ;;  %v8962_v61 = vld [vmem:[#allocation12 + $0x490] sm:$0xf0]  ;;  %v9381_v29 = vor.u32 %v11735_v57, %v9378_v46  ;;  %v11518_v46 = vld [vmem:[#allocation12 + $0xf4] sm:$0xf0] }
 0x159   :  { %2615 = vmatpush.bf16.msrb.mxu0 %v8997_v49  ;;  %v11663_v10 = vld [vmem:[#allocation12 + $0x584] sm:$0xf]  ;;  %v9090_v13 = vld [vmem:[#allocation12 + $0x590] sm:$0xf0]  ;;  %v8965_v4 = vor.u32 %v11631_v6, %v8962_v61  ;;  %v8632_v6 = vld [vmem:[#allocation12 + $0x1e8] sm:$0xf] }
 0x15a   :  { %2628 = vmatpush.bf16.msrb.mxu1 %v9125_v51  ;;  %2608 = vmatpush.bf16.msra.mxu3 %v8773_v50  ;;  %v11699_v9 = vld [vmem:[#allocation12 + $0x6a4] sm:$0xf]  ;;  %v9234_v58 = vld [vmem:[#allocation12 + $0x6b0] sm:$0xf0]  ;;  %v9093_v35 = vor.u32 %v11663_v10, %v9090_v13  ;;  %v11550_v61 = vld [vmem:[#allocation12 + $0x1f4] sm:$0xf0] }
 0x15b   :  { %2640 = vmatpush.bf16.msrb.mxu2 %v9269_v3  ;;  %v11731_v33 = vld [vmem:[#allocation12 + $0x7a4] sm:$0xf]  ;;  %v9362_v53 = vld [vmem:[#allocation12 + $0x7b0] sm:$0xf0]  ;;  %v9237_v20 = vor.u32 %v11699_v9, %v9234_v58 }
 0x15c   :  { %2596 = vmatmul.bf16.vlgmr.msra.gmra.mxu2 %v13300_v18  ;;  %v11627_v38 = vld [vmem:[#allocation12 + $0x464] sm:$0xf]  ;;  %v8946_v56 = vld [vmem:[#allocation12 + $0x470] sm:$0xf0]  ;;  %v9365_v26 = vor.u32 %v11731_v33, %v9362_v53 }
 0x15d   :  { %2616 = vmatpush.bf16.msrb.mxu0 %v8981_v21  ;;  %2609 = vmatmul.bf16.vlgmr.msra.gmra.mxu3 %v13306_v43  ;;  %v11659_v28 = vld [vmem:[#allocation12 + $0x564] sm:$0xf]  ;;  %v9074_v24 = vld [vmem:[#allocation12 + $0x570] sm:$0xf0]  ;;  %v8949_v17 = vor.u32 %v11627_v38, %v8946_v56  ;;  %v8488_v38 = vld [vmem:[#allocation12 + $0xc8] sm:$0xf] }
 0x15e   :  { %2653 = vmatpush.bf16.msrb.mxu3 %v9397_v19  ;;  %2629 = vmatpush.bf16.msrb.mxu1 %v9109_v32  ;;  %v11695_v34 = vld [vmem:[#allocation12 + $0x684] sm:$0xf]  ;;  %v9218_v16 = vld [vmem:[#allocation12 + $0x690] sm:$0xf0]  ;;  %v9077_v62 = vor.u32 %v11659_v28, %v9074_v24  ;;  %v8504_v32 = vld [vmem:[#allocation12 + $0xe8] sm:$0xf] }
 0x15f   :  { %2641 = vmatpush.bf16.msrb.mxu2 %v9253_v40  ;;  %v11727_v7 = vld [vmem:[#allocation12 + $0x784] sm:$0xf]  ;;  %v9346_v14 = vld [vmem:[#allocation12 + $0x790] sm:$0xf0]  ;;  %v9221_v45 = vor.u32 %v11695_v34, %v9218_v16  ;;  %v11514_v56 = vld [vmem:[#allocation12 + $0xd4] sm:$0xf0] }
 0x160   :  { %v11623_v8 = vld [vmem:[#allocation12 + $0x444] sm:$0xf]  ;;  %v8930_v59 = vld [vmem:[#allocation12 + $0x450] sm:$0xf0]  ;;  %v9349_v47 = vor.u32 %v11727_v7, %v9346_v14  ;;  %v11546_v28 = vld [vmem:[#allocation12 + $0x1d4] sm:$0xf0]  ;;  %v8489_v7 = vor.u32 %v11514_v56, %v8488_v38 }
 0x161   :  { %2617 = vmatpush.bf16.msrb.mxu0 %v8965_v4  ;;  %v11655_v39 = vld [vmem:[#allocation12 + $0x544] sm:$0xf]  ;;  %v9058_v0 = vld [vmem:[#allocation12 + $0x550] sm:$0xf0]  ;;  %v8933_v48 = vor.u32 %v11623_v8, %v8930_v59  ;;  %v11498_v38 = vld [vmem:[#allocation12 + $0x54] sm:$0xf0] }
 0x162   :  { %2654 = vmatpush.bf16.msrb.mxu3 %v9381_v29  ;;  %2630 = vmatpush.bf16.msrb.mxu1 %v9093_v35  ;;  %v11691_v37 = vld [vmem:[#allocation12 + $0x664] sm:$0xf]  ;;  %v9202_v44 = vld [vmem:[#allocation12 + $0x670] sm:$0xf0]  ;;  %v9061_v5 = vor.u32 %v11655_v39, %v9058_v0  ;;  %v8505_v29 = vor.u32 %v11518_v46, %v8504_v32  ;;  %v8633_v35 = vor.u32 %v11550_v61, %v8632_v6  ;;  %v11614_v39 = vld [vmem:[#allocation12 + $0x3f4] sm:$0xf0] }
 0x163   :  { %2642 = vmatpush.bf16.msrb.mxu2 %v9237_v20  ;;  %v11723_v25 = vld [vmem:[#allocation12 + $0x764] sm:$0xf]  ;;  %v9330_v49 = vld [vmem:[#allocation12 + $0x770] sm:$0xf0]  ;;  %v9205_v63 = vor.u32 %v11691_v37, %v9202_v44  ;;  %v8616_v20 = vld [vmem:[#allocation12 + $0x1c8] sm:$0xf] }
 0x164   :  { %v11619_v11 = vld [vmem:[#allocation12 + $0x424] sm:$0xf]  ;;  %v8914_v2 = vld [vmem:[#allocation12 + $0x430] sm:$0xf0]  ;;  %v9333_v12 = vor.u32 %v11723_v25, %v9330_v49  ;;  %v8617_v8 = vor.u32 %v11546_v28, %v8616_v20  ;;  %v8472_v0 = vld [vmem:[#allocation12 + $0xa8] sm:$0xf] }
 0x165   :  { %2618 = vmatpush.bf16.msrb.mxu0 %v8949_v17  ;;  %v11651_v51 = vld [vmem:[#allocation12 + $0x524] sm:$0xf]  ;;  %v9042_v52 = vld [vmem:[#allocation12 + $0x530] sm:$0xf0]  ;;  %v8917_v3 = vor.u32 %v11619_v11, %v8914_v2  ;;  %v11582_v17 = vld [vmem:[#allocation12 + $0x2f4] sm:$0xf0] }
 0x166   :  { %2655 = vmatpush.bf16.msrb.mxu3 %v9365_v26  ;;  %2631 = vmatpush.bf16.msrb.mxu1 %v9077_v62  ;;  %v11687_v60 = vld [vmem:[#allocation12 + $0x644] sm:$0xf]  ;;  %v9186_v27 = vld [vmem:[#allocation12 + $0x650] sm:$0xf0]  ;;  %v9045_v22 = vor.u32 %v11651_v51, %v9042_v52  ;;  %v8760_v26 = vld [vmem:[#allocation12 + $0x2e8] sm:$0xf] }
 0x167   :  { %2643 = vmatpush.bf16.msrb.mxu2 %v9221_v45  ;;  %v11719_v55 = vld [vmem:[#allocation12 + $0x744] sm:$0xf]  ;;  %v9314_v23 = vld [vmem:[#allocation12 + $0x750] sm:$0xf0]  ;;  %v9189_v57 = vor.u32 %v11687_v60, %v9186_v27  ;;  %v8888_v45 = vld [vmem:[#allocation12 + $0x3e8] sm:$0xf]  ;;  %v8761_v37 = vor.u32 %v11582_v17, %v8760_v26 }
 0x168   :  { %v11615_v50 = vld [vmem:[#allocation12 + $0x404] sm:$0xf]  ;;  %v8898_v41 = vld [vmem:[#allocation12 + $0x410] sm:$0xf0]  ;;  %v9317_v13 = vor.u32 %v11719_v55, %v9314_v23  ;;  %v11510_v44 = vld [vmem:[#allocation12 + $0xb4] sm:$0xf0]  ;;  %v8889_v11 = vor.u32 %v11614_v39, %v8888_v45 }
 0x169   :  { %2619 = vmatpush.bf16.msrb.mxu0 %v8933_v48  ;;  %v11647_v19 = vld [vmem:[#allocation12 + $0x504] sm:$0xf]  ;;  %v9026_v21 = vld [vmem:[#allocation12 + $0x510] sm:$0xf0]  ;;  %v8901_v9 = vor.u32 %v11615_v50, %v8898_v41  ;;  %v11542_v48 = vld [vmem:[#allocation12 + $0x1b4] sm:$0xf0]  ;;  %v8473_v2 = vor.u32 %v11510_v44, %v8472_v0 }
 0x16a   :  { %2656 = vmatpush.bf16.msrb.mxu3 %v9349_v47  ;;  %2632 = vmatpush.bf16.msrb.mxu1 %v9061_v5  ;;  %v11683_v40 = vld [vmem:[#allocation12 + $0x624] sm:$0xf]  ;;  %v9170_v10 = vld [vmem:[#allocation12 + $0x630] sm:$0xf0]  ;;  %v9029_v58 = vor.u32 %v11647_v19, %v9026_v21  ;;  %v8600_v47 = vld [vmem:[#allocation12 + $0x1a8] sm:$0xf] }
 0x16b   :  { %2644 = vmatpush.bf16.msrb.mxu2 %v9205_v63  ;;  %v11715_v4 = vld [vmem:[#allocation12 + $0x724] sm:$0xf]  ;;  %v9298_v33 = vld [vmem:[#allocation12 + $0x730] sm:$0xf0]  ;;  %v9173_v53 = vor.u32 %v11683_v40, %v9170_v10  ;;  %v8744_v5 = vld [vmem:[#allocation12 + $0x2c8] sm:$0xf]  ;;  %v8601_v63 = vor.u32 %v11542_v48, %v8600_v47 }
 0x16c   :  { %v11679_v24 = vld [vmem:[#allocation12 + $0x604] sm:$0xf]  ;;  %v9154_v34 = vld [vmem:[#allocation12 + $0x610] sm:$0xf0]  ;;  %v9301_v16 = vor.u32 %v11715_v4, %v9298_v33  ;;  %v11578_v49 = vld [vmem:[#allocation12 + $0x2d4] sm:$0xf0] }
 0x16d   :  { %2620 = vmatpush.bf16.msrb.mxu0 %v8917_v3  ;;  %v11711_v62 = vld [vmem:[#allocation12 + $0x704] sm:$0xf]  ;;  %v9282_v14 = vld [vmem:[#allocation12 + $0x710] sm:$0xf0]  ;;  %v9157_v59 = vor.u32 %v11679_v24, %v9154_v34  ;;  %v8872_v51 = vld [vmem:[#allocation12 + $0x3c8] sm:$0xf]  ;;  %v8745_v27 = vor.u32 %v11578_v49, %v8744_v5 }
 0x16e   :  { %2657 = vmatpush.bf16.msrb.mxu3 %v9333_v12  ;;  %2633 = vmatpush.bf16.msrb.mxu1 %v9045_v22  ;;  %v9285_v25 = vor.u32 %v11711_v62, %v9282_v14  ;;  %v11610_v52 = vld [vmem:[#allocation12 + $0x3d4] sm:$0xf0]  ;;  %v8456_v60 = vld [vmem:[#allocation12 + $0x88] sm:$0xf] }
 0x16f   :  { %2645 = vmatpush.bf16.msrb.mxu2 %v9189_v57  ;;  %v11506_v12 = vld [vmem:[#allocation12 + $0x94] sm:$0xf0]  ;;  %v8584_v3 = vld [vmem:[#allocation12 + $0x188] sm:$0xf]  ;;  %v8873_v22 = vor.u32 %v11610_v52, %v8872_v51 }
 0x170   :  { %v11538_v55 = vld [vmem:[#allocation12 + $0x194] sm:$0xf0]  ;;  %v8728_v23 = vld [vmem:[#allocation12 + $0x2a8] sm:$0xf]  ;;  %v8457_v41 = vor.u32 %v11506_v12, %v8456_v60 }
 0x171   :  { %2621 = vmatpush.bf16.msrb.mxu0 %v8901_v9  ;;  %v11574_v50 = vld [vmem:[#allocation12 + $0x2b4] sm:$0xf0]  ;;  %v8585_v19 = vor.u32 %v11538_v55, %v8584_v3  ;;  %v8856_v21 = vld [vmem:[#allocation12 + $0x3a8] sm:$0xf] }
 0x172   :  { %2658 = vmatpush.bf16.msrb.mxu3 %v9317_v13  ;;  %2634 = vmatpush.bf16.msrb.mxu1 %v9029_v58  ;;  %v11606_v57 = vld [vmem:[#allocation12 + $0x3b4] sm:$0xf0]  ;;  %v8440_v32 = vld [vmem:[#allocation12 + $0x68] sm:$0xf]  ;;  %v8729_v46 = vor.u32 %v11574_v50, %v8728_v23 }
 0x173   :  { %2646 = vmatpush.bf16.msrb.mxu2 %v9173_v53  ;;  %v11502_v6 = vld [vmem:[#allocation12 + $0x74] sm:$0xf0]  ;;  %v8568_v61 = vld [vmem:[#allocation12 + $0x168] sm:$0xf]  ;;  %v8857_v9 = vor.u32 %v11606_v57, %v8856_v21 }
 0x174   :  { %2622 = vmatmul.bf16.vlgmr.msrb.gmra.mxu0 %v13324_v15  ;;  %v11534_v40 = vld [vmem:[#allocation12 + $0x174] sm:$0xf0]  ;;  %v8712_v10 = vld [vmem:[#allocation12 + $0x288] sm:$0xf]  ;;  %v8441_v58 = vor.u32 %v11502_v6, %v8440_v32 }
 0x175   :  { %2666 = vmatpush.bf16.msra.mxu0 %v8505_v29  ;;  %2635 = vmatmul.bf16.vlgmr.msrb.gmra.mxu1 %v13336_v36  ;;  %v11570_v13 = vld [vmem:[#allocation12 + $0x294] sm:$0xf0]  ;;  %v8569_v29 = vor.u32 %v11534_v40, %v8568_v61  ;;  %v8840_v4 = vld [vmem:[#allocation12 + $0x388] sm:$0xf] }
 0x176   :  { %2679 = vmatpush.bf16.msra.mxu1 %v8633_v35  ;;  %2659 = vmatpush.bf16.msrb.mxu3 %v9301_v16  ;;  %v11602_v33 = vld [vmem:[#allocation12 + $0x394] sm:$0xf0]  ;;  %v8424_v35 = vld [vmem:[#allocation12 + $0x48] sm:$0xf]  ;;  %v8713_v53 = vor.u32 %v11570_v13, %v8712_v10 }
 0x177   :  { %2647 = vmatpush.bf16.msrb.mxu2 %v9157_v59  ;;  %v8552_v56 = vld [vmem:[#allocation12 + $0x148] sm:$0xf]  ;;  %v11530_v20 = vld [vmem:[#allocation12 + $0x154] sm:$0xf0]  ;;  %v8841_v34 = vor.u32 %v11602_v33, %v8840_v4  ;;  %v8425_v16 = vor.u32 %v11498_v38, %v8424_v35 }
 0x178   :  { %v8696_v28 = vld [vmem:[#allocation12 + $0x268] sm:$0xf]  ;;  %v11566_v24 = vld [vmem:[#allocation12 + $0x274] sm:$0xf0]  ;;  %v8553_v26 = vor.u32 %v11530_v20, %v8552_v56 }
 0x179   :  { %2667 = vmatpush.bf16.msra.mxu0 %v8489_v7  ;;  %v8824_v17 = vld [vmem:[#allocation12 + $0x368] sm:$0xf]  ;;  %v11598_v7 = vld [vmem:[#allocation12 + $0x374] sm:$0xf0]  ;;  %v8697_v14 = vor.u32 %v11566_v24, %v8696_v28 }
 0x17a   :  { %2680 = vmatpush.bf16.msra.mxu1 %v8617_v8  ;;  %2660 = vmatpush.bf16.msrb.mxu3 %v9285_v25  ;;  %v8408_v62 = vld [vmem:[#allocation12 + $0x28] sm:$0xf]  ;;  %v11494_v8 = vld [vmem:[#allocation12 + $0x34] sm:$0xf0] }
 0x17b   :  { %2692 = vmatpush.bf16.msra.mxu2 %v8761_v37  ;;  %v8536_v59 = vld [vmem:[#allocation12 + $0x128] sm:$0xf]  ;;  %v11526_v45 = vld [vmem:[#allocation12 + $0x134] sm:$0xf0]  ;;  %v8825_v37 = vor.u32 %v11598_v7, %v8824_v17  ;;  %v8409_v47 = vor.u32 %v11494_v8, %v8408_v62 }
 0x17c   :  { %2648 = vmatmul.bf16.vlgmr.msrb.gmra.mxu2 %v13340_v54  ;;  %v8680_v39 = vld [vmem:[#allocation12 + $0x248] sm:$0xf]  ;;  %v11562_v0 = vld [vmem:[#allocation12 + $0x254] sm:$0xf0]  ;;  %v8537_v48 = vor.u32 %v11526_v45, %v8536_v59 }
 0x17d   :  { %2668 = vmatpush.bf16.msra.mxu0 %v8473_v2  ;;  %2661 = vmatmul.bf16.vlgmr.msrb.gmra.mxu3 %v13342_v31  ;;  %v8808_v44 = vld [vmem:[#allocation12 + $0x348] sm:$0xf]  ;;  %v11594_v25 = vld [vmem:[#allocation12 + $0x354] sm:$0xf0] }
 0x17e   :  { %2705 = vmatpush.bf16.msra.mxu3 %v8889_v11  ;;  %2681 = vmatpush.bf16.msra.mxu1 %v8601_v63  ;;  %v8392_v5 = vld [vmem:[#allocation12 + $0x8] sm:$0xf]  ;;  %v11490_v49 = vld [vmem:[#allocation12 + $0x14] sm:$0xf0]  ;;  %v8681_v11 = vor.u32 %v11562_v0, %v8680_v39  ;;  %v8809_v12 = vor.u32 %v11594_v25, %v8808_v44 }
 0x17f   :  { %2693 = vmatpush.bf16.msra.mxu2 %v8745_v27  ;;  %v8520_v2 = vld [vmem:[#allocation12 + $0x108] sm:$0xf]  ;;  %v11522_v63 = vld [vmem:[#allocation12 + $0x114] sm:$0xf0]  ;;  %v8393_v23 = vor.u32 %v11490_v49, %v8392_v5 }
 0x180   :  { %v9016_v51 = vld [vmem:[#allocation12 + $0x4e8] sm:$0xf]  ;;  %v11646_v52 = vld [vmem:[#allocation12 + $0x4f4] sm:$0xf0]  ;;  %v8521_v50 = vor.u32 %v11522_v63, %v8520_v2 }
 0x181   :  { %2669 = vmatpush.bf16.msra.mxu0 %v8457_v41  ;;  %v9144_v60 = vld [vmem:[#allocation12 + $0x5e8] sm:$0xf]  ;;  %v11678_v27 = vld [vmem:[#allocation12 + $0x5f4] sm:$0xf0] }
 0x182   :  { %2706 = vmatpush.bf16.msra.mxu3 %v8873_v22  ;;  %2682 = vmatpush.bf16.msra.mxu1 %v8585_v19  ;;  %v8664_v3 = vld [vmem:[#allocation12 + $0x228] sm:$0xf]  ;;  %v11558_v55 = vld [vmem:[#allocation12 + $0x234] sm:$0xf0]  ;;  %v9017_v19 = vor.u32 %v11646_v52, %v9016_v51  ;;  %v9145_v21 = vor.u32 %v11678_v27, %v9144_v60 }
 0x183   :  { %2694 = vmatpush.bf16.msra.mxu2 %v8729_v46  ;;  %v8792_v22 = vld [vmem:[#allocation12 + $0x328] sm:$0xf]  ;;  %v11590_v41 = vld [vmem:[#allocation12 + $0x334] sm:$0xf0]  ;;  %v8665_v32 = vor.u32 %v11558_v55, %v8664_v3 }
 0x184   :  { %v9000_v57 = vld [vmem:[#allocation12 + $0x4c8] sm:$0xf]  ;;  %v11642_v46 = vld [vmem:[#allocation12 + $0x4d4] sm:$0xf0]  ;;  %v8793_v40 = vor.u32 %v11590_v41, %v8792_v22 }
 0x185   :  { %2670 = vmatpush.bf16.msra.mxu0 %v8441_v58  ;;  %v9128_v6 = vld [vmem:[#allocation12 + $0x5c8] sm:$0xf]  ;;  %v11674_v61 = vld [vmem:[#allocation12 + $0x5d4] sm:$0xf0]  ;;  %v9001_v33 = vor.u32 %v11642_v46, %v9000_v57 }
 0x186   :  { %2707 = vmatpush.bf16.msra.mxu3 %v8857_v9  ;;  %2683 = vmatpush.bf16.msra.mxu1 %v8569_v29  ;;  %v8648_v10 = vld [vmem:[#allocation12 + $0x208] sm:$0xf]  ;;  %v11554_v13 = vld [vmem:[#allocation12 + $0x214] sm:$0xf0]  ;;  %v9129_v35 = vor.u32 %v11674_v61, %v9128_v6 }
 0x187   :  { %2695 = vmatpush.bf16.msra.mxu2 %v8713_v53  ;;  %v8776_v9 = vld [vmem:[#allocation12 + $0x308] sm:$0xf]  ;;  %v11586_v58 = vld [vmem:[#allocation12 + $0x314] sm:$0xf0]  ;;  %v8649_v56 = vor.u32 %v11554_v13, %v8648_v10 }
 0x188   :  { %v9272_v29 = vld [vmem:[#allocation12 + $0x6e8] sm:$0xf]  ;;  %v11710_v4 = vld [vmem:[#allocation12 + $0x6f4] sm:$0xf0]  ;;  %v8777_v24 = vor.u32 %v11586_v58, %v8776_v9 }
 0x189   :  { %2671 = vmatpush.bf16.msra.mxu0 %v8425_v16  ;;  %v9400_v53 = vld [vmem:[#allocation12 + $0x7e8] sm:$0xf]  ;;  %v11742_v38 = vld [vmem:[#allocation12 + $0x7f4] sm:$0xf0] }
 0x18a   :  { %2708 = vmatpush.bf16.msra.mxu3 %v8841_v34  ;;  %2684 = vmatpush.bf16.msra.mxu1 %v8553_v26  ;;  %v8984_v20 = vld [vmem:[#allocation12 + $0x4a8] sm:$0xf]  ;;  %v11638_v28 = vld [vmem:[#allocation12 + $0x4b4] sm:$0xf0]  ;;  %v9273_v34 = vor.u32 %v11710_v4, %v9272_v29  ;;  %v9401_v17 = vor.u32 %v11742_v38, %v9400_v53 }
 0x18b   :  { %2696 = vmatpush.bf16.msra.mxu2 %v8697_v14  ;;  %v9112_v16 = vld [vmem:[#allocation12 + $0x5a8] sm:$0xf]  ;;  %v11670_v26 = vld [vmem:[#allocation12 + $0x5b4] sm:$0xf0]  ;;  %v8985_v14 = vor.u32 %v11638_v28, %v8984_v20 }
 0x18c   :  { %v9256_v7 = vld [vmem:[#allocation12 + $0x6c8] sm:$0xf]  ;;  %v11706_v62 = vld [vmem:[#allocation12 + $0x6d4] sm:$0xf0]  ;;  %v9113_v45 = vor.u32 %v11670_v26, %v9112_v16 }
 0x18d   :  { %2672 = vmatpush.bf16.msra.mxu0 %v8409_v47  ;;  %v9384_v8 = vld [vmem:[#allocation12 + $0x7c8] sm:$0xf]  ;;  %v11738_v59 = vld [vmem:[#allocation12 + $0x7d4] sm:$0xf0] }
 0x18e   :  { %2709 = vmatpush.bf16.msra.mxu3 %v8825_v37  ;;  %2685 = vmatpush.bf16.msra.mxu1 %v8537_v48  ;;  %v8968_v39 = vld [vmem:[#allocation12 + $0x488] sm:$0xf]  ;;  %v11634_v0 = vld [vmem:[#allocation12 + $0x494] sm:$0xf0]  ;;  %v9257_v37 = vor.u32 %v11706_v62, %v9256_v7  ;;  %v9385_v48 = vor.u32 %v11738_v59, %v9384_v8  ;;  %v11516_v59 = vld [vmem:[#allocation12 + $0xec] sm:$0xf] }
 0x18f   :  { %2697 = vmatpush.bf16.msra.mxu2 %v8681_v11  ;;  %v9096_v44 = vld [vmem:[#allocation12 + $0x588] sm:$0xf]  ;;  %v11666_v47 = vld [vmem:[#allocation12 + $0x594] sm:$0xf0]  ;;  %v8969_v49 = vor.u32 %v11634_v0, %v8968_v39  ;;  %v11548_v39 = vld [vmem:[#allocation12 + $0x1ec] sm:$0xf] }
 0x190   :  { %v9240_v25 = vld [vmem:[#allocation12 + $0x6a8] sm:$0xf]  ;;  %v11702_v5 = vld [vmem:[#allocation12 + $0x6b4] sm:$0xf0]  ;;  %v9097_v63 = vor.u32 %v11666_v47, %v9096_v44 }
 0x191   :  { %2673 = vmatpush.bf16.msra.mxu0 %v8393_v23  ;;  %v9368_v11 = vld [vmem:[#allocation12 + $0x7a8] sm:$0xf]  ;;  %v11734_v2 = vld [vmem:[#allocation12 + $0x7b4] sm:$0xf0]  ;;  %v9241_v60 = vor.u32 %v11702_v5, %v9240_v25 }
 0x192   :  { %2710 = vmatpush.bf16.msra.mxu3 %v8809_v12  ;;  %2686 = vmatpush.bf16.msra.mxu1 %v8521_v50  ;;  %v8952_v51 = vld [vmem:[#allocation12 + $0x468] sm:$0xf]  ;;  %v11630_v52 = vld [vmem:[#allocation12 + $0x474] sm:$0xf0]  ;;  %v9369_v3 = vor.u32 %v11734_v2, %v9368_v11  ;;  %v11512_v2 = vld [vmem:[#allocation12 + $0xcc] sm:$0xf] }
 0x193   :  { %2698 = vmatpush.bf16.msra.mxu2 %v8665_v32  ;;  %v9080_v27 = vld [vmem:[#allocation12 + $0x568] sm:$0xf]  ;;  %v11662_v12 = vld [vmem:[#allocation12 + $0x574] sm:$0xf0]  ;;  %v8953_v50 = vor.u32 %v11630_v52, %v8952_v51  ;;  %v8490_v52 = vld [vmem:[#allocation12 + $0xd8] sm:$0xf0] }
 0x194   :  { %2674 = vmatmul.bf16.vlgmr.msra.gmra.mxu0 %v13248_v30  ;;  %v9224_v55 = vld [vmem:[#allocation12 + $0x688] sm:$0xf]  ;;  %v11698_v23 = vld [vmem:[#allocation12 + $0x694] sm:$0xf0] }
 0x195   :  { %2718 = vmatpush.bf16.msrb.mxu0 %v9017_v19  ;;  %2687 = vmatmul.bf16.vlgmr.msra.gmra.mxu1 %v13266_v1  ;;  %v9352_v22 = vld [vmem:[#allocation12 + $0x788] sm:$0xf]  ;;  %v11730_v41 = vld [vmem:[#allocation12 + $0x794] sm:$0xf0]  ;;  %v9081_v19 = vor.u32 %v11662_v12, %v9080_v27  ;;  %v9225_v32 = vor.u32 %v11698_v23, %v9224_v55  ;;  %v8618_v27 = vld [vmem:[#allocation12 + $0x1d8] sm:$0xf0] }
 0x196   :  { %2731 = vmatpush.bf16.msrb.mxu1 %v9145_v21  ;;  %2711 = vmatpush.bf16.msra.mxu3 %v8793_v40  ;;  %v8936_v21 = vld [vmem:[#allocation12 + $0x448] sm:$0xf]  ;;  %v11626_v57 = vld [vmem:[#allocation12 + $0x454] sm:$0xf0]  ;;  %v9353_v61 = vor.u32 %v11730_v41, %v9352_v22  ;;  %v11580_v22 = vld [vmem:[#allocation12 + $0x2ec] sm:$0xf] }
 0x197   :  { %2699 = vmatpush.bf16.msra.mxu2 %v8649_v56  ;;  %v9064_v46 = vld [vmem:[#allocation12 + $0x548] sm:$0xf]  ;;  %v11658_v6 = vld [vmem:[#allocation12 + $0x554] sm:$0xf0]  ;;  %v8937_v13 = vor.u32 %v11626_v57, %v8936_v21  ;;  %v8762_v41 = vld [vmem:[#allocation12 + $0x2f8] sm:$0xf0] }
 0x198   :  { %v9208_v40 = vld [vmem:[#allocation12 + $0x668] sm:$0xf]  ;;  %v11694_v10 = vld [vmem:[#allocation12 + $0x674] sm:$0xf0]  ;;  %v9065_v29 = vor.u32 %v11658_v6, %v9064_v46  ;;  %v11612_v21 = vld [vmem:[#allocation12 + $0x3ec] sm:$0xf] }
 0x199   :  { %2719 = vmatpush.bf16.msrb.mxu0 %v9001_v33  ;;  %v9336_v9 = vld [vmem:[#allocation12 + $0x768] sm:$0xf]  ;;  %v11726_v58 = vld [vmem:[#allocation12 + $0x774] sm:$0xf0]  ;;  %v8890_v57 = vld [vmem:[#allocation12 + $0x3f8] sm:$0xf0] }
 0x19a   :  { %2732 = vmatpush.bf16.msrb.mxu1 %v9129_v35  ;;  %2712 = vmatpush.bf16.msra.mxu3 %v8777_v24  ;;  %v8920_v4 = vld [vmem:[#allocation12 + $0x428] sm:$0xf]  ;;  %v11622_v33 = vld [vmem:[#allocation12 + $0x434] sm:$0xf0]  ;;  %v9209_v35 = vor.u32 %v11694_v10, %v9208_v40  ;;  %v9337_v56 = vor.u32 %v11726_v58, %v9336_v9  ;;  %v8474_v40 = vld [vmem:[#allocation12 + $0xb8] sm:$0xf0] }
 0x19b   :  { %2744 = vmatpush.bf16.msrb.mxu2 %v9273_v34  ;;  %v9048_v53 = vld [vmem:[#allocation12 + $0x528] sm:$0xf]  ;;  %v11654_v38 = vld [vmem:[#allocation12 + $0x534] sm:$0xf0]  ;;  %v8921_v24 = vor.u32 %v11622_v33, %v8920_v4  ;;  %v11540_v9 = vld [vmem:[#allocation12 + $0x1ac] sm:$0xf] }
 0x19c   :  { %2700 = vmatmul.bf16.vlgmr.msra.gmra.mxu2 %v13300_v18  ;;  %v9192_v20 = vld [vmem:[#allocation12 + $0x648] sm:$0xf]  ;;  %v11690_v28 = vld [vmem:[#allocation12 + $0x654] sm:$0xf0]  ;;  %v8602_v58 = vld [vmem:[#allocation12 + $0x1b8] sm:$0xf0] }
 0x19d   :  { %2720 = vmatpush.bf16.msrb.mxu0 %v8985_v14  ;;  %2713 = vmatmul.bf16.vlgmr.msra.gmra.mxu3 %v13306_v43  ;;  %v9320_v34 = vld [vmem:[#allocation12 + $0x748] sm:$0xf]  ;;  %v11722_v16 = vld [vmem:[#allocation12 + $0x754] sm:$0xf0]  ;;  %v9193_v8 = vor.u32 %v11690_v28, %v9192_v20  ;;  %v11576_v4 = vld [vmem:[#allocation12 + $0x2cc] sm:$0xf] }
 0x19e   :  { %2757 = vmatpush.bf16.msrb.mxu3 %v9401_v17  ;;  %2733 = vmatpush.bf16.msrb.mxu1 %v9113_v45  ;;  %v8904_v26 = vld [vmem:[#allocation12 + $0x408] sm:$0xf]  ;;  %v9049_v17 = vor.u32 %v11654_v38, %v9048_v53  ;;  %v11618_v7 = vld [vmem:[#allocation12 + $0x414] sm:$0xf0]  ;;  %v8506_v45 = vld [vmem:[#allocation12 + $0xf8] sm:$0xf0]  ;;  %v9321_v0 = vor.u32 %v11722_v16, %v9320_v34 }
 0x19f   :  { %2745 = vmatpush.bf16.msrb.mxu2 %v9257_v37  ;;  %v9032_v62 = vld [vmem:[#allocation12 + $0x508] sm:$0xf]  ;;  %v11650_v14 = vld [vmem:[#allocation12 + $0x514] sm:$0xf0]  ;;  %v8634_v37 = vld [vmem:[#allocation12 + $0x1f8] sm:$0xf0]  ;;  %v8509_v11 = vor.u32 %v11516_v59, %v8506_v45 }
 0x1a0   :  { %v9176_v44 = vld [vmem:[#allocation12 + $0x628] sm:$0xf]  ;;  %v11686_v47 = vld [vmem:[#allocation12 + $0x634] sm:$0xf0]  ;;  %v8746_v33 = vld [vmem:[#allocation12 + $0x2d8] sm:$0xf0] }
 0x1a1   :  { %2721 = vmatpush.bf16.msrb.mxu0 %v8969_v49  ;;  %v9304_v25 = vld [vmem:[#allocation12 + $0x728] sm:$0xf]  ;;  %v11718_v5 = vld [vmem:[#allocation12 + $0x734] sm:$0xf0]  ;;  %v9033_v49 = vor.u32 %v11650_v14, %v9032_v62  ;;  %v9177_v51 = vor.u32 %v11686_v47, %v9176_v44  ;;  %v11608_v53 = vld [vmem:[#allocation12 + $0x3cc] sm:$0xf]  ;;  %v8749_v34 = vor.u32 %v11576_v4, %v8746_v33 }
 0x1a2   :  { %2758 = vmatpush.bf16.msrb.mxu3 %v9385_v48  ;;  %2734 = vmatpush.bf16.msrb.mxu1 %v9097_v63  ;;  %v8905_v48 = vor.u32 %v11618_v7, %v8904_v26  ;;  %v8637_v63 = vor.u32 %v11548_v39, %v8634_v37  ;;  %v9305_v12 = vor.u32 %v11718_v5, %v9304_v25  ;;  %v11682_v55 = vld [vmem:[#allocation12 + $0x614] sm:$0xf0]  ;;  %v9288_v23 = vld [vmem:[#allocation12 + $0x708] sm:$0xf]  ;;  %v8874_v38 = vld [vmem:[#allocation12 + $0x3d8] sm:$0xf0] }
 0x1a3   :  { %2746 = vmatpush.bf16.msrb.mxu2 %v9241_v60  ;;  %v11544_v60 = vld [vmem:[#allocation12 + $0x1cc] sm:$0xf]  ;;  %v8586_v26 = vld [vmem:[#allocation12 + $0x198] sm:$0xf0]  ;;  %v8877_v7 = vor.u32 %v11608_v53, %v8874_v38 }
 0x1a4   :  { %v8621_v46 = vor.u32 %v11544_v60, %v8618_v27  ;;  %v11504_v28 = vld [vmem:[#allocation12 + $0x8c] sm:$0xf]  ;;  %v8730_v14 = vld [vmem:[#allocation12 + $0x2b8] sm:$0xf0] }
 0x1a5   :  { %2722 = vmatpush.bf16.msrb.mxu0 %v8953_v50  ;;  %v11714_v50 = vld [vmem:[#allocation12 + $0x714] sm:$0xf0]  ;;  %v11536_v16 = vld [vmem:[#allocation12 + $0x18c] sm:$0xf]  ;;  %v8858_v45 = vld [vmem:[#allocation12 + $0x3b8] sm:$0xf0] }
 0x1a6   :  { %2759 = vmatpush.bf16.msrb.mxu3 %v9369_v3  ;;  %2735 = vmatpush.bf16.msrb.mxu1 %v9081_v19  ;;  %v9160_v3 = vld [vmem:[#allocation12 + $0x608] sm:$0xf]  ;;  %v8493_v19 = vor.u32 %v11512_v2, %v8490_v52  ;;  %v9289_v10 = vor.u32 %v11714_v50, %v9288_v23  ;;  %v11572_v62 = vld [vmem:[#allocation12 + $0x2ac] sm:$0xf]  ;;  %v8442_v44 = vld [vmem:[#allocation12 + $0x78] sm:$0xf0] }
 0x1a7   :  { %2747 = vmatpush.bf16.msrb.mxu2 %v9225_v32  ;;  %v9161_v6 = vor.u32 %v11682_v55, %v9160_v3  ;;  %v11604_v59 = vld [vmem:[#allocation12 + $0x3ac] sm:$0xf]  ;;  %v8570_v5 = vld [vmem:[#allocation12 + $0x178] sm:$0xf0] }
 0x1a8   :  { %v13358_v32 = vpop.f32.mrf.mxu0  ;;  %v11500_v37 = vld [vmem:[#allocation12 + $0x6c] sm:$0xf]  ;;  %v8714_v2 = vld [vmem:[#allocation12 + $0x298] sm:$0xf0] }
 0x1a9   :  { %2723 = vmatpush.bf16.msrb.mxu0 %v8937_v13  ;;  %v8765_v13 = vor.u32 %v11580_v22, %v8762_v41  ;;  %v11532_v25 = vld [vmem:[#allocation12 + $0x16c] sm:$0xf]  ;;  %v8842_v52 = vld [vmem:[#allocation12 + $0x398] sm:$0xf0] }
 0x1aa   :  { %2760 = vmatpush.bf16.msrb.mxu3 %v9353_v61  ;;  %2736 = vmatpush.bf16.msrb.mxu1 %v9065_v29  ;;  %v11508_v61 = vld [vmem:[#allocation12 + $0xac] sm:$0xf]  ;;  %v8893_v29 = vor.u32 %v11612_v21, %v8890_v57  ;;  %v8573_v60 = vor.u32 %v11532_v25, %v8570_v5  ;;  %v8426_v3 = vld [vmem:[#allocation12 + $0x58] sm:$0xf0] }
 0x1ab   :  { %2748 = vmatpush.bf16.msrb.mxu2 %v9209_v35  ;;  %v8477_v35 = vor.u32 %v11508_v61, %v8474_v40  ;;  %v11528_v50 = vld [vmem:[#allocation12 + $0x14c] sm:$0xf]  ;;  %v8554_v22 = vld [vmem:[#allocation12 + $0x158] sm:$0xf0] }
 0x1ac   :  { %v2480_v20 = vpop.f32.mrf.mxu1  ;;  %v8698_v21 = vld [vmem:[#allocation12 + $0x278] sm:$0xf0]  ;;  %v11596_v61 = vld [vmem:[#allocation12 + $0x36c] sm:$0xf] }
 0x1ad   :  { %2724 = vmatpush.bf16.msrb.mxu0 %v8921_v24  ;;  %v8458_v24 = vld [vmem:[#allocation12 + $0x98] sm:$0xf0]  ;;  %v11524_v4 = vld [vmem:[#allocation12 + $0x12c] sm:$0xf] }
 0x1ae   :  { %2761 = vmatpush.bf16.msrb.mxu3 %v9337_v56  ;;  %2737 = vmatpush.bf16.msrb.mxu1 %v9049_v17  ;;  %v8605_v56 = vor.u32 %v11540_v9, %v8602_v58  ;;  %v13362_v17 = vld [vmem:[#allocation14] sm:$0xf]  ;;  %v8826_v40 = vld [vmem:[#allocation12 + $0x378] sm:$0xf0]  ;;  %v11560_v53 = vld [vmem:[#allocation12 + $0x24c] sm:$0xf] }
 0x1af   :  { %2749 = vmatpush.bf16.msrb.mxu2 %v9193_v8  ;;  %v8461_v8 = vor.u32 %v11504_v28, %v8458_v24  ;;  %v1170_v47 = vperm.slane %v13362_v17, 0  ;;  %v8410_v9 = vld [vmem:[#allocation12 + $0x38] sm:$0xf0]  ;;  %v11592_v24 = vld [vmem:[#allocation12 + $0x34c] sm:$0xf] }
 0x1b0   :  { %v2469_v39 = vpop.f32.mrf.mxu0  ;;  %v8538_v33 = vld [vmem:[#allocation12 + $0x138] sm:$0xf0] }
 0x1b1   :  { %2725 = vmatpush.bf16.msrb.mxu0 %v8905_v48  ;;  %v8733_v48 = vor.u32 %v11572_v62, %v8730_v14  ;;  %v2468_v55 = vadd.f32 %v13358_v32, %v1170_v47  ;;  %v8682_v38 = vld [vmem:[#allocation12 + $0x258] sm:$0xf0]  ;;  %v11520_v62 = vld [vmem:[#allocation12 + $0x10c] sm:$0xf] }
 0x1b2   :  { %2762 = vmatpush.bf16.msrb.mxu3 %v9321_v0  ;;  %2738 = vmatpush.bf16.msrb.mxu1 %v9033_v49  ;;  %v8589_v0 = vor.u32 %v11536_v16, %v8586_v26  ;;  %v8861_v49 = vor.u32 %v11604_v59, %v8858_v45  ;;  %v11488_v16 = vld [vmem:[#allocation12 + $0xc] sm:$0xf]  ;;  %v8541_v26 = vor.u32 %v11524_v4, %v8538_v33  ;;  %v8522_v14 = vld [vmem:[#allocation12 + $0x118] sm:$0xf0] }
 0x1b3   :  { %2750 = vmatpush.bf16.msrb.mxu2 %v9177_v51  ;;  %v11600_v51 = vld [vmem:[#allocation12 + $0x38c] sm:$0xf]  ;;  %v2481_v32 = vadd.f32 %v2480_v20, %v2468_v55  ;;  %v9018_v45 = vld [vmem:[#allocation12 + $0x4f8] sm:$0xf0] }
 0x1b4   :  { %2726 = vmatmul.bf16.vlgmr.msrb.gmra.mxu0 %v13324_v15  ;;  %v2482_v27 = vpop.f32.mrf.mxu1  ;;  %v8845_v41 = vor.u32 %v11600_v51, %v8842_v52  ;;  %v11644_v59 = vld [vmem:[#allocation12 + $0x4ec] sm:$0xf]  ;;  %v8666_v47 = vld [vmem:[#allocation12 + $0x238] sm:$0xf0] }
 0x1b5   :  { %2770 = vmatpush.bf16.msra.mxu0 %v8509_v11  ;;  %2739 = vmatmul.bf16.vlgmr.msrb.gmra.mxu1 %v13336_v36  ;;  %v11568_v11 = vld [vmem:[#allocation12 + $0x28c] sm:$0xf]  ;;  %v9021_v51 = vor.u32 %v11644_v59, %v9018_v45  ;;  %v8986_v4 = vld [vmem:[#allocation12 + $0x4b8] sm:$0xf0] }
 0x1b6   :  { %2783 = vmatpush.bf16.msra.mxu1 %v8637_v63  ;;  %2763 = vmatpush.bf16.msrb.mxu3 %v9305_v12  ;;  %v8445_v63 = vor.u32 %v11500_v37, %v8442_v44  ;;  %v11496_v12 = vld [vmem:[#allocation12 + $0x4c] sm:$0xf]  ;;  %v8717_v23 = vor.u32 %v11568_v11, %v8714_v2  ;;  %v9146_v37 = vld [vmem:[#allocation12 + $0x5f8] sm:$0xf0] }
 0x1b7   :  { %2751 = vmatpush.bf16.msrb.mxu2 %v9161_v6  ;;  %v8429_v57 = vor.u32 %v11496_v12, %v8426_v3  ;;  %v2506_v6 = vpop.f32.mrf.mxu3  ;;  %v11676_v39 = vld [vmem:[#allocation12 + $0x5ec] sm:$0xf]  ;;  %v8794_v2 = vld [vmem:[#allocation12 + $0x338] sm:$0xf0] }
 0x1b8   :  { %v2519_v58 = vpop.f32.mrf.mxu0  ;;  %v11556_v44 = vld [vmem:[#allocation12 + $0x22c] sm:$0xf]  ;;  %v9149_v27 = vor.u32 %v11676_v39, %v9146_v37  ;;  %v9002_v3 = vld [vmem:[#allocation12 + $0x4d8] sm:$0xf0] }
 0x1b9   :  { %2771 = vmatpush.bf16.msra.mxu0 %v8493_v19  ;;  %v11564_v19 = vld [vmem:[#allocation12 + $0x26c] sm:$0xf]  ;;  %v8669_v12 = vor.u32 %v11556_v44, %v8666_v47  ;;  %v8970_v59 = vld [vmem:[#allocation12 + $0x498] sm:$0xf0] }
 0x1ba   :  { %2784 = vmatpush.bf16.msra.mxu1 %v8621_v46  ;;  %2764 = vmatpush.bf16.msrb.mxu3 %v9289_v10  ;;  %v2493_v46 = vpop.f32.mrf.mxu2  ;;  %v8557_v10 = vor.u32 %v11528_v50, %v8554_v22  ;;  %v11588_v11 = vld [vmem:[#allocation12 + $0x32c] sm:$0xf]  ;;  %v9242_v44 = vld [vmem:[#allocation12 + $0x6b8] sm:$0xf0] }
 0x1bb   :  { %2796 = vmatpush.bf16.msra.mxu2 %v8765_v13  ;;  %v11492_v13 = vld [vmem:[#allocation12 + $0x2c] sm:$0xf]  ;;  %v8797_v50 = vor.u32 %v11588_v11, %v8794_v2  ;;  %v8954_v2 = vld [vmem:[#allocation12 + $0x478] sm:$0xf0] }
 0x1bc   :  { %2752 = vmatmul.bf16.vlgmr.msrb.gmra.mxu2 %v13340_v54  ;;  %v8413_v28 = vor.u32 %v11492_v13, %v8410_v9  ;;  %v2532_v20 = vpop.f32.mrf.mxu1  ;;  %v11672_v55 = vld [vmem:[#allocation12 + $0x5cc] sm:$0xf] }
 0x1bd   :  { %2772 = vmatpush.bf16.msra.mxu0 %v8477_v35  ;;  %2765 = vmatmul.bf16.vlgmr.msrb.gmra.mxu3 %v13342_v31  ;;  %v8829_v35 = vor.u32 %v11596_v61, %v8826_v40  ;;  %v11552_v22 = vld [vmem:[#allocation12 + $0x20c] sm:$0xf] }
 0x1be   :  { %2809 = vmatpush.bf16.msra.mxu3 %v8893_v29  ;;  %2785 = vmatpush.bf16.msra.mxu1 %v8605_v56  ;;  %v8701_v29 = vor.u32 %v11564_v19, %v8698_v21  ;;  %v2494_v56 = vadd.f32 %v2493_v46, %v2481_v32  ;;  %v11584_v19 = vld [vmem:[#allocation12 + $0x30c] sm:$0xf] }
 0x1bf   :  { %2797 = vmatpush.bf16.msra.mxu2 %v8749_v34  ;;  %v8810_v34 = vld [vmem:[#allocation12 + $0x358] sm:$0xf0]  ;;  %v11708_v46 = vld [vmem:[#allocation12 + $0x6ec] sm:$0xf] }
 0x1c0   :  { %v2521_v52 = vpop.f32.mrf.mxu0  ;;  %v11740_v40 = vld [vmem:[#allocation12 + $0x7ec] sm:$0xf] }
 0x1c1   :  { %2773 = vmatpush.bf16.msra.mxu0 %v8461_v8  ;;  %v8685_v8 = vor.u32 %v11560_v53, %v8682_v38  ;;  %v9114_v53 = vld [vmem:[#allocation12 + $0x5b8] sm:$0xf0]  ;;  %v11664_v45 = vld [vmem:[#allocation12 + $0x58c] sm:$0xf] }
 0x1c2   :  { %2810 = vmatpush.bf16.msra.mxu3 %v8877_v7  ;;  %2786 = vmatpush.bf16.msra.mxu1 %v8589_v0  ;;  %v8394_v7 = vld [vmem:[#allocation12 + $0x18] sm:$0xf0]  ;;  %v8813_v0 = vor.u32 %v11592_v24, %v8810_v34  ;;  %v2495_v5 = vpop.f32.mrf.mxu2  ;;  %v11700_v37 = vld [vmem:[#allocation12 + $0x6ac] sm:$0xf] }
 0x1c3   :  { %2798 = vmatpush.bf16.msra.mxu2 %v8733_v48  ;;  %v2507_v48 = vadd.f32 %v2506_v6, %v2494_v56  ;;  %v8397_v25 = vor.u32 %v11488_v16, %v8394_v7  ;;  %v9274_v6 = vld [vmem:[#allocation12 + $0x6f8] sm:$0xf0]  ;;  %v11736_v7 = vld [vmem:[#allocation12 + $0x7cc] sm:$0xf] }
 0x1c4   :  { %v2534_v13 = vpop.f32.mrf.mxu1  ;;  %v9277_v33 = vor.u32 %v11708_v46, %v9274_v6  ;;  %v9258_v24 = vld [vmem:[#allocation12 + $0x6d8] sm:$0xf0]  ;;  %v11628_v11 = vld [vmem:[#allocation12 + $0x46c] sm:$0xf] }
 0x1c5   :  { %2774 = vmatpush.bf16.msra.mxu0 %v8445_v63  ;;  %v8525_v63 = vor.u32 %v11520_v62, %v8522_v14  ;;  %v2520_v21 = vadd.f32 %v2519_v58, %v2507_v48  ;;  %v9386_v62 = vld [vmem:[#allocation12 + $0x7d8] sm:$0xf0]  ;;  %v11732_v48 = vld [vmem:[#allocation12 + $0x7ac] sm:$0xf] }
 0x1c6   :  { %2811 = vmatpush.bf16.msra.mxu3 %v8861_v49  ;;  %2787 = vmatpush.bf16.msra.mxu1 %v8573_v60  ;;  %v2508_v49 = vpop.f32.mrf.mxu3  ;;  %v11640_v60 = vld [vmem:[#allocation12 + $0x4cc] sm:$0xf]  ;;  %v8938_v46 = vld [vmem:[#allocation12 + $0x458] sm:$0xf0] }
 0x1c7   :  { %2799 = vmatpush.bf16.msra.mxu2 %v8717_v23  ;;  %v9130_v23 = vld [vmem:[#allocation12 + $0x5d8] sm:$0xf0]  ;;  %v9005_v61 = vor.u32 %v11640_v60, %v9002_v3  ;;  %v2533_v38 = vadd.f32 %v2532_v20, %v2520_v21  ;;  %v11660_v52 = vld [vmem:[#allocation12 + $0x56c] sm:$0xf] }
 0x1c8   :  { %v9133_v9 = vor.u32 %v11672_v55, %v9130_v23  ;;  %v9082_v60 = vld [vmem:[#allocation12 + $0x578] sm:$0xf0]  ;;  %v11696_v3 = vld [vmem:[#allocation12 + $0x68c] sm:$0xf] }
 0x1c9   :  { %2775 = vmatpush.bf16.msra.mxu0 %v8429_v57  ;;  %v8778_v57 = vld [vmem:[#allocation12 + $0x318] sm:$0xf0]  ;;  %v9085_v21 = vor.u32 %v11660_v52, %v9082_v60  ;;  %v11716_v52 = vld [vmem:[#allocation12 + $0x72c] sm:$0xf] }
 0x1ca   :  { %2812 = vmatpush.bf16.msra.mxu3 %v8845_v41  ;;  %2788 = vmatpush.bf16.msra.mxu1 %v8557_v10  ;;  %v8650_v41 = vld [vmem:[#allocation12 + $0x218] sm:$0xf0]  ;;  %v8781_v58 = vor.u32 %v11584_v19, %v8778_v57  ;;  %v2545_v34 = vpop.f32.mrf.mxu2  ;;  %v11624_v57 = vld [vmem:[#allocation12 + $0x44c] sm:$0xf] }
 0x1cb   :  { %2800 = vmatpush.bf16.msra.mxu2 %v8701_v29  ;;  %v9402_v10 = vld [vmem:[#allocation12 + $0x7f8] sm:$0xf0]  ;;  %v8653_v32 = vor.u32 %v11552_v22, %v8650_v41  ;;  %v11636_v29 = vld [vmem:[#allocation12 + $0x4ac] sm:$0xf]  ;;  %v2546_v14 = vadd.f32 %v2545_v34, %v2533_v38 }
 0x1cc   :  { %v9405_v56 = vor.u32 %v11740_v40, %v9402_v10  ;;  %v9226_v55 = vld [vmem:[#allocation12 + $0x698] sm:$0xf0]  ;;  %v11728_v22 = vld [vmem:[#allocation12 + $0x78c] sm:$0xf] }
 0x1cd   :  { %2776 = vmatpush.bf16.msra.mxu0 %v8413_v28  ;;  %v11704_v28 = vld [vmem:[#allocation12 + $0x6cc] sm:$0xf]  ;;  %v9354_v41 = vld [vmem:[#allocation12 + $0x798] sm:$0xf0]  ;;  %v9229_v6 = vor.u32 %v11696_v3, %v9226_v55 }
 0x1ce   :  { %2813 = vmatpush.bf16.msra.mxu3 %v8829_v35  ;;  %2789 = vmatpush.bf16.msra.mxu1 %v8541_v26  ;;  %v11668_v35 = vld [vmem:[#allocation12 + $0x5ac] sm:$0xf]  ;;  %v2558_v16 = vpop.f32.mrf.mxu3  ;;  %v8989_v26 = vor.u32 %v11636_v29, %v8986_v4  ;;  %v9261_v20 = vor.u32 %v11704_v28, %v9258_v24  ;;  %v9066_v40 = vld [vmem:[#allocation12 + $0x558] sm:$0xf0]  ;;  %v9357_v13 = vor.u32 %v11728_v22, %v9354_v41 }
 0x1cf   :  { %2801 = vmatpush.bf16.msra.mxu2 %v8685_v8  ;;  %v11632_v8 = vld [vmem:[#allocation12 + $0x48c] sm:$0xf]  ;;  %v13370_v39 = vadd.f32 %v2558_v16, %v2546_v14  ;;  %v8941_v29 = vor.u32 %v11624_v57, %v8938_v46  ;;  %v8922_v38 = vld [vmem:[#allocation12 + $0x438] sm:$0xf0]  ;;  %v1171_v57 = vperm.slane %v13362_v17, 1 }
 0x1d0   :  { %v8973_v47 = vor.u32 %v11632_v8, %v8970_v59  ;;  %v11724_v4 = vld [vmem:[#allocation12 + $0x76c] sm:$0xf]  ;;  %v9050_v34 = vld [vmem:[#allocation12 + $0x538] sm:$0xf0] }
 0x1d1   :  { %2777 = vmatpush.bf16.msra.mxu0 %v8397_v25  ;;  %v9370_v25 = vld [vmem:[#allocation12 + $0x7b8] sm:$0xf0]  ;;  %v2876_v5 = vrot.slane %v13370_v39, 4  ;;  %v11652_v24 = vld [vmem:[#allocation12 + $0x52c] sm:$0xf] }
 0x1d2   :  { %2814 = vmatpush.bf16.msra.mxu3 %v8813_v0  ;;  %2790 = vmatpush.bf16.msra.mxu1 %v8525_v63  ;;  %v9389_v0 = vor.u32 %v11736_v7, %v9386_v62  ;;  %v13375_v63 = vpop.f32.mrf.mxu0  ;;  %v11688_v62 = vld [vmem:[#allocation12 + $0x64c] sm:$0xf]  ;;  %v9194_v14 = vld [vmem:[#allocation12 + $0x658] sm:$0xf0] }
 0x1d3   :  { %2802 = vmatpush.bf16.msra.mxu2 %v8669_v12  ;;  %v9373_v12 = vor.u32 %v11732_v48, %v9370_v25  ;;  %v11720_v8 = vld [vmem:[#allocation12 + $0x74c] sm:$0xf]  ;;  %v9322_v59 = vld [vmem:[#allocation12 + $0x758] sm:$0xf0] }
 0x1d4   :  { %2778 = vmatmul.bf16.vlgmr.msra.gmra.mxu0 %v13248_v30  ;;  %v9117_v30 = vor.u32 %v11668_v35, %v9114_v53  ;;  %v11620_v53 = vld [vmem:[#allocation12 + $0x42c] sm:$0xf]  ;;  %v9306_v60 = vld [vmem:[#allocation12 + $0x738] sm:$0xf0] }
 0x1d5   :  { %2822 = vmatpush.bf16.msrb.mxu0 %v9021_v51  ;;  %2791 = vmatmul.bf16.vlgmr.msra.gmra.mxu1 %v13266_v1  ;;  %v9098_v1 = vld [vmem:[#allocation12 + $0x598] sm:$0xf0]  ;;  %v9245_v51 = vor.u32 %v11700_v37, %v9242_v44  ;;  %v9197_v37 = vor.u32 %v11688_v62, %v9194_v14  ;;  %v11648_v44 = vld [vmem:[#allocation12 + $0x50c] sm:$0xf]  ;;  %v3030_v14 = vld [vmem:[%s14226_s9 + $0x20] sm:$0xff] }
 0x1d6   :  { %2835 = vmatpush.bf16.msrb.mxu1 %v9149_v27  ;;  %2815 = vmatpush.bf16.msra.mxu3 %v8797_v50  ;;  %v9101_v49 = vor.u32 %v11664_v45, %v9098_v1  ;;  %v13378_v27 = vpop.f32.mrf.mxu1  ;;  %v2560_v23 = vpop.f32.mrf.mxu3  ;;  %v8957_v50 = vor.u32 %v11628_v11, %v8954_v2  ;;  %v9053_v45 = vor.u32 %v11652_v24, %v9050_v34  ;;  %v11616_v1 = vld [vmem:[#allocation12 + $0x40c] sm:$0xf]  ;;  %v9178_v11 = vld [vmem:[#allocation12 + $0x638] sm:$0xf0]  ;;  %v3032_v24 = vld [vmem:[%s14226_s9 + $0x30] sm:$0xff] }
 0x1d7   :  { %2803 = vmatpush.bf16.msra.mxu2 %v8653_v32  ;;  %v9210_v32 = vld [vmem:[#allocation12 + $0x678] sm:$0xf0]  ;;  %v11680_v23 = vld [vmem:[#allocation12 + $0x60c] sm:$0xf] }
 0x1d8   :  { %v11712_v22 = vld [vmem:[#allocation12 + $0x70c] sm:$0xf]  ;;  %v9290_v41 = vld [vmem:[#allocation12 + $0x718] sm:$0xf0] }
 0x1d9   :  { %2823 = vmatpush.bf16.msrb.mxu0 %v9005_v61  ;;  %v11656_v61 = vld [vmem:[#allocation12 + $0x54c] sm:$0xf] }
 0x1da   :  { %2836 = vmatpush.bf16.msrb.mxu1 %v9133_v9  ;;  %2816 = vmatpush.bf16.msra.mxu3 %v8781_v58  ;;  %v11692_v9 = vld [vmem:[#allocation12 + $0x66c] sm:$0xf]  ;;  %v9338_v58 = vld [vmem:[#allocation12 + $0x778] sm:$0xf0]  ;;  %v9069_v35 = vor.u32 %v11656_v61, %v9066_v40  ;;  %v9293_v40 = vor.u32 %v11712_v22, %v9290_v41 }
 0x1db   :  { %2848 = vmatpush.bf16.msrb.mxu2 %v9277_v33  ;;  %v9213_v28 = vor.u32 %v11692_v9, %v9210_v32  ;;  %v9341_v7 = vor.u32 %v11724_v4, %v9338_v58  ;;  %v3038_v32 = vld [vmem:[%s14226_s9 + $0x60] sm:$0xff]  ;;  %v3037_v4 = vld [vmem:[%s14226_s9 + $0x58] sm:$0xff] }
 0x1dc   :  { %2804 = vmatmul.bf16.vlgmr.msra.gmra.mxu2 %v13300_v18  ;;  %v2877_v18 = vadd.f32 %v2876_v5, %v13370_v39  ;;  %v9325_v5 = vor.u32 %v11720_v8, %v9322_v59 }
 0x1dd   :  { %2824 = vmatpush.bf16.msrb.mxu0 %v8989_v26  ;;  %2817 = vmatmul.bf16.vlgmr.msra.gmra.mxu3 %v13306_v43  ;;  %v2547_v43 = vpop.f32.mrf.mxu2 }
 0x1de   :  { %2861 = vmatpush.bf16.msrb.mxu3 %v9405_v56  ;;  %2837 = vmatpush.bf16.msrb.mxu1 %v9117_v30  ;;  %v2878_v19 = vrot.slane %v2877_v18, 2  ;;  %v2573_v56 = vpop.f32.mrf.mxu0  ;;  %v2586_v26 = vpop.f32.mrf.mxu1  ;;  %v8925_v30 = vor.u32 %v11620_v53, %v8922_v38  ;;  %v9309_v43 = vor.u32 %v11716_v52, %v9306_v60  ;;  %v3035_v53 = vld [vmem:[%s14226_s9 + $0x48] sm:$0xff]  ;;  %v3056_v52 = vld [vmem:[%s14226_s9 + $0xf0] sm:$0xff] }
 0x1df   :  { %2849 = vmatpush.bf16.msrb.mxu2 %v9261_v20  ;;  %v3031_v26 = vld [vmem:[%s14226_s9 + $0x28] sm:$0xff] }
 0x1e0   :  { %v2879_v10 = vadd.f32 %v2878_v19, %v2877_v18  ;;  %v2610_v2 = vpop.f32.mrf.mxu3 }
 0x1e1   :  { %2825 = vmatpush.bf16.msrb.mxu0 %v8973_v47  ;;  %v9034_v47 = vld [vmem:[#allocation12 + $0x518] sm:$0xf0] }
 0x1e2   :  { %2862 = vmatpush.bf16.msrb.mxu3 %v9389_v0  ;;  %2838 = vmatpush.bf16.msrb.mxu1 %v9101_v49  ;;  %v2880_v33 = vrot.slane %v2879_v10, 1  ;;  %v8906_v0 = vld [vmem:[#allocation12 + $0x418] sm:$0xf0]  ;;  %v11684_v49 = vld [vmem:[#allocation12 + $0x62c] sm:$0xf] }
 0x1e3   :  { %2850 = vmatpush.bf16.msrb.mxu2 %v9245_v51  ;;  %v8909_v51 = vor.u32 %v11616_v1, %v8906_v0  ;;  %v9181_v3 = vor.u32 %v11684_v49, %v9178_v11  ;;  %v13442_v49 = vld [vmem:[#allocation15] sm:$0xf] }
 0x1e4   :  { %v2881_v16 = vadd.f32 %v2880_v33, %v2879_v10  ;;  %v3039_v10 = vld [vmem:[%s14226_s9 + $0x68] sm:$0xff] }
 0x1e5   :  { %2826 = vmatpush.bf16.msrb.mxu0 %v8957_v50  ;;  %v2597_v25 = vpop.f32.mrf.mxu2  ;;  %v9162_v50 = vld [vmem:[#allocation12 + $0x618] sm:$0xf0] }
 0x1e6   :  { %2863 = vmatpush.bf16.msrb.mxu3 %v9373_v12  ;;  %2839 = vmatpush.bf16.msrb.mxu1 %v9085_v21  ;;  %v2900_v20 = vmul.f32 %v2881_v16, %v12959_v42  ;;  %v9037_v12 = vor.u32 %v11648_v44, %v9034_v47  ;;  %v3040_v21 = vld [vmem:[%s14226_s9 + $0x70] sm:$0xff]  ;;  %v9165_v46 = vor.u32 %v11680_v23, %v9162_v50 }
 0x1e7   :  { %2851 = vmatpush.bf16.msrb.mxu2 %v9229_v6 }
 0x1e8   :  { %v13382_v48 = vsub.f32 %v13370_v39, %v2900_v20  ;;  %v3041_v39 = vld [vmem:[%s14226_s9 + $0x78] sm:$0xff] }
 0x1e9   :  { %2827 = vmatpush.bf16.msrb.mxu0 %v8941_v29  ;;  %v2572_v29 = vadd.f32 %v13375_v63, %v1171_v57  ;;  %v3029_v20 = vld [vmem:[%s14226_s9 + $0x18] sm:$0xff] }
 0x1ea   :  { %2864 = vmatpush.bf16.msrb.mxu3 %v9357_v13  ;;  %2840 = vmatpush.bf16.msrb.mxu1 %v9069_v35  ;;  %v2908_v18 = vmul.f32 %v13382_v48, %v13382_v48  ;;  %v2612_v13 = vpop.f32.mrf.mxu3 }
 0x1eb   :  { %2852 = vmatpush.bf16.msrb.mxu2 %v9213_v28  ;;  %v2585_v33 = vadd.f32 %v13378_v27, %v2572_v29  ;;  %v3034_v28 = vld [vmem:[%s14226_s9 + $0x40] sm:$0xff]  ;;  %v3051_v13 = vld [vmem:[%s14226_s9 + $0xc8] sm:$0xff] }
 0x1ec   :  { %v2912_v55 = vrot.slane %v2908_v18, 4 }
 0x1ed   :  { %2828 = vmatpush.bf16.msrb.mxu0 %v8925_v30  ;;  %v2599_v61 = vpop.f32.mrf.mxu2  ;;  %v2598_v38 = vadd.f32 %v2597_v25, %v2585_v33  ;;  %v3027_v25 = vld [vmem:[%s14226_s9 + $0x8] sm:$0xff] }
 0x1ee   :  { %2865 = vmatpush.bf16.msrb.mxu3 %v9341_v7  ;;  %2841 = vmatpush.bf16.msrb.mxu1 %v9053_v45  ;;  %v2913_v19 = vadd.f32 %v2912_v55, %v2908_v18  ;;  %v3055_v55 = vld [vmem:[%s14226_s9 + $0xe8] sm:$0xff] }
 0x1ef   :  { %2853 = vmatpush.bf16.msrb.mxu2 %v9197_v37  ;;  %v2611_v27 = vadd.f32 %v2610_v2, %v2598_v38  ;;  %v3028_v37 = vld [vmem:[%s14226_s9 + $0x10] sm:$0xff] }
 0x1f0   :  { %v2914_v6 = vrot.slane %v2913_v19, 2 }
 0x1f1   :  { %2829 = vmatpush.bf16.msrb.mxu0 %v8909_v51  ;;  %v2623_v35 = vpop.f32.mrf.mxu0  ;;  %v3026_v51 = vld [vmem:[%s14226_s9] sm:$0xff] }
 0x1f2   :  { %2866 = vmatpush.bf16.msrb.mxu3 %v9325_v5  ;;  %2842 = vmatpush.bf16.msrb.mxu1 %v9037_v12  ;;  %v2915_v9 = vadd.f32 %v2914_v6, %v2913_v19  ;;  %v2636_v56 = vpop.f32.mrf.mxu1  ;;  %v2624_v34 = vadd.f32 %v2623_v35, %v2611_v27  ;;  %v3057_v5 = vld [vmem:[%s14226_s9 + $0xf8] sm:$0xff]  ;;  %v13450_v12 = vld [vmem:[#allocation17] sm:$0xf]  ;;  %v3054_v19 = vld [vmem:[%s14226_s9 + $0xe0] sm:$0xff] }
 0x1f3   :  { %2854 = vmatpush.bf16.msrb.mxu2 %v9181_v3  ;;  %v2989_v3 = vperm.slane %v13442_v49, 0  ;;  %v3002_v41 = vperm.slane %v13450_v12, 0  ;;  %v3045_v27 = vld [vmem:[%s14226_s9 + $0x98] sm:$0xff] }
 0x1f4   :  { %2830 = vmatmul.bf16.vlgmr.msrb.gmra.mxu0 %v13324_v15  ;;  %v2916_v15 = vrot.slane %v2915_v9, 1  ;;  %v2637_v8 = vadd.f32 %v2636_v56, %v2624_v34 }
 0x1f5   :  { %3094 = vmatpush.msra.mxu0 %v3041_v39  ;;  %2843 = vmatmul.bf16.vlgmr.msrb.gmra.mxu1 %v13336_v36  ;;  %v3036_v36 = vld [vmem:[%s14226_s9 + $0x50] sm:$0xff] }
 0x1f6   :  { %2867 = vmatpush.bf16.msrb.mxu3 %v9309_v43  ;;  %v2917_v58 = vadd.f32 %v2916_v15, %v2915_v9  ;;  %3114 = vmatpush.msra.mxu1 %v3057_v5  ;;  %v3050_v15 = vld [vmem:[%s14226_s9 + $0xc0] sm:$0xff] }
 0x1f7   :  { %3095 = vmatpush.msra.mxu0 %v3040_v21  ;;  %2855 = vmatpush.bf16.msrb.mxu2 %v9165_v46  ;;  %v3053_v46 = vld [vmem:[%s14226_s9 + $0xd8] sm:$0xff] }
 0x1f8   :  { %v2936_v63 = vmul.f32 %v2917_v58, %v12959_v42  ;;  %3115 = vmatpush.msra.mxu1 %v3056_v52 }
 0x1f9   :  { %3096 = vmatpush.msra.mxu0 %v3039_v10  ;;  %v2625_v16 = vpop.f32.mrf.mxu0 }
 0x1fa   :  { %2868 = vmatpush.bf16.msrb.mxu3 %v9293_v40  ;;  %2856 = vmatmul.bf16.vlgmr.msrb.gmra.mxu2 %v13340_v54  ;;  %v2940_v54 = vadd.f32 1e-05, %v2936_v63  ;;  %v2638_v7 = vpop.f32.mrf.mxu1  ;;  %v3048_v63 = vld [vmem:[%s14226_s9 + $0xb0] sm:$0xff] }
 0x1fb   :  { %3097 = vmatpush.msra.mxu0 %v3038_v32  ;;  %3116 = vmatpush.msra.mxu1 %v3055_v55  ;;  %v3044_v16 = vld [vmem:[%s14226_s9 + $0x90] sm:$0xff] }
 0x1fc   :  { %12299 = vrsqrt.f32 %v2940_v54  ;;  %vm2950_vm3 = vweird.f32 %v2940_v54 }
 0x1fd   :  { %2869 = vmatmul.bf16.vlgmr.msrb.gmra.mxu3 %v13342_v31  ;;  %3098 = vmatpush.msra.mxu0 %v3037_v4  ;;  %v3033_v31 = vld [vmem:[%s14226_s9 + $0x38] sm:$0xff] }
 0x1fe   :  { %3117 = vmatpush.msra.mxu1 %v3054_v19 }
 0x1ff   :  { %3099 = vmatpush.msra.mxu0 %v3036_v36  ;;  %v2649_v59 = vpop.f32.mrf.mxu2  ;;  %v3049_v36 = vld [vmem:[%s14226_s9 + $0xb8] sm:$0xff] }
 0x200   :  { %v2650_v1 = vadd.f32 %v2649_v59, %v2637_v8  ;;  %v2662_v0 = vpop.f32.mrf.mxu3  ;;  %3118 = vmatpush.msra.mxu1 %v3053_v46 }
 0x201   :  { %3100 = vmatpush.msra.mxu0 %v3035_v53  ;;  %v3047_v53 = vld [vmem:[%s14226_s9 + $0xa8] sm:$0xff] }
 0x202   :  { %v12300_v62 = vpop.eup %12299  ;;  %v2663_v47 = vadd.f32 %v2662_v0, %v2650_v1 }
 0x203   :  { %3101 = vmatpush.msra.mxu0 %v3034_v28  ;;  %v2945_v30 = vmul.f32 %v12300_v62, %v2940_v54  ;;  %vm2951_vm2 = vweird.f32 %v12300_v62  ;;  %v3046_v54 = vld [vmem:[%s14226_s9 + $0xa0] sm:$0xff] }
 0x204   :  { %v2882_v2 = vrot.slane %v2663_v47, 4  ;;  %vm2952_vm4 = vmor %vm2950_vm3, %vm2951_vm2  ;;  %vm3174_vm2 = vcmask 31744  }
 0x205   :  { %3102 = vmatpush.msra.mxu0 %v3033_v31  ;;  %v2946_v45 = vmul.f32 %v12300_v62, %v2945_v30  ;;  %v3042_v30 = vld [vmem:[%s14226_s9 + $0x80] sm:$0xff] }
 0x206   :  { %v2883_v18 = vadd.f32 %v2882_v2, %v2663_v47 }
 0x207   :  { %3103 = vmatpush.msra.mxu0 %v3032_v24  ;;  %v2947_v44 = vmul.f32 0.5, %v2946_v45  ;;  %v2651_v39 = vpop.f32.mrf.mxu2 }
 0x208   :  { %v2884_v23 = vrot.slane %v2883_v18, 2  ;;  %v2664_v22 = vpop.f32.mrf.mxu3  ;;  %v2990_v39 = vperm.slane %v13442_v49, 1 }
 0x209   :  { %3104 = vmatpush.msra.mxu0 %v3031_v26  ;;  %v2948_v11 = vsub.f32 1.5, %v2947_v44  ;;  %v3003_v22 = vperm.slane %v13450_v12, 1 }
 0x20a   :  { %v2885_v21 = vadd.f32 %v2884_v23, %v2883_v18 }
 0x20b   :  { %3105 = vmatpush.msra.mxu0 %v3030_v14  ;;  %v2949_v60 = vmul.f32 %v12300_v62, %v2948_v11 }
 0x20c   :  { %v2886_v6 = vrot.slane %v2885_v21, 1 }
 0x20d   :  { %3106 = vmatpush.msra.mxu0 %v3029_v20  ;;  %v2953_v43 = vsel %vm2952_vm4, %v12300_v62, %v2949_v60  ;;  %v3043_v62 = vld [vmem:[%s14226_s9 + $0x88] sm:$0xff]  ;;  %v1172_v20 = vperm.slane %v13362_v17, 2 }
 0x20e   :  { %v2984_v50 = vmul.f32 %v2953_v43, %v13382_v48  ;;  %v3052_v48 = vld [vmem:[%s14226_s9 + $0xd0] sm:$0xff]  ;;  %v2887_v40 = vadd.f32 %v2886_v6, %v2885_v21 }
 0x20f   :  { %3107 = vmatpush.msra.mxu0 %v3028_v37  ;;  %3119 = vmatpush.msra.mxu1 %v3052_v48  ;;  %v3073_v48 = vld [vmem:[%s14226_s9 + $0x178] sm:$0xff] }
 0x210   :  { %v2997_v57 = vmul.f32 %v2989_v3, %v2984_v50  ;;  %v2901_v9 = vmul.f32 %v2887_v40, %v12959_v42  ;;  %3134 = vmatpush.msra.mxu2 %v3073_v48 }
 0x211   :  { %3108 = vmatpush.msra.mxu0 %v3027_v25  ;;  %3120 = vmatpush.msra.mxu1 %v3051_v13  ;;  %v2675_v32 = vpop.f32.mrf.mxu0  ;;  %v3072_v13 = vld [vmem:[%s14226_s9 + $0x170] sm:$0xff] }
 0x212   :  { %v3010_v61 = vadd.f32 %v3002_v41, %v2997_v57  ;;  %v2905_v4 = vsub.f32 %v2663_v47, %v2901_v9  ;;  %v2688_v58 = vpop.f32.mrf.mxu1  ;;  %v2676_v0 = vadd.f32 %v2675_v32, %v1172_v20  ;;  %3135 = vmatpush.msra.mxu2 %v3072_v13 }
 0x213   :  { %3109 = vmatpush.msra.mxu0 %v3026_v51  ;;  %3121 = vmatpush.msra.mxu1 %v3050_v15  ;;  %v3071_v15 = vld [vmem:[%s14226_s9 + $0x168] sm:$0xff] }
 0x214   :  { %vm3014_vm5 = vcmp.ge.f32.partialorder %v3010_v61, 0.0  ;;  %v3018_v10 = vmul.f32 0.01, %v3010_v61  ;;  %v2909_v33 = vmul.f32 %v2905_v4, %v2905_v4  ;;  %v2689_v47 = vadd.f32 %v2688_v58, %v2676_v0  ;;  %3136 = vmatpush.msra.mxu2 %v3071_v15 }
 0x215   :  { %3122 = vmatpush.msra.mxu1 %v3049_v36  ;;  %v3004_v15 = vperm.slane %v13450_v12, 2 }
 0x216   :  { %v13471_v29 = vsel %vm3014_vm5, %v3010_v61, %v3018_v10  ;;  %v2918_v35 = vrot.slane %v2909_v33, 4 }
 0x217   :  { %3110 = vmatmul.f32.vlgmr.msra.gmra.mxu0 %v13471_v29  ;;  %3123 = vmatpush.msra.mxu1 %v3048_v63 }
 0x218   :  { %v2919_v38 = vadd.f32 %v2918_v35, %v2909_v33  ;;  %v3070_v33 = vld [vmem:[%s14226_s9 + $0x160] sm:$0xff]  ;;  %v3069_v35 = vld [vmem:[%s14226_s9 + $0x158] sm:$0xff] }
 0x219   :  { %3124 = vmatpush.msra.mxu1 %v3047_v53  ;;  %v2677_v56 = vpop.f32.mrf.mxu0  ;;  %3137 = vmatpush.msra.mxu2 %v3070_v33 }
 0x21a   :  { %v2920_v28 = vrot.slane %v2919_v38, 2  ;;  %v2690_v31 = vpop.f32.mrf.mxu1 }
 0x21b   :  { %3125 = vmatpush.msra.mxu1 %v3046_v54  ;;  %3138 = vmatpush.msra.mxu2 %v3069_v35  ;;  %v3067_v54 = vld [vmem:[%s14226_s9 + $0x148] sm:$0xff] }
 0x21c   :  { %v2921_v24 = vadd.f32 %v2920_v28, %v2919_v38  ;;  %v3068_v38 = vld [vmem:[%s14226_s9 + $0x150] sm:$0xff] }
 0x21d   :  { %3126 = vmatpush.msra.mxu1 %v3045_v27  ;;  %3139 = vmatpush.msra.mxu2 %v3068_v38  ;;  %v3066_v27 = vld [vmem:[%s14226_s9 + $0x140] sm:$0xff] }
 0x21e   :  { %v2922_v26 = vrot.slane %v2921_v24, 1 }
 0x21f   :  { %v2701_v34 = vpop.f32.mrf.mxu2  ;;  %3127 = vmatpush.msra.mxu1 %v3044_v16  ;;  %3140 = vmatpush.msra.mxu2 %v3067_v54  ;;  %v3065_v16 = vld [vmem:[%s14226_s9 + $0x138] sm:$0xff]  ;;  %v3088_v54 = vld [vmem:[%s14226_s9 + $0x1f0] sm:$0xff] }
 0x220   :  { %v2714_v7 = vpop.f32.mrf.mxu3  ;;  %v2923_v14 = vadd.f32 %v2922_v26, %v2921_v24  ;;  %v2702_v11 = vadd.f32 %v2701_v34, %v2689_v47 }
 0x221   :  { %3128 = vmatpush.msra.mxu1 %v3043_v62  ;;  %3141 = vmatpush.msra.mxu2 %v3066_v27  ;;  %v3087_v27 = vld [vmem:[%s14226_s9 + $0x1e8] sm:$0xff] }
 0x222   :  { %v2937_v8 = vmul.f32 %v2923_v14, %v12959_v42  ;;  %v2715_v60 = vadd.f32 %v2714_v7, %v2702_v11  ;;  %v3064_v7 = vld [vmem:[%s14226_s9 + $0x130] sm:$0xff]  ;;  %v3063_v14 = vld [vmem:[%s14226_s9 + $0x128] sm:$0xff] }
 0x223   :  { %3129 = vmatpush.msra.mxu1 %v3042_v30  ;;  %3142 = vmatpush.msra.mxu2 %v3065_v16 }
 0x224   :  { %v2941_v59 = vadd.f32 1e-05, %v2937_v8 }
 0x225   :  { %3143 = vmatpush.msra.mxu2 %v3064_v7 }
 0x226   :  { %12301 = vrsqrt.f32 %v2941_v59  ;;  %vm2960_vm7 = vweird.f32 %v2941_v59 }
 0x227   :  { %v2703_v45 = vpop.f32.mrf.mxu2  ;;  %3144 = vmatpush.msra.mxu2 %v3063_v14 }
 0x228   :  { %v2716_v1 = vpop.f32.mrf.mxu3 }
 0x229   :  { %v3061_v1 = vld [vmem:[%s14226_s9 + $0x118] sm:$0xff] }
 0x22c   :  { %v12302_v37 = vpop.eup %12301 }
 0x22d   :  { %v2955_v44 = vmul.f32 %v12302_v37, %v2941_v59  ;;  %vm2961_vm6 = vweird.f32 %v12302_v37  ;;  %v3062_v59 = vld [vmem:[%s14226_s9 + $0x120] sm:$0xff] }
 0x22e   :  { %vm2962_vm8 = vmor %vm2960_vm7, %vm2961_vm6  ;;  %3145 = vmatpush.msra.mxu2 %v3062_v59  ;;  %v3083_v59 = vld [vmem:[%s14226_s9 + $0x1c8] sm:$0xff] }
 0x22f   :  { %v2956_v5 = vmul.f32 %v12302_v37, %v2955_v44  ;;  %v3060_v44 = vld [vmem:[%s14226_s9 + $0x110] sm:$0xff] }
 0x230   :  { %3146 = vmatpush.msra.mxu2 %v3061_v1 }
 0x231   :  { %v2727_v25 = vpop.f32.mrf.mxu0  ;;  %v2957_v51 = vmul.f32 0.5, %v2956_v5  ;;  %v3059_v5 = vld [vmem:[%s14226_s9 + $0x108] sm:$0xff] }
 0x232   :  { %v2740_v2 = vpop.f32.mrf.mxu1  ;;  %v2728_v3 = vadd.f32 %v2727_v25, %v2715_v60  ;;  %3147 = vmatpush.msra.mxu2 %v3060_v44  ;;  %v1173_v60 = vperm.slane %v13362_v17, 3  ;;  %v2991_v17 = vperm.slane %v13442_v49, 2  ;;  %v3080_v44 = vld [vmem:[%s14226_s9 + $0x1b0] sm:$0xff] }
 0x233   :  { %v2958_v52 = vsub.f32 1.5, %v2957_v51 }
 0x234   :  { %v2741_v41 = vadd.f32 %v2740_v2, %v2728_v3  ;;  %3148 = vmatpush.msra.mxu2 %v3059_v5  ;;  %v3058_v2 = vld [vmem:[%s14226_s9 + $0x100] sm:$0xff] }
 0x235   :  { %v2959_v18 = vmul.f32 %v12302_v37, %v2958_v52 }
 0x236   :  { %3149 = vmatpush.msra.mxu2 %v3058_v2 }
 0x237   :  { %v2963_v43 = vsel %vm2962_vm8, %v12302_v37, %v2959_v18 }
 0x238   :  { %v2985_v50 = vmul.f32 %v2963_v43, %v2905_v4 }
 0x239   :  { %v2729_v55 = vpop.f32.mrf.mxu0 }
 0x23a   :  { %v2742_v23 = vpop.f32.mrf.mxu1  ;;  %v2998_v19 = vmul.f32 %v2990_v39, %v2985_v50 }
 0x23c   :  { %v3011_v6 = vadd.f32 %v3003_v22, %v2998_v19 }
 0x23e   :  { %vm3015_vm9 = vcmp.ge.f32.partialorder %v3011_v6, 0.0  ;;  %v3019_v40 = vmul.f32 0.01, %v3011_v6 }
 0x23f   :  { %v2753_v21 = vpop.f32.mrf.mxu2 }
 0x240   :  { %v2754_v57 = vadd.f32 %v2753_v21, %v2741_v41  ;;  %v2766_v46 = vpop.f32.mrf.mxu3  ;;  %v13511_v9 = vsel %vm3015_vm9, %v3011_v6, %v3019_v40 }
 0x241   :  { %3130 = vmatmul.f32.vlgmr.msra.gmra.mxu1 %v13511_v9 }
 0x242   :  { %v2767_v61 = vadd.f32 %v2766_v46, %v2754_v57 }
 0x244   :  { %v2888_v10 = vrot.slane %v2767_v61, 4 }
 0x246   :  { %v2889_v32 = vadd.f32 %v2888_v10, %v2767_v61 }
 0x247   :  { %v2755_v4 = vpop.f32.mrf.mxu2 }
 0x248   :  { %v2890_v58 = vrot.slane %v2889_v32, 2  ;;  %v2768_v36 = vpop.f32.mrf.mxu3 }
 0x24a   :  { %v2891_v63 = vadd.f32 %v2890_v58, %v2889_v32 }
 0x24c   :  { %v2892_v53 = vrot.slane %v2891_v63, 1 }
 0x24e   :  { %v2893_v56 = vadd.f32 %v2892_v53, %v2891_v63  ;;  %v3089_v53 = vld [vmem:[%s14226_s9 + $0x1f8] sm:$0xff] }
 0x24f   :  { %3154 = vmatpush.msra.mxu3 %v3089_v53 }
 0x250   :  { %v2902_v28 = vmul.f32 %v2893_v56, %v12959_v42 }
 0x251   :  { %v2779_v31 = vpop.f32.mrf.mxu0  ;;  %3155 = vmatpush.msra.mxu3 %v3088_v54 }
 0x252   :  { %v2792_v24 = vpop.f32.mrf.mxu1  ;;  %v2906_v34 = vsub.f32 %v2767_v61, %v2902_v28  ;;  %v2780_v39 = vadd.f32 %v2779_v31, %v1173_v60 }
 0x253   :  { %3156 = vmatpush.msra.mxu3 %v3087_v27 }
 0x254   :  { %v2910_v26 = vmul.f32 %v2906_v34, %v2906_v34  ;;  %v2793_v43 = vadd.f32 %v2792_v24, %v2780_v39  ;;  %v3074_v39 = vld [vmem:[%s14226_s9 + $0x180] sm:$0xff] }
 0x256   :  { %v2924_v62 = vrot.slane %v2910_v26, 4 }
 0x258   :  { %v2925_v30 = vadd.f32 %v2924_v62, %v2910_v26  ;;  %v3086_v26 = vld [vmem:[%s14226_s9 + $0x1e0] sm:$0xff]  ;;  %v3085_v62 = vld [vmem:[%s14226_s9 + $0x1d8] sm:$0xff] }
 0x259   :  { %v2781_v8 = vpop.f32.mrf.mxu0  ;;  %3157 = vmatpush.msra.mxu3 %v3086_v26 }
 0x25a   :  { %v2794_v20 = vpop.f32.mrf.mxu1  ;;  %v2926_v45 = vrot.slane %v2925_v30, 2 }
 0x25b   :  { %3158 = vmatpush.msra.mxu3 %v3085_v62 }
 0x25c   :  { %v2927_v0 = vadd.f32 %v2926_v45, %v2925_v30  ;;  %v3084_v30 = vld [vmem:[%s14226_s9 + $0x1d0] sm:$0xff]  ;;  %v3082_v45 = vld [vmem:[%s14226_s9 + $0x1c0] sm:$0xff] }
 0x25d   :  { %3159 = vmatpush.msra.mxu3 %v3084_v30 }
 0x25e   :  { %v2928_v25 = vrot.slane %v2927_v0, 1 }
 0x25f   :  { %v2805_v37 = vpop.f32.mrf.mxu2  ;;  %3160 = vmatpush.msra.mxu3 %v3083_v59 }
 0x260   :  { %v2818_v47 = vpop.f32.mrf.mxu3  ;;  %v2929_v11 = vadd.f32 %v2928_v25, %v2927_v0  ;;  %v2806_v22 = vadd.f32 %v2805_v37, %v2793_v43  ;;  %v3081_v0 = vld [vmem:[%s14226_s9 + $0x1b8] sm:$0xff]  ;;  %v3079_v25 = vld [vmem:[%s14226_s9 + $0x1a8] sm:$0xff] }
 0x261   :  { %3161 = vmatpush.msra.mxu3 %v3082_v45 }
 0x262   :  { %v2938_v51 = vmul.f32 %v2929_v11, %v12959_v42  ;;  %v2819_v57 = vadd.f32 %v2818_v47, %v2806_v22  ;;  %v3078_v11 = vld [vmem:[%s14226_s9 + $0x1a0] sm:$0xff] }
 0x263   :  { %3162 = vmatpush.msra.mxu3 %v3081_v0 }
 0x264   :  { %v2942_v52 = vadd.f32 1e-05, %v2938_v51  ;;  %v3077_v51 = vld [vmem:[%s14226_s9 + $0x198] sm:$0xff] }
 0x265   :  { %3163 = vmatpush.msra.mxu3 %v3080_v44 }
 0x266   :  { %12303 = vrsqrt.f32 %v2942_v52  ;;  %vm2970_vm11 = vweird.f32 %v2942_v52 }
 0x267   :  { %v2807_v18 = vpop.f32.mrf.mxu2  ;;  %3164 = vmatpush.msra.mxu3 %v3079_v25 }
 0x268   :  { %v2820_v3 = vpop.f32.mrf.mxu3  ;;  %v3075_v18 = vld [vmem:[%s14226_s9 + $0x188] sm:$0xff] }
 0x269   :  { %3165 = vmatpush.msra.mxu3 %v3078_v11 }
 0x26b   :  { %3166 = vmatpush.msra.mxu3 %v3077_v51 }
 0x26c   :  { %v12304_v55 = vpop.eup %12303 }
 0x26d   :  { %v2965_v23 = vmul.f32 %v12304_v55, %v2942_v52  ;;  %vm2971_vm10 = vweird.f32 %v12304_v55  ;;  %v3076_v52 = vld [vmem:[%s14226_s9 + $0x190] sm:$0xff] }
 0x26e   :  { %vm2972_vm12 = vmor %vm2970_vm11, %vm2971_vm10  ;;  %3167 = vmatpush.msra.mxu3 %v3076_v52 }
 0x26f   :  { %v2966_v19 = vmul.f32 %v12304_v55, %v2965_v23 }
 0x270   :  { %3168 = vmatpush.msra.mxu3 %v3075_v18 }
 0x271   :  { %v2831_v50 = vpop.f32.mrf.mxu0  ;;  %v2967_v21 = vmul.f32 0.5, %v2966_v19 }
 0x272   :  { %v2844_v41 = vpop.f32.mrf.mxu1  ;;  %v2832_v6 = vadd.f32 %v2831_v50, %v2819_v57  ;;  %3169 = vmatpush.msra.mxu3 %v3074_v39 }
 0x273   :  { %v2968_v46 = vsub.f32 1.5, %v2967_v21 }
 0x274   :  { %v2845_v32 = vadd.f32 %v2844_v41, %v2832_v6 }
 0x275   :  { %v2969_v61 = vmul.f32 %v12304_v55, %v2968_v46  ;;  %v2992_v46 = vperm.slane %v13442_v49, 3 }
 0x277   :  { %v2973_v10 = vsel %vm2972_vm12, %v12304_v55, %v2969_v61 }
 0x278   :  { %v2986_v13 = vmul.f32 %v2973_v10, %v2906_v34 }
 0x279   :  { %v2833_v48 = vpop.f32.mrf.mxu0 }
 0x27a   :  { %v2846_v40 = vpop.f32.mrf.mxu1  ;;  %v2999_v58 = vmul.f32 %v2991_v17, %v2986_v13  ;;  %v3005_v48 = vperm.slane %v13450_v12, 3 }
 0x27c   :  { %v3012_v35 = vadd.f32 %v3004_v15, %v2999_v58 }
 0x27d   :  { %v2857_v4 = vpop.f32.mrf.mxu2 }
 0x27e   :  { %v2858_v36 = vadd.f32 %v2857_v4, %v2845_v32  ;;  %vm3016_vm13 = vcmp.ge.f32.partialorder %v3012_v35, 0.0  ;;  %v3020_v56 = vmul.f32 0.01, %v3012_v35  ;;  %v12280_v32 = vld [vmem:[#allocation18] ss:$0 sm:$0xff] }
 0x280   :  { %v2870_v33 = vpop.f32.mrf.mxu3  ;;  %v13567_v31 = vsel %vm3016_vm13, %v3012_v35, %v3020_v56 }
 0x281   :  { %v2871_v63 = vadd.f32 %v2870_v33, %v2858_v36  ;;  %3150 = vmatmul.f32.vlgmr.msra.gmra.mxu2 %v13567_v31 }
 0x283   :  { %v2894_v38 = vrot.slane %v2871_v63, 4 }
 0x285   :  { %v2895_v28 = vadd.f32 %v2894_v38, %v2871_v63  ;;  %v2859_v24 = vpop.f32.mrf.mxu2 }
 0x287   :  { %v2896_v34 = vrot.slane %v2895_v28, 2 }
 0x288   :  { %v2872_v16 = vpop.f32.mrf.mxu3 }
 0x289   :  { %v2897_v7 = vadd.f32 %v2896_v34, %v2895_v28 }
 0x28b   :  { %v2898_v14 = vrot.slane %v2897_v7, 1 }
 0x28d   :  { %v2899_v8 = vadd.f32 %v2898_v14, %v2897_v7 }
 0x28f   :  { %v2903_v20 = vmul.f32 %v2899_v8, %v12959_v42 }
 0x291   :  { %v2907_v1 = vsub.f32 %v2871_v63, %v2903_v20 }
 0x293   :  { %v2911_v37 = vmul.f32 %v2907_v1, %v2907_v1 }
 0x294   :  { %v3111_v15 = vpop.f32.mrf.mxu0 }
 0x295   :  { %v2930_v47 = vrot.slane %v2911_v37, 4  ;;  %v3112_v58 = vadd.f32 %v12280_v32, %v3111_v15 }
 0x297   :  { %v2931_v5 = vadd.f32 %v2930_v47, %v2911_v37 }
 0x299   :  { %v2932_v2 = vrot.slane %v2931_v5, 2 }
 0x29b   :  { %v2933_v60 = vadd.f32 %v2932_v2, %v2931_v5 }
 0x29d   :  { %v2934_v3 = vrot.slane %v2933_v60, 1 }
 0x29f   :  { %v2935_v55 = vadd.f32 %v2934_v3, %v2933_v60 }
 0x2a1   :  { %v2939_v43 = vmul.f32 %v2935_v55, %v12959_v42 }
 0x2a3   :  { %v2943_v23 = vadd.f32 1e-05, %v2939_v43 }
 0x2a5   :  { %12305 = vrsqrt.f32 %v2943_v23  ;;  %vm2980_vm15 = vweird.f32 %v2943_v23 }
 0x2ab   :  { %v12306_v50 = vpop.eup %12305 }
 0x2ac   :  { %v2975_v22 = vmul.f32 %v12306_v50, %v2943_v23  ;;  %vm2981_vm14 = vweird.f32 %v12306_v50 }
 0x2ad   :  { %vm2982_vm0 = vmor %vm2980_vm15, %vm2981_vm14 }
 0x2ae   :  { %v2976_v41 = vmul.f32 %v12306_v50, %v2975_v22 }
 0x2b0   :  { %v2977_v19 = vmul.f32 0.5, %v2976_v41 }
 0x2b2   :  { %v2978_v21 = vsub.f32 1.5, %v2977_v19 }
 0x2b4   :  { %v2979_v57 = vmul.f32 %v12306_v50, %v2978_v21 }
 0x2b6   :  { %v2983_v6 = vsel %vm2982_vm0, %v12306_v50, %v2979_v57 }
 0x2b7   :  { %v2987_v61 = vmul.f32 %v2983_v6, %v2907_v1 }
 0x2b9   :  { %v3000_v17 = vmul.f32 %v2992_v46, %v2987_v61 }
 0x2bb   :  { %v3013_v40 = vadd.f32 %v3005_v48, %v3000_v17 }
 0x2bd   :  { %vm3017_vm1 = vcmp.ge.f32.partialorder %v3013_v40, 0.0  ;;  %v3021_v10 = vmul.f32 0.01, %v3013_v40 }
 0x2be   :  { %v3131_v4 = vpop.f32.mrf.mxu1 }
 0x2bf   :  { %v13616_v13 = vsel %vm3017_vm1, %v3013_v40, %v3021_v10  ;;  %v3132_v33 = vadd.f32 %v3131_v4, %v3112_v58 }
 0x2c0   :  { %3170 = vmatmul.f32.vlgmr.msra.gmra.mxu3 %v13616_v13 }
 0x304   :  { %v3151_v36 = vpop.f32.mrf.mxu2 }
 0x305   :  { %v3152_v63 = vadd.f32 %v3151_v36, %v3132_v33 }
 0x343   :  { %v3171_v49 = vpop.f32.mrf.mxu3 }
 0x344   :  { %v3172_v35 = vadd.f32 %v3171_v49, %v3152_v63 }
 0x346   :  { %v3176_v12 = vsel %vm3174_vm2, %v3172_v35, -inf  ;;  %3175 = vst.msk [vmem:[%s14234_s17] sm:$0xff] %vm3174_vm2, %v3172_v35 }
 0x347   :  { %3177 = vmax.xlane.f32.xlu0 %v3176_v12 }
 0x3ba   :  { %v3178_v53 = vpop.xlane.xlu0 %3177 }
 0x3bb   :  { %v3179_v38 = vsub.f32 %v3172_v35, %v3178_v53 }
 0x3bd   :  { %v3180_v56 = vmul.f32 1.442695, %v3179_v38 }
 0x3bf   :  { %12307 = vpow2.f32 %v3180_v56 }
 0x3c5   :  { %v12308_v54 = vpop.eup %12307 }
 0x3c6   :  { %v3182_v28 = vsel %vm3174_vm2, %v12308_v54, 0.0 }
 0x3c7   :  { %3183 = vadd.xlane.f32.xlu0 %v3182_v28 }
 0x43a   :  { %v3184_v27 = vpop.xlane.xlu0 %3183 }
 0x43b   :  { %12309 = vrcp.f32 %v3184_v27  ;;  %v3196_v26 = vand.u32 2147483648, %v3184_v27  ;;  %v3194_v62 = vand.u32 2147483647, %v3184_v27  ;;  %vm3190_vm4 = vweird.f32 %v3184_v27 }
 0x43d   :  { %v3197_v30 = vor.u32 1.1754944e-38, %v3196_v26  ;;  %vm3195_vm6 = vcmp.eq.f32.partialorder %v3194_v62, 8.507059e+37 }
 0x441   :  { %v12310_v24 = vpop.eup %12309 }
 0x442   :  { %v3186_v34 = vmul.f32 %v12310_v24, %v3184_v27  ;;  %vm3191_vm3 = vweird.f32 %v12310_v24 }
 0x443   :  { %vm3192_vm5 = vmor %vm3190_vm4, %vm3191_vm3 }
 0x444   :  { %v3187_v16 = vsub.f32 1.0, %v3186_v34 }
 0x446   :  { %v3188_v7 = vmul.f32 %v12310_v24, %v3187_v16 }
 0x448   :  { %v3189_v14 = vadd.f32 %v12310_v24, %v3188_v7 }
 0x44a   :  { %v3193_v8 = vsel %vm3192_vm5, %v12310_v24, %v3189_v14 }
 0x44b   :  { %v3198_v59 = vsel %vm3195_vm6, %v3197_v30, %v3193_v8 }
 0x44c   :  { %v13628_v20 = vmul.f32 %v12308_v54, %v3198_v59 }
 0x44d   :  { %12754 = dma.done.wait [#allocation3], 65536 }
 0x44e   :  { %12755 = vsyncadd [#allocation3], 4294901760  ;;  %v9856_v45 = vld [vmem:[#allocation2 + $0x380] sm:$0xf]  ;;  %s14273_s23 = sld [smem:[#allocation43_spill]] }
 0x44f   :  { %v11863_v1 = vld [vmem:[#allocation2 + $0x3bc] sm:$0xf0] }
 0x450   :  { %v10368_v0 = vld [vmem:[#allocation2 + $0x780] sm:$0xf]  ;;  %v9857_v37 = vor.u32 %v11863_v1, %v9856_v45 }
 0x451   :  { %v11991_v44 = vld [vmem:[#allocation2 + $0x7bc] sm:$0xf0] }
 0x452   :  { %v10880_v47 = vld [vmem:[#allocation2 + $0xb80] sm:$0xf]  ;;  %v10369_v5 = vor.u32 %v11991_v44, %v10368_v0  ;;  %6280 = vmatpush.bf16.msrb.mxu0 %v9857_v37 }
 0x453   :  { %v12119_v25 = vld [vmem:[#allocation2 + $0xbbc] sm:$0xf0] }
 0x454   :  { %v10881_v11 = vor.u32 %v12119_v25, %v10880_v47  ;;  %v11392_v2 = vld [vmem:[#allocation2 + $0xf80] sm:$0xf]  ;;  %6293 = vmatpush.bf16.msrb.mxu1 %v10369_v5 }
 0x455   :  { %v12247_v51 = vld [vmem:[#allocation2 + $0xfbc] sm:$0xf0] }
 0x456   :  { %v9792_v52 = vld [vmem:[#allocation2 + $0x300] sm:$0xf]  ;;  %v11393_v60 = vor.u32 %v12247_v51, %v11392_v2  ;;  %6306 = vmatpush.bf16.msrb.mxu2 %v10881_v11 }
 0x457   :  { %v11847_v18 = vld [vmem:[#allocation2 + $0x33c] sm:$0xf0] }
 0x458   :  { %v10304_v3 = vld [vmem:[#allocation2 + $0x700] sm:$0xf]  ;;  %v9793_v55 = vor.u32 %v11847_v18, %v9792_v52  ;;  %6319 = vmatpush.bf16.msrb.mxu3 %v11393_v60 }
 0x459   :  { %v11975_v39 = vld [vmem:[#allocation2 + $0x73c] sm:$0xf0] }
 0x45a   :  { %v10305_v43 = vor.u32 %v11975_v39, %v10304_v3  ;;  %v10816_v23 = vld [vmem:[#allocation2 + $0xb00] sm:$0xf]  ;;  %6281 = vmatpush.bf16.msrb.mxu0 %v9793_v55 }
 0x45b   :  { %v12103_v50 = vld [vmem:[#allocation2 + $0xb3c] sm:$0xf0] }
 0x45c   :  { %v11328_v22 = vld [vmem:[#allocation2 + $0xf00] sm:$0xf]  ;;  %v10817_v41 = vor.u32 %v12103_v50, %v10816_v23  ;;  %6294 = vmatpush.bf16.msrb.mxu1 %v10305_v43 }
 0x45d   :  { %v12231_v19 = vld [vmem:[#allocation2 + $0xf3c] sm:$0xf0] }
 0x45e   :  { %v9728_v21 = vld [vmem:[#allocation2 + $0x280] sm:$0xf]  ;;  %v11329_v46 = vor.u32 %v12231_v19, %v11328_v22  ;;  %6307 = vmatpush.bf16.msrb.mxu2 %v10817_v41 }
 0x45f   :  { %v11831_v57 = vld [vmem:[#allocation2 + $0x2bc] sm:$0xf0] }
 0x460   :  { %v10240_v6 = vld [vmem:[#allocation2 + $0x680] sm:$0xf]  ;;  %v9729_v17 = vor.u32 %v11831_v57, %v9728_v21  ;;  %6320 = vmatpush.bf16.msrb.mxu3 %v11329_v46 }
 0x461   :  { %v11959_v61 = vld [vmem:[#allocation2 + $0x6bc] sm:$0xf0] }
 0x462   :  { %v10752_v48 = vld [vmem:[#allocation2 + $0xa80] sm:$0xf]  ;;  %v10241_v15 = vor.u32 %v11959_v61, %v10240_v6  ;;  %6282 = vmatpush.bf16.msrb.mxu0 %v9729_v17 }
 0x463   :  { %v12087_v40 = vld [vmem:[#allocation2 + $0xabc] sm:$0xf0] }
 0x464   :  { %v11264_v10 = vld [vmem:[#allocation2 + $0xe80] sm:$0xf]  ;;  %v10753_v4 = vor.u32 %v12087_v40, %v10752_v48  ;;  %6295 = vmatpush.bf16.msrb.mxu1 %v10241_v15 }
 0x465   :  { %v12215_v32 = vld [vmem:[#allocation2 + $0xebc] sm:$0xf0] }
 0x466   :  { %v9664_v58 = vld [vmem:[#allocation2 + $0x200] sm:$0xf]  ;;  %v11265_v63 = vor.u32 %v12215_v32, %v11264_v10  ;;  %6308 = vmatpush.bf16.msrb.mxu2 %v10753_v4  ;;  %v11855_v4 = vld [vmem:[#allocation2 + $0x384] sm:$0xf] }
 0x467   :  { %v11815_v36 = vld [vmem:[#allocation2 + $0x23c] sm:$0xf0] }
 0x468   :  { %v10176_v33 = vld [vmem:[#allocation2 + $0x600] sm:$0xf]  ;;  %v9665_v56 = vor.u32 %v11815_v36, %v9664_v58  ;;  %6321 = vmatpush.bf16.msrb.mxu3 %v11265_v63  ;;  %v9858_v58 = vld [vmem:[#allocation2 + $0x3c0] sm:$0xf0] }
 0x469   :  { %v11943_v49 = vld [vmem:[#allocation2 + $0x63c] sm:$0xf0]  ;;  %v11983_v36 = vld [vmem:[#allocation2 + $0x784] sm:$0xf] }
 0x46a   :  { %v10688_v35 = vld [vmem:[#allocation2 + $0xa00] sm:$0xf]  ;;  %v10177_v54 = vor.u32 %v11943_v49, %v10176_v33  ;;  %6283 = vmatpush.bf16.msrb.mxu0 %v9665_v56  ;;  %v10370_v63 = vld [vmem:[#allocation2 + $0x7c0] sm:$0xf0] }
 0x46b   :  { %v12071_v12 = vld [vmem:[#allocation2 + $0xa3c] sm:$0xf0]  ;;  %v12111_v49 = vld [vmem:[#allocation2 + $0xb84] sm:$0xf] }
 0x46c   :  { %v11200_v53 = vld [vmem:[#allocation2 + $0xe00] sm:$0xf]  ;;  %v10689_v28 = vor.u32 %v12071_v12, %v10688_v35  ;;  %6296 = vmatpush.bf16.msrb.mxu1 %v10177_v54  ;;  %v10882_v35 = vld [vmem:[#allocation2 + $0xbc0] sm:$0xf0] }
 0x46d   :  { %v12199_v38 = vld [vmem:[#allocation2 + $0xe3c] sm:$0xf0]  ;;  %v11394_v56 = vld [vmem:[#allocation2 + $0xfc0] sm:$0xf0] }
 0x46e   :  { %v9600_v27 = vld [vmem:[#allocation2 + $0x180] sm:$0xf]  ;;  %v11201_v16 = vor.u32 %v12199_v38, %v11200_v53  ;;  %6309 = vmatpush.bf16.msrb.mxu2 %v10689_v28  ;;  %v12239_v38 = vld [vmem:[#allocation2 + $0xf84] sm:$0xf]  ;;  %v9861_v28 = vor.u32 %v11855_v4, %v9858_v58 }
 0x46f   :  { %v11799_v24 = vld [vmem:[#allocation2 + $0x1bc] sm:$0xf0]  ;;  %v10626_v4 = vld [vmem:[#allocation2 + $0x9c0] sm:$0xf0] }
 0x470   :  { %v10112_v34 = vld [vmem:[#allocation2 + $0x580] sm:$0xf]  ;;  %v9601_v8 = vor.u32 %v11799_v24, %v9600_v27  ;;  %6322 = vmatpush.bf16.msrb.mxu3 %v11201_v16  ;;  %v10373_v27 = vor.u32 %v11983_v36, %v10370_v63  ;;  %v10885_v24 = vor.u32 %v12111_v49, %v10882_v35  ;;  %v9794_v16 = vld [vmem:[#allocation2 + $0x340] sm:$0xf0] }
 0x471   :  { %v11927_v26 = vld [vmem:[#allocation2 + $0x5bc] sm:$0xf0]  ;;  %v12175_v58 = vld [vmem:[#allocation2 + $0xd84] sm:$0xf] }
 0x472   :  { %v10624_v7 = vld [vmem:[#allocation2 + $0x980] sm:$0xf]  ;;  %v10113_v59 = vor.u32 %v11927_v26, %v10112_v34  ;;  %6284 = vmatpush.bf16.msrb.mxu0 %v9601_v8  ;;  %v11839_v34 = vld [vmem:[#allocation2 + $0x304] sm:$0xf] }
 0x473   :  { %v12055_v62 = vld [vmem:[#allocation2 + $0x9bc] sm:$0xf0]  ;;  %v11967_v26 = vld [vmem:[#allocation2 + $0x704] sm:$0xf] }
 0x474   :  { %v11136_v14 = vld [vmem:[#allocation2 + $0xd80] sm:$0xf]  ;;  %v10625_v45 = vor.u32 %v12055_v62, %v10624_v7  ;;  %6297 = vmatpush.bf16.msrb.mxu1 %v10113_v59  ;;  %v11397_v7 = vor.u32 %v12239_v38, %v11394_v56  ;;  %v13632_v62 = vpack.c.bf16 %v13567_v31, %v13567_v31  ;;  %v10818_v8 = vld [vmem:[#allocation2 + $0xb40] sm:$0xf0]  ;;  %v13636_v59 = vpack.c.bf16 %v13616_v13, %v13616_v13 }
 0x475   :  { %v12183_v30 = vld [vmem:[#allocation2 + $0xdbc] sm:$0xf0]  ;;  %v13644_v31 = vpack.c.bf16 %v13511_v9, %v13511_v9  ;;  %v9730_v13 = vld [vmem:[#allocation2 + $0x2c0] sm:$0xf0] }
 0x476   :  { %v9536_v1 = vld [vmem:[#allocation2 + $0x100] sm:$0xf]  ;;  %v11137_v44 = vor.u32 %v12183_v30, %v11136_v14  ;;  %6310 = vmatpush.bf16.msrb.mxu2 %v10625_v45  ;;  %v10306_v14 = vld [vmem:[#allocation2 + $0x740] sm:$0xf0] }
 0x477   :  { %v11783_v0 = vld [vmem:[#allocation2 + $0x13c] sm:$0xf0]  ;;  %v12095_v30 = vld [vmem:[#allocation2 + $0xb04] sm:$0xf] }
 0x478   :  { %v10048_v37 = vld [vmem:[#allocation2 + $0x500] sm:$0xf]  ;;  %v9537_v51 = vor.u32 %v11783_v0, %v9536_v1  ;;  %6323 = vmatpush.bf16.msrb.mxu3 %v11137_v44  ;;  %v12223_v45 = vld [vmem:[#allocation2 + $0xf04] sm:$0xf]  ;;  %v13640_v0 = vpack.c.bf16 %v13471_v29, %v13471_v29  ;;  %v10309_v44 = vor.u32 %v11967_v26, %v10306_v14 }
 0x479   :  { %v11911_v47 = vld [vmem:[#allocation2 + $0x53c] sm:$0xf0]  ;;  %v11330_v1 = vld [vmem:[#allocation2 + $0xf40] sm:$0xf0] }
 0x47a   :  { %v10560_v25 = vld [vmem:[#allocation2 + $0x900] sm:$0xf]  ;;  %v10049_v52 = vor.u32 %v11911_v47, %v10048_v37  ;;  %6285 = vmatpush.bf16.msrb.mxu0 %v9537_v51  ;;  %v9797_v37 = vor.u32 %v11839_v34, %v9794_v16  ;;  %v10821_v47 = vor.u32 %v12095_v30, %v10818_v8  ;;  %v10242_v29 = vld [vmem:[#allocation2 + $0x6c0] sm:$0xf0] }
 0x47b   :  { %v12039_v5 = vld [vmem:[#allocation2 + $0x93c] sm:$0xf0]  ;;  %v10754_v51 = vld [vmem:[#allocation2 + $0xac0] sm:$0xf0] }
 0x47c   :  { %v11072_v11 = vld [vmem:[#allocation2 + $0xd00] sm:$0xf]  ;;  %v10561_v60 = vor.u32 %v12039_v5, %v10560_v25  ;;  %6298 = vmatpush.bf16.msrb.mxu1 %v10049_v52  ;;  %v11823_v25 = vld [vmem:[#allocation2 + $0x284] sm:$0xf] }
 0x47d   :  { %v12167_v2 = vld [vmem:[#allocation2 + $0xd3c] sm:$0xf0]  ;;  %v11951_v5 = vld [vmem:[#allocation2 + $0x684] sm:$0xf] }
 0x47e   :  { %v9472_v18 = vld [vmem:[#allocation2 + $0x80] sm:$0xf]  ;;  %v11073_v55 = vor.u32 %v12167_v2, %v11072_v11  ;;  %6311 = vmatpush.bf16.msrb.mxu2 %v10561_v60  ;;  %v11333_v11 = vor.u32 %v12223_v45, %v11330_v1  ;;  %v12079_v2 = vld [vmem:[#allocation2 + $0xa84] sm:$0xf]  ;;  %v9733_v60 = vor.u32 %v11823_v25, %v9730_v13 }
 0x47f   :  { %v11767_v3 = vld [vmem:[#allocation2 + $0xbc] sm:$0xf0]  ;;  %v12207_v9 = vld [vmem:[#allocation2 + $0xe84] sm:$0xf] }
 0x480   :  { %v9984_v39 = vld [vmem:[#allocation2 + $0x480] sm:$0xf]  ;;  %v9473_v19 = vor.u32 %v11767_v3, %v9472_v18  ;;  %6324 = vmatpush.bf16.msrb.mxu3 %v11073_v55  ;;  %v11266_v52 = vld [vmem:[#allocation2 + $0xec0] sm:$0xf0]  ;;  %v10245_v18 = vor.u32 %v11951_v5, %v10242_v29  ;;  %v10757_v3 = vor.u32 %v12079_v2, %v10754_v51 }
 0x481   :  { %v11895_v43 = vld [vmem:[#allocation2 + $0x4bc] sm:$0xf0]  ;;  %v9666_v55 = vld [vmem:[#allocation2 + $0x240] sm:$0xf0] }
 0x482   :  { %v10496_v23 = vld [vmem:[#allocation2 + $0x880] sm:$0xf]  ;;  %v9985_v46 = vor.u32 %v11895_v43, %v9984_v39  ;;  %6286 = vmatpush.bf16.msrb.mxu0 %v9473_v19  ;;  %v11807_v39 = vld [vmem:[#allocation2 + $0x204] sm:$0xf]  ;;  %v12777_v19 = vmov 0  }
 0x483   :  { %v12023_v50 = vld [vmem:[#allocation2 + $0x8bc] sm:$0xf0]  ;;  %v11935_v43 = vld [vmem:[#allocation2 + $0x604] sm:$0xf]  ;;  %12311 = vset.pattern.permute.xlu0 %v12777_v19 }
 0x484   :  { %v11008_v22 = vld [vmem:[#allocation2 + $0xc80] sm:$0xf]  ;;  %v10497_v6 = vor.u32 %v12023_v50, %v10496_v23  ;;  %6299 = vmatpush.bf16.msrb.mxu1 %v9985_v46  ;;  %v11269_v23 = vor.u32 %v12207_v9, %v11266_v52  ;;  %v10178_v50 = vld [vmem:[#allocation2 + $0x640] sm:$0xf0]  ;;  %7179 = vperm.xlu0 %12311, %v13628_v20   ;;  %v9669_v46 = vor.u32 %v11807_v39, %v9666_v55  ;;  %v9864_v39 = vld [vmem:[#allocation2 + $0x388] sm:$0xf] }
 0x485   :  { %v12151_v41 = vld [vmem:[#allocation2 + $0xcbc] sm:$0xf0]  ;;  %v11138_v36 = vld [vmem:[#allocation2 + $0xdc0] sm:$0xf0]  ;;  %v11864_v55 = vld [vmem:[#allocation2 + $0x3c4] sm:$0xf0] }
 0x486   :  { %v9408_v21 = vld [vmem:[#allocation2] sm:$0xf]  ;;  %v11009_v40 = vor.u32 %v12151_v41, %v11008_v22  ;;  %6312 = vmatpush.bf16.msrb.mxu2 %v10497_v6  ;;  %v12063_v22 = vld [vmem:[#allocation2 + $0xa04] sm:$0xf]  ;;  %v10181_v6 = vor.u32 %v11935_v43, %v10178_v50  ;;  %v11141_v38 = vor.u32 %v12175_v58, %v11138_v36  ;;  %v10376_v43 = vld [vmem:[#allocation2 + $0x788] sm:$0xf] }
 0x487   :  { %v11751_v57 = vld [vmem:[#allocation2 + $0x3c] sm:$0xf0]  ;;  %v10690_v41 = vld [vmem:[#allocation2 + $0xa40] sm:$0xf0]  ;;  %v11992_v50 = vld [vmem:[#allocation2 + $0x7c4] sm:$0xf0] }
 0x488   :  { %v9920_v61 = vld [vmem:[#allocation2 + $0x400] sm:$0xf]  ;;  %v9409_v33 = vor.u32 %v11751_v57, %v9408_v21  ;;  %6325 = vmatpush.bf16.msrb.mxu3 %v11009_v40  ;;  %v12191_v21 = vld [vmem:[#allocation2 + $0xe04] sm:$0xf]  ;;  %v10824_v58 = vld [vmem:[#allocation2 + $0xb08] sm:$0xf] }
 0x489   :  { %v11879_v48 = vld [vmem:[#allocation2 + $0x43c] sm:$0xf0]  ;;  %v11202_v57 = vld [vmem:[#allocation2 + $0xe40] sm:$0xf0]  ;;  %v12104_v36 = vld [vmem:[#allocation2 + $0xb44] sm:$0xf0] }
 0x48a   :  { %v10432_v17 = vld [vmem:[#allocation2 + $0x800] sm:$0xf]  ;;  %v9921_v12 = vor.u32 %v11879_v48, %v9920_v61  ;;  %6287 = vmatpush.bf16.msrb.mxu0 %v9409_v33  ;;  %v10693_v61 = vor.u32 %v12063_v22, %v10690_v41  ;;  %v11791_v48 = vld [vmem:[#allocation2 + $0x184] sm:$0xf]  ;;  %v10888_v22 = vld [vmem:[#allocation2 + $0xb88] sm:$0xf] }
 0x48b   :  { %v12007_v10 = vld [vmem:[#allocation2 + $0x83c] sm:$0xf0]  ;;  %v11919_v40 = vld [vmem:[#allocation2 + $0x584] sm:$0xf]  ;;  %v12120_v41 = vld [vmem:[#allocation2 + $0xbc4] sm:$0xf0] }
 0x48c   :  { %v10944_v32 = vld [vmem:[#allocation2 + $0xc00] sm:$0xf]  ;;  %v10433_v53 = vor.u32 %v12007_v10, %v10432_v17  ;;  %6300 = vmatpush.bf16.msrb.mxu1 %v9921_v12  ;;  %v9602_v17 = vld [vmem:[#allocation2 + $0x1c0] sm:$0xf0]  ;;  %v11205_v10 = vor.u32 %v12191_v21, %v11202_v57  ;;  %v11400_v57 = vld [vmem:[#allocation2 + $0xf88] sm:$0xf] }
 0x48d   :  { %v12135_v15 = vld [vmem:[#allocation2 + $0xc3c] sm:$0xf0]  ;;  %6288 = vmatmul.bf16.vlgmr.msrb.gmra.mxu0 %v13640_v0  ;;  %v9605_v33 = vor.u32 %v11791_v48, %v9602_v17  ;;  %v11775_v35 = vld [vmem:[#allocation2 + $0x104] sm:$0xf]  ;;  %v10377_v48 = vor.u32 %v11992_v50, %v10376_v43  ;;  %v10889_v17 = vor.u32 %v12120_v41, %v10888_v22  ;;  %v9544_v22 = vld [vmem:[#allocation2 + $0x108] sm:$0xf] }
 0x48e   :  { %v10945_v54 = vor.u32 %v12135_v15, %v10944_v32  ;;  %6313 = vmatpush.bf16.msrb.mxu2 %v10433_v53  ;;  %6332 = vmatpush.bf16.msra.mxu0 %v9861_v28  ;;  %v10114_v32 = vld [vmem:[#allocation2 + $0x5c0] sm:$0xf0]  ;;  %v11784_v41 = vld [vmem:[#allocation2 + $0x144] sm:$0xf0] }
 0x48f   :  { %6301 = vmatmul.bf16.vlgmr.msrb.gmra.mxu1 %v13644_v31  ;;  %v12047_v15 = vld [vmem:[#allocation2 + $0x984] sm:$0xf]  ;;  %v10117_v63 = vor.u32 %v11919_v40, %v10114_v32  ;;  %v9800_v40 = vld [vmem:[#allocation2 + $0x308] sm:$0xf] }
 0x490   :  { %6326 = vmatpush.bf16.msrb.mxu3 %v10945_v54  ;;  %6345 = vmatpush.bf16.msra.mxu1 %v10373_v27  ;;  %v10629_v49 = vor.u32 %v12047_v15, %v10626_v4  ;;  %v9538_v12 = vld [vmem:[#allocation2 + $0x140] sm:$0xf0]  ;;  %v10312_v32 = vld [vmem:[#allocation2 + $0x708] sm:$0xf] }
 0x491   :  { %6314 = vmatmul.bf16.vlgmr.msrb.gmra.mxu2 %v13632_v62  ;;  %v11903_v53 = vld [vmem:[#allocation2 + $0x504] sm:$0xf]  ;;  %v9541_v34 = vor.u32 %v11775_v35, %v9538_v12  ;;  %v11976_v4 = vld [vmem:[#allocation2 + $0x744] sm:$0xf0]  ;;  %v10825_v12 = vor.u32 %v12104_v36, %v10824_v58 }
 0x492   :  { %6358 = vmatpush.bf16.msra.mxu2 %v10885_v24  ;;  %6333 = vmatpush.bf16.msra.mxu0 %v9797_v37  ;;  %v10050_v56 = vld [vmem:[#allocation2 + $0x540] sm:$0xf0]  ;;  %v10313_v35 = vor.u32 %v11976_v4, %v10312_v32  ;;  %v9480_v32 = vld [vmem:[#allocation2 + $0x88] sm:$0xf] }
 0x493   :  { %6327 = vmatmul.bf16.vlgmr.msrb.gmra.mxu3 %v13636_v59  ;;  %v12031_v54 = vld [vmem:[#allocation2 + $0x904] sm:$0xf]  ;;  %v10053_v16 = vor.u32 %v11903_v53, %v10050_v56  ;;  %v9736_v53 = vld [vmem:[#allocation2 + $0x288] sm:$0xf] }
 0x494   :  { %6371 = vmatpush.bf16.msra.mxu3 %v11397_v7  ;;  %6346 = vmatpush.bf16.msra.mxu1 %v10309_v44  ;;  %v10562_v28 = vld [vmem:[#allocation2 + $0x940] sm:$0xf0]  ;;  %v10248_v56 = vld [vmem:[#allocation2 + $0x688] sm:$0xf] }
 0x495   :  { %v12159_v27 = vld [vmem:[#allocation2 + $0xd04] sm:$0xf]  ;;  %v10565_v26 = vor.u32 %v12031_v54, %v10562_v28  ;;  %v11960_v28 = vld [vmem:[#allocation2 + $0x6c4] sm:$0xf0] }
 0x496   :  { %6359 = vmatpush.bf16.msra.mxu2 %v10821_v47  ;;  %6334 = vmatpush.bf16.msra.mxu0 %v9733_v60  ;;  %v11074_v24 = vld [vmem:[#allocation2 + $0xd40] sm:$0xf0]  ;;  %v9992_v4 = vld [vmem:[#allocation2 + $0x488] sm:$0xf] }
 0x497   :  { %v11759_v7 = vld [vmem:[#allocation2 + $0x84] sm:$0xf]  ;;  %v11077_v8 = vor.u32 %v12159_v27, %v11074_v24  ;;  %v10760_v27 = vld [vmem:[#allocation2 + $0xa88] sm:$0xf] }
 0x498   :  { %6372 = vmatpush.bf16.msra.mxu3 %v11333_v11  ;;  %6347 = vmatpush.bf16.msra.mxu1 %v10245_v18  ;;  %v9474_v14 = vld [vmem:[#allocation2 + $0xc0] sm:$0xf0]  ;;  %v12088_v24 = vld [vmem:[#allocation2 + $0xac4] sm:$0xf0] }
 0x499   :  { %v11887_v30 = vld [vmem:[#allocation2 + $0x484] sm:$0xf]  ;;  %v9477_v25 = vor.u32 %v11759_v7, %v9474_v14  ;;  %v10249_v7 = vor.u32 %v11960_v28, %v10248_v56  ;;  %v10761_v14 = vor.u32 %v12088_v24, %v10760_v27  ;;  %v11896_v36 = vld [vmem:[#allocation2 + $0x4c4] sm:$0xf0] }
 0x49a   :  { %6360 = vmatpush.bf16.msra.mxu2 %v10757_v3  ;;  %6335 = vmatpush.bf16.msra.mxu0 %v9669_v46  ;;  %v9986_v45 = vld [vmem:[#allocation2 + $0x4c0] sm:$0xf0]  ;;  %v12248_v46 = vld [vmem:[#allocation2 + $0xfc4] sm:$0xf0]  ;;  %v9993_v56 = vor.u32 %v11896_v36, %v9992_v4  ;;  %v11808_v4 = vld [vmem:[#allocation2 + $0x20c] sm:$0xf] }
 0x49b   :  { %v12015_v1 = vld [vmem:[#allocation2 + $0x884] sm:$0xf]  ;;  %v9989_v11 = vor.u32 %v11887_v30, %v9986_v45  ;;  %v11401_v15 = vor.u32 %v12248_v46, %v11400_v57  ;;  %v9672_v30 = vld [vmem:[#allocation2 + $0x208] sm:$0xf]  ;;  %v11936_v36 = vld [vmem:[#allocation2 + $0x60c] sm:$0xf] }
 0x49c   :  { %6373 = vmatpush.bf16.msra.mxu3 %v11269_v23  ;;  %6348 = vmatpush.bf16.msra.mxu1 %v10181_v6  ;;  %v10498_v37 = vld [vmem:[#allocation2 + $0x8c0] sm:$0xf0]  ;;  %v10184_v45 = vld [vmem:[#allocation2 + $0x608] sm:$0xf] }
 0x49d   :  { %v12143_v44 = vld [vmem:[#allocation2 + $0xc84] sm:$0xf]  ;;  %v10501_v29 = vor.u32 %v12015_v1, %v10498_v37  ;;  %v11944_v37 = vld [vmem:[#allocation2 + $0x644] sm:$0xf0] }
 0x49e   :  { %6361 = vmatpush.bf16.msra.mxu2 %v10693_v61  ;;  %6336 = vmatpush.bf16.msra.mxu0 %v9605_v33  ;;  %v11010_v47 = vld [vmem:[#allocation2 + $0xcc0] sm:$0xf0]  ;;  %v9865_v61 = vor.u32 %v11864_v55, %v9864_v39  ;;  %v11336_v33 = vld [vmem:[#allocation2 + $0xf08] sm:$0xf] }
 0x49f   :  { %v11743_v13 = vld [vmem:[#allocation2 + $0x4] sm:$0xf]  ;;  %v11013_v52 = vor.u32 %v12143_v44, %v11010_v47  ;;  %v10696_v44 = vld [vmem:[#allocation2 + $0xa08] sm:$0xf] }
 0x4a0   :  { %6374 = vmatpush.bf16.msra.mxu3 %v11205_v10  ;;  %6349 = vmatpush.bf16.msra.mxu1 %v10117_v63  ;;  %v9410_v5 = vld [vmem:[#allocation2 + $0x40] sm:$0xf0]  ;;  %v11848_v10 = vld [vmem:[#allocation2 + $0x344] sm:$0xf0] }
 0x4a1   :  { %v11871_v2 = vld [vmem:[#allocation2 + $0x404] sm:$0xf]  ;;  %v9413_v23 = vor.u32 %v11743_v13, %v9410_v5  ;;  %v12232_v63 = vld [vmem:[#allocation2 + $0xf44] sm:$0xf0] }
 0x4a2   :  { %6362 = vmatpush.bf16.msra.mxu2 %v10629_v49  ;;  %6337 = vmatpush.bf16.msra.mxu0 %v9541_v34  ;;  %v9922_v51 = vld [vmem:[#allocation2 + $0x440] sm:$0xf0]  ;;  %v9801_v49 = vor.u32 %v11848_v10, %v9800_v40  ;;  %v11337_v54 = vor.u32 %v12232_v63, %v11336_v33  ;;  %v11272_v34 = vld [vmem:[#allocation2 + $0xe88] sm:$0xf] }
 0x4a3   :  { %v11999_v9 = vld [vmem:[#allocation2 + $0x804] sm:$0xf]  ;;  %v9925_v19 = vor.u32 %v11871_v2, %v9922_v51  ;;  %v12072_v47 = vld [vmem:[#allocation2 + $0xa44] sm:$0xf0] }
 0x4a4   :  { %6375 = vmatpush.bf16.msra.mxu3 %v11141_v38  ;;  %6350 = vmatpush.bf16.msra.mxu1 %v10053_v16  ;;  %v10434_v60 = vld [vmem:[#allocation2 + $0x840] sm:$0xf0]  ;;  %v11832_v38 = vld [vmem:[#allocation2 + $0x2c4] sm:$0xf0] }
 0x4a5   :  { %v12127_v18 = vld [vmem:[#allocation2 + $0xc04] sm:$0xf]  ;;  %v10437_v21 = vor.u32 %v11999_v9, %v10434_v60  ;;  %v12216_v16 = vld [vmem:[#allocation2 + $0xec4] sm:$0xf0] }
 0x4a6   :  { %6363 = vmatpush.bf16.msra.mxu2 %v10565_v26  ;;  %v10946_v3 = vld [vmem:[#allocation2 + $0xc40] sm:$0xf0]  ;;  %6338 = vmatpush.bf16.msra.mxu0 %v9477_v25  ;;  %v9737_v26 = vor.u32 %v11832_v38, %v9736_v53  ;;  %v11273_v1 = vor.u32 %v12216_v16, %v11272_v34  ;;  %v11208_v25 = vld [vmem:[#allocation2 + $0xe08] sm:$0xf] }
 0x4a7   :  { %v10949_v6 = vor.u32 %v12127_v18, %v10946_v3  ;;  %v12200_v13 = vld [vmem:[#allocation2 + $0xe44] sm:$0xf0] }
 0x4a8   :  { %6376 = vmatpush.bf16.msra.mxu3 %v11077_v8  ;;  %6351 = vmatpush.bf16.msra.mxu1 %v9989_v11  ;;  %v11816_v8 = vld [vmem:[#allocation2 + $0x244] sm:$0xf0]  ;;  %v10185_v11 = vor.u32 %v11944_v37, %v10184_v45  ;;  %v12112_v37 = vld [vmem:[#allocation2 + $0xb8c] sm:$0xf] }
 0x4a9   :  { %v9673_v5 = vor.u32 %v11816_v8, %v9672_v30  ;;  %v9608_v2 = vld [vmem:[#allocation2 + $0x188] sm:$0xf]  ;;  %v9866_v30 = vld [vmem:[#allocation2 + $0x3c8] sm:$0xf0] }
 0x4aa   :  { %6364 = vmatpush.bf16.msra.mxu2 %v10501_v29  ;;  %6339 = vmatpush.bf16.msra.mxu0 %v9413_v23  ;;  %v10697_v29 = vor.u32 %v12072_v47, %v10696_v44  ;;  %v11800_v51 = vld [vmem:[#allocation2 + $0x1c4] sm:$0xf0]  ;;  %v11984_v8 = vld [vmem:[#allocation2 + $0x78c] sm:$0xf] }
 0x4ab   :  { %v10120_v9 = vld [vmem:[#allocation2 + $0x588] sm:$0xf]  ;;  %v9609_v43 = vor.u32 %v11800_v51, %v9608_v2  ;;  %v10890_v44 = vld [vmem:[#allocation2 + $0xbc8] sm:$0xf0] }
 0x4ac   :  { %6377 = vmatpush.bf16.msra.mxu3 %v11013_v52  ;;  %6352 = vmatpush.bf16.msra.mxu1 %v9925_v19  ;;  %v11209_v52 = vor.u32 %v12200_v13, %v11208_v25  ;;  %v11928_v60 = vld [vmem:[#allocation2 + $0x5c4] sm:$0xf0]  ;;  %v12240_v13 = vld [vmem:[#allocation2 + $0xf8c] sm:$0xf]  ;;  %v10893_v51 = vor.u32 %v12112_v37, %v10890_v44 }
 0x4ad   :  { %6340 = vmatmul.bf16.vlgmr.msra.gmra.mxu0 %v13640_v0  ;;  %v10632_v18 = vld [vmem:[#allocation2 + $0x988] sm:$0xf]  ;;  %v10121_v23 = vor.u32 %v11928_v60, %v10120_v9  ;;  %v11840_v9 = vld [vmem:[#allocation2 + $0x30c] sm:$0xf] }
 0x4ae   :  { %6365 = vmatpush.bf16.msra.mxu2 %v10437_v21  ;;  %6384 = vmatpush.bf16.msrb.mxu0 %v9865_v61  ;;  %v12056_v3 = vld [vmem:[#allocation2 + $0x9c4] sm:$0xf0]  ;;  %v11968_v60 = vld [vmem:[#allocation2 + $0x70c] sm:$0xf] }
 0x4af   :  { %6353 = vmatmul.bf16.vlgmr.msra.gmra.mxu1 %v13644_v31  ;;  %v11144_v39 = vld [vmem:[#allocation2 + $0xd88] sm:$0xf]  ;;  %v10633_v50 = vor.u32 %v12056_v3, %v10632_v18  ;;  %v10314_v3 = vld [vmem:[#allocation2 + $0x748] sm:$0xf0] }
 0x4b0   :  { %6378 = vmatpush.bf16.msra.mxu3 %v10949_v6  ;;  %6397 = vmatpush.bf16.msrb.mxu1 %v10377_v48  ;;  %v12184_v55 = vld [vmem:[#allocation2 + $0xdc4] sm:$0xf0]  ;;  %v11776_v37 = vld [vmem:[#allocation2 + $0x10c] sm:$0xf] }
 0x4b1   :  { %6366 = vmatmul.bf16.vlgmr.msra.gmra.mxu2 %v13632_v62  ;;  %v10056_v19 = vld [vmem:[#allocation2 + $0x508] sm:$0xf]  ;;  %v11145_v21 = vor.u32 %v12184_v55, %v11144_v39  ;;  %v12096_v39 = vld [vmem:[#allocation2 + $0xb0c] sm:$0xf] }
 0x4b2   :  { %6410 = vmatpush.bf16.msrb.mxu2 %v10889_v17  ;;  %6385 = vmatpush.bf16.msrb.mxu0 %v9801_v49  ;;  %v11912_v57 = vld [vmem:[#allocation2 + $0x544] sm:$0xf0]  ;;  %v9545_v17 = vor.u32 %v11784_v41, %v9544_v22  ;;  %v10826_v55 = vld [vmem:[#allocation2 + $0xb48] sm:$0xf0]  ;;  %v10317_v22 = vor.u32 %v11968_v60, %v10314_v3 }
 0x4b3   :  { %6379 = vmatmul.bf16.vlgmr.msra.gmra.mxu3 %v13636_v59  ;;  %v10568_v46 = vld [vmem:[#allocation2 + $0x908] sm:$0xf]  ;;  %v10057_v40 = vor.u32 %v11912_v57, %v10056_v19  ;;  %v10829_v41 = vor.u32 %v12096_v39, %v10826_v55  ;;  %v11824_v19 = vld [vmem:[#allocation2 + $0x28c] sm:$0xf] }
 0x4b4   :  { %6423 = vmatpush.bf16.msrb.mxu3 %v11401_v15  ;;  %6398 = vmatpush.bf16.msrb.mxu1 %v10313_v35  ;;  %v12040_v6 = vld [vmem:[#allocation2 + $0x944] sm:$0xf0]  ;;  %v11952_v57 = vld [vmem:[#allocation2 + $0x68c] sm:$0xf] }
 0x4b5   :  { %v11080_v61 = vld [vmem:[#allocation2 + $0xd08] sm:$0xf]  ;;  %v10569_v10 = vor.u32 %v12040_v6, %v10568_v46  ;;  %v10250_v6 = vld [vmem:[#allocation2 + $0x6c8] sm:$0xf0] }
 0x4b6   :  { %6411 = vmatpush.bf16.msrb.mxu2 %v10825_v12  ;;  %6386 = vmatpush.bf16.msrb.mxu0 %v9737_v26  ;;  %v12168_v48 = vld [vmem:[#allocation2 + $0xd44] sm:$0xf0]  ;;  %v9546_v44 = vld [vmem:[#allocation2 + $0x148] sm:$0xf0] }
 0x4b7   :  { %v11768_v15 = vld [vmem:[#allocation2 + $0xc4] sm:$0xf0]  ;;  %v11081_v58 = vor.u32 %v12168_v48, %v11080_v61  ;;  %v12080_v61 = vld [vmem:[#allocation2 + $0xa8c] sm:$0xf] }
 0x4b8   :  { %6424 = vmatpush.bf16.msrb.mxu3 %v11337_v54  ;;  %6399 = vmatpush.bf16.msrb.mxu1 %v10249_v7  ;;  %v10504_v33 = vld [vmem:[#allocation2 + $0x888] sm:$0xf]  ;;  %v9481_v12 = vor.u32 %v11768_v15, %v9480_v32  ;;  %v10762_v48 = vld [vmem:[#allocation2 + $0xac8] sm:$0xf0]  ;;  %v10253_v32 = vor.u32 %v11952_v57, %v10250_v6 }
 0x4b9   :  { %v12024_v63 = vld [vmem:[#allocation2 + $0x8c4] sm:$0xf0]  ;;  %v10765_v15 = vor.u32 %v12080_v61, %v10762_v48  ;;  %v11760_v60 = vld [vmem:[#allocation2 + $0x8c] sm:$0xf] }
 0x4ba   :  { %6412 = vmatpush.bf16.msrb.mxu2 %v10761_v14  ;;  %6387 = vmatpush.bf16.msrb.mxu0 %v9673_v5  ;;  %v11016_v49 = vld [vmem:[#allocation2 + $0xc88] sm:$0xf]  ;;  %v10505_v54 = vor.u32 %v12024_v63, %v10504_v33  ;;  %v11856_v14 = vld [vmem:[#allocation2 + $0x38c] sm:$0xf] }
 0x4bb   :  { %v12152_v35 = vld [vmem:[#allocation2 + $0xcc4] sm:$0xf0]  ;;  %v11402_v5 = vld [vmem:[#allocation2 + $0xfc8] sm:$0xf0] }
 0x4bc   :  { %6425 = vmatpush.bf16.msrb.mxu3 %v11273_v1  ;;  %6400 = vmatpush.bf16.msrb.mxu1 %v10185_v11  ;;  %v9416_v53 = vld [vmem:[#allocation2 + $0x8] sm:$0xf]  ;;  %v11017_v34 = vor.u32 %v12152_v35, %v11016_v49  ;;  %v10378_v1 = vld [vmem:[#allocation2 + $0x7c8] sm:$0xf0]  ;;  %v11405_v18 = vor.u32 %v12240_v13, %v11402_v5 }
 0x4bd   :  { %v11752_v38 = vld [vmem:[#allocation2 + $0x44] sm:$0xf0]  ;;  %v10381_v2 = vor.u32 %v11984_v8, %v10378_v1  ;;  %v10186_v63 = vld [vmem:[#allocation2 + $0x648] sm:$0xf0] }
 0x4be   :  { %6413 = vmatpush.bf16.msrb.mxu2 %v10697_v29  ;;  %6388 = vmatpush.bf16.msrb.mxu0 %v9609_v43  ;;  %v9928_v28 = vld [vmem:[#allocation2 + $0x408] sm:$0xf]  ;;  %v9417_v45 = vor.u32 %v11752_v38, %v9416_v53  ;;  %v9869_v29 = vor.u32 %v11856_v14, %v9866_v30  ;;  %v12224_v43 = vld [vmem:[#allocation2 + $0xf0c] sm:$0xf] }
 0x4bf   :  { %v11880_v27 = vld [vmem:[#allocation2 + $0x444] sm:$0xf0]  ;;  %v12064_v49 = vld [vmem:[#allocation2 + $0xa0c] sm:$0xf] }
 0x4c0   :  { %6426 = vmatpush.bf16.msrb.mxu3 %v11209_v52  ;;  %6401 = vmatpush.bf16.msrb.mxu1 %v10121_v23  ;;  %v10440_v24 = vld [vmem:[#allocation2 + $0x808] sm:$0xf]  ;;  %v9929_v47 = vor.u32 %v11880_v27, %v9928_v28  ;;  %v9802_v52 = vld [vmem:[#allocation2 + $0x348] sm:$0xf0] }
 0x4c1   :  { %v12008_v16 = vld [vmem:[#allocation2 + $0x844] sm:$0xf0]  ;;  %v11338_v23 = vld [vmem:[#allocation2 + $0xf48] sm:$0xf0] }
 0x4c2   :  { %6414 = vmatpush.bf16.msrb.mxu2 %v10633_v50  ;;  %6389 = vmatpush.bf16.msrb.mxu0 %v9545_v17  ;;  %v10952_v26 = vld [vmem:[#allocation2 + $0xc08] sm:$0xf]  ;;  %v10441_v25 = vor.u32 %v12008_v16, %v10440_v24  ;;  %v9805_v50 = vor.u32 %v11840_v9, %v9802_v52  ;;  %v11341_v46 = vor.u32 %v12224_v43, %v11338_v23  ;;  %v12208_v17 = vld [vmem:[#allocation2 + $0xe8c] sm:$0xf] }
 0x4c3   :  { %v12136_v7 = vld [vmem:[#allocation2 + $0xc44] sm:$0xf0]  ;;  %v10698_v35 = vld [vmem:[#allocation2 + $0xa48] sm:$0xf0] }
 0x4c4   :  { %6427 = vmatpush.bf16.msrb.mxu3 %v11145_v21  ;;  %6402 = vmatpush.bf16.msrb.mxu1 %v10057_v40  ;;  %v10953_v11 = vor.u32 %v12136_v7, %v10952_v26  ;;  %v9738_v21 = vld [vmem:[#allocation2 + $0x2c8] sm:$0xf0] }
 0x4c5   :  { %v11274_v40 = vld [vmem:[#allocation2 + $0xec8] sm:$0xf0] }
 0x4c6   :  { %6415 = vmatpush.bf16.msrb.mxu2 %v10569_v10  ;;  %6390 = vmatpush.bf16.msrb.mxu0 %v9481_v12  ;;  %v9741_v10 = vor.u32 %v11824_v19, %v9738_v21  ;;  %v11277_v33 = vor.u32 %v12208_v17, %v11274_v40  ;;  %v12192_v12 = vld [vmem:[#allocation2 + $0xe0c] sm:$0xf] }
 0x4c7   :  { %v11210_v53 = vld [vmem:[#allocation2 + $0xe48] sm:$0xf0] }
 0x4c8   :  { %6428 = vmatpush.bf16.msrb.mxu3 %v11081_v58  ;;  %6403 = vmatpush.bf16.msrb.mxu1 %v9993_v56  ;;  %v9674_v58 = vld [vmem:[#allocation2 + $0x248] sm:$0xf0]  ;;  %v10189_v56 = vor.u32 %v11936_v36, %v10186_v63  ;;  %v10896_v63 = vld [vmem:[#allocation2 + $0xb90] sm:$0xf] }
 0x4c9   :  { %v9677_v38 = vor.u32 %v11808_v4, %v9674_v58  ;;  %v11792_v28 = vld [vmem:[#allocation2 + $0x18c] sm:$0xf]  ;;  %v11865_v4 = vld [vmem:[#allocation2 + $0x3cc] sm:$0xf0] }
 0x4ca   :  { %6416 = vmatpush.bf16.msrb.mxu2 %v10505_v54  ;;  %6391 = vmatpush.bf16.msrb.mxu0 %v9417_v45  ;;  %v10701_v54 = vor.u32 %v12064_v49, %v10698_v35  ;;  %v9610_v27 = vld [vmem:[#allocation2 + $0x1c8] sm:$0xf0]  ;;  %v10384_v58 = vld [vmem:[#allocation2 + $0x790] sm:$0xf] }
 0x4cb   :  { %v11920_v24 = vld [vmem:[#allocation2 + $0x58c] sm:$0xf]  ;;  %v9613_v8 = vor.u32 %v11792_v28, %v9610_v27  ;;  %v12121_v49 = vld [vmem:[#allocation2 + $0xbcc] sm:$0xf0] }
 0x4cc   :  { %6429 = vmatpush.bf16.msrb.mxu3 %v11017_v34  ;;  %6404 = vmatpush.bf16.msrb.mxu1 %v9929_v47  ;;  %v11213_v34 = vor.u32 %v12192_v12, %v11210_v53  ;;  %v10122_v16 = vld [vmem:[#allocation2 + $0x5c8] sm:$0xf0]  ;;  %v11408_v53 = vld [vmem:[#allocation2 + $0xf90] sm:$0xf]  ;;  %v10897_v27 = vor.u32 %v12121_v49, %v10896_v63 }
 0x4cd   :  { %6392 = vmatmul.bf16.vlgmr.msrb.gmra.mxu0 %v13640_v0  ;;  %v12048_v26 = vld [vmem:[#allocation2 + $0x98c] sm:$0xf]  ;;  %v10125_v45 = vor.u32 %v11920_v24, %v10122_v16  ;;  %v9808_v24 = vld [vmem:[#allocation2 + $0x310] sm:$0xf] }
 0x4ce   :  { %6417 = vmatpush.bf16.msrb.mxu2 %v10441_v25  ;;  %6436 = vmatpush.bf16.msra.mxu0 %v9869_v29  ;;  %v10634_v7 = vld [vmem:[#allocation2 + $0x9c8] sm:$0xf0]  ;;  %v10320_v16 = vld [vmem:[#allocation2 + $0x710] sm:$0xf] }
 0x4cf   :  { %6405 = vmatmul.bf16.vlgmr.msrb.gmra.mxu1 %v13644_v31  ;;  %v12176_v14 = vld [vmem:[#allocation2 + $0xd8c] sm:$0xf]  ;;  %v10637_v1 = vor.u32 %v12048_v26, %v10634_v7  ;;  %v11977_v7 = vld [vmem:[#allocation2 + $0x74c] sm:$0xf0] }
 0x4d0   :  { %6430 = vmatpush.bf16.msrb.mxu3 %v10953_v11  ;;  %6449 = vmatpush.bf16.msra.mxu1 %v10381_v2  ;;  %v11146_v30 = vld [vmem:[#allocation2 + $0xdc8] sm:$0xf0]  ;;  %v9552_v63 = vld [vmem:[#allocation2 + $0x110] sm:$0xf] }
 0x4d1   :  { %6418 = vmatmul.bf16.vlgmr.msrb.gmra.mxu2 %v13632_v62  ;;  %v11904_v47 = vld [vmem:[#allocation2 + $0x50c] sm:$0xf]  ;;  %v11149_v25 = vor.u32 %v12176_v14, %v11146_v30  ;;  %v10832_v14 = vld [vmem:[#allocation2 + $0xb10] sm:$0xf] }
 0x4d2   :  { %6462 = vmatpush.bf16.msra.mxu2 %v10893_v51  ;;  %6437 = vmatpush.bf16.msra.mxu0 %v9805_v50  ;;  %v10058_v13 = vld [vmem:[#allocation2 + $0x548] sm:$0xf0]  ;;  %v9549_v51 = vor.u32 %v11776_v37, %v9546_v44  ;;  %v12105_v30 = vld [vmem:[#allocation2 + $0xb4c] sm:$0xf0]  ;;  %v10321_v37 = vor.u32 %v11977_v7, %v10320_v16 }
 0x4d3   :  { %6431 = vmatmul.bf16.vlgmr.msrb.gmra.mxu3 %v13636_v59  ;;  %v12032_v5 = vld [vmem:[#allocation2 + $0x90c] sm:$0xf]  ;;  %v10061_v9 = vor.u32 %v11904_v47, %v10058_v13  ;;  %v10833_v44 = vor.u32 %v12105_v30, %v10832_v14  ;;  %v9744_v47 = vld [vmem:[#allocation2 + $0x290] sm:$0xf] }
 0x4d4   :  { %6475 = vmatpush.bf16.msra.mxu3 %v11405_v18  ;;  %6450 = vmatpush.bf16.msra.mxu1 %v10317_v22  ;;  %v10570_v11 = vld [vmem:[#allocation2 + $0x948] sm:$0xf0]  ;;  %v10256_v13 = vld [vmem:[#allocation2 + $0x690] sm:$0xf] }
 0x4d5   :  { %v12160_v29 = vld [vmem:[#allocation2 + $0xd0c] sm:$0xf]  ;;  %v10573_v52 = vor.u32 %v12032_v5, %v10570_v11  ;;  %v11961_v11 = vld [vmem:[#allocation2 + $0x6cc] sm:$0xf0] }
 0x4d6   :  { %6463 = vmatpush.bf16.msra.mxu2 %v10829_v41  ;;  %6438 = vmatpush.bf16.msra.mxu0 %v9741_v10  ;;  %v11082_v2 = vld [vmem:[#allocation2 + $0xd48] sm:$0xf0]  ;;  %v11785_v49 = vld [vmem:[#allocation2 + $0x14c] sm:$0xf0] }
 0x4d7   :  { %v9482_v18 = vld [vmem:[#allocation2 + $0xc8] sm:$0xf0]  ;;  %v11085_v39 = vor.u32 %v12160_v29, %v11082_v2  ;;  %v10768_v29 = vld [vmem:[#allocation2 + $0xa90] sm:$0xf] }
 0x4d8   :  { %6476 = vmatpush.bf16.msra.mxu3 %v11341_v46  ;;  %6451 = vmatpush.bf16.msra.mxu1 %v10253_v32  ;;  %v11888_v3 = vld [vmem:[#allocation2 + $0x48c] sm:$0xf]  ;;  %v9485_v41 = vor.u32 %v11760_v60, %v9482_v18  ;;  %v12089_v2 = vld [vmem:[#allocation2 + $0xacc] sm:$0xf0]  ;;  %v10257_v60 = vor.u32 %v11961_v11, %v10256_v13 }
 0x4d9   :  { %v9994_v55 = vld [vmem:[#allocation2 + $0x4c8] sm:$0xf0]  ;;  %v10769_v18 = vor.u32 %v12089_v2, %v10768_v29  ;;  %v9488_v16 = vld [vmem:[#allocation2 + $0x90] sm:$0xf] }
 0x4da   :  { %6464 = vmatpush.bf16.msra.mxu2 %v10765_v15  ;;  %6439 = vmatpush.bf16.msra.mxu0 %v9677_v38  ;;  %v12016_v43 = vld [vmem:[#allocation2 + $0x88c] sm:$0xf]  ;;  %v9997_v57 = vor.u32 %v11888_v3, %v9994_v55  ;;  %v9872_v15 = vld [vmem:[#allocation2 + $0x390] sm:$0xf] }
 0x4db   :  { %v10506_v23 = vld [vmem:[#allocation2 + $0x8c8] sm:$0xf0]  ;;  %v12249_v38 = vld [vmem:[#allocation2 + $0xfcc] sm:$0xf0] }
 0x4dc   :  { %6477 = vmatpush.bf16.msra.mxu3 %v11277_v33  ;;  %6452 = vmatpush.bf16.msra.mxu1 %v10189_v56  ;;  %v12144_v50 = vld [vmem:[#allocation2 + $0xc8c] sm:$0xf]  ;;  %v10509_v46 = vor.u32 %v12016_v43, %v10506_v23  ;;  %v11993_v33 = vld [vmem:[#allocation2 + $0x7cc] sm:$0xf0]  ;;  %v11409_v26 = vor.u32 %v12249_v38, %v11408_v53 }
 0x4dd   :  { %v11018_v22 = vld [vmem:[#allocation2 + $0xcc8] sm:$0xf0]  ;;  %v10385_v28 = vor.u32 %v11993_v33, %v10384_v58  ;;  %v9680_v3 = vld [vmem:[#allocation2 + $0x210] sm:$0xf] }
 0x4de   :  { %6465 = vmatpush.bf16.msra.mxu2 %v10701_v54  ;;  %6440 = vmatpush.bf16.msra.mxu0 %v9613_v8  ;;  %v11744_v19 = vld [vmem:[#allocation2 + $0xc] sm:$0xf]  ;;  %v11021_v17 = vor.u32 %v12144_v50, %v11018_v22  ;;  %v9873_v54 = vor.u32 %v11865_v4, %v9872_v15  ;;  %v11344_v8 = vld [vmem:[#allocation2 + $0xf10] sm:$0xf] }
 0x4df   :  { %v9418_v21 = vld [vmem:[#allocation2 + $0x48] sm:$0xf0]  ;;  %v10192_v55 = vld [vmem:[#allocation2 + $0x610] sm:$0xf] }
 0x4e0   :  { %6478 = vmatpush.bf16.msra.mxu3 %v11213_v34  ;;  %6453 = vmatpush.bf16.msra.mxu1 %v10125_v45  ;;  %v11872_v6 = vld [vmem:[#allocation2 + $0x40c] sm:$0xf]  ;;  %v9421_v36 = vor.u32 %v11744_v19, %v9418_v21  ;;  %v11849_v34 = vld [vmem:[#allocation2 + $0x34c] sm:$0xf0] }
 0x4e1   :  { %v9930_v61 = vld [vmem:[#allocation2 + $0x448] sm:$0xf0]  ;;  %v12233_v45 = vld [vmem:[#allocation2 + $0xf4c] sm:$0xf0] }
 0x4e2   :  { %6466 = vmatpush.bf16.msra.mxu2 %v10637_v1  ;;  %6441 = vmatpush.bf16.msra.mxu0 %v9549_v51  ;;  %v12000_v48 = vld [vmem:[#allocation2 + $0x80c] sm:$0xf]  ;;  %v9933_v35 = vor.u32 %v11872_v6, %v9930_v61  ;;  %v9809_v1 = vor.u32 %v11849_v34, %v9808_v24  ;;  %v11345_v5 = vor.u32 %v12233_v45, %v11344_v8  ;;  %v11280_v51 = vld [vmem:[#allocation2 + $0xe90] sm:$0xf] }
 0x4e3   :  { %v10442_v40 = vld [vmem:[#allocation2 + $0x848] sm:$0xf0]  ;;  %v11945_v23 = vld [vmem:[#allocation2 + $0x64c] sm:$0xf0] }
 0x4e4   :  { %6479 = vmatpush.bf16.msra.mxu3 %v11149_v25  ;;  %6454 = vmatpush.bf16.msra.mxu1 %v10061_v9  ;;  %v12128_v10 = vld [vmem:[#allocation2 + $0xc0c] sm:$0xf]  ;;  %v10445_v12 = vor.u32 %v12000_v48, %v10442_v40  ;;  %v11833_v25 = vld [vmem:[#allocation2 + $0x2cc] sm:$0xf0] }
 0x4e5   :  { %v10954_v32 = vld [vmem:[#allocation2 + $0xc48] sm:$0xf0]  ;;  %v12217_v9 = vld [vmem:[#allocation2 + $0xecc] sm:$0xf0] }
 0x4e6   :  { %6467 = vmatpush.bf16.msra.mxu2 %v10573_v52  ;;  %6442 = vmatpush.bf16.msra.mxu0 %v9485_v41  ;;  %v10957_v56 = vor.u32 %v12128_v10, %v10954_v32  ;;  %v9745_v52 = vor.u32 %v11833_v25, %v9744_v47  ;;  %v11281_v43 = vor.u32 %v12217_v9, %v11280_v51  ;;  %v10704_v50 = vld [vmem:[#allocation2 + $0xa10] sm:$0xf] }
 0x4e7   :  { %v12073_v22 = vld [vmem:[#allocation2 + $0xa4c] sm:$0xf0] }
 0x4e8   :  { %6480 = vmatpush.bf16.msra.mxu3 %v11085_v39  ;;  %6455 = vmatpush.bf16.msra.mxu1 %v9997_v57  ;;  %v11817_v39 = vld [vmem:[#allocation2 + $0x24c] sm:$0xf0]  ;;  %v10193_v57 = vor.u32 %v11945_v23, %v10192_v55  ;;  %v11985_v55 = vld [vmem:[#allocation2 + $0x794] sm:$0xf] }
 0x4e9   :  { %v11216_v41 = vld [vmem:[#allocation2 + $0xe10] sm:$0xf]  ;;  %v9681_v21 = vor.u32 %v11817_v39, %v9680_v3  ;;  %v11857_v3 = vld [vmem:[#allocation2 + $0x394] sm:$0xf] }
 0x4ea   :  { %6468 = vmatpush.bf16.msra.mxu2 %v10509_v46  ;;  %6443 = vmatpush.bf16.msra.mxu0 %v9421_v36  ;;  %v12201_v19 = vld [vmem:[#allocation2 + $0xe4c] sm:$0xf0]  ;;  %v10705_v46 = vor.u32 %v12073_v22, %v10704_v50  ;;  %v9874_v39 = vld [vmem:[#allocation2 + $0x3d0] sm:$0xf0] }
 0x4eb   :  { %v9616_v6 = vld [vmem:[#allocation2 + $0x190] sm:$0xf]  ;;  %v10386_v23 = vld [vmem:[#allocation2 + $0x7d0] sm:$0xf0] }
 0x4ec   :  { %6481 = vmatpush.bf16.msra.mxu3 %v11021_v17  ;;  %6456 = vmatpush.bf16.msra.mxu1 %v9933_v35  ;;  %v11801_v61 = vld [vmem:[#allocation2 + $0x1cc] sm:$0xf0]  ;;  %v11217_v17 = vor.u32 %v12201_v19, %v11216_v41  ;;  %v12113_v50 = vld [vmem:[#allocation2 + $0xb94] sm:$0xf] }
 0x4ed   :  { %6444 = vmatmul.bf16.vlgmr.msra.gmra.mxu0 %v13640_v0  ;;  %v10128_v48 = vld [vmem:[#allocation2 + $0x590] sm:$0xf]  ;;  %v9617_v58 = vor.u32 %v11801_v61, %v9616_v6  ;;  %v10898_v22 = vld [vmem:[#allocation2 + $0xbd0] sm:$0xf0]  ;;  %v9877_v6 = vor.u32 %v11857_v3, %v9874_v39  ;;  %v10389_v61 = vor.u32 %v11985_v55, %v10386_v23 }
 0x4ee   :  { %6469 = vmatpush.bf16.msra.mxu2 %v10445_v12  ;;  %6488 = vmatpush.bf16.msrb.mxu0 %v9873_v54  ;;  %v11929_v40 = vld [vmem:[#allocation2 + $0x5cc] sm:$0xf0]  ;;  %v10130_v3 = vld [vmem:[#allocation2 + $0x5d0] sm:$0xf0] }
 0x4ef   :  { %6457 = vmatmul.bf16.vlgmr.msra.gmra.mxu1 %v13644_v31  ;;  %v10640_v10 = vld [vmem:[#allocation2 + $0x990] sm:$0xf]  ;;  %v10129_v36 = vor.u32 %v11929_v40, %v10128_v48  ;;  %v10901_v48 = vor.u32 %v12113_v50, %v10898_v22  ;;  %v9810_v40 = vld [vmem:[#allocation2 + $0x350] sm:$0xf0] }
 0x4f0   :  { %6482 = vmatpush.bf16.msra.mxu3 %v10957_v56  ;;  %6501 = vmatpush.bf16.msrb.mxu1 %v10385_v28  ;;  %v12057_v32 = vld [vmem:[#allocation2 + $0x9cc] sm:$0xf0]  ;;  %v12049_v39 = vld [vmem:[#allocation2 + $0x994] sm:$0xf] }
 0x4f1   :  { %6470 = vmatmul.bf16.vlgmr.msra.gmra.mxu2 %v13632_v62  ;;  %v11152_v15 = vld [vmem:[#allocation2 + $0xd90] sm:$0xf]  ;;  %v10641_v33 = vor.u32 %v12057_v32, %v10640_v10  ;;  %v11969_v10 = vld [vmem:[#allocation2 + $0x714] sm:$0xf] }
 0x4f2   :  { %6514 = vmatpush.bf16.msrb.mxu2 %v10897_v27  ;;  %6489 = vmatpush.bf16.msrb.mxu0 %v9809_v1  ;;  %v12185_v4 = vld [vmem:[#allocation2 + $0xdcc] sm:$0xf0]  ;;  %v9553_v27 = vor.u32 %v11785_v49, %v9552_v63  ;;  %v10642_v55 = vld [vmem:[#allocation2 + $0x9d0] sm:$0xf0] }
 0x4f3   :  { %6483 = vmatmul.bf16.vlgmr.msra.gmra.mxu3 %v13636_v59  ;;  %v10064_v35 = vld [vmem:[#allocation2 + $0x510] sm:$0xf]  ;;  %v11153_v12 = vor.u32 %v12185_v4, %v11152_v15  ;;  %v10322_v15 = vld [vmem:[#allocation2 + $0x750] sm:$0xf0] }
 0x4f4   :  { %6527 = vmatpush.bf16.msrb.mxu3 %v11409_v26  ;;  %6502 = vmatpush.bf16.msrb.mxu1 %v10321_v37  ;;  %v11913_v53 = vld [vmem:[#allocation2 + $0x54c] sm:$0xf0]  ;;  %v12097_v4 = vld [vmem:[#allocation2 + $0xb14] sm:$0xf]  ;;  %v10325_v49 = vor.u32 %v11969_v10, %v10322_v15 }
 0x4f5   :  { %v10576_v38 = vld [vmem:[#allocation2 + $0x910] sm:$0xf]  ;;  %v10065_v24 = vor.u32 %v11913_v53, %v10064_v35  ;;  %v9746_v53 = vld [vmem:[#allocation2 + $0x2d0] sm:$0xf0] }
 0x4f6   :  { %6515 = vmatpush.bf16.msrb.mxu2 %v10833_v44  ;;  %6490 = vmatpush.bf16.msrb.mxu0 %v9745_v52  ;;  %v12041_v56 = vld [vmem:[#allocation2 + $0x94c] sm:$0xf0]  ;;  %v11154_v23 = vld [vmem:[#allocation2 + $0xdd0] sm:$0xf0] }
 0x4f7   :  { %v11088_v54 = vld [vmem:[#allocation2 + $0xd10] sm:$0xf]  ;;  %v10577_v34 = vor.u32 %v12041_v56, %v10576_v38  ;;  %v11953_v38 = vld [vmem:[#allocation2 + $0x694] sm:$0xf] }
 0x4f8   :  { %6528 = vmatpush.bf16.msrb.mxu3 %v11345_v5  ;;  %6503 = vmatpush.bf16.msrb.mxu1 %v10257_v60  ;;  %v12169_v28 = vld [vmem:[#allocation2 + $0xd4c] sm:$0xf0]  ;;  %v10578_v10 = vld [vmem:[#allocation2 + $0x950] sm:$0xf0] }
 0x4f9   :  { %v11769_v26 = vld [vmem:[#allocation2 + $0xcc] sm:$0xf0]  ;;  %v11089_v14 = vor.u32 %v12169_v28, %v11088_v54  ;;  %v10258_v54 = vld [vmem:[#allocation2 + $0x6d0] sm:$0xf0] }
 0x4fa   :  { %6516 = vmatpush.bf16.msrb.mxu2 %v10769_v18  ;;  %6491 = vmatpush.bf16.msrb.mxu0 %v9681_v21  ;;  %v10000_v7 = vld [vmem:[#allocation2 + $0x490] sm:$0xf]  ;;  %v9489_v44 = vor.u32 %v11769_v26, %v9488_v16  ;;  %v12778_v18 = vmov 1   ;;  %v12241_v21 = vld [vmem:[#allocation2 + $0xf94] sm:$0xf]  ;;  %v10261_v26 = vor.u32 %v11953_v38, %v10258_v54 }
 0x4fb   :  { %v11897_v30 = vld [vmem:[#allocation2 + $0x4cc] sm:$0xf0]  ;;  %12312 = vset.pattern.permute.xlu0 %v12778_v18  ;;  %v12081_v28 = vld [vmem:[#allocation2 + $0xa94] sm:$0xf] }
 0x4fc   :  { %6529 = vmatpush.bf16.msrb.mxu3 %v11281_v43  ;;  %6504 = vmatpush.bf16.msrb.mxu1 %v10193_v57  ;;  %v10512_v8 = vld [vmem:[#allocation2 + $0x890] sm:$0xf]  ;;  %v10001_v5 = vor.u32 %v11897_v30, %v10000_v7  ;;  %v11410_v57 = vld [vmem:[#allocation2 + $0xfd0] sm:$0xf0] }
 0x4fd   :  { %v12025_v45 = vld [vmem:[#allocation2 + $0x8cc] sm:$0xf0]  ;;  %7263 = vperm.xlu0 %12312, %v13628_v20   ;;  %v11413_v32 = vor.u32 %v12241_v21, %v11410_v57  ;;  %v9682_v30 = vld [vmem:[#allocation2 + $0x250] sm:$0xf0] }
 0x4fe   :  { %6517 = vmatpush.bf16.msrb.mxu2 %v10705_v46  ;;  %6492 = vmatpush.bf16.msrb.mxu0 %v9617_v58  ;;  %v11024_v1 = vld [vmem:[#allocation2 + $0xc90] sm:$0xf]  ;;  %v10513_v11 = vor.u32 %v12025_v45, %v10512_v8  ;;  %v10834_v58 = vld [vmem:[#allocation2 + $0xb50] sm:$0xf0] }
 0x4ff   :  { %v12153_v37 = vld [vmem:[#allocation2 + $0xccc] sm:$0xf0]  ;;  %v10837_v35 = vor.u32 %v12097_v4, %v10834_v58  ;;  %v11937_v8 = vld [vmem:[#allocation2 + $0x614] sm:$0xf] }
 0x500   :  { %6530 = vmatpush.bf16.msrb.mxu3 %v11217_v17  ;;  %6505 = vmatpush.bf16.msrb.mxu1 %v10129_v36  ;;  %v9424_v47 = vld [vmem:[#allocation2 + $0x10] sm:$0xf]  ;;  %v11025_v51 = vor.u32 %v12153_v37, %v11024_v1  ;;  %v11841_v17 = vld [vmem:[#allocation2 + $0x314] sm:$0xf] }
 0x501   :  { %v11753_v25 = vld [vmem:[#allocation2 + $0x4c] sm:$0xf0]  ;;  %v12225_v36 = vld [vmem:[#allocation2 + $0xf14] sm:$0xf]  ;;  %v9813_v63 = vor.u32 %v11841_v17, %v9810_v40 }
 0x502   :  { %6518 = vmatpush.bf16.msrb.mxu2 %v10641_v33  ;;  %6493 = vmatpush.bf16.msrb.mxu0 %v9553_v27  ;;  %v9936_v13 = vld [vmem:[#allocation2 + $0x410] sm:$0xf]  ;;  %v9425_v43 = vor.u32 %v11753_v25, %v9424_v47  ;;  %v11346_v33 = vld [vmem:[#allocation2 + $0xf50] sm:$0xf0] }
 0x503   :  { %v11881_v29 = vld [vmem:[#allocation2 + $0x44c] sm:$0xf0]  ;;  %v11349_v56 = vor.u32 %v12225_v36, %v11346_v33  ;;  %v10770_v27 = vld [vmem:[#allocation2 + $0xad0] sm:$0xf0] }
 0x504   :  { %6531 = vmatpush.bf16.msrb.mxu3 %v11153_v12  ;;  %6506 = vmatpush.bf16.msrb.mxu1 %v10065_v24  ;;  %v10448_v2 = vld [vmem:[#allocation2 + $0x810] sm:$0xf]  ;;  %v9937_v41 = vor.u32 %v11881_v29, %v9936_v13  ;;  %v11825_v12 = vld [vmem:[#allocation2 + $0x294] sm:$0xf]  ;;  %v10773_v7 = vor.u32 %v12081_v28, %v10770_v27 }
 0x505   :  { %v12009_v9 = vld [vmem:[#allocation2 + $0x84c] sm:$0xf0]  ;;  %v12209_v24 = vld [vmem:[#allocation2 + $0xe94] sm:$0xf]  ;;  %v9749_v16 = vor.u32 %v11825_v12, %v9746_v53 }
 0x506   :  { %6519 = vmatpush.bf16.msrb.mxu2 %v10577_v34  ;;  %v10960_v52 = vld [vmem:[#allocation2 + $0xc10] sm:$0xf]  ;;  %6494 = vmatpush.bf16.msrb.mxu0 %v9489_v44  ;;  %v10449_v19 = vor.u32 %v12009_v9, %v10448_v2  ;;  %v11282_v34 = vld [vmem:[#allocation2 + $0xed0] sm:$0xf0] }
 0x507   :  { %v12137_v60 = vld [vmem:[#allocation2 + $0xc4c] sm:$0xf0]  ;;  %v11285_v45 = vor.u32 %v12209_v24, %v11282_v34  ;;  %v10194_v1 = vld [vmem:[#allocation2 + $0x650] sm:$0xf0] }
 0x508   :  { %6532 = vmatpush.bf16.msrb.mxu3 %v11089_v14  ;;  %6507 = vmatpush.bf16.msrb.mxu1 %v10001_v5  ;;  %v10961_v46 = vor.u32 %v12137_v60, %v10960_v52  ;;  %v11809_v14 = vld [vmem:[#allocation2 + $0x214] sm:$0xf] }
 0x509   :  { %v12065_v37 = vld [vmem:[#allocation2 + $0xa14] sm:$0xf]  ;;  %v9685_v13 = vor.u32 %v11809_v14, %v9682_v30 }
 0x50a   :  { %6520 = vmatpush.bf16.msrb.mxu2 %v10513_v11  ;;  %6495 = vmatpush.bf16.msrb.mxu0 %v9425_v43  ;;  %v10706_v44 = vld [vmem:[#allocation2 + $0xa50] sm:$0xf0]  ;;  %v6289_v5 = vpop.f32.mrf.mxu0  ;;  %v10197_v11 = vor.u32 %v11937_v8, %v10194_v1 }
 0x50b   :  { %v12193_v47 = vld [vmem:[#allocation2 + $0xe14] sm:$0xf]  ;;  %v10709_v29 = vor.u32 %v12065_v37, %v10706_v44 }
 0x50c   :  { %6533 = vmatpush.bf16.msrb.mxu3 %v11025_v51  ;;  %6508 = vmatpush.bf16.msrb.mxu1 %v9937_v41  ;;  %v11218_v25 = vld [vmem:[#allocation2 + $0xe50] sm:$0xf0]  ;;  %v6302_v2 = vpop.f32.mrf.mxu1  ;;  %v10645_v41 = vor.u32 %v12049_v39, %v10642_v55  ;;  %v11416_v55 = vld [vmem:[#allocation2 + $0xf98] sm:$0xf] }
 0x50d   :  { %6496 = vmatmul.bf16.vlgmr.msrb.gmra.mxu0 %v13640_v0  ;;  %v11793_v51 = vld [vmem:[#allocation2 + $0x194] sm:$0xf]  ;;  %v11221_v60 = vor.u32 %v12193_v47, %v11218_v25  ;;  %v6303_v18 = vadd.f32 %v6302_v2, %v6289_v5  ;;  %v10392_v2 = vld [vmem:[#allocation2 + $0x798] sm:$0xf] }
 0x50e   :  { %6521 = vmatpush.bf16.msrb.mxu2 %v10449_v19  ;;  %6540 = vmatpush.bf16.msra.mxu0 %v9877_v6  ;;  %v9618_v9 = vld [vmem:[#allocation2 + $0x1d0] sm:$0xf0] }
 0x50f   :  { %6509 = vmatmul.bf16.vlgmr.msrb.gmra.mxu1 %v13644_v31  ;;  %v11921_v52 = vld [vmem:[#allocation2 + $0x594] sm:$0xf]  ;;  %v9621_v50 = vor.u32 %v11793_v51, %v9618_v9  ;;  %v11994_v9 = vld [vmem:[#allocation2 + $0x7d4] sm:$0xf0] }
 0x510   :  { %6534 = vmatpush.bf16.msrb.mxu3 %v10961_v46  ;;  %6553 = vmatpush.bf16.msra.mxu1 %v10389_v61  ;;  %v12177_v43 = vld [vmem:[#allocation2 + $0xd94] sm:$0xf]  ;;  %v10133_v22 = vor.u32 %v11921_v52, %v10130_v3  ;;  %v10904_v52 = vld [vmem:[#allocation2 + $0xb98] sm:$0xf] }
 0x511   :  { %6522 = vmatmul.bf16.vlgmr.msrb.gmra.mxu2 %v13632_v62  ;;  %v11777_v21 = vld [vmem:[#allocation2 + $0x114] sm:$0xf]  ;;  %v11157_v6 = vor.u32 %v12177_v43, %v11154_v23  ;;  %v12250_v43 = vld [vmem:[#allocation2 + $0xfd4] sm:$0xf0] }
 0x512   :  { %6566 = vmatpush.bf16.msra.mxu2 %v10901_v48  ;;  %6541 = vmatpush.bf16.msra.mxu0 %v9813_v63  ;;  %v9554_v57 = vld [vmem:[#allocation2 + $0x150] sm:$0xf0]  ;;  %v6291_v36 = vpop.f32.mrf.mxu0 }
 0x513   :  { %6535 = vmatmul.bf16.vlgmr.msrb.gmra.mxu3 %v13636_v59  ;;  %v11905_v46 = vld [vmem:[#allocation2 + $0x514] sm:$0xf]  ;;  %v9557_v58 = vor.u32 %v11777_v21, %v9554_v57  ;;  %v9816_v21 = vld [vmem:[#allocation2 + $0x318] sm:$0xf] }
 0x514   :  { %6579 = vmatpush.bf16.msra.mxu3 %v11413_v32  ;;  %6554 = vmatpush.bf16.msra.mxu1 %v10325_v49  ;;  %v6315_v19 = vpop.f32.mrf.mxu2  ;;  %v10066_v17 = vld [vmem:[#allocation2 + $0x550] sm:$0xf0]  ;;  %v6304_v53 = vpop.f32.mrf.mxu1  ;;  %v11850_v57 = vld [vmem:[#allocation2 + $0x354] sm:$0xf0] }
 0x515   :  { %v6316_v61 = vadd.f32 %v6315_v19, %v6303_v18  ;;  %v12033_v40 = vld [vmem:[#allocation2 + $0x914] sm:$0xf]  ;;  %v10069_v33 = vor.u32 %v11905_v46, %v10066_v17  ;;  %v13670_v18 = vpop.permute.xlu0 %7179  ;;  %v10328_v46 = vld [vmem:[#allocation2 + $0x718] sm:$0xf] }
 0x516   :  { %6567 = vmatpush.bf16.msra.mxu2 %v10837_v35  ;;  %6542 = vmatpush.bf16.msra.mxu0 %v9749_v16  ;;  %v6328_v48 = vpop.f32.mrf.mxu3  ;;  %v12161_v32 = vld [vmem:[#allocation2 + $0xd14] sm:$0xf]  ;;  %v10581_v63 = vor.u32 %v12033_v40, %v10578_v10  ;;  %v10840_v17 = vld [vmem:[#allocation2 + $0xb18] sm:$0xf] }
 0x517   :  { %v11090_v15 = vld [vmem:[#allocation2 + $0xd50] sm:$0xf0]  ;;  %v6329_v4 = vadd.f32 %v6328_v48, %v6316_v61  ;;  %v11417_v61 = vor.u32 %v12250_v43, %v11416_v55  ;;  %v11978_v48 = vld [vmem:[#allocation2 + $0x754] sm:$0xf0] }
 0x518   :  { %6580 = vmatpush.bf16.msra.mxu3 %v11349_v56  ;;  %6555 = vmatpush.bf16.msra.mxu1 %v10261_v26  ;;  %v11761_v49 = vld [vmem:[#allocation2 + $0x94] sm:$0xf]  ;;  %v11093_v38 = vor.u32 %v12161_v32, %v11090_v15  ;;  %v12106_v40 = vld [vmem:[#allocation2 + $0xb54] sm:$0xf0]  ;;  %v9817_v15 = vor.u32 %v11850_v57, %v9816_v21 }
 0x519   :  { %v9490_v35 = vld [vmem:[#allocation2 + $0xd0] sm:$0xf0]  ;;  %v11352_v10 = vld [vmem:[#allocation2 + $0xf18] sm:$0xf]  ;;  %v10841_v36 = vor.u32 %v12106_v40, %v10840_v17 }
 0x51a   :  { %6568 = vmatpush.bf16.msra.mxu2 %v10773_v7  ;;  %6543 = vmatpush.bf16.msra.mxu0 %v9685_v13  ;;  %v11889_v12 = vld [vmem:[#allocation2 + $0x494] sm:$0xf]  ;;  %v9493_v34 = vor.u32 %v11761_v49, %v9490_v35  ;;  %v12234_v32 = vld [vmem:[#allocation2 + $0xf54] sm:$0xf0] }
 0x51b   :  { %v10002_v56 = vld [vmem:[#allocation2 + $0x4d0] sm:$0xf0]  ;;  %v10264_v49 = vld [vmem:[#allocation2 + $0x698] sm:$0xf]  ;;  %v11353_v35 = vor.u32 %v12234_v32, %v11352_v10 }
 0x51c   :  { %6581 = vmatpush.bf16.msra.mxu3 %v11285_v45  ;;  %6556 = vmatpush.bf16.msra.mxu1 %v10197_v11  ;;  %v12017_v54 = vld [vmem:[#allocation2 + $0x894] sm:$0xf]  ;;  %v10005_v14 = vor.u32 %v11889_v12, %v10002_v56  ;;  %v6317_v37 = vpop.f32.mrf.mxu2  ;;  %v9880_v11 = vld [vmem:[#allocation2 + $0x398] sm:$0xf] }
 0x51d   :  { %v10514_v28 = vld [vmem:[#allocation2 + $0x8d0] sm:$0xf0]  ;;  %v11962_v12 = vld [vmem:[#allocation2 + $0x6d4] sm:$0xf0] }
 0x51e   :  { %6569 = vmatpush.bf16.msra.mxu2 %v10709_v29  ;;  %6544 = vmatpush.bf16.msra.mxu0 %v9621_v50  ;;  %v12145_v27 = vld [vmem:[#allocation2 + $0xc94] sm:$0xf]  ;;  %v10517_v30 = vor.u32 %v12017_v54, %v10514_v28  ;;  %v6330_v5 = vpop.f32.mrf.mxu3  ;;  %v11866_v29 = vld [vmem:[#allocation2 + $0x3d4] sm:$0xf0] }
 0x51f   :  { %v11026_v24 = vld [vmem:[#allocation2 + $0xcd0] sm:$0xf0]  ;;  %v10776_v53 = vld [vmem:[#allocation2 + $0xa98] sm:$0xf] }
 0x520   :  { %6582 = vmatpush.bf16.msra.mxu3 %v11221_v60  ;;  %6557 = vmatpush.bf16.msra.mxu1 %v10133_v22  ;;  %v11745_v16 = vld [vmem:[#allocation2 + $0x14] sm:$0xf]  ;;  %v11029_v44 = vor.u32 %v12145_v27, %v11026_v24  ;;  %v12122_v60 = vld [vmem:[#allocation2 + $0xbd4] sm:$0xf0]  ;;  %v9881_v22 = vor.u32 %v11866_v29, %v9880_v11  ;;  %v10265_v24 = vor.u32 %v11962_v12, %v10264_v49 }
 0x521   :  { %v9426_v26 = vld [vmem:[#allocation2 + $0x50] sm:$0xf0]  ;;  %v10905_v19 = vor.u32 %v12122_v60, %v10904_v52  ;;  %v11288_v56 = vld [vmem:[#allocation2 + $0xe98] sm:$0xf] }
 0x522   :  { %6570 = vmatpush.bf16.msra.mxu2 %v10645_v41  ;;  %6545 = vmatpush.bf16.msra.mxu0 %v9557_v58  ;;  %v13668_v7 = vld [vmem:[#allocation20] sm:$0xff]  ;;  %v9429_v51 = vor.u32 %v11745_v16, %v9426_v26  ;;  %v10393_v41 = vor.u32 %v11994_v9, %v10392_v2  ;;  %v10329_v58 = vor.u32 %v11978_v48, %v10328_v46  ;;  %v12218_v54 = vld [vmem:[#allocation2 + $0xed4] sm:$0xf0] }
 0x523   :  { %v11873_v8 = vld [vmem:[#allocation2 + $0x414] sm:$0xf]  ;;  %v7486_v23 = vperm.slane %v13668_v7, 0  ;;  %v9688_v27 = vld [vmem:[#allocation2 + $0x218] sm:$0xf] }
 0x524   :  { %6583 = vmatpush.bf16.msra.mxu3 %v11157_v6  ;;  %6558 = vmatpush.bf16.msra.mxu1 %v10069_v33  ;;  %v9938_v45 = vld [vmem:[#allocation2 + $0x450] sm:$0xf0]  ;;  %v7466_v6 = vmul.f32 %v13670_v18, %v6329_v4  ;;  %v9752_v33 = vld [vmem:[#allocation2 + $0x298] sm:$0xf] }
 0x525   :  { %v12001_v1 = vld [vmem:[#allocation2 + $0x814] sm:$0xf]  ;;  %v9941_v3 = vor.u32 %v11873_v8, %v9938_v45  ;;  %v11818_v16 = vld [vmem:[#allocation2 + $0x254] sm:$0xf0]  ;;  %v11289_v8 = vor.u32 %v12218_v54, %v11288_v56 }
 0x526   :  { %6571 = vmatpush.bf16.msra.mxu2 %v10581_v63  ;;  %v10450_v47 = vld [vmem:[#allocation2 + $0x850] sm:$0xf0]  ;;  %6546 = vmatpush.bf16.msra.mxu0 %v9493_v34  ;;  %v11834_v63 = vld [vmem:[#allocation2 + $0x2d4] sm:$0xf0]  ;;  %v13674_v4 = vadd.f32 %v7486_v23, %v7466_v6 }
 0x527   :  { %v12129_v25 = vld [vmem:[#allocation2 + $0xc14] sm:$0xf]  ;;  %v10453_v39 = vor.u32 %v12001_v1, %v10450_v47  ;;  %v9753_v28 = vor.u32 %v11834_v63, %v9752_v33  ;;  %v10200_v26 = vld [vmem:[#allocation2 + $0x618] sm:$0xf]  ;;  %v9689_v47 = vor.u32 %v11818_v16, %v9688_v27  ;;  %v7487_v33 = vperm.slane %v13668_v7, 1 }
 0x528   :  { %6584 = vmatpush.bf16.msra.mxu3 %v11093_v38  ;;  %v10962_v13 = vld [vmem:[#allocation2 + $0xc50] sm:$0xf0]  ;;  %6559 = vmatpush.bf16.msra.mxu1 %v10005_v14  ;;  %v12090_v38 = vld [vmem:[#allocation2 + $0xad4] sm:$0xf0] }
 0x529   :  { %v10965_v50 = vor.u32 %v12129_v25, %v10962_v13  ;;  %v10777_v34 = vor.u32 %v12090_v38, %v10776_v53  ;;  %v11946_v14 = vld [vmem:[#allocation2 + $0x654] sm:$0xf0] }
 0x52a   :  { %6572 = vmatpush.bf16.msra.mxu2 %v10517_v30  ;;  %6547 = vmatpush.bf16.msra.mxu0 %v9429_v51  ;;  %v7538_v30 = vrot.slane %v13674_v4, 4  ;;  %v10712_v45 = vld [vmem:[#allocation2 + $0xa18] sm:$0xf]  ;;  %v6341_v25 = vpop.f32.mrf.mxu0  ;;  %v10201_v13 = vor.u32 %v11946_v14, %v10200_v26 }
 0x52b   :  { %v12074_v1 = vld [vmem:[#allocation2 + $0xa54] sm:$0xf0] }
 0x52c   :  { %6585 = vmatpush.bf16.msra.mxu3 %v11029_v44  ;;  %6560 = vmatpush.bf16.msra.mxu1 %v9941_v3  ;;  %v11224_v37 = vld [vmem:[#allocation2 + $0xe18] sm:$0xf]  ;;  %v10713_v5 = vor.u32 %v12074_v1, %v10712_v45  ;;  %v6354_v11 = vpop.f32.mrf.mxu1  ;;  %v7539_v9 = vadd.f32 %v7538_v30, %v13674_v4 }
 0x52d   :  { %6548 = vmatmul.bf16.vlgmr.msra.gmra.mxu0 %v13640_v0  ;;  %v12202_v44 = vld [vmem:[#allocation2 + $0xe54] sm:$0xf0]  ;;  %v6355_v60 = vadd.f32 %v6354_v11, %v6341_v25 }
 0x52e   :  { %6573 = vmatpush.bf16.msra.mxu2 %v10453_v39  ;;  %6592 = vmatpush.bf16.msrb.mxu0 %v9881_v22  ;;  %v9624_v29 = vld [vmem:[#allocation2 + $0x198] sm:$0xf]  ;;  %v11225_v52 = vor.u32 %v12202_v44, %v11224_v37 }
 0x52f   :  { %6561 = vmatmul.bf16.vlgmr.msra.gmra.mxu1 %v13644_v31  ;;  %v11802_v2 = vld [vmem:[#allocation2 + $0x1d4] sm:$0xf0] }
 0x530   :  { %6586 = vmatpush.bf16.msra.mxu3 %v10965_v50  ;;  %6605 = vmatpush.bf16.msrb.mxu1 %v10393_v41  ;;  %v10136_v51 = vld [vmem:[#allocation2 + $0x598] sm:$0xf]  ;;  %v9625_v50 = vor.u32 %v11802_v2, %v9624_v29 }
 0x531   :  { %6574 = vmatmul.bf16.vlgmr.msra.gmra.mxu2 %v13632_v62  ;;  %v11930_v3 = vld [vmem:[#allocation2 + $0x5d4] sm:$0xf0] }
 0x532   :  { %6618 = vmatpush.bf16.msrb.mxu2 %v10905_v19  ;;  %6593 = vmatpush.bf16.msrb.mxu0 %v9817_v15  ;;  %v10648_v39 = vld [vmem:[#allocation2 + $0x998] sm:$0xf]  ;;  %v10137_v41 = vor.u32 %v11930_v3, %v10136_v51  ;;  %v6343_v49 = vpop.f32.mrf.mxu0 }
 0x533   :  { %6587 = vmatmul.bf16.vlgmr.msra.gmra.mxu3 %v13636_v59  ;;  %v12058_v55 = vld [vmem:[#allocation2 + $0x9d4] sm:$0xf0]  ;;  %v10330_v49 = vld [vmem:[#allocation2 + $0x758] sm:$0xf0] }
 0x534   :  { %6631 = vmatpush.bf16.msrb.mxu3 %v11417_v61  ;;  %6606 = vmatpush.bf16.msrb.mxu1 %v10329_v58  ;;  %v11160_v43 = vld [vmem:[#allocation2 + $0xd98] sm:$0xf]  ;;  %v10649_v19 = vor.u32 %v12058_v55, %v10648_v39  ;;  %v6367_v21 = vpop.f32.mrf.mxu2  ;;  %v7540_v61 = vrot.slane %v7539_v9, 2  ;;  %v6356_v54 = vpop.f32.mrf.mxu1  ;;  %v11858_v39 = vld [vmem:[#allocation2 + $0x39c] sm:$0xf] }
 0x535   :  { %v12186_v23 = vld [vmem:[#allocation2 + $0xdd4] sm:$0xf0]  ;;  %v6368_v17 = vadd.f32 %v6367_v21, %v6355_v60  ;;  %v9882_v55 = vld [vmem:[#allocation2 + $0x3d8] sm:$0xf0] }
 0x536   :  { %6619 = vmatpush.bf16.msrb.mxu2 %v10841_v36  ;;  %6594 = vmatpush.bf16.msrb.mxu0 %v9753_v28  ;;  %v9560_v22 = vld [vmem:[#allocation2 + $0x118] sm:$0xf]  ;;  %v11161_v48 = vor.u32 %v12186_v23, %v11160_v43  ;;  %v6380_v40 = vpop.f32.mrf.mxu3  ;;  %v7541_v28 = vadd.f32 %v7540_v61, %v7539_v9  ;;  %v11986_v43 = vld [vmem:[#allocation2 + $0x79c] sm:$0xf] }
 0x537   :  { %v11786_v57 = vld [vmem:[#allocation2 + $0x154] sm:$0xf0]  ;;  %v6381_v36 = vadd.f32 %v6380_v40, %v6368_v17  ;;  %v9885_v40 = vor.u32 %v11858_v39, %v9882_v55  ;;  %v11226_v55 = vld [vmem:[#allocation2 + $0xe58] sm:$0xf0] }
 0x538   :  { %6632 = vmatpush.bf16.msrb.mxu3 %v11353_v35  ;;  %6607 = vmatpush.bf16.msrb.mxu1 %v10265_v24  ;;  %v10072_v46 = vld [vmem:[#allocation2 + $0x518] sm:$0xf]  ;;  %v9561_v63 = vor.u32 %v11786_v57, %v9560_v22  ;;  %v7542_v2 = vrot.slane %v7541_v28, 1  ;;  %v10394_v22 = vld [vmem:[#allocation2 + $0x7d8] sm:$0xf0] }
 0x539   :  { %v11914_v6 = vld [vmem:[#allocation2 + $0x554] sm:$0xf0]  ;;  %v7467_v27 = vmul.f32 %v13670_v18, %v6381_v36  ;;  %v11970_v36 = vld [vmem:[#allocation2 + $0x71c] sm:$0xf] }
 0x53a   :  { %6620 = vmatpush.bf16.msrb.mxu2 %v10777_v34  ;;  %6595 = vmatpush.bf16.msrb.mxu0 %v9689_v47  ;;  %v10584_v10 = vld [vmem:[#allocation2 + $0x918] sm:$0xf]  ;;  %v10073_v35 = vor.u32 %v11914_v6, %v10072_v46  ;;  %v12242_v46 = vld [vmem:[#allocation2 + $0xf9c] sm:$0xf]  ;;  %v7543_v61 = vadd.f32 %v7542_v2, %v7541_v28 }
 0x53b   :  { %v12042_v32 = vld [vmem:[#allocation2 + $0x954] sm:$0xf0]  ;;  %v11418_v6 = vld [vmem:[#allocation2 + $0xfd8] sm:$0xf0] }
 0x53c   :  { %6633 = vmatpush.bf16.msrb.mxu3 %v11289_v8  ;;  %6608 = vmatpush.bf16.msrb.mxu1 %v10201_v13  ;;  %v11096_v15 = vld [vmem:[#allocation2 + $0xd18] sm:$0xf]  ;;  %v10585_v12 = vor.u32 %v12042_v32, %v10584_v10  ;;  %v13684_v8 = vadd.f32 %v7487_v33, %v7467_v27  ;;  %v6369_v29 = vpop.f32.mrf.mxu2  ;;  %v10397_v10 = vor.u32 %v11986_v43, %v10394_v22  ;;  %v9690_v2 = vld [vmem:[#allocation2 + $0x258] sm:$0xf0] }
 0x53d   :  { %v12170_v58 = vld [vmem:[#allocation2 + $0xd54] sm:$0xf0]  ;;  %v10333_v27 = vor.u32 %v11970_v36, %v10330_v49  ;;  %v11810_v29 = vld [vmem:[#allocation2 + $0x21c] sm:$0xf] }
 0x53e   :  { %6621 = vmatpush.bf16.msrb.mxu2 %v10713_v5  ;;  %6596 = vmatpush.bf16.msrb.mxu0 %v9625_v50  ;;  %v9496_v53 = vld [vmem:[#allocation2 + $0x98] sm:$0xf]  ;;  %v11097_v24 = vor.u32 %v12170_v58, %v11096_v15  ;;  %v7544_v51 = vrot.slane %v13684_v8, 4  ;;  %v6382_v3 = vpop.f32.mrf.mxu3  ;;  %v11842_v15 = vld [vmem:[#allocation2 + $0x31c] sm:$0xf] }
 0x53f   :  { %v11770_v38 = vld [vmem:[#allocation2 + $0xd4] sm:$0xf0]  ;;  %v9818_v58 = vld [vmem:[#allocation2 + $0x358] sm:$0xf0] }
 0x540   :  { %6634 = vmatpush.bf16.msrb.mxu3 %v11225_v52  ;;  %6609 = vmatpush.bf16.msrb.mxu1 %v10137_v41  ;;  %v10008_v56 = vld [vmem:[#allocation2 + $0x498] sm:$0xf]  ;;  %v9497_v45 = vor.u32 %v11770_v38, %v9496_v53  ;;  %v7545_v23 = vadd.f32 %v7544_v51, %v13684_v8  ;;  %v12114_v41 = vld [vmem:[#allocation2 + $0xb9c] sm:$0xf]  ;;  %v9821_v28 = vor.u32 %v11842_v15, %v9818_v58 }
 0x541   :  { %v11898_v34 = vld [vmem:[#allocation2 + $0x4d4] sm:$0xf0]  ;;  %v12226_v53 = vld [vmem:[#allocation2 + $0xf1c] sm:$0xf] }
 0x542   :  { %6622 = vmatpush.bf16.msrb.mxu2 %v10649_v19  ;;  %v10520_v16 = vld [vmem:[#allocation2 + $0x898] sm:$0xf]  ;;  %6597 = vmatpush.bf16.msrb.mxu0 %v9561_v63  ;;  %v10009_v47 = vor.u32 %v11898_v34, %v10008_v56  ;;  %v10906_v19 = vld [vmem:[#allocation2 + $0xbd8] sm:$0xf0]  ;;  %v11421_v63 = vor.u32 %v12242_v46, %v11418_v6  ;;  %v7634_v56 = vmul.f32 %v7543_v61, %v12959_v42 }
 0x543   :  { %v12026_v26 = vld [vmem:[#allocation2 + $0x8d4] sm:$0xf0]  ;;  %v10909_v32 = vor.u32 %v12114_v41, %v10906_v19  ;;  %v11354_v38 = vld [vmem:[#allocation2 + $0xf58] sm:$0xf0] }
 0x544   :  { %6635 = vmatpush.bf16.msrb.mxu3 %v11161_v48  ;;  %v11032_v14 = vld [vmem:[#allocation2 + $0xc98] sm:$0xf]  ;;  %6610 = vmatpush.bf16.msrb.mxu1 %v10073_v35  ;;  %v10521_v25 = vor.u32 %v12026_v26, %v10520_v16  ;;  %v7546_v48 = vrot.slane %v7545_v23, 2  ;;  %v12098_v35 = vld [vmem:[#allocation2 + $0xb1c] sm:$0xf] }
 0x545   :  { %v12154_v30 = vld [vmem:[#allocation2 + $0xcd4] sm:$0xf0]  ;;  %v11826_v34 = vld [vmem:[#allocation2 + $0x29c] sm:$0xf] }
 0x546   :  { %v9432_v1 = vld [vmem:[#allocation2 + $0x18] sm:$0xf]  ;;  %6623 = vmatpush.bf16.msrb.mxu2 %v10585_v12  ;;  %v11033_v9 = vor.u32 %v12154_v30, %v11032_v14  ;;  %6598 = vmatpush.bf16.msrb.mxu0 %v9497_v45  ;;  %v7547_v33 = vadd.f32 %v7546_v48, %v7545_v23  ;;  %v10842_v12 = vld [vmem:[#allocation2 + $0xb58] sm:$0xf0]  ;;  %v11357_v14 = vor.u32 %v12226_v53, %v11354_v38 }
 0x547   :  { %v11754_v37 = vld [vmem:[#allocation2 + $0x54] sm:$0xf0]  ;;  %v9754_v16 = vld [vmem:[#allocation2 + $0x2d8] sm:$0xf0]  ;;  %v9693_v23 = vor.u32 %v11810_v29, %v9690_v2 }
 0x548   :  { %v9944_v44 = vld [vmem:[#allocation2 + $0x418] sm:$0xf]  ;;  %6636 = vmatpush.bf16.msrb.mxu3 %v11097_v24  ;;  %v9433_v50 = vor.u32 %v11754_v37, %v9432_v1  ;;  %6611 = vmatpush.bf16.msrb.mxu1 %v10009_v47  ;;  %v7548_v54 = vrot.slane %v7547_v33, 1  ;;  %v10845_v24 = vor.u32 %v12098_v35, %v10842_v12  ;;  %v11954_v26 = vld [vmem:[#allocation2 + $0x69c] sm:$0xf] }
 0x549   :  { %v11882_v13 = vld [vmem:[#allocation2 + $0x454] sm:$0xf0]  ;;  %v10266_v30 = vld [vmem:[#allocation2 + $0x6d8] sm:$0xf0] }
 0x54a   :  { %v10456_v5 = vld [vmem:[#allocation2 + $0x818] sm:$0xf]  ;;  %6624 = vmatpush.bf16.msrb.mxu2 %v10521_v25  ;;  %v9945_v21 = vor.u32 %v11882_v13, %v9944_v44  ;;  %6599 = vmatpush.bf16.msrb.mxu0 %v9433_v50  ;;  %v12082_v45 = vld [vmem:[#allocation2 + $0xa9c] sm:$0xf]  ;;  %v7549_v37 = vadd.f32 %v7548_v54, %v7547_v33  ;;  %v13693_v25 = vsub.f32 %v13674_v4, %v7634_v56  ;;  %v6393_v50 = vpop.f32.mrf.mxu0 }
 0x54b   :  { %v12010_v11 = vld [vmem:[#allocation2 + $0x854] sm:$0xf0]  ;;  %v10778_v1 = vld [vmem:[#allocation2 + $0xad8] sm:$0xf0]  ;;  %v9757_v13 = vor.u32 %v11826_v34, %v9754_v16 }
 0x54c   :  { %v10968_v52 = vld [vmem:[#allocation2 + $0xc18] sm:$0xf]  ;;  %v10457_v57 = vor.u32 %v12010_v11, %v10456_v5  ;;  %6637 = vmatpush.bf16.msrb.mxu3 %v11033_v9  ;;  %6612 = vmatpush.bf16.msrb.mxu1 %v9945_v21  ;;  %v12210_v44 = vld [vmem:[#allocation2 + $0xe9c] sm:$0xf]  ;;  %v10269_v5 = vor.u32 %v11954_v26, %v10266_v30  ;;  %v10781_v11 = vor.u32 %v12082_v45, %v10778_v1  ;;  %v6406_v19 = vpop.f32.mrf.mxu1 }
 0x54d   :  { %v12138_v60 = vld [vmem:[#allocation2 + $0xc54] sm:$0xf0]  ;;  %6600 = vmatmul.bf16.vlgmr.msrb.gmra.mxu0 %v13640_v0  ;;  %v11290_v47 = vld [vmem:[#allocation2 + $0xed8] sm:$0xf0]  ;;  %v7635_v39 = vmul.f32 %v7549_v37, %v12959_v42  ;;  %v7666_v43 = vmul.f32 %v13693_v25, %v13693_v25  ;;  %v6407_v61 = vadd.f32 %v6406_v19, %v6393_v50 }
 0x54e   :  { %v10969_v17 = vor.u32 %v12138_v60, %v10968_v52  ;;  %6625 = vmatpush.bf16.msrb.mxu2 %v10457_v57  ;;  %6644 = vmatpush.bf16.msra.mxu0 %v9885_v40  ;;  %v11938_v51 = vld [vmem:[#allocation2 + $0x61c] sm:$0xf]  ;;  %v11293_v9 = vor.u32 %v12210_v44, %v11290_v47 }
 0x54f   :  { %6613 = vmatmul.bf16.vlgmr.msrb.gmra.mxu1 %v13644_v31  ;;  %v10202_v52 = vld [vmem:[#allocation2 + $0x658] sm:$0xf0]  ;;  %v7682_v58 = vrot.slane %v7666_v43, 4 }
 0x550   :  { %6638 = vmatpush.bf16.msrb.mxu3 %v10969_v17  ;;  %6657 = vmatpush.bf16.msra.mxu1 %v10397_v10  ;;  %v12066_v60 = vld [vmem:[#allocation2 + $0xa1c] sm:$0xf]  ;;  %v10205_v22 = vor.u32 %v11938_v51, %v10202_v52  ;;  %v13700_v10 = vsub.f32 %v13684_v8, %v7635_v39 }
 0x551   :  { %6626 = vmatmul.bf16.vlgmr.msrb.gmra.mxu2 %v13632_v62  ;;  %v10714_v3 = vld [vmem:[#allocation2 + $0xa58] sm:$0xf0] }
 0x552   :  { %6670 = vmatpush.bf16.msra.mxu2 %v10909_v32  ;;  %6645 = vmatpush.bf16.msra.mxu0 %v9821_v28  ;;  %v12194_v4 = vld [vmem:[#allocation2 + $0xe1c] sm:$0xf]  ;;  %v10717_v41 = vor.u32 %v12066_v60, %v10714_v3  ;;  %v6395_v45 = vpop.f32.mrf.mxu0 }
 0x553   :  { %6639 = vmatmul.bf16.vlgmr.msrb.gmra.mxu3 %v13636_v59  ;;  %v11794_v21 = vld [vmem:[#allocation2 + $0x19c] sm:$0xf]  ;;  %v11229_v6 = vor.u32 %v12194_v4, %v11226_v55  ;;  %v11851_v45 = vld [vmem:[#allocation2 + $0x35c] sm:$0xf0] }
 0x554   :  { %6683 = vmatpush.bf16.msra.mxu3 %v11421_v63  ;;  %6658 = vmatpush.bf16.msra.mxu1 %v10333_v27  ;;  %v9626_v57 = vld [vmem:[#allocation2 + $0x1d8] sm:$0xf0]  ;;  %v6419_v49 = vpop.f32.mrf.mxu2 }
 0x555   :  { %v11922_v46 = vld [vmem:[#allocation2 + $0x59c] sm:$0xf]  ;;  %v9629_v36 = vor.u32 %v11794_v21, %v9626_v57  ;;  %v6420_v56 = vadd.f32 %v6419_v49, %v6407_v61 }
 0x556   :  { %6671 = vmatpush.bf16.msra.mxu2 %v10845_v24  ;;  %6646 = vmatpush.bf16.msra.mxu0 %v9757_v13  ;;  %v10138_v48 = vld [vmem:[#allocation2 + $0x5d8] sm:$0xf0]  ;;  %v6432_v54 = vpop.f32.mrf.mxu3  ;;  %v7667_v24 = vmul.f32 %v13700_v10, %v13700_v10 }
 0x557   :  { %v12050_v17 = vld [vmem:[#allocation2 + $0x99c] sm:$0xf]  ;;  %v10141_v33 = vor.u32 %v11922_v46, %v10138_v48  ;;  %v6433_v26 = vadd.f32 %v6432_v54, %v6420_v56  ;;  %v11424_v54 = vld [vmem:[#allocation2 + $0xfa0] sm:$0xf] }
 0x558   :  { %6684 = vmatpush.bf16.msra.mxu3 %v11357_v14  ;;  %6659 = vmatpush.bf16.msra.mxu1 %v10269_v5  ;;  %v10650_v40 = vld [vmem:[#allocation2 + $0x9d8] sm:$0xf0]  ;;  %v7488_v14 = vperm.slane %v13668_v7, 2  ;;  %v6408_v5 = vpop.f32.mrf.mxu1  ;;  %v7688_v60 = vrot.slane %v7667_v24, 4 }
 0x559   :  { %v12178_v32 = vld [vmem:[#allocation2 + $0xd9c] sm:$0xf]  ;;  %v10653_v63 = vor.u32 %v12050_v17, %v10650_v40  ;;  %v7468_v29 = vmul.f32 %v13670_v18, %v6433_v26  ;;  %v12107_v5 = vld [vmem:[#allocation2 + $0xb5c] sm:$0xf0] }
 0x55a   :  { %6672 = vmatpush.bf16.msra.mxu2 %v10781_v11  ;;  %v11162_v15 = vld [vmem:[#allocation2 + $0xdd8] sm:$0xf0]  ;;  %6647 = vmatpush.bf16.msra.mxu0 %v9693_v23  ;;  %v7683_v11 = vadd.f32 %v7682_v58, %v7666_v43  ;;  %v9888_v58 = vld [vmem:[#allocation2 + $0x3a0] sm:$0xf] }
 0x55b   :  { %v11778_v35 = vld [vmem:[#allocation2 + $0x11c] sm:$0xf]  ;;  %v11165_v38 = vor.u32 %v12178_v32, %v11162_v15  ;;  %v13706_v4 = vadd.f32 %v7488_v14, %v7468_v29  ;;  %v7689_v15 = vadd.f32 %v7688_v60, %v7667_v24  ;;  %v11360_v29 = vld [vmem:[#allocation2 + $0xf20] sm:$0xf] }
 0x55c   :  { %6685 = vmatpush.bf16.msra.mxu3 %v11293_v9  ;;  %6660 = vmatpush.bf16.msra.mxu1 %v10205_v22  ;;  %v9562_v12 = vld [vmem:[#allocation2 + $0x158] sm:$0xf0]  ;;  %v6421_v46 = vpop.f32.mrf.mxu2 }
 0x55d   :  { %v11906_v53 = vld [vmem:[#allocation2 + $0x51c] sm:$0xf]  ;;  %v9565_v30 = vor.u32 %v11778_v35, %v9562_v12  ;;  %v7550_v61 = vrot.slane %v13706_v4, 4  ;;  %v11995_v35 = vld [vmem:[#allocation2 + $0x7dc] sm:$0xf0]  ;;  %v7690_v26 = vrot.slane %v7689_v15, 2 }
 0x55e   :  { %6673 = vmatpush.bf16.msra.mxu2 %v10717_v41  ;;  %v10074_v28 = vld [vmem:[#allocation2 + $0x558] sm:$0xf0]  ;;  %6648 = vmatpush.bf16.msra.mxu0 %v9629_v36  ;;  %v6434_v32 = vpop.f32.mrf.mxu3  ;;  %v11867_v36 = vld [vmem:[#allocation2 + $0x3dc] sm:$0xf0] }
 0x55f   :  { %v12034_v8 = vld [vmem:[#allocation2 + $0x91c] sm:$0xf]  ;;  %v10077_v1 = vor.u32 %v11906_v53, %v10074_v28  ;;  %v10912_v12 = vld [vmem:[#allocation2 + $0xba0] sm:$0xf] }
 0x560   :  { %6686 = vmatpush.bf16.msra.mxu3 %v11229_v6  ;;  %v10586_v27 = vld [vmem:[#allocation2 + $0x958] sm:$0xf0]  ;;  %6661 = vmatpush.bf16.msra.mxu1 %v10141_v33  ;;  %v7684_v6 = vrot.slane %v7683_v11, 2  ;;  %v10400_v33 = vld [vmem:[#allocation2 + $0x7a0] sm:$0xf] }
 0x561   :  { %v12162_v34 = vld [vmem:[#allocation2 + $0xd1c] sm:$0xf]  ;;  %v10589_v37 = vor.u32 %v12034_v8, %v10586_v27  ;;  %v12123_v53 = vld [vmem:[#allocation2 + $0xbdc] sm:$0xf0]  ;;  %v10401_v14 = vor.u32 %v11995_v35, %v10400_v33 }
 0x562   :  { %v11098_v16 = vld [vmem:[#allocation2 + $0xd58] sm:$0xf0]  ;;  %6674 = vmatpush.bf16.msra.mxu2 %v10653_v63  ;;  %6649 = vmatpush.bf16.msra.mxu0 %v9565_v30  ;;  %v7551_v63 = vadd.f32 %v7550_v61, %v13706_v4  ;;  %v12251_v28 = vld [vmem:[#allocation2 + $0xfdc] sm:$0xf0]  ;;  %v7685_v8 = vadd.f32 %v7684_v6, %v7683_v11  ;;  %v10913_v30 = vor.u32 %v12123_v53, %v10912_v12 }
 0x563   :  { %v11762_v44 = vld [vmem:[#allocation2 + $0x9c] sm:$0xf]  ;;  %v11101_v2 = vor.u32 %v12162_v34, %v11098_v16  ;;  %v9889_v34 = vor.u32 %v11867_v36, %v9888_v58  ;;  %v9824_v16 = vld [vmem:[#allocation2 + $0x320] sm:$0xf] }
 0x564   :  { %v9498_v47 = vld [vmem:[#allocation2 + $0xd8] sm:$0xf0]  ;;  %6687 = vmatpush.bf16.msra.mxu3 %v11165_v38  ;;  %6662 = vmatpush.bf16.msra.mxu1 %v10077_v1  ;;  %v7552_v27 = vrot.slane %v7551_v63, 2  ;;  %v10336_v1 = vld [vmem:[#allocation2 + $0x720] sm:$0xf] }
 0x565   :  { %v11890_v13 = vld [vmem:[#allocation2 + $0x49c] sm:$0xf]  ;;  %v9501_v55 = vor.u32 %v11762_v44, %v9498_v47  ;;  %v11425_v44 = vor.u32 %v12251_v28, %v11424_v54  ;;  %v11979_v47 = vld [vmem:[#allocation2 + $0x75c] sm:$0xf0] }
 0x566   :  { %v10010_v51 = vld [vmem:[#allocation2 + $0x4d8] sm:$0xf0]  ;;  %6675 = vmatpush.bf16.msra.mxu2 %v10589_v37  ;;  %v7553_v37 = vadd.f32 %v7552_v27, %v7551_v63  ;;  %v12235_v11 = vld [vmem:[#allocation2 + $0xf5c] sm:$0xf0]  ;;  %v10337_v60 = vor.u32 %v11979_v47, %v10336_v1 }
 0x567   :  { %v12018_v9 = vld [vmem:[#allocation2 + $0x89c] sm:$0xf]  ;;  %v10013_v43 = vor.u32 %v11890_v13, %v10010_v51  ;;  %6650 = vmatpush.bf16.msra.mxu0 %v9501_v55  ;;  %v10848_v13 = vld [vmem:[#allocation2 + $0xb20] sm:$0xf] }
 0x568   :  { %v10522_v52 = vld [vmem:[#allocation2 + $0x8d8] sm:$0xf0]  ;;  %6688 = vmatpush.bf16.msra.mxu3 %v11101_v2  ;;  %v7686_v2 = vrot.slane %v7685_v8, 1  ;;  %v7554_v51 = vrot.slane %v7553_v37, 1  ;;  %v11835_v55 = vld [vmem:[#allocation2 + $0x2dc] sm:$0xf0] }
 0x569   :  { %v12146_v3 = vld [vmem:[#allocation2 + $0xc9c] sm:$0xf]  ;;  %v10525_v41 = vor.u32 %v12018_v9, %v10522_v52  ;;  %6663 = vmatpush.bf16.msra.mxu1 %v10013_v43  ;;  %v9825_v9 = vor.u32 %v11851_v45, %v9824_v16  ;;  %v7691_v52 = vadd.f32 %v7690_v26, %v7689_v15  ;;  %v11963_v43 = vld [vmem:[#allocation2 + $0x6dc] sm:$0xf0] }
 0x56a   :  { %v11034_v39 = vld [vmem:[#allocation2 + $0xcd8] sm:$0xf0]  ;;  %v7687_v46 = vadd.f32 %v7686_v2, %v7685_v8  ;;  %v11819_v15 = vld [vmem:[#allocation2 + $0x25c] sm:$0xf0]  ;;  %v6445_v28 = vpop.f32.mrf.mxu0 }
 0x56b   :  { %v11746_v23 = vld [vmem:[#allocation2 + $0x1c] sm:$0xf]  ;;  %v11037_v48 = vor.u32 %v12146_v3, %v11034_v39  ;;  %6676 = vmatpush.bf16.msra.mxu2 %v10525_v41  ;;  %v10849_v3 = vor.u32 %v12107_v5, %v10848_v13  ;;  %v9760_v39 = vld [vmem:[#allocation2 + $0x2a0] sm:$0xf] }
 0x56c   :  { %v9434_v50 = vld [vmem:[#allocation2 + $0x58] sm:$0xf0]  ;;  %v10784_v41 = vld [vmem:[#allocation2 + $0xaa0] sm:$0xf]  ;;  %v9761_v61 = vor.u32 %v11835_v55, %v9760_v39 }
 0x56d   :  { %v11874_v22 = vld [vmem:[#allocation2 + $0x41c] sm:$0xf]  ;;  %v9437_v49 = vor.u32 %v11746_v23, %v9434_v50  ;;  %6689 = vmatpush.bf16.msra.mxu3 %v11037_v48  ;;  %v10272_v23 = vld [vmem:[#allocation2 + $0x6a0] sm:$0xf]  ;;  %v7555_v50 = vadd.f32 %v7554_v51, %v7553_v37 }
 0x56e   :  { %v9946_v19 = vld [vmem:[#allocation2 + $0x458] sm:$0xf0]  ;;  %v9696_v48 = vld [vmem:[#allocation2 + $0x220] sm:$0xf] }
 0x56f   :  { %v12002_v21 = vld [vmem:[#allocation2 + $0x81c] sm:$0xf]  ;;  %v9949_v38 = vor.u32 %v11874_v22, %v9946_v19  ;;  %6651 = vmatpush.bf16.msra.mxu0 %v9437_v49  ;;  %v11361_v22 = vor.u32 %v12235_v11, %v11360_v29  ;;  %v12091_v19 = vld [vmem:[#allocation2 + $0xadc] sm:$0xf0]  ;;  %v7636_v6 = vmul.f32 %v7555_v50, %v12959_v42  ;;  %v9697_v54 = vor.u32 %v11819_v15, %v9696_v48 }
 0x570   :  { %v10458_v57 = vld [vmem:[#allocation2 + $0x858] sm:$0xf0]  ;;  %v10785_v32 = vor.u32 %v12091_v19, %v10784_v41  ;;  %v10208_v58 = vld [vmem:[#allocation2 + $0x620] sm:$0xf]  ;;  %v7489_v48 = vperm.slane %v13668_v7, 3 }
 0x571   :  { %v12130_v17 = vld [vmem:[#allocation2 + $0xc1c] sm:$0xf]  ;;  %v10461_v56 = vor.u32 %v12002_v21, %v10458_v57  ;;  %6664 = vmatpush.bf16.msra.mxu1 %v9949_v38  ;;  %v11296_v21 = vld [vmem:[#allocation2 + $0xea0] sm:$0xf]  ;;  %v13716_v36 = vsub.f32 %v13706_v4, %v7636_v6  ;;  %v7778_v38 = vmul.f32 %v7687_v46, %v12959_v42 }
 0x572   :  { %v10970_v40 = vld [vmem:[#allocation2 + $0xc58] sm:$0xf0]  ;;  %6652 = vmatmul.bf16.vlgmr.msra.gmra.mxu0 %v13640_v0  ;;  %v12219_v57 = vld [vmem:[#allocation2 + $0xedc] sm:$0xf0]  ;;  %v6447_v15 = vpop.f32.mrf.mxu0 }
 0x573   :  { %v10973_v24 = vor.u32 %v12130_v17, %v10970_v40  ;;  %6677 = vmatpush.bf16.msra.mxu2 %v10461_v56  ;;  %6696 = vmatpush.bf16.msrb.mxu0 %v9889_v34  ;;  %v7692_v17 = vrot.slane %v7691_v52, 1  ;;  %v10273_v40 = vor.u32 %v11963_v43, %v10272_v23  ;;  %v11297_v33 = vor.u32 %v12219_v57, %v11296_v21  ;;  %v11947_v63 = vld [vmem:[#allocation2 + $0x65c] sm:$0xf0]  ;;  %v6458_v34 = vpop.f32.mrf.mxu1  ;;  %v11971_v15 = vld [vmem:[#allocation2 + $0x724] sm:$0xf] }
 0x574   :  { %6665 = vmatmul.bf16.vlgmr.msra.gmra.mxu1 %v13644_v31  ;;  %v10720_v49 = vld [vmem:[#allocation2 + $0xa20] sm:$0xf]  ;;  %v7668_v56 = vmul.f32 %v13716_v36, %v13716_v36  ;;  %v10209_v4 = vor.u32 %v11947_v63, %v10208_v58  ;;  %v6459_v1 = vadd.f32 %v6458_v34, %v6445_v28  ;;  %v13721_v5 = vadd.f32 1e-05, %v7778_v38 }
 0x575   :  { %6690 = vmatpush.bf16.msra.mxu3 %v10973_v24  ;;  %6709 = vmatpush.bf16.msrb.mxu1 %v10401_v14  ;;  %v12075_v35 = vld [vmem:[#allocation2 + $0xa5c] sm:$0xf0]  ;;  %v7693_v27 = vadd.f32 %v7692_v17, %v7691_v52 }
 0x576   :  { %6678 = vmatmul.bf16.vlgmr.msra.gmra.mxu2 %v13632_v62  ;;  %v11232_v12 = vld [vmem:[#allocation2 + $0xe20] sm:$0xf]  ;;  %v10721_v24 = vor.u32 %v12075_v35, %v10720_v49  ;;  %v6484_v43 = vpop.f32.mrf.mxu3  ;;  %12317 = vrsqrt.f32 %v13721_v5  ;;  %vm7816_vm7 = vweird.f32 %v13721_v5 }
 0x577   :  { %6722 = vmatpush.bf16.msrb.mxu2 %v10913_v30  ;;  %6697 = vmatpush.bf16.msrb.mxu0 %v9825_v9  ;;  %v12203_v53 = vld [vmem:[#allocation2 + $0xe5c] sm:$0xf0]  ;;  %v7694_v30 = vrot.slane %v7668_v56, 4  ;;  %v7779_v51 = vmul.f32 %v7693_v27, %v12959_v42 }
 0x578   :  { %6691 = vmatmul.bf16.vlgmr.msra.gmra.mxu3 %v13636_v59  ;;  %v9632_v8 = vld [vmem:[#allocation2 + $0x1a0] sm:$0xf]  ;;  %v11233_v45 = vor.u32 %v12203_v53, %v11232_v12 }
 0x579   :  { %6735 = vmatpush.bf16.msrb.mxu3 %v11425_v44  ;;  %6710 = vmatpush.bf16.msrb.mxu1 %v10337_v60  ;;  %v11803_v16 = vld [vmem:[#allocation2 + $0x1dc] sm:$0xf0]  ;;  %v7695_v29 = vadd.f32 %v7694_v30, %v7668_v56  ;;  %v6471_v60 = vpop.f32.mrf.mxu2  ;;  %v13725_v58 = vadd.f32 1e-05, %v7779_v51  ;;  %v12779_v51 = vmov 2  }
 0x57a   :  { %v10144_v26 = vld [vmem:[#allocation2 + $0x5a0] sm:$0xf]  ;;  %v9633_v11 = vor.u32 %v11803_v16, %v9632_v8  ;;  %12313 = vset.pattern.permute.xlu1 %v12779_v51 }
 0x57b   :  { %6723 = vmatpush.bf16.msrb.mxu2 %v10849_v3  ;;  %6698 = vmatpush.bf16.msrb.mxu0 %v9761_v61  ;;  %v11931_v14 = vld [vmem:[#allocation2 + $0x5dc] sm:$0xf0]  ;;  %v7696_v23 = vrot.slane %v7695_v29, 2  ;;  %v6460_v12 = vpop.f32.mrf.mxu1  ;;  %12319 = vrsqrt.f32 %v13725_v58  ;;  %vm7826_vm9 = vweird.f32 %v13725_v58 }
 0x57c   :  { %v10656_v37 = vld [vmem:[#allocation2 + $0x9a0] sm:$0xf]  ;;  %v10145_v9 = vor.u32 %v11931_v14, %v10144_v26  ;;  %7347 = vperm.xlu1 %12313, %v13628_v20   ;;  %v10850_v12 = vld [vmem:[#allocation2 + $0xb60] sm:$0xf0] }
 0x57d   :  { %6736 = vmatpush.bf16.msrb.mxu3 %v11361_v22  ;;  %6711 = vmatpush.bf16.msrb.mxu1 %v10273_v40  ;;  %v12059_v44 = vld [vmem:[#allocation2 + $0x9dc] sm:$0xf0]  ;;  %v6472_v22 = vadd.f32 %v6471_v60, %v6459_v1  ;;  %v7697_v6 = vadd.f32 %v7696_v23, %v7695_v29  ;;  %v10402_v60 = vld [vmem:[#allocation2 + $0x7e0] sm:$0xf0] }
 0x57e   :  { %v11168_v47 = vld [vmem:[#allocation2 + $0xda0] sm:$0xf]  ;;  %v10657_v52 = vor.u32 %v12059_v44, %v10656_v37  ;;  %v12115_v23 = vld [vmem:[#allocation2 + $0xba4] sm:$0xf] }
 0x57f   :  { %6724 = vmatpush.bf16.msrb.mxu2 %v10785_v32  ;;  %v12187_v13 = vld [vmem:[#allocation2 + $0xddc] sm:$0xf0]  ;;  %6699 = vmatpush.bf16.msrb.mxu0 %v9697_v54  ;;  %v6485_v61 = vadd.f32 %v6484_v43, %v6472_v22  ;;  %v7698_v53 = vrot.slane %v7697_v6, 1 }
 0x580   :  { %v9568_v2 = vld [vmem:[#allocation2 + $0x120] sm:$0xf]  ;;  %v11169_v50 = vor.u32 %v12187_v13, %v11168_v47 }
 0x581   :  { %6737 = vmatpush.bf16.msrb.mxu3 %v11297_v33  ;;  %6712 = vmatpush.bf16.msrb.mxu1 %v10209_v4  ;;  %v11787_v3 = vld [vmem:[#allocation2 + $0x15c] sm:$0xf0]  ;;  %v7469_v38 = vmul.f32 %v13670_v18, %v6485_v61  ;;  %v7699_v4 = vadd.f32 %v7698_v53, %v7697_v6  ;;  %v6473_v37 = vpop.f32.mrf.mxu2 }
 0x582   :  { %v10080_v39 = vld [vmem:[#allocation2 + $0x520] sm:$0xf]  ;;  %v9569_v17 = vor.u32 %v11787_v3, %v9568_v2  ;;  %v6486_v2 = vpop.f32.mrf.mxu3  ;;  %v12211_v37 = vld [vmem:[#allocation2 + $0xea4] sm:$0xf] }
 0x583   :  { %6725 = vmatpush.bf16.msrb.mxu2 %v10721_v24  ;;  %v11915_v55 = vld [vmem:[#allocation2 + $0x55c] sm:$0xf0]  ;;  %6700 = vmatpush.bf16.msrb.mxu0 %v9633_v11  ;;  %v13729_v24 = vadd.f32 %v7489_v48, %v7469_v38  ;;  %v7780_v44 = vmul.f32 %v7699_v4, %v12959_v42  ;;  %v11859_v11 = vld [vmem:[#allocation2 + $0x3a4] sm:$0xf] }
 0x584   :  { %v10592_v41 = vld [vmem:[#allocation2 + $0x920] sm:$0xf]  ;;  %v10081_v33 = vor.u32 %v11915_v55, %v10080_v39  ;;  %v12227_v38 = vld [vmem:[#allocation2 + $0xf24] sm:$0xf] }
 0x585   :  { %6738 = vmatpush.bf16.msrb.mxu3 %v11233_v45  ;;  %v12043_v19 = vld [vmem:[#allocation2 + $0x95c] sm:$0xf0]  ;;  %6713 = vmatpush.bf16.msrb.mxu1 %v10145_v9  ;;  %v7556_v47 = vrot.slane %v13729_v24, 4  ;;  %v9890_v9 = vld [vmem:[#allocation2 + $0x3e0] sm:$0xf0] }
 0x586   :  { %v11104_v21 = vld [vmem:[#allocation2 + $0xd20] sm:$0xf]  ;;  %v10593_v63 = vor.u32 %v12043_v19, %v10592_v41  ;;  %v13735_v3 = vadd.f32 1e-05, %v7780_v44  ;;  %v12243_v41 = vld [vmem:[#allocation2 + $0xfa4] sm:$0xf]  ;;  %v9893_v6 = vor.u32 %v11859_v11, %v9890_v9 }
 0x587   :  { %v12171_v57 = vld [vmem:[#allocation2 + $0xd5c] sm:$0xf0]  ;;  %6726 = vmatpush.bf16.msrb.mxu2 %v10657_v52  ;;  %6701 = vmatpush.bf16.msrb.mxu0 %v9569_v17  ;;  %v11987_v52 = vld [vmem:[#allocation2 + $0x7a4] sm:$0xf]  ;;  %v7557_v39 = vadd.f32 %v7556_v47, %v13729_v24 }
 0x588   :  { %v9504_v46 = vld [vmem:[#allocation2 + $0xa0] sm:$0xf]  ;;  %v11105_v56 = vor.u32 %v12171_v57, %v11104_v21  ;;  %v11426_v19 = vld [vmem:[#allocation2 + $0xfe0] sm:$0xf0]  ;;  %v13738_v21 = vpop.eup %12317  ;;  %v10405_v48 = vor.u32 %v11987_v52, %v10402_v60  ;;  %12321 = vrsqrt.f32 %v13735_v3  ;;  %vm7836_vm13 = vweird.f32 %v13735_v3 }
 0x589   :  { %v11771_v40 = vld [vmem:[#allocation2 + $0xdc] sm:$0xf0]  ;;  %6739 = vmatpush.bf16.msrb.mxu3 %v11169_v50  ;;  %6714 = vmatpush.bf16.msrb.mxu1 %v10081_v33  ;;  %v10914_v50 = vld [vmem:[#allocation2 + $0xbe0] sm:$0xf0]  ;;  %v7558_v57 = vrot.slane %v7557_v39, 2  ;;  %v13740_v61 = vpop.eup %12319  ;;  %v7811_v53 = vmul.f32 %v13738_v21, %v13721_v5  ;;  %vm7817_vm8 = vweird.f32 %v13738_v21 }
 0x58a   :  { %v10016_v32 = vld [vmem:[#allocation2 + $0x4a0] sm:$0xf]  ;;  %v9505_v34 = vor.u32 %v11771_v40, %v9504_v46  ;;  %v10917_v17 = vor.u32 %v12115_v23, %v10914_v50  ;;  %v11843_v40 = vld [vmem:[#allocation2 + $0x324] sm:$0xf]  ;;  %vm7827_vm10 = vweird.f32 %v13740_v61  ;;  %vm13780_vm11 = vmor %vm7816_vm7, %vm7817_vm8 }
 0x58b   :  { %v11899_v49 = vld [vmem:[#allocation2 + $0x4dc] sm:$0xf0]  ;;  %6727 = vmatpush.bf16.msrb.mxu2 %v10593_v63  ;;  %v7559_v33 = vadd.f32 %v7558_v57, %v7557_v39  ;;  %v11429_v63 = vor.u32 %v12243_v41, %v11426_v19  ;;  %v11827_v4 = vld [vmem:[#allocation2 + $0x2a4] sm:$0xf]  ;;  %vm13789_vm12 = vmor %vm7826_vm9, %vm7827_vm10 }
 0x58c   :  { %v10528_v35 = vld [vmem:[#allocation2 + $0x8a0] sm:$0xf]  ;;  %v10017_v18 = vor.u32 %v11899_v49, %v10016_v32  ;;  %6702 = vmatpush.bf16.msrb.mxu0 %v9505_v34  ;;  %v9826_v32 = vld [vmem:[#allocation2 + $0x360] sm:$0xf0] }
 0x58d   :  { %v12027_v54 = vld [vmem:[#allocation2 + $0x8dc] sm:$0xf0]  ;;  %6740 = vmatpush.bf16.msrb.mxu3 %v11105_v56  ;;  %v10338_v49 = vld [vmem:[#allocation2 + $0x760] sm:$0xf0] }
 0x58e   :  { %v11040_v7 = vld [vmem:[#allocation2 + $0xca0] sm:$0xf]  ;;  %v10529_v30 = vor.u32 %v12027_v54, %v10528_v35  ;;  %6715 = vmatpush.bf16.msrb.mxu1 %v10017_v18  ;;  %v12099_v35 = vld [vmem:[#allocation2 + $0xb24] sm:$0xf]  ;;  %v7821_v54 = vmul.f32 %v13740_v61, %v13725_v58  ;;  %v13751_v47 = vpop.eup %12321 }
 0x58f   :  { %v12155_v28 = vld [vmem:[#allocation2 + $0xcdc] sm:$0xf0]  ;;  %v11362_v56 = vld [vmem:[#allocation2 + $0xf60] sm:$0xf0]  ;;  %v7831_v41 = vmul.f32 %v13751_v47, %v13735_v3  ;;  %vm7837_vm14 = vweird.f32 %v13751_v47 }
 0x590   :  { %v9440_v8 = vld [vmem:[#allocation2 + $0x20] sm:$0xf]  ;;  %v11041_v13 = vor.u32 %v12155_v28, %v11040_v7  ;;  %6728 = vmatpush.bf16.msrb.mxu2 %v10529_v30  ;;  %v7560_v7 = vrot.slane %v7559_v33, 1  ;;  %v9829_v28 = vor.u32 %v11843_v40, %v9826_v32  ;;  %v9762_v34 = vld [vmem:[#allocation2 + $0x2e0] sm:$0xf0]  ;;  %vm13819_vm15 = vmor %vm7836_vm13, %vm7837_vm14 }
 0x591   :  { %v11755_v27 = vld [vmem:[#allocation2 + $0x5c] sm:$0xf0]  ;;  %v10274_v18 = vld [vmem:[#allocation2 + $0x6e0] sm:$0xf0]  ;;  %v9765_v11 = vor.u32 %v11827_v4, %v9762_v34 }
 0x592   :  { %v9952_v16 = vld [vmem:[#allocation2 + $0x420] sm:$0xf]  ;;  %v9441_v55 = vor.u32 %v11755_v27, %v9440_v8  ;;  %6741 = vmatpush.bf16.msrb.mxu3 %v11041_v13  ;;  %v10341_v8 = vor.u32 %v11971_v15, %v10338_v49  ;;  %v10853_v27 = vor.u32 %v12099_v35, %v10850_v12  ;;  %v12083_v30 = vld [vmem:[#allocation2 + $0xaa4] sm:$0xf]  ;;  %v7822_v13 = vmul.f32 %v13740_v61, %v7821_v54  ;;  %v6510_v15 = vpop.f32.mrf.mxu1 }
 0x593   :  { %v11883_v26 = vld [vmem:[#allocation2 + $0x45c] sm:$0xf0]  ;;  %v11298_v44 = vld [vmem:[#allocation2 + $0xee0] sm:$0xf0] }
 0x594   :  { %v10464_v14 = vld [vmem:[#allocation2 + $0x820] sm:$0xf]  ;;  %v9953_v22 = vor.u32 %v11883_v26, %v9952_v16  ;;  %6703 = vmatpush.bf16.msrb.mxu0 %v9441_v55  ;;  %v11955_v16 = vld [vmem:[#allocation2 + $0x6a4] sm:$0xf]  ;;  %v7561_v26 = vadd.f32 %v7560_v7, %v7559_v33  ;;  %v11301_v55 = vor.u32 %v12211_v37, %v11298_v44  ;;  %v7832_v7 = vmul.f32 %v13751_v47, %v7831_v41 }
 0x595   :  { %v12011_v45 = vld [vmem:[#allocation2 + $0x85c] sm:$0xf0]  ;;  %v10277_v2 = vor.u32 %v11955_v16, %v10274_v18  ;;  %v11811_v9 = vld [vmem:[#allocation2 + $0x224] sm:$0xf]  ;;  %v6523_v18 = vpop.f32.mrf.mxu2 }
 0x596   :  { %v10976_v1 = vld [vmem:[#allocation2 + $0xc20] sm:$0xf]  ;;  %v10465_v43 = vor.u32 %v12011_v45, %v10464_v14  ;;  %6716 = vmatpush.bf16.msrb.mxu1 %v9953_v22  ;;  %v11365_v14 = vor.u32 %v12227_v38, %v11362_v56  ;;  %v10786_v45 = vld [vmem:[#allocation2 + $0xae0] sm:$0xf0] }
 0x597   :  { %v12139_v29 = vld [vmem:[#allocation2 + $0xc5c] sm:$0xf0]  ;;  %6704 = vmatmul.bf16.vlgmr.msrb.gmra.mxu0 %v13640_v0  ;;  %v10789_v51 = vor.u32 %v12083_v30, %v10786_v45  ;;  %v9698_v52 = vld [vmem:[#allocation2 + $0x260] sm:$0xf0] }
 0x598   :  { %v10977_v46 = vor.u32 %v12139_v29, %v10976_v1  ;;  %6729 = vmatpush.bf16.msrb.mxu2 %v10465_v43  ;;  %6748 = vmatpush.bf16.msra.mxu0 %v9893_v6  ;;  %v7812_v1 = vmul.f32 %v13738_v21, %v7811_v53  ;;  %v7637_v29 = vmul.f32 %v7561_v26, %v12959_v42  ;;  %v11939_v60 = vld [vmem:[#allocation2 + $0x624] sm:$0xf] }
 0x599   :  { %6717 = vmatmul.bf16.vlgmr.msrb.gmra.mxu1 %v13644_v31  ;;  %v10210_v23 = vld [vmem:[#allocation2 + $0x660] sm:$0xf0] }
 0x59a   :  { %6742 = vmatpush.bf16.msrb.mxu3 %v10977_v46  ;;  %6761 = vmatpush.bf16.msra.mxu1 %v10405_v48  ;;  %v13757_v39 = vsub.f32 %v13729_v24, %v7637_v29  ;;  %v12067_v50 = vld [vmem:[#allocation2 + $0xa24] sm:$0xf]  ;;  %v7813_v43 = vmul.f32 0.5, %v7812_v1  ;;  %v7823_v46 = vmul.f32 0.5, %v7822_v13  ;;  %v9701_v48 = vor.u32 %v11811_v9, %v9698_v52  ;;  %v6536_v29 = vpop.f32.mrf.mxu3 }
 0x59b   :  { %6730 = vmatmul.bf16.vlgmr.msrb.gmra.mxu2 %v13632_v62  ;;  %v10722_v22 = vld [vmem:[#allocation2 + $0xa60] sm:$0xf0]  ;;  %v10213_v40 = vor.u32 %v11939_v60, %v10210_v23  ;;  %v7833_v52 = vmul.f32 0.5, %v7832_v7 }
 0x59c   :  { %6774 = vmatpush.bf16.msra.mxu2 %v10917_v17  ;;  %6749 = vmatpush.bf16.msra.mxu0 %v9829_v28  ;;  %v12195_v19 = vld [vmem:[#allocation2 + $0xe24] sm:$0xf]  ;;  %v7669_v6 = vmul.f32 %v13757_v39, %v13757_v39  ;;  %v6497_v17 = vpop.f32.mrf.mxu0  ;;  %v10725_v32 = vor.u32 %v12067_v50, %v10722_v22  ;;  %v7814_v54 = vsub.f32 1.5, %v7813_v43 }
 0x59d   :  { %6743 = vmatmul.bf16.vlgmr.msrb.gmra.mxu3 %v13636_v59  ;;  %v11234_v57 = vld [vmem:[#allocation2 + $0xe60] sm:$0xf0]  ;;  %v6511_v53 = vadd.f32 %v6510_v15, %v6497_v17 }
 0x59e   :  { %6787 = vmatpush.bf16.msra.mxu3 %v11429_v63  ;;  %6762 = vmatpush.bf16.msra.mxu1 %v10341_v8  ;;  %v11795_v24 = vld [vmem:[#allocation2 + $0x1a4] sm:$0xf]  ;;  %v7700_v35 = vrot.slane %v7669_v6, 4  ;;  %v11237_v12 = vor.u32 %v12195_v19, %v11234_v57 }
 0x59f   :  { %v9634_v33 = vld [vmem:[#allocation2 + $0x1e0] sm:$0xf0]  ;;  %v6524_v13 = vadd.f32 %v6523_v18, %v6511_v53 }
 0x5a0   :  { %6775 = vmatpush.bf16.msra.mxu2 %v10853_v27  ;;  %6750 = vmatpush.bf16.msra.mxu0 %v9765_v11  ;;  %v11923_v63 = vld [vmem:[#allocation2 + $0x5a4] sm:$0xf]  ;;  %v7824_v27 = vsub.f32 1.5, %v7823_v46  ;;  %v7701_v4 = vadd.f32 %v7700_v35, %v7669_v6  ;;  %v9637_v34 = vor.u32 %v11795_v24, %v9634_v33  ;;  %v6512_v24 = vpop.f32.mrf.mxu1  ;;  %v11852_v35 = vld [vmem:[#allocation2 + $0x364] sm:$0xf0] }
 0x5a1   :  { %v10146_v49 = vld [vmem:[#allocation2 + $0x5e0] sm:$0xf0]  ;;  %v13773_v50 = vadd.f32 %v6536_v29, %v6524_v13 }
 0x5a2   :  { %6788 = vmatpush.bf16.msra.mxu3 %v11365_v14  ;;  %6763 = vmatpush.bf16.msra.mxu1 %v10277_v2  ;;  %v12051_v38 = vld [vmem:[#allocation2 + $0x9a4] sm:$0xf]  ;;  %v10149_v26 = vor.u32 %v11923_v63, %v10146_v49  ;;  %v7702_v37 = vrot.slane %v7701_v4, 2  ;;  %v7825_v19 = vmul.f32 %v13740_v61, %v7824_v27  ;;  %v13798_v27 = vld [vmem:[#allocation23] sm:$0xff]  ;;  %v6538_v13 = vpop.f32.mrf.mxu3 }
 0x5a3   :  { %v10658_v56 = vld [vmem:[#allocation2 + $0x9e0] sm:$0xf0] }
 0x5a4   :  { %6776 = vmatpush.bf16.msra.mxu2 %v10789_v51  ;;  %v12179_v28 = vld [vmem:[#allocation2 + $0xda4] sm:$0xf]  ;;  %6751 = vmatpush.bf16.msra.mxu0 %v9701_v48  ;;  %v10661_v14 = vor.u32 %v12051_v38, %v10658_v56  ;;  %v13766_v51 = vmul.f32 %v13738_v21, %v7814_v54  ;;  %v7703_v23 = vadd.f32 %v7702_v37, %v7701_v4  ;;  %v6499_v41 = vpop.f32.mrf.mxu0 }
 0x5a5   :  { %v11170_v8 = vld [vmem:[#allocation2 + $0xde0] sm:$0xf0]  ;;  %v7829_v4 = vsel %vm13789_vm12, %v13740_v61, %v7825_v19  ;;  %v11868_v61 = vld [vmem:[#allocation2 + $0x3e4] sm:$0xf0] }
 0x5a6   :  { %6789 = vmatpush.bf16.msra.mxu3 %v11301_v55  ;;  %v11779_v16 = vld [vmem:[#allocation2 + $0x124] sm:$0xf]  ;;  %6764 = vmatpush.bf16.msra.mxu1 %v10213_v40  ;;  %v11173_v44 = vor.u32 %v12179_v28, %v11170_v8  ;;  %v7819_v56 = vsel %vm13780_vm11, %v13738_v21, %v13766_v51  ;;  %v6525_v21 = vpop.f32.mrf.mxu2 }
 0x5a7   :  { %v9570_v30 = vld [vmem:[#allocation2 + $0x160] sm:$0xf0]  ;;  %v7970_v51 = vmul.f32 %v7819_v56, %v13693_v25  ;;  %v8039_v25 = vperm.slane %v13798_v27, 1  ;;  %v11980_v56 = vld [vmem:[#allocation2 + $0x764] sm:$0xf0] }
 0x5a8   :  { %6777 = vmatpush.bf16.msra.mxu2 %v10725_v32  ;;  %v11907_v45 = vld [vmem:[#allocation2 + $0x524] sm:$0xf]  ;;  %6752 = vmatpush.bf16.msra.mxu0 %v9637_v34  ;;  %v9573_v22 = vor.u32 %v11779_v16, %v9570_v30  ;;  %v7704_v32 = vrot.slane %v7703_v23, 1 }
 0x5a9   :  { %v10082_v1 = vld [vmem:[#allocation2 + $0x560] sm:$0xf0] }
 0x5aa   :  { %6790 = vmatpush.bf16.msra.mxu3 %v11237_v12  ;;  %v12035_v11 = vld [vmem:[#allocation2 + $0x924] sm:$0xf]  ;;  %6765 = vmatpush.bf16.msra.mxu1 %v10149_v26  ;;  %v10085_v57 = vor.u32 %v11907_v45, %v10082_v1  ;;  %v7834_v12 = vsub.f32 1.5, %v7833_v52  ;;  %v7705_v54 = vadd.f32 %v7704_v32, %v7703_v23  ;;  %v7971_v52 = vmul.f32 %v7829_v4, %v13700_v10 }
 0x5ab   :  { %v10594_v2 = vld [vmem:[#allocation2 + $0x960] sm:$0xf0] }
 0x5ac   :  { %v13769_v9 = vld [vmem:[#allocation21] sm:$0xff]  ;;  %6778 = vmatpush.bf16.msra.mxu2 %v10661_v14  ;;  %v10597_v46 = vor.u32 %v12035_v11, %v10594_v2  ;;  %6753 = vmatpush.bf16.msra.mxu0 %v9573_v22  ;;  %v7781_v30 = vmul.f32 %v7705_v54, %v12959_v42  ;;  %v7835_v29 = vmul.f32 %v13751_v47, %v7834_v12  ;;  %v10408_v11 = vld [vmem:[#allocation2 + $0x7a8] sm:$0xf] }
 0x5ad   :  { %v12163_v60 = vld [vmem:[#allocation2 + $0xd24] sm:$0xf]  ;;  %v7988_v49 = vperm.slane %v13769_v9, 0  ;;  %v7989_v5 = vperm.slane %v13769_v9, 1  ;;  %v11996_v2 = vld [vmem:[#allocation2 + $0x7e4] sm:$0xf0] }
 0x5ae   :  { %v11106_v55 = vld [vmem:[#allocation2 + $0xd60] sm:$0xf0]  ;;  %6791 = vmatpush.bf16.msra.mxu3 %v11173_v44  ;;  %6766 = vmatpush.bf16.msra.mxu1 %v10085_v57  ;;  %v9896_v44 = vld [vmem:[#allocation2 + $0x3a8] sm:$0xf]  ;;  %v7839_v32 = vsel %vm13819_vm15, %v13751_v47, %v7835_v29  ;;  %v7990_v4 = vperm.slane %v13769_v9, 2 }
 0x5af   :  { %v11763_v43 = vld [vmem:[#allocation2 + $0xa4] sm:$0xf]  ;;  %v11109_v15 = vor.u32 %v12163_v60, %v11106_v55  ;;  %v13809_v60 = vadd.f32 1e-05, %v7781_v30  ;;  %v13811_v55 = vpop.permute.xlu0 %7263  ;;  %v10920_v22 = vld [vmem:[#allocation2 + $0xba8] sm:$0xf]  ;;  %v9897_v40 = vor.u32 %v11868_v61, %v9896_v44 }
 0x5b0   :  { %v9506_v6 = vld [vmem:[#allocation2 + $0xe0] sm:$0xf0]  ;;  %6779 = vmatpush.bf16.msra.mxu2 %v10597_v46  ;;  %v11432_v57 = vld [vmem:[#allocation2 + $0xfa8] sm:$0xf]  ;;  %v7470_v3 = vmul.f32 %v13811_v55, %v13773_v50 }
 0x5b1   :  { %v11891_v48 = vld [vmem:[#allocation2 + $0x4a4] sm:$0xf]  ;;  %v9509_v7 = vor.u32 %v11763_v43, %v9506_v6  ;;  %v12124_v43 = vld [vmem:[#allocation2 + $0xbe4] sm:$0xf0]  ;;  %v8038_v6 = vperm.slane %v13798_v27, 0  ;;  %12323 = vrsqrt.f32 %v13809_v60  ;;  %vm7846_vm1 = vweird.f32 %v13809_v60 }
 0x5b2   :  { %v10018_v17 = vld [vmem:[#allocation2 + $0x4e0] sm:$0xf0]  ;;  %6792 = vmatpush.bf16.msra.mxu3 %v11109_v15  ;;  %v12252_v46 = vld [vmem:[#allocation2 + $0xfe4] sm:$0xf0]  ;;  %v10409_v15 = vor.u32 %v11996_v2, %v10408_v11 }
 0x5b3   :  { %v12019_v33 = vld [vmem:[#allocation2 + $0x8a4] sm:$0xf]  ;;  %v10021_v34 = vor.u32 %v11891_v48, %v10018_v17  ;;  %6754 = vmatpush.bf16.msra.mxu0 %v9509_v7  ;;  %v13824_v48 = vld [vmem:[#allocation20] sm:$0xff]  ;;  %v10344_v12 = vld [vmem:[#allocation2 + $0x728] sm:$0xf] }
 0x5b4   :  { %v10530_v63 = vld [vmem:[#allocation2 + $0x8e0] sm:$0xf0]  ;;  %v7490_v17 = vperm.slane %v13824_v48, 4  ;;  %v10856_v54 = vld [vmem:[#allocation2 + $0xb28] sm:$0xf] }
 0x5b5   :  { %v12147_v53 = vld [vmem:[#allocation2 + $0xca4] sm:$0xf]  ;;  %v10533_v16 = vor.u32 %v12019_v33, %v10530_v63  ;;  %6767 = vmatpush.bf16.msra.mxu1 %v10021_v34  ;;  %v10921_v33 = vor.u32 %v12124_v43, %v10920_v22  ;;  %v9832_v63 = vld [vmem:[#allocation2 + $0x328] sm:$0xf] }
 0x5b6   :  { %v11042_v38 = vld [vmem:[#allocation2 + $0xce0] sm:$0xf0]  ;;  %v12108_v7 = vld [vmem:[#allocation2 + $0xb64] sm:$0xf0]  ;;  %v13839_v34 = vadd.f32 %v7490_v17, %v7470_v3 }
 0x5b7   :  { %v11747_v28 = vld [vmem:[#allocation2 + $0x24] sm:$0xf]  ;;  %v11045_v45 = vor.u32 %v12147_v53, %v11042_v38  ;;  %6780 = vmatpush.bf16.msra.mxu2 %v10533_v16  ;;  %v8021_v53 = vmul.f32 %v7989_v5, %v7971_v52  ;;  %v11433_v38 = vor.u32 %v12252_v46, %v11432_v57  ;;  %v11368_v47 = vld [vmem:[#allocation2 + $0xf28] sm:$0xf]  ;;  %v8040_v5 = vperm.slane %v13798_v27, 2  ;;  %v13843_v30 = vpop.eup %12323 }
 0x5b8   :  { %v9442_v8 = vld [vmem:[#allocation2 + $0x60] sm:$0xf0]  ;;  %v12236_v50 = vld [vmem:[#allocation2 + $0xf64] sm:$0xf0]  ;;  %v10345_v16 = vor.u32 %v11980_v56, %v10344_v12  ;;  %v7841_v29 = vmul.f32 %v13843_v30, %v13809_v60  ;;  %v6549_v12 = vpop.f32.mrf.mxu0  ;;  %vm7847_vm3 = vweird.f32 %v13843_v30  ;;  %v6575_v60 = vpop.f32.mrf.mxu2 }
 0x5b9   :  { %v11875_v58 = vld [vmem:[#allocation2 + $0x424] sm:$0xf]  ;;  %v9445_v23 = vor.u32 %v11747_v28, %v9442_v8  ;;  %6793 = vmatpush.bf16.msra.mxu3 %v11045_v45  ;;  %v8020_v28 = vmul.f32 %v7988_v49, %v7970_v51  ;;  %v7972_v8 = vmul.f32 %v7839_v32, %v13716_v36  ;;  %v9768_v49 = vld [vmem:[#allocation2 + $0x2a8] sm:$0xf]  ;;  %v11369_v36 = vor.u32 %v12236_v50, %v11368_v47  ;;  %vm13872_vm5 = vmor %vm7846_vm1, %vm7847_vm3 }
 0x5ba   :  { %v9954_v26 = vld [vmem:[#allocation2 + $0x460] sm:$0xf0]  ;;  %v11964_v45 = vld [vmem:[#allocation2 + $0x6e4] sm:$0xf0]  ;;  %v8071_v13 = vadd.f32 %v8039_v25, %v8021_v53 }
 0x5bb   :  { %v12003_v14 = vld [vmem:[#allocation2 + $0x824] sm:$0xf]  ;;  %v9957_v41 = vor.u32 %v11875_v58, %v9954_v26  ;;  %6755 = vmatpush.bf16.msra.mxu0 %v9445_v23  ;;  %v9833_v58 = vor.u32 %v11852_v35, %v9832_v63  ;;  %v10857_v26 = vor.u32 %v12108_v7, %v10856_v54  ;;  %v13846_v44 = vadd.f32 %v8038_v6, %v8020_v28  ;;  %v11304_v61 = vld [vmem:[#allocation2 + $0xea8] sm:$0xf]  ;;  %v6562_v28 = vpop.f32.mrf.mxu1 }
 0x5bc   :  { %v10466_v18 = vld [vmem:[#allocation2 + $0x860] sm:$0xf0]  ;;  %v12220_v11 = vld [vmem:[#allocation2 + $0xee4] sm:$0xf0]  ;;  %v8022_v43 = vmul.f32 %v7990_v4, %v7972_v8  ;;  %vm8087_vm0 = vcmp.ge.f32.partialorder %v8071_v13, 0.0 }
 0x5bd   :  { %v12131_v1 = vld [vmem:[#allocation2 + $0xc24] sm:$0xf]  ;;  %v10469_v19 = vor.u32 %v12003_v14, %v10466_v18  ;;  %6768 = vmatpush.bf16.msra.mxu1 %v9957_v41  ;;  %v11836_v14 = vld [vmem:[#allocation2 + $0x2e4] sm:$0xf0]  ;;  %v7842_v41 = vmul.f32 %v13843_v30, %v7841_v29  ;;  %v11305_v10 = vor.u32 %v12220_v11, %v11304_v61  ;;  %v13856_v17 = vmul.f32 0.2, %v13846_v44 }
 0x5be   :  { %v10978_v37 = vld [vmem:[#allocation2 + $0xc60] sm:$0xf0]  ;;  %v10280_v18 = vld [vmem:[#allocation2 + $0x6a8] sm:$0xf]  ;;  %6756 = vmatmul.bf16.vlgmr.msra.gmra.mxu0 %v13640_v0  ;;  %v9769_v51 = vor.u32 %v11836_v14, %v9768_v49  ;;  %v8072_v56 = vadd.f32 %v8040_v5, %v8022_v43  ;;  %vm8086_vm4 = vcmp.ge.f32.partialorder %v13846_v44, 0.0  ;;  %v7991_v61 = vperm.slane %v13769_v9, 3 }
 0x5bf   :  { %v10981_v24 = vor.u32 %v12131_v1, %v10978_v37  ;;  %6781 = vmatpush.bf16.msra.mxu2 %v10469_v19  ;;  %6800 = vmatpush.bf16.msrb.mxu0 %v9897_v40  ;;  %v13841_v21 = vld [vmem:[#allocation24] sm:$0xff]  ;;  %v10792_v1 = vld [vmem:[#allocation2 + $0xaa8] sm:$0xf]  ;;  %v7562_v19 = vrot.slane %v13839_v34, 4  ;;  %v10281_v57 = vor.u32 %v11964_v45, %v10280_v18  ;;  %v7843_v32 = vmul.f32 0.5, %v7842_v41 }
 0x5c0   :  { %v12092_v37 = vld [vmem:[#allocation2 + $0xae4] sm:$0xf0]  ;;  %6769 = vmatmul.bf16.vlgmr.msra.gmra.mxu1 %v13644_v31  ;;  %v8138_v40 = vperm.slane %v13841_v21, 0  ;;  %v8139_v5 = vperm.slane %v13841_v21, 1  ;;  %v8104_v11 = vmul.f32 0.2, %v8072_v56 }
 0x5c1   :  { %6794 = vmatpush.bf16.msra.mxu3 %v10981_v24  ;;  %6813 = vmatpush.bf16.msrb.mxu1 %v10409_v15  ;;  %v9704_v2 = vld [vmem:[#allocation2 + $0x228] sm:$0xf]  ;;  %v10793_v46 = vor.u32 %v12092_v37, %v10792_v1  ;;  %v8103_v24 = vmul.f32 0.2, %v8071_v13  ;;  %v7844_v54 = vsub.f32 1.5, %v7843_v32  ;;  %v7563_v7 = vadd.f32 %v7562_v19, %v13839_v34  ;;  %v6588_v19 = vpop.f32.mrf.mxu3 }
 0x5c2   :  { %6782 = vmatmul.bf16.vlgmr.msra.gmra.mxu2 %v13632_v62  ;;  %v11820_v52 = vld [vmem:[#allocation2 + $0x264] sm:$0xf0]  ;;  %vm8088_vm6 = vcmp.ge.f32.partialorder %v8072_v56, 0.0 }
 0x5c3   :  { %6826 = vmatpush.bf16.msrb.mxu2 %v10921_v33  ;;  %6801 = vmatpush.bf16.msrb.mxu0 %v9833_v58  ;;  %v10216_v23 = vld [vmem:[#allocation2 + $0x628] sm:$0xf]  ;;  %v9705_v33 = vor.u32 %v11820_v52, %v9704_v2  ;;  %v6563_v58 = vadd.f32 %v6562_v28, %v6549_v12  ;;  %v6564_v28 = vpop.f32.mrf.mxu1 }
 0x5c4   :  { %6795 = vmatmul.bf16.vlgmr.msra.gmra.mxu3 %v13636_v59  ;;  %v11948_v22 = vld [vmem:[#allocation2 + $0x664] sm:$0xf0] }
 0x5c5   :  { %6839 = vmatpush.bf16.msrb.mxu3 %v11433_v38  ;;  %6814 = vmatpush.bf16.msrb.mxu1 %v10345_v16  ;;  %v10728_v6 = vld [vmem:[#allocation2 + $0xa28] sm:$0xf]  ;;  %v10217_v63 = vor.u32 %v11948_v22, %v10216_v23  ;;  %v6576_v41 = vadd.f32 %v6575_v60, %v6563_v58 }
 0x5c6   :  { %v12076_v25 = vld [vmem:[#allocation2 + $0xa64] sm:$0xf0] }
 0x5c7   :  { %6827 = vmatpush.bf16.msrb.mxu2 %v10857_v26  ;;  %v11240_v3 = vld [vmem:[#allocation2 + $0xe28] sm:$0xf]  ;;  %6802 = vmatpush.bf16.msrb.mxu0 %v9769_v51  ;;  %v10729_v35 = vor.u32 %v12076_v25, %v10728_v6  ;;  %v7845_v26 = vmul.f32 %v13843_v30, %v7844_v54  ;;  %v6589_v32 = vadd.f32 %v6588_v19, %v6576_v41  ;;  %v9898_v41 = vld [vmem:[#allocation2 + $0x3e8] sm:$0xf0] }
 0x5c8   :  { %v12204_v15 = vld [vmem:[#allocation2 + $0xe64] sm:$0xf0]  ;;  %v11988_v19 = vld [vmem:[#allocation2 + $0x7ac] sm:$0xf] }
 0x5c9   :  { %6840 = vmatpush.bf16.msrb.mxu3 %v11369_v36  ;;  %v9640_v53 = vld [vmem:[#allocation2 + $0x1a8] sm:$0xf]  ;;  %6815 = vmatpush.bf16.msrb.mxu1 %v10281_v57  ;;  %v11241_v8 = vor.u32 %v12204_v15, %v11240_v3  ;;  %v8119_v36 = vsel %vm8087_vm0, %v8071_v13, %v8103_v24  ;;  %v7849_v2 = vsel %vm13872_vm5, %v13843_v30, %v7845_v26  ;;  %v7564_v13 = vrot.slane %v7563_v7, 2 }
 0x5ca   :  { %v11804_v38 = vld [vmem:[#allocation2 + $0x1e4] sm:$0xf0]  ;;  %v7973_v22 = vmul.f32 %v7849_v2, %v13757_v39  ;;  %v8140_v24 = vperm.slane %v13841_v21, 2  ;;  %v8171_v39 = vmul.f32 %v8139_v5, %v8119_v36  ;;  %v7491_v3 = vperm.slane %v13824_v48, 5 }
 0x5cb   :  { %6828 = vmatpush.bf16.msrb.mxu2 %v10793_v46  ;;  %v10152_v47 = vld [vmem:[#allocation2 + $0x5a8] sm:$0xf]  ;;  %6803 = vmatpush.bf16.msrb.mxu0 %v9705_v33  ;;  %v9641_v1 = vor.u32 %v11804_v38, %v9640_v53  ;;  %v8041_v46 = vperm.slane %v13798_v27, 3  ;;  %v8120_v27 = vsel %vm8088_vm6, %v8072_v56, %v8104_v11  ;;  %v7565_v12 = vadd.f32 %v7564_v13, %v7563_v7 }
 0x5cc   :  { %v11932_v50 = vld [vmem:[#allocation2 + $0x5e4] sm:$0xf0]  ;;  %v8141_v7 = vperm.slane %v13841_v21, 3 }
 0x5cd   :  { %6841 = vmatpush.bf16.msrb.mxu3 %v11305_v10  ;;  %v10664_v4 = vld [vmem:[#allocation2 + $0x9a8] sm:$0xf]  ;;  %v10153_v37 = vor.u32 %v11932_v50, %v10152_v47  ;;  %6816 = vmatpush.bf16.msrb.mxu1 %v10217_v63  ;;  %v8118_v10 = vsel %vm8086_vm4, %v13846_v44, %v13856_v17  ;;  %v8023_v63 = vmul.f32 %v7991_v61, %v7973_v22  ;;  %v6590_v22 = vpop.f32.mrf.mxu3 }
 0x5ce   :  { %v12060_v16 = vld [vmem:[#allocation2 + $0x9e4] sm:$0xf0]  ;;  %v7471_v47 = vmul.f32 %v13811_v55, %v6589_v32 }
 0x5cf   :  { %v11176_v49 = vld [vmem:[#allocation2 + $0xda8] sm:$0xf]  ;;  %6829 = vmatpush.bf16.msrb.mxu2 %v10729_v35  ;;  %v10665_v51 = vor.u32 %v12060_v16, %v10664_v4  ;;  %6804 = vmatpush.bf16.msrb.mxu0 %v9641_v1  ;;  %v6551_v35 = vpop.f32.mrf.mxu0  ;;  %v8073_v16 = vadd.f32 %v8041_v46, %v8023_v63 }
 0x5d0   :  { %v12188_v14 = vld [vmem:[#allocation2 + $0xde4] sm:$0xf0] }
 0x5d1   :  { %v13865_v18 = vld [vmem:[#allocation2 + $0x128] sm:$0xf]  ;;  %6842 = vmatpush.bf16.msrb.mxu3 %v11241_v8  ;;  %v11177_v43 = vor.u32 %v12188_v14, %v11176_v49  ;;  %6817 = vmatpush.bf16.msrb.mxu1 %v10153_v37  ;;  %v8170_v49 = vmul.f32 %v8138_v40, %v8118_v10  ;;  %v8172_v14 = vmul.f32 %v8140_v24, %v8120_v27  ;;  %vm8089_vm7 = vcmp.ge.f32.partialorder %v8073_v16, 0.0  ;;  %v12116_v10 = vld [vmem:[#allocation2 + $0xbac] sm:$0xf] }
 0x5d2   :  { %v11788_v29 = vld [vmem:[#allocation2 + $0x164] sm:$0xf0]  ;;  %v8105_v1 = vmul.f32 0.2, %v8073_v16  ;;  %v7566_v37 = vrot.slane %v7565_v12, 1 }
 0x5d3   :  { %v10088_v52 = vld [vmem:[#allocation2 + $0x528] sm:$0xf]  ;;  %v9577_v30 = vor.u32 %v11788_v29, %v13865_v18  ;;  %6830 = vmatpush.bf16.msrb.mxu2 %v10665_v51  ;;  %v13894_v18 = vadd.f32 %v7491_v3, %v7471_v47  ;;  %v8186_v13 = vadd.f32 %v8171_v39, %v8170_v49  ;;  %v6577_v51 = vpop.f32.mrf.mxu2  ;;  %v10922_v24 = vld [vmem:[#allocation2 + $0xbe8] sm:$0xf0] }
 0x5d4   :  { %v11916_v23 = vld [vmem:[#allocation2 + $0x564] sm:$0xf0]  ;;  %v7567_v39 = vadd.f32 %v7566_v37, %v7565_v12  ;;  %v12244_v3 = vld [vmem:[#allocation2 + $0xfac] sm:$0xf] }
 0x5d5   :  { %v10600_v9 = vld [vmem:[#allocation2 + $0x928] sm:$0xf]  ;;  %v10089_v53 = vor.u32 %v11916_v23, %v10088_v52  ;;  %6843 = vmatpush.bf16.msrb.mxu3 %v11177_v43  ;;  %6805 = vmatpush.bf16.msrb.mxu0 %v9577_v30  ;;  %v7568_v21 = vrot.slane %v13894_v18, 4  ;;  %v8121_v23 = vsel %vm8089_vm7, %v8073_v16, %v8105_v1  ;;  %v11860_v43 = vld [vmem:[#allocation2 + $0x3ac] sm:$0xf] }
 0x5d6   :  { %v12044_v57 = vld [vmem:[#allocation2 + $0x964] sm:$0xf0]  ;;  %v9901_v35 = vor.u32 %v11860_v43, %v9898_v41  ;;  %v10346_v12 = vld [vmem:[#allocation2 + $0x768] sm:$0xf0] }
 0x5d7   :  { %v11112_v6 = vld [vmem:[#allocation2 + $0xd28] sm:$0xf]  ;;  %v10601_v38 = vor.u32 %v12044_v57, %v10600_v9  ;;  %6818 = vmatpush.bf16.msrb.mxu1 %v10089_v53  ;;  %v8173_v9 = vmul.f32 %v8141_v7, %v8121_v23  ;;  %v8187_v57 = vadd.f32 %v8186_v13, %v8172_v14  ;;  %v7569_v46 = vadd.f32 %v7568_v21, %v13894_v18  ;;  %v11370_v16 = vld [vmem:[#allocation2 + $0xf68] sm:$0xf0] }
 0x5d8   :  { %v12172_v25 = vld [vmem:[#allocation2 + $0xd64] sm:$0xf0]  ;;  %v11828_v49 = vld [vmem:[#allocation2 + $0x2ac] sm:$0xf] }
 0x5d9   :  { %v9512_v15 = vld [vmem:[#allocation2 + $0xa8] sm:$0xf]  ;;  %v11113_v50 = vor.u32 %v12172_v25, %v11112_v6  ;;  %6831 = vmatpush.bf16.msrb.mxu2 %v10601_v38  ;;  %v10410_v25 = vld [vmem:[#allocation2 + $0x7e8] sm:$0xf0]  ;;  %v7570_v63 = vrot.slane %v7569_v46, 2  ;;  %v10925_v38 = vor.u32 %v12116_v10, %v10922_v24 }
 0x5da   :  { %v11772_v33 = vld [vmem:[#allocation2 + $0xe4] sm:$0xf0]  ;;  %v10413_v53 = vor.u32 %v11988_v19, %v10410_v25  ;;  %v9770_v14 = vld [vmem:[#allocation2 + $0x2e8] sm:$0xf0] }
 0x5db   :  { %v10024_v54 = vld [vmem:[#allocation2 + $0x4a8] sm:$0xf]  ;;  %v9513_v36 = vor.u32 %v11772_v33, %v9512_v15  ;;  %6844 = vmatpush.bf16.msrb.mxu3 %v11113_v50  ;;  %v11434_v15 = vld [vmem:[#allocation2 + $0xfe8] sm:$0xf0]  ;;  %v8188_v33 = vadd.f32 %v8187_v57, %v8173_v9  ;;  %v7571_v28 = vadd.f32 %v7570_v63, %v7569_v46  ;;  %v9773_v51 = vor.u32 %v11828_v49, %v9770_v14 }
 0x5dc   :  { %v11900_v44 = vld [vmem:[#allocation2 + $0x4e4] sm:$0xf0]  ;;  %v11437_v47 = vor.u32 %v12244_v3, %v11434_v15  ;;  %v12100_v50 = vld [vmem:[#allocation2 + $0xb2c] sm:$0xf] }
 0x5dd   :  { %v10536_v17 = vld [vmem:[#allocation2 + $0x8a8] sm:$0xf]  ;;  %v10025_v29 = vor.u32 %v11900_v44, %v10024_v54  ;;  %6806 = vmatpush.bf16.msrb.mxu0 %v9513_v36  ;;  %v11844_v54 = vld [vmem:[#allocation2 + $0x32c] sm:$0xf]  ;;  %8189 = vadd.xlane.f32.xlu2 %v8188_v33 }
 0x5de   :  { %v12028_v8 = vld [vmem:[#allocation2 + $0x8e4] sm:$0xf0]  ;;  %v9834_v44 = vld [vmem:[#allocation2 + $0x368] sm:$0xf0] }
 0x5df   :  { %v11048_v58 = vld [vmem:[#allocation2 + $0xca8] sm:$0xf]  ;;  %v10537_v61 = vor.u32 %v12028_v8, %v10536_v17  ;;  %6819 = vmatpush.bf16.msrb.mxu1 %v10025_v29  ;;  %v11972_v17 = vld [vmem:[#allocation2 + $0x72c] sm:$0xf] }
 0x5e0   :  { %v12156_v4 = vld [vmem:[#allocation2 + $0xce4] sm:$0xf0]  ;;  %v10858_v8 = vld [vmem:[#allocation2 + $0xb68] sm:$0xf0] }
 0x5e1   :  { %v9448_v5 = vld [vmem:[#allocation2 + $0x28] sm:$0xf]  ;;  %v11049_v40 = vor.u32 %v12156_v4, %v11048_v58  ;;  %6832 = vmatpush.bf16.msrb.mxu2 %v10537_v61  ;;  %v7638_v58 = vmul.f32 %v7567_v39, %v12959_v42  ;;  %v12228_v4 = vld [vmem:[#allocation2 + $0xf2c] sm:$0xf]  ;;  %v10861_v7 = vor.u32 %v12100_v50, %v10858_v8  ;;  %v6614_v39 = vpop.f32.mrf.mxu1 }
 0x5e2   :  { %v11756_v56 = vld [vmem:[#allocation2 + $0x64] sm:$0xf0]  ;;  %v11956_v36 = vld [vmem:[#allocation2 + $0x6ac] sm:$0xf]  ;;  %v11373_v1 = vor.u32 %v12228_v4, %v11370_v16 }
 0x5e3   :  { %v9960_v26 = vld [vmem:[#allocation2 + $0x428] sm:$0xf]  ;;  %v9449_v30 = vor.u32 %v11756_v56, %v9448_v5  ;;  %6845 = vmatpush.bf16.msrb.mxu3 %v11049_v40  ;;  %v7572_v5 = vrot.slane %v7571_v28, 1  ;;  %v9837_v56 = vor.u32 %v11844_v54, %v9834_v44  ;;  %v10282_v37 = vld [vmem:[#allocation2 + $0x6e8] sm:$0xf0] }
 0x5e4   :  { %v11884_v45 = vld [vmem:[#allocation2 + $0x464] sm:$0xf0]  ;;  %v12084_v29 = vld [vmem:[#allocation2 + $0xaac] sm:$0xf]  ;;  %v10285_v40 = vor.u32 %v11956_v36, %v10282_v37 }
 0x5e5   :  { %v10472_v11 = vld [vmem:[#allocation2 + $0x828] sm:$0xf]  ;;  %v9961_v6 = vor.u32 %v11884_v45, %v9960_v26  ;;  %6807 = vmatpush.bf16.msrb.mxu0 %v9449_v30  ;;  %v10349_v26 = vor.u32 %v11972_v17, %v10346_v12  ;;  %v7573_v45 = vadd.f32 %v7572_v5, %v7571_v28  ;;  %v10794_v61 = vld [vmem:[#allocation2 + $0xae8] sm:$0xf0]  ;;  %v6627_v12 = vpop.f32.mrf.mxu2  ;;  %v6640_v5 = vpop.f32.mrf.mxu3 }
 0x5e6   :  { %v12012_v2 = vld [vmem:[#allocation2 + $0x864] sm:$0xf0]  ;;  %v11306_v13 = vld [vmem:[#allocation2 + $0xee8] sm:$0xf0] }
 0x5e7   :  { %v10984_v60 = vld [vmem:[#allocation2 + $0xc28] sm:$0xf]  ;;  %v10473_v32 = vor.u32 %v12012_v2, %v10472_v11  ;;  %6820 = vmatpush.bf16.msrb.mxu1 %v9961_v6  ;;  %v13902_v11 = vsub.f32 %v13839_v34, %v7638_v58  ;;  %v12212_v2 = vld [vmem:[#allocation2 + $0xeac] sm:$0xf]  ;;  %v7639_v21 = vmul.f32 %v7573_v45, %v12959_v42  ;;  %v6601_v6 = vpop.f32.mrf.mxu0 }
 0x5e8   :  { %v12140_v52 = vld [vmem:[#allocation2 + $0xc64] sm:$0xf0]  ;;  %6808 = vmatmul.bf16.vlgmr.msrb.gmra.mxu0 %v13640_v0  ;;  %v9706_v23 = vld [vmem:[#allocation2 + $0x268] sm:$0xf0]  ;;  %v11309_v22 = vor.u32 %v12212_v2, %v11306_v13  ;;  %v6615_v63 = vadd.f32 %v6614_v39, %v6601_v6 }
 0x5e9   :  { %v10985_v27 = vor.u32 %v12140_v52, %v10984_v60  ;;  %6833 = vmatpush.bf16.msrb.mxu2 %v10473_v32  ;;  %6852 = vmatpush.bf16.msra.mxu0 %v9901_v35  ;;  %v10797_v60 = vor.u32 %v12084_v29, %v10794_v61  ;;  %v11812_v52 = vld [vmem:[#allocation2 + $0x22c] sm:$0xf]  ;;  %v7670_v9 = vmul.f32 %v13902_v11, %v13902_v11 }
 0x5ea   :  { %6821 = vmatmul.bf16.vlgmr.msrb.gmra.mxu1 %v13644_v31  ;;  %v11940_v34 = vld [vmem:[#allocation2 + $0x62c] sm:$0xf]  ;;  %v9709_v30 = vor.u32 %v11812_v52, %v9706_v23  ;;  %v13911_v25 = vsub.f32 %v13894_v18, %v7639_v21  ;;  %v6628_v16 = vadd.f32 %v6627_v12, %v6615_v63  ;;  %v11997_v12 = vld [vmem:[#allocation2 + $0x7ec] sm:$0xf0] }
 0x5eb   :  { %6846 = vmatpush.bf16.msrb.mxu3 %v10985_v27  ;;  %6865 = vmatpush.bf16.msra.mxu1 %v10413_v53  ;;  %v10218_v43 = vld [vmem:[#allocation2 + $0x668] sm:$0xf0] }
 0x5ec   :  { %6834 = vmatmul.bf16.vlgmr.msrb.gmra.mxu2 %v13632_v62  ;;  %v12068_v41 = vld [vmem:[#allocation2 + $0xa2c] sm:$0xf]  ;;  %v10221_v10 = vor.u32 %v11940_v34, %v10218_v43  ;;  %v7671_v17 = vmul.f32 %v13911_v25, %v13911_v25  ;;  %v6641_v45 = vadd.f32 %v6640_v5, %v6628_v16 }
 0x5ed   :  { %6878 = vmatpush.bf16.msra.mxu2 %v10925_v38  ;;  %6853 = vmatpush.bf16.msra.mxu0 %v9837_v56  ;;  %v10730_v19 = vld [vmem:[#allocation2 + $0xa68] sm:$0xf0]  ;;  %v7706_v38 = vrot.slane %v7670_v9, 4  ;;  %v6629_v63 = vpop.f32.mrf.mxu2 }
 0x5ee   :  { %6847 = vmatmul.bf16.vlgmr.msrb.gmra.mxu3 %v13636_v59  ;;  %v12196_v57 = vld [vmem:[#allocation2 + $0xe2c] sm:$0xf]  ;;  %v10733_v24 = vor.u32 %v12068_v41, %v10730_v19  ;;  %v7712_v2 = vrot.slane %v7671_v17, 4  ;;  %v7472_v52 = vmul.f32 %v13811_v55, %v6641_v45 }
 0x5ef   :  { %6891 = vmatpush.bf16.msra.mxu3 %v11437_v47  ;;  %6866 = vmatpush.bf16.msra.mxu1 %v10349_v26  ;;  %v11242_v46 = vld [vmem:[#allocation2 + $0xe68] sm:$0xf0]  ;;  %v7707_v49 = vadd.f32 %v7706_v38, %v7670_v9  ;;  %v6603_v61 = vpop.f32.mrf.mxu0 }
 0x5f0   :  { %v11796_v32 = vld [vmem:[#allocation2 + $0x1ac] sm:$0xf]  ;;  %v11245_v33 = vor.u32 %v12196_v57, %v11242_v46  ;;  %v10352_v61 = vld [vmem:[#allocation2 + $0x730] sm:$0xf] }
 0x5f1   :  { %6879 = vmatpush.bf16.msra.mxu2 %v10861_v7  ;;  %6854 = vmatpush.bf16.msra.mxu0 %v9773_v51  ;;  %v9642_v3 = vld [vmem:[#allocation2 + $0x1e8] sm:$0xf0]  ;;  %v7708_v41 = vrot.slane %v7707_v49, 2 }
 0x5f2   :  { %v11924_v15 = vld [vmem:[#allocation2 + $0x5ac] sm:$0xf]  ;;  %v9645_v18 = vor.u32 %v11796_v32, %v9642_v3 }
 0x5f3   :  { %6892 = vmatpush.bf16.msra.mxu3 %v11373_v1  ;;  %6867 = vmatpush.bf16.msra.mxu1 %v10285_v40  ;;  %v10154_v27 = vld [vmem:[#allocation2 + $0x5e8] sm:$0xf0]  ;;  %v7492_v1 = vperm.slane %v13824_v48, 6 }
 0x5f4   :  { %v12052_v35 = vld [vmem:[#allocation2 + $0x9ac] sm:$0xf]  ;;  %v10157_v28 = vor.u32 %v11924_v15, %v10154_v27 }
 0x5f5   :  { %6880 = vmatpush.bf16.msra.mxu2 %v10797_v60  ;;  %v10666_v53 = vld [vmem:[#allocation2 + $0x9e8] sm:$0xf0]  ;;  %6855 = vmatpush.bf16.msra.mxu0 %v9709_v30  ;;  %v6616_v60 = vpop.f32.mrf.mxu1  ;;  %v13917_v57 = vadd.f32 %v7492_v1, %v7472_v52  ;;  %v11376_v52 = vld [vmem:[#allocation2 + $0xf30] sm:$0xf] }
 0x5f6   :  { %v12180_v54 = vld [vmem:[#allocation2 + $0xdac] sm:$0xf]  ;;  %v10669_v47 = vor.u32 %v12052_v35, %v10666_v53 }
 0x5f7   :  { %6893 = vmatpush.bf16.msra.mxu3 %v11309_v22  ;;  %v11178_v44 = vld [vmem:[#allocation2 + $0xde8] sm:$0xf0]  ;;  %6868 = vmatpush.bf16.msra.mxu1 %v10221_v10  ;;  %v7574_v27 = vrot.slane %v13917_v57, 4 }
 0x5f8   :  { %v11780_v50 = vld [vmem:[#allocation2 + $0x12c] sm:$0xf]  ;;  %v11181_v4 = vor.u32 %v12180_v54, %v11178_v44  ;;  %v6642_v54 = vpop.f32.mrf.mxu3  ;;  %v9904_v44 = vld [vmem:[#allocation2 + $0x3b0] sm:$0xf] }
 0x5f9   :  { %6881 = vmatpush.bf16.msra.mxu2 %v10733_v24  ;;  %v9578_v8 = vld [vmem:[#allocation2 + $0x168] sm:$0xf0]  ;;  %6856 = vmatpush.bf16.msra.mxu0 %v9645_v18  ;;  %v7713_v24 = vadd.f32 %v7712_v2, %v7671_v17  ;;  %v11869_v18 = vld [vmem:[#allocation2 + $0x3ec] sm:$0xf0]  ;;  %v7575_v17 = vadd.f32 %v7574_v27, %v13917_v57 }
 0x5fa   :  { %v11908_v58 = vld [vmem:[#allocation2 + $0x52c] sm:$0xf]  ;;  %v9581_v37 = vor.u32 %v11780_v50, %v9578_v8  ;;  %v10928_v50 = vld [vmem:[#allocation2 + $0xbb0] sm:$0xf] }
 0x5fb   :  { %6894 = vmatpush.bf16.msra.mxu3 %v11245_v33  ;;  %v10090_v56 = vld [vmem:[#allocation2 + $0x568] sm:$0xf0]  ;;  %6869 = vmatpush.bf16.msra.mxu1 %v10157_v28  ;;  %v10416_v28 = vld [vmem:[#allocation2 + $0x7b0] sm:$0xf] }
 0x5fc   :  { %v12036_v26 = vld [vmem:[#allocation2 + $0x92c] sm:$0xf]  ;;  %v10093_v13 = vor.u32 %v11908_v58, %v10090_v56  ;;  %v12125_v8 = vld [vmem:[#allocation2 + $0xbec] sm:$0xf0]  ;;  %v7709_v58 = vadd.f32 %v7708_v41, %v7707_v49  ;;  %v10417_v45 = vor.u32 %v11997_v12, %v10416_v28 }
 0x5fd   :  { %v10602_v7 = vld [vmem:[#allocation2 + $0x968] sm:$0xf0]  ;;  %6882 = vmatpush.bf16.msra.mxu2 %v10669_v47  ;;  %6857 = vmatpush.bf16.msra.mxu0 %v9581_v37  ;;  %v11440_v56 = vld [vmem:[#allocation2 + $0xfb0] sm:$0xf]  ;;  %v10929_v1 = vor.u32 %v12125_v8, %v10928_v50 }
 0x5fe   :  { %v12164_v14 = vld [vmem:[#allocation2 + $0xd2c] sm:$0xf]  ;;  %v10605_v51 = vor.u32 %v12036_v26, %v10602_v7  ;;  %v12253_v26 = vld [vmem:[#allocation2 + $0xfec] sm:$0xf0]  ;;  %v7576_v7 = vrot.slane %v7575_v17, 2 }
 0x5ff   :  { %v11114_v36 = vld [vmem:[#allocation2 + $0xd68] sm:$0xf0]  ;;  %6895 = vmatpush.bf16.msra.mxu3 %v11181_v4  ;;  %6870 = vmatpush.bf16.msra.mxu1 %v10093_v13  ;;  %v7714_v4 = vrot.slane %v7713_v24, 2  ;;  %v9840_v37 = vld [vmem:[#allocation2 + $0x330] sm:$0xf]  ;;  %v11441_v13 = vor.u32 %v12253_v26, %v11440_v56  ;;  %v6653_v56 = vpop.f32.mrf.mxu0 }
 0x600   :  { %v11764_v29 = vld [vmem:[#allocation2 + $0xac] sm:$0xf]  ;;  %v11117_v23 = vor.u32 %v12164_v14, %v11114_v36  ;;  %v9905_v36 = vor.u32 %v11869_v18, %v9904_v44  ;;  %v7577_v2 = vadd.f32 %v7576_v7, %v7575_v17  ;;  %v11981_v49 = vld [vmem:[#allocation2 + $0x76c] sm:$0xf0] }
 0x601   :  { %v9514_v21 = vld [vmem:[#allocation2 + $0xe8] sm:$0xf0]  ;;  %6883 = vmatpush.bf16.msra.mxu2 %v10605_v51  ;;  %v10864_v51 = vld [vmem:[#allocation2 + $0xb30] sm:$0xf]  ;;  %v7715_v60 = vadd.f32 %v7714_v4, %v7713_v24 }
 0x602   :  { %v11892_v40 = vld [vmem:[#allocation2 + $0x4ac] sm:$0xf]  ;;  %v9517_v46 = vor.u32 %v11764_v29, %v9514_v21  ;;  %v11853_v29 = vld [vmem:[#allocation2 + $0x36c] sm:$0xf0] }
 0x603   :  { %v10026_v34 = vld [vmem:[#allocation2 + $0x4e8] sm:$0xf0]  ;;  %6896 = vmatpush.bf16.msra.mxu3 %v11117_v23  ;;  %v12109_v21 = vld [vmem:[#allocation2 + $0xb6c] sm:$0xf0] }
 0x604   :  { %v12020_v22 = vld [vmem:[#allocation2 + $0x8ac] sm:$0xf]  ;;  %v10029_v39 = vor.u32 %v11892_v40, %v10026_v34  ;;  %6858 = vmatpush.bf16.msra.mxu0 %v9517_v46  ;;  %v7710_v40 = vrot.slane %v7709_v58, 1  ;;  %v12237_v23 = vld [vmem:[#allocation2 + $0xf6c] sm:$0xf0]  ;;  %v7578_v34 = vrot.slane %v7577_v2, 1  ;;  %v10865_v41 = vor.u32 %v12109_v21, %v10864_v51 }
 0x605   :  { %v10538_v43 = vld [vmem:[#allocation2 + $0x8e8] sm:$0xf0]  ;;  %v10288_v46 = vld [vmem:[#allocation2 + $0x6b0] sm:$0xf] }
 0x606   :  { %v12148_v19 = vld [vmem:[#allocation2 + $0xcac] sm:$0xf]  ;;  %v10541_v32 = vor.u32 %v12020_v22, %v10538_v43  ;;  %6871 = vmatpush.bf16.msra.mxu1 %v10029_v39  ;;  %v9841_v22 = vor.u32 %v11853_v29, %v9840_v37  ;;  %v10353_v43 = vor.u32 %v11981_v49, %v10352_v61  ;;  %v10800_v24 = vld [vmem:[#allocation2 + $0xab0] sm:$0xf] }
 0x607   :  { %v11050_v9 = vld [vmem:[#allocation2 + $0xce8] sm:$0xf0]  ;;  %v12093_v39 = vld [vmem:[#allocation2 + $0xaec] sm:$0xf0] }
 0x608   :  { %v11748_v30 = vld [vmem:[#allocation2 + $0x2c] sm:$0xf]  ;;  %v11053_v35 = vor.u32 %v12148_v19, %v11050_v9  ;;  %6884 = vmatpush.bf16.msra.mxu2 %v10541_v32  ;;  %v9776_v19 = vld [vmem:[#allocation2 + $0x2b0] sm:$0xf]  ;;  %v7711_v32 = vadd.f32 %v7710_v40, %v7709_v58 }
 0x609   :  { %v9450_v6 = vld [vmem:[#allocation2 + $0x68] sm:$0xf0]  ;;  %v11837_v9 = vld [vmem:[#allocation2 + $0x2ec] sm:$0xf0] }
 0x60a   :  { %v11876_v10 = vld [vmem:[#allocation2 + $0x42c] sm:$0xf]  ;;  %v9453_v47 = vor.u32 %v11748_v30, %v9450_v6  ;;  %6897 = vmatpush.bf16.msra.mxu3 %v11053_v35  ;;  %v7579_v30 = vadd.f32 %v7578_v34, %v7577_v2  ;;  %v11377_v6 = vor.u32 %v12237_v23, %v11376_v52  ;;  %v9777_v27 = vor.u32 %v11837_v9, %v9776_v19  ;;  %v11821_v54 = vld [vmem:[#allocation2 + $0x26c] sm:$0xf0] }
 0x60b   :  { %v9962_v3 = vld [vmem:[#allocation2 + $0x468] sm:$0xf0]  ;;  %v10224_v44 = vld [vmem:[#allocation2 + $0x630] sm:$0xf]  ;;  %v7782_v50 = vmul.f32 %v7711_v32, %v12959_v42 }
 0x60c   :  { %v12004_v15 = vld [vmem:[#allocation2 + $0x82c] sm:$0xf]  ;;  %v9965_v16 = vor.u32 %v11876_v10, %v9962_v3  ;;  %6859 = vmatpush.bf16.msra.mxu0 %v9453_v47  ;;  %v11965_v10 = vld [vmem:[#allocation2 + $0x6ec] sm:$0xf0]  ;;  %v7716_v3 = vrot.slane %v7715_v60, 1  ;;  %v7640_v63 = vmul.f32 %v7579_v30, %v12959_v42 }
 0x60d   :  { %v10474_v33 = vld [vmem:[#allocation2 + $0x868] sm:$0xf0]  ;;  %v10289_v35 = vor.u32 %v11965_v10, %v10288_v46  ;;  %v11949_v17 = vld [vmem:[#allocation2 + $0x66c] sm:$0xf0]  ;;  %v13932_v49 = vadd.f32 1e-05, %v7782_v50  ;;  %v6692_v10 = vpop.f32.mrf.mxu3 }
 0x60e   :  { %v12132_v53 = vld [vmem:[#allocation2 + $0xc2c] sm:$0xf]  ;;  %v10477_v5 = vor.u32 %v12004_v15, %v10474_v33  ;;  %6872 = vmatpush.bf16.msra.mxu1 %v9965_v16  ;;  %v11312_v15 = vld [vmem:[#allocation2 + $0xeb0] sm:$0xf]  ;;  %v13927_v18 = vsub.f32 %v13917_v57, %v7640_v63  ;;  %v7717_v8 = vadd.f32 %v7716_v3, %v7715_v60  ;;  %v10225_v57 = vor.u32 %v11949_v17, %v10224_v44 }
 0x60f   :  { %v10986_v38 = vld [vmem:[#allocation2 + $0xc68] sm:$0xf0]  ;;  %6860 = vmatmul.bf16.vlgmr.msra.gmra.mxu0 %v13640_v0  ;;  %v12221_v33 = vld [vmem:[#allocation2 + $0xeec] sm:$0xf0]  ;;  %12325 = vrsqrt.f32 %v13932_v49  ;;  %vm7856_vm8 = vweird.f32 %v13932_v49 }
 0x610   :  { %v10989_v14 = vor.u32 %v12132_v53, %v10986_v38  ;;  %6885 = vmatpush.bf16.msra.mxu2 %v10477_v5  ;;  %6904 = vmatpush.bf16.msrb.mxu0 %v9905_v36  ;;  %v10801_v53 = vor.u32 %v12093_v39, %v10800_v24  ;;  %v9712_v38 = vld [vmem:[#allocation2 + $0x230] sm:$0xf]  ;;  %v11313_v28 = vor.u32 %v12221_v33, %v11312_v15 }
 0x611   :  { %6873 = vmatmul.bf16.vlgmr.msra.gmra.mxu1 %v13644_v31  ;;  %v10736_v47 = vld [vmem:[#allocation2 + $0xa30] sm:$0xf]  ;;  %v7672_v16 = vmul.f32 %v13927_v18, %v13927_v18  ;;  %v9713_v5 = vor.u32 %v11821_v54, %v9712_v38  ;;  %v7783_v51 = vmul.f32 %v7717_v8, %v12959_v42  ;;  %v6655_v54 = vpop.f32.mrf.mxu0 }
 0x612   :  { %6898 = vmatpush.bf16.msra.mxu3 %v10989_v14  ;;  %6917 = vmatpush.bf16.msrb.mxu1 %v10417_v45  ;;  %v12077_v12 = vld [vmem:[#allocation2 + $0xa6c] sm:$0xf0]  ;;  %v6666_v14 = vpop.f32.mrf.mxu1  ;;  %v11845_v54 = vld [vmem:[#allocation2 + $0x334] sm:$0xf] }
 0x613   :  { %6886 = vmatmul.bf16.vlgmr.msra.gmra.mxu2 %v13632_v62  ;;  %v11248_v58 = vld [vmem:[#allocation2 + $0xe30] sm:$0xf]  ;;  %v10737_v7 = vor.u32 %v12077_v12, %v10736_v47  ;;  %v7718_v37 = vrot.slane %v7672_v16, 4  ;;  %v6667_v61 = vadd.f32 %v6666_v14, %v6653_v56  ;;  %v13936_v32 = vadd.f32 1e-05, %v7783_v51 }
 0x614   :  { %6930 = vmatpush.bf16.msrb.mxu2 %v10929_v1  ;;  %6905 = vmatpush.bf16.msrb.mxu0 %v9841_v22  ;;  %v12205_v4 = vld [vmem:[#allocation2 + $0xe6c] sm:$0xf0] }
 0x615   :  { %6899 = vmatmul.bf16.vlgmr.msra.gmra.mxu3 %v13636_v59  ;;  %v9648_v26 = vld [vmem:[#allocation2 + $0x1b0] sm:$0xf]  ;;  %v11249_v29 = vor.u32 %v12205_v4, %v11248_v58  ;;  %v7719_v60 = vadd.f32 %v7718_v37, %v7672_v16  ;;  %v13942_v37 = vpop.eup %12325  ;;  %12327 = vrsqrt.f32 %v13936_v32  ;;  %vm7866_vm11 = vweird.f32 %v13936_v32 }
 0x616   :  { %6943 = vmatpush.bf16.msrb.mxu3 %v11441_v13  ;;  %6918 = vmatpush.bf16.msrb.mxu1 %v10353_v43  ;;  %v11805_v36 = vld [vmem:[#allocation2 + $0x1ec] sm:$0xf0]  ;;  %v6679_v43 = vpop.f32.mrf.mxu2  ;;  %vm7857_vm9 = vweird.f32 %v13942_v37 }
 0x617   :  { %v10160_v45 = vld [vmem:[#allocation2 + $0x5b0] sm:$0xf]  ;;  %v9649_v52 = vor.u32 %v11805_v36, %v9648_v26  ;;  %v7720_v46 = vrot.slane %v7719_v60, 2  ;;  %vm13982_vm10 = vmor %vm7856_vm8, %vm7857_vm9 }
 0x618   :  { %6931 = vmatpush.bf16.msrb.mxu2 %v10865_v41  ;;  %6906 = vmatpush.bf16.msrb.mxu0 %v9777_v27  ;;  %v11933_v1 = vld [vmem:[#allocation2 + $0x5ec] sm:$0xf0]  ;;  %v7493_v27 = vperm.slane %v13824_v48, 7 }
 0x619   :  { %v10672_v2 = vld [vmem:[#allocation2 + $0x9b0] sm:$0xf]  ;;  %v10161_v34 = vor.u32 %v11933_v1, %v10160_v45  ;;  %v7721_v33 = vadd.f32 %v7720_v46, %v7719_v60 }
 0x61a   :  { %6944 = vmatpush.bf16.msrb.mxu3 %v11377_v6  ;;  %6919 = vmatpush.bf16.msrb.mxu1 %v10289_v35  ;;  %v12061_v13 = vld [vmem:[#allocation2 + $0x9ec] sm:$0xf0]  ;;  %v6680_v6 = vadd.f32 %v6679_v43, %v6667_v61  ;;  %v6668_v50 = vpop.f32.mrf.mxu1  ;;  %v10418_v43 = vld [vmem:[#allocation2 + $0x7f0] sm:$0xf0] }
 0x61b   :  { %v11184_v21 = vld [vmem:[#allocation2 + $0xdb0] sm:$0xf]  ;;  %v10673_v22 = vor.u32 %v12061_v13, %v10672_v2  ;;  %v7722_v8 = vrot.slane %v7721_v33, 1  ;;  %v12101_v50 = vld [vmem:[#allocation2 + $0xb34] sm:$0xf] }
 0x61c   :  { %6932 = vmatpush.bf16.msrb.mxu2 %v10801_v53  ;;  %v12189_v40 = vld [vmem:[#allocation2 + $0xdec] sm:$0xf0]  ;;  %6907 = vmatpush.bf16.msrb.mxu0 %v9713_v5  ;;  %v6693_v63 = vadd.f32 %v6692_v10, %v6680_v6  ;;  %v7851_v6 = vmul.f32 %v13942_v37, %v13932_v49  ;;  %v11122_v49 = vld [vmem:[#allocation2 + $0xd70] sm:$0xf0] }
 0x61d   :  { %v9584_v23 = vld [vmem:[#allocation2 + $0x130] sm:$0xf]  ;;  %v11185_v30 = vor.u32 %v12189_v40, %v11184_v21 }
 0x61e   :  { %6945 = vmatpush.bf16.msrb.mxu3 %v11313_v28  ;;  %6920 = vmatpush.bf16.msrb.mxu1 %v10225_v57  ;;  %v11789_v41 = vld [vmem:[#allocation2 + $0x16c] sm:$0xf0]  ;;  %v7473_v58 = vmul.f32 %v13811_v55, %v6693_v63  ;;  %v7723_v57 = vadd.f32 %v7722_v8, %v7721_v33  ;;  %v6681_v51 = vpop.f32.mrf.mxu2  ;;  %v10866_v8 = vld [vmem:[#allocation2 + $0xb70] sm:$0xf0] }
 0x61f   :  { %v10096_v19 = vld [vmem:[#allocation2 + $0x530] sm:$0xf]  ;;  %v9585_v35 = vor.u32 %v11789_v41, %v9584_v23  ;;  %v9906_v23 = vld [vmem:[#allocation2 + $0x3f0] sm:$0xf0] }
 0x620   :  { %6933 = vmatpush.bf16.msrb.mxu2 %v10737_v7  ;;  %v11917_v9 = vld [vmem:[#allocation2 + $0x56c] sm:$0xf0]  ;;  %6908 = vmatpush.bf16.msrb.mxu0 %v9649_v52  ;;  %v13940_v7 = vadd.f32 %v7493_v27, %v7473_v58  ;;  %v7784_v21 = vmul.f32 %v7723_v57, %v12959_v42  ;;  %v11861_v52 = vld [vmem:[#allocation2 + $0x3b4] sm:$0xf]  ;;  %v12780_v27 = vmov 3   ;;  %v7852_v58 = vmul.f32 %v13942_v37, %v7851_v6 }
 0x621   :  { %v10608_v24 = vld [vmem:[#allocation2 + $0x930] sm:$0xf]  ;;  %v10097_v44 = vor.u32 %v11917_v9, %v10096_v19  ;;  %v12117_v41 = vld [vmem:[#allocation2 + $0xbb4] sm:$0xf]  ;;  %v9909_v63 = vor.u32 %v11861_v52, %v9906_v23  ;;  %12314 = vset.pattern.permute.xlu1 %v12780_v27  ;;  %12315 = vset.pattern.permute.xlu0 %v12780_v27 }
 0x622   :  { %6946 = vmatpush.bf16.msrb.mxu3 %v11249_v29  ;;  %v12045_v39 = vld [vmem:[#allocation2 + $0x96c] sm:$0xf0]  ;;  %6921 = vmatpush.bf16.msrb.mxu1 %v10161_v34  ;;  %v7580_v40 = vrot.slane %v13940_v7, 4  ;;  %v6694_v34 = vpop.f32.mrf.mxu3  ;;  %v13947_v19 = vadd.f32 1e-05, %v7784_v21 }
 0x623   :  { %v11120_v3 = vld [vmem:[#allocation2 + $0xd30] sm:$0xf]  ;;  %v10609_v28 = vor.u32 %v12045_v39, %v10608_v24  ;;  %v12245_v39 = vld [vmem:[#allocation2 + $0xfb4] sm:$0xf]  ;;  %7431 = vperm.xlu1 %12314, %v13628_v20  }
 0x624   :  { %v12173_v15 = vld [vmem:[#allocation2 + $0xd6c] sm:$0xf0]  ;;  %6934 = vmatpush.bf16.msrb.mxu2 %v10673_v22  ;;  %6909 = vmatpush.bf16.msrb.mxu0 %v9585_v35  ;;  %v11989_v22 = vld [vmem:[#allocation2 + $0x7b4] sm:$0xf]  ;;  %v7581_v9 = vadd.f32 %v7580_v40, %v13940_v7  ;;  %v13952_v35 = vpop.eup %12327  ;;  %12329 = vrsqrt.f32 %v13947_v19  ;;  %vm7876_vm14 = vweird.f32 %v13947_v19 }
 0x625   :  { %v9520_v53 = vld [vmem:[#allocation2 + $0xb0] sm:$0xf]  ;;  %v11121_v4 = vor.u32 %v12173_v15, %v11120_v3  ;;  %v11442_v3 = vld [vmem:[#allocation2 + $0xff0] sm:$0xf0]  ;;  %vm7867_vm12 = vweird.f32 %v13952_v35 }
 0x626   :  { %v11773_v38 = vld [vmem:[#allocation2 + $0xec] sm:$0xf0]  ;;  %6947 = vmatpush.bf16.msrb.mxu3 %v11185_v30  ;;  %6922 = vmatpush.bf16.msrb.mxu1 %v10097_v44  ;;  %v10930_v30 = vld [vmem:[#allocation2 + $0xbf0] sm:$0xf0]  ;;  %v7582_v15 = vrot.slane %v7581_v9, 2  ;;  %vm14001_vm13 = vmor %vm7866_vm11, %vm7867_vm12 }
 0x627   :  { %v10032_v17 = vld [vmem:[#allocation2 + $0x4b0] sm:$0xf]  ;;  %v9521_v14 = vor.u32 %v11773_v38, %v9520_v53  ;;  %v10421_v53 = vor.u32 %v11989_v22, %v10418_v43  ;;  %v10933_v38 = vor.u32 %v12117_v41, %v10930_v30  ;;  %v9842_v44 = vld [vmem:[#allocation2 + $0x370] sm:$0xf0] }
 0x628   :  { %v11901_v47 = vld [vmem:[#allocation2 + $0x4ec] sm:$0xf0]  ;;  %6935 = vmatpush.bf16.msrb.mxu2 %v10609_v28  ;;  %v11973_v28 = vld [vmem:[#allocation2 + $0x734] sm:$0xf]  ;;  %v9845_v20 = vor.u32 %v11845_v54, %v9842_v44  ;;  %v6718_v44 = vpop.f32.mrf.mxu1 }
 0x629   :  { %v10544_v12 = vld [vmem:[#allocation2 + $0x8b0] sm:$0xf]  ;;  %v10033_v55 = vor.u32 %v11901_v47, %v10032_v17  ;;  %6910 = vmatpush.bf16.msrb.mxu0 %v9521_v14  ;;  %v7583_v17 = vadd.f32 %v7582_v15, %v7581_v9  ;;  %v11445_v47 = vor.u32 %v12245_v39, %v11442_v3  ;;  %v11829_v57 = vld [vmem:[#allocation2 + $0x2b4] sm:$0xf] }
 0x62a   :  { %v12029_v16 = vld [vmem:[#allocation2 + $0x8ec] sm:$0xf0]  ;;  %6948 = vmatpush.bf16.msrb.mxu3 %v11121_v4  ;;  %v12229_v4 = vld [vmem:[#allocation2 + $0xf34] sm:$0xf]  ;;  %v13962_v21 = vpop.eup %12329 }
 0x62b   :  { %v11056_v5 = vld [vmem:[#allocation2 + $0xcb0] sm:$0xf]  ;;  %v10545_v29 = vor.u32 %v12029_v16, %v10544_v12  ;;  %6923 = vmatpush.bf16.msrb.mxu1 %v10033_v55  ;;  %v10354_v12 = vld [vmem:[#allocation2 + $0x770] sm:$0xf0]  ;;  %v7871_v39 = vmul.f32 %v13962_v21, %v13947_v19  ;;  %vm7877_vm15 = vweird.f32 %v13962_v21  ;;  %v10360_v19 = vld [vmem:[#allocation2 + $0x738] sm:$0xf] }
 0x62c   :  { %v12157_v48 = vld [vmem:[#allocation2 + $0xcec] sm:$0xf0]  ;;  %v11378_v16 = vld [vmem:[#allocation2 + $0xf70] sm:$0xf0]  ;;  %vm14024_vm0 = vmor %vm7876_vm14, %vm7877_vm15 }
 0x62d   :  { %v9456_v56 = vld [vmem:[#allocation2 + $0x30] sm:$0xf]  ;;  %v11057_v60 = vor.u32 %v12157_v48, %v11056_v5  ;;  %6936 = vmatpush.bf16.msrb.mxu2 %v10545_v29  ;;  %v7861_v5 = vmul.f32 %v13952_v35, %v13936_v32  ;;  %v7584_v48 = vrot.slane %v7583_v17, 1  ;;  %v9778_v14 = vld [vmem:[#allocation2 + $0x2f0] sm:$0xf0] }
 0x62e   :  { %v11757_v26 = vld [vmem:[#allocation2 + $0x6c] sm:$0xf0]  ;;  %v10290_v55 = vld [vmem:[#allocation2 + $0x6f0] sm:$0xf0]  ;;  %v9781_v52 = vor.u32 %v11829_v57, %v9778_v14 }
 0x62f   :  { %v9968_v36 = vld [vmem:[#allocation2 + $0x430] sm:$0xf]  ;;  %v9457_v46 = vor.u32 %v11757_v26, %v9456_v56  ;;  %6949 = vmatpush.bf16.msrb.mxu3 %v11057_v60  ;;  %v10357_v56 = vor.u32 %v11973_v28, %v10354_v12  ;;  %v10869_v26 = vor.u32 %v12101_v50, %v10866_v8  ;;  %v12085_v29 = vld [vmem:[#allocation2 + $0xab4] sm:$0xf]  ;;  %v7862_v40 = vmul.f32 %v13952_v35, %v7861_v5 }
 0x630   :  { %v11885_v45 = vld [vmem:[#allocation2 + $0x46c] sm:$0xf0]  ;;  %v11314_v51 = vld [vmem:[#allocation2 + $0xef0] sm:$0xf0]  ;;  %v7872_v5 = vmul.f32 %v13962_v21, %v7871_v39 }
 0x631   :  { %v10480_v1 = vld [vmem:[#allocation2 + $0x830] sm:$0xf]  ;;  %v9969_v10 = vor.u32 %v11885_v45, %v9968_v36  ;;  %6911 = vmatpush.bf16.msrb.mxu0 %v9457_v46  ;;  %v11957_v36 = vld [vmem:[#allocation2 + $0x6b4] sm:$0xf]  ;;  %v7585_v45 = vadd.f32 %v7584_v48, %v7583_v17 }
 0x632   :  { %v12013_v61 = vld [vmem:[#allocation2 + $0x86c] sm:$0xf0]  ;;  %v10293_v23 = vor.u32 %v11957_v36, %v10290_v55  ;;  %v11813_v22 = vld [vmem:[#allocation2 + $0x234] sm:$0xf] }
 0x633   :  { %v10992_v2 = vld [vmem:[#allocation2 + $0xc30] sm:$0xf]  ;;  %v10481_v24 = vor.u32 %v12013_v61, %v10480_v1  ;;  %6924 = vmatpush.bf16.msrb.mxu1 %v9969_v10  ;;  %v11381_v1 = vor.u32 %v12229_v4, %v11378_v16  ;;  %v10802_v61 = vld [vmem:[#allocation2 + $0xaf0] sm:$0xf0]  ;;  %v7641_v60 = vmul.f32 %v7585_v45, %v12959_v42 }
 0x634   :  { %v12141_v13 = vld [vmem:[#allocation2 + $0xc6c] sm:$0xf0]  ;;  %6912 = vmatmul.bf16.vlgmr.msrb.gmra.mxu0 %v13640_v0  ;;  %v10805_v34 = vor.u32 %v12085_v29, %v10802_v61  ;;  %v9714_v43 = vld [vmem:[#allocation2 + $0x270] sm:$0xf0] }
 0x635   :  { %v10993_v33 = vor.u32 %v12141_v13, %v10992_v2  ;;  %6937 = vmatpush.bf16.msrb.mxu2 %v10481_v24  ;;  %6956 = vmatpush.bf16.msra.mxu0 %v9909_v63  ;;  %v7853_v2 = vmul.f32 0.5, %v7852_v58  ;;  %v12213_v13 = vld [vmem:[#allocation2 + $0xeb4] sm:$0xf]  ;;  %v13968_v9 = vsub.f32 %v13940_v7, %v7641_v60  ;;  %v9717_v27 = vor.u32 %v11813_v22, %v9714_v43  ;;  %v6744_v60 = vpop.f32.mrf.mxu3 }
 0x636   :  { %6925 = vmatmul.bf16.vlgmr.msrb.gmra.mxu1 %v13644_v31  ;;  %v11941_v41 = vld [vmem:[#allocation2 + $0x634] sm:$0xf]  ;;  %v11317_v46 = vor.u32 %v12213_v13, %v11314_v51  ;;  %v7873_v22 = vmul.f32 0.5, %v7872_v5 }
 0x637   :  { %6950 = vmatpush.bf16.msrb.mxu3 %v10993_v33  ;;  %6969 = vmatpush.bf16.msra.mxu1 %v10421_v53  ;;  %v10226_v30 = vld [vmem:[#allocation2 + $0x670] sm:$0xf0]  ;;  %v7854_v24 = vsub.f32 1.5, %v7853_v2  ;;  %v7863_v33 = vmul.f32 0.5, %v7862_v40  ;;  %v7673_v63 = vmul.f32 %v13968_v9, %v13968_v9  ;;  %v6705_v53 = vpop.f32.mrf.mxu0 }
 0x638   :  { %6938 = vmatmul.bf16.vlgmr.msrb.gmra.mxu2 %v13632_v62  ;;  %v12069_v6 = vld [vmem:[#allocation2 + $0xa34] sm:$0xf]  ;;  %v6719_v8 = vadd.f32 %v6718_v44, %v6705_v53 }
 0x639   :  { %6982 = vmatpush.bf16.msra.mxu2 %v10933_v38  ;;  %6957 = vmatpush.bf16.msra.mxu0 %v9845_v20  ;;  %v10738_v10 = vld [vmem:[#allocation2 + $0xa70] sm:$0xf0]  ;;  %v10229_v38 = vor.u32 %v11941_v41, %v10226_v30  ;;  %v7724_v12 = vrot.slane %v7673_v63, 4  ;;  %v7855_v16 = vmul.f32 %v13942_v37, %v7854_v24 }
 0x63a   :  { %6951 = vmatmul.bf16.vlgmr.msrb.gmra.mxu3 %v13636_v59  ;;  %v12197_v3 = vld [vmem:[#allocation2 + $0xe34] sm:$0xf]  ;;  %v10741_v54 = vor.u32 %v12069_v6, %v10738_v10 }
 0x63b   :  { %6995 = vmatpush.bf16.msra.mxu3 %v11445_v47  ;;  %6970 = vmatpush.bf16.msra.mxu1 %v10357_v56  ;;  %v11250_v15 = vld [vmem:[#allocation2 + $0xe70] sm:$0xf0]  ;;  %v7864_v56 = vsub.f32 1.5, %v7863_v33 }
 0x63c   :  { %v11797_v7 = vld [vmem:[#allocation2 + $0x1b4] sm:$0xf]  ;;  %v11253_v50 = vor.u32 %v12197_v3, %v11250_v15 }
 0x63d   :  { %6983 = vmatpush.bf16.msra.mxu2 %v10869_v26  ;;  %6958 = vmatpush.bf16.msra.mxu0 %v9781_v52  ;;  %v9650_v28 = vld [vmem:[#allocation2 + $0x1f0] sm:$0xf0]  ;;  %v7725_v26 = vadd.f32 %v7724_v12, %v7673_v63  ;;  %v7865_v24 = vmul.f32 %v13952_v35, %v7864_v56  ;;  %v6720_v63 = vpop.f32.mrf.mxu1 }
 0x63e   :  { %v11925_v17 = vld [vmem:[#allocation2 + $0x5b4] sm:$0xf]  ;;  %v9653_v57 = vor.u32 %v11797_v7, %v9650_v28  ;;  %v9848_v63 = vld [vmem:[#allocation2 + $0x338] sm:$0xf] }
 0x63f   :  { %6996 = vmatpush.bf16.msra.mxu3 %v11381_v1  ;;  %6971 = vmatpush.bf16.msra.mxu1 %v10293_v23  ;;  %v10162_v47 = vld [vmem:[#allocation2 + $0x5f0] sm:$0xf0]  ;;  %v6731_v1 = vpop.f32.mrf.mxu2  ;;  %v7726_v13 = vrot.slane %v7725_v26, 2  ;;  %v6707_v10 = vpop.f32.mrf.mxu0  ;;  %v7869_v32 = vsel %vm14001_vm13, %v13952_v35, %v7865_v24  ;;  %v11870_v35 = vld [vmem:[#allocation2 + $0x3f4] sm:$0xf0] }
 0x640   :  { %v12053_v58 = vld [vmem:[#allocation2 + $0x9b4] sm:$0xf]  ;;  %v10165_v36 = vor.u32 %v11925_v17, %v10162_v47  ;;  %v6732_v40 = vadd.f32 %v6731_v1, %v6719_v8  ;;  %v7874_v47 = vsub.f32 1.5, %v7873_v22  ;;  %v12110_v28 = vld [vmem:[#allocation2 + $0xb74] sm:$0xf0] }
 0x641   :  { %6984 = vmatpush.bf16.msra.mxu2 %v10805_v34  ;;  %v10674_v4 = vld [vmem:[#allocation2 + $0x9f0] sm:$0xf0]  ;;  %6959 = vmatpush.bf16.msra.mxu0 %v9717_v27  ;;  %v7859_v34 = vsel %vm13982_vm10, %v13942_v37, %v7855_v16  ;;  %v7727_v41 = vadd.f32 %v7726_v13, %v7725_v26  ;;  %v13994_v27 = vld [vmem:[#allocation21] sm:$0xff]  ;;  %v10424_v13 = vld [vmem:[#allocation2 + $0x7b8] sm:$0xf] }
 0x642   :  { %v12181_v48 = vld [vmem:[#allocation2 + $0xdb4] sm:$0xf]  ;;  %v10677_v45 = vor.u32 %v12053_v58, %v10674_v4  ;;  %v7992_v53 = vperm.slane %v13994_v27, 4  ;;  %v7993_v17 = vperm.slane %v13994_v27, 5  ;;  %v7974_v8 = vmul.f32 %v7859_v34, %v13902_v11  ;;  %v12126_v34 = vld [vmem:[#allocation2 + $0xbf4] sm:$0xf0] }
 0x643   :  { %6997 = vmatpush.bf16.msra.mxu3 %v11317_v46  ;;  %v11186_v20 = vld [vmem:[#allocation2 + $0xdf0] sm:$0xf0]  ;;  %6972 = vmatpush.bf16.msra.mxu1 %v10229_v38  ;;  %v13991_v46 = vadd.f32 %v6744_v60, %v6732_v40  ;;  %v7728_v7 = vrot.slane %v7727_v41, 1  ;;  %v7875_v2 = vmul.f32 %v13962_v21, %v7874_v47  ;;  %v7975_v40 = vmul.f32 %v7869_v32, %v13911_v25  ;;  %v11384_v47 = vld [vmem:[#allocation2 + $0xf38] sm:$0xf] }
 0x644   :  { %v11781_v14 = vld [vmem:[#allocation2 + $0x134] sm:$0xf]  ;;  %v11189_v51 = vor.u32 %v12181_v48, %v11186_v20  ;;  %v8024_v22 = vmul.f32 %v7992_v53, %v7974_v8  ;;  %v11854_v53 = vld [vmem:[#allocation2 + $0x374] sm:$0xf0] }
 0x645   :  { %6985 = vmatpush.bf16.msra.mxu2 %v10741_v54  ;;  %v9586_v55 = vld [vmem:[#allocation2 + $0x170] sm:$0xf0]  ;;  %6960 = vmatpush.bf16.msra.mxu0 %v9653_v57  ;;  %v7729_v58 = vadd.f32 %v7728_v7, %v7727_v41  ;;  %v11448_v41 = vld [vmem:[#allocation2 + $0xfb8] sm:$0xf]  ;;  %v8025_v7 = vmul.f32 %v7993_v17, %v7975_v40 }
 0x646   :  { %v11909_v29 = vld [vmem:[#allocation2 + $0x534] sm:$0xf]  ;;  %v9589_v30 = vor.u32 %v11781_v14, %v9586_v55 }
 0x647   :  { %v10098_v61 = vld [vmem:[#allocation2 + $0x570] sm:$0xf0]  ;;  %6998 = vmatpush.bf16.msra.mxu3 %v11253_v50  ;;  %6973 = vmatpush.bf16.msra.mxu1 %v10165_v36  ;;  %v6733_v36 = vpop.f32.mrf.mxu2  ;;  %v7785_v11 = vmul.f32 %v7729_v58, %v12959_v42  ;;  %v7994_v58 = vperm.slane %v13994_v27, 6 }
 0x648   :  { %v12037_v52 = vld [vmem:[#allocation2 + $0x934] sm:$0xf]  ;;  %v10101_v39 = vor.u32 %v11909_v29, %v10098_v61  ;;  %v9912_v29 = vld [vmem:[#allocation2 + $0x3b8] sm:$0xf]  ;;  %v6746_v61 = vpop.f32.mrf.mxu3 }
 0x649   :  { %v10610_v23 = vld [vmem:[#allocation2 + $0x970] sm:$0xf0]  ;;  %6986 = vmatpush.bf16.msra.mxu2 %v10677_v45  ;;  %6961 = vmatpush.bf16.msra.mxu0 %v9589_v30  ;;  %v14015_v60 = vadd.f32 1e-05, %v7785_v11  ;;  %v12254_v30 = vld [vmem:[#allocation2 + $0xff4] sm:$0xf0] }
 0x64a   :  { %v12165_v43 = vld [vmem:[#allocation2 + $0xd34] sm:$0xf]  ;;  %v10613_v37 = vor.u32 %v12037_v52, %v10610_v23  ;;  %v10936_v23 = vld [vmem:[#allocation2 + $0xbb8] sm:$0xf] }
 0x64b   :  { %v11765_v6 = vld [vmem:[#allocation2 + $0xb4] sm:$0xf]  ;;  %6999 = vmatpush.bf16.msra.mxu3 %v11189_v51  ;;  %v11125_v38 = vor.u32 %v12165_v43, %v11122_v49  ;;  %6974 = vmatpush.bf16.msra.mxu1 %v10101_v39  ;;  %v11998_v51 = vld [vmem:[#allocation2 + $0x7f4] sm:$0xf0]  ;;  %12331 = vrsqrt.f32 %v14015_v60  ;;  %v9913_v39 = vor.u32 %v11870_v35, %v9912_v29  ;;  %vm7886_vm4 = vweird.f32 %v14015_v60 }
 0x64c   :  { %v9522_v3 = vld [vmem:[#allocation2 + $0xf0] sm:$0xf0]  ;;  %v11320_v36 = vld [vmem:[#allocation2 + $0xeb8] sm:$0xf] }
 0x64d   :  { %v11893_v15 = vld [vmem:[#allocation2 + $0x4b4] sm:$0xf]  ;;  %v9525_v4 = vor.u32 %v11765_v6, %v9522_v3  ;;  %6987 = vmatpush.bf16.msra.mxu2 %v10613_v37  ;;  %v7879_v3 = vsel %vm14024_vm0, %v13962_v21, %v7875_v2  ;;  %v9849_v21 = vor.u32 %v11854_v53, %v9848_v63  ;;  %v12222_v11 = vld [vmem:[#allocation2 + $0xef4] sm:$0xf0]  ;;  %v6757_v63 = vpop.f32.mrf.mxu0 }
 0x64e   :  { %v10034_v33 = vld [vmem:[#allocation2 + $0x4f0] sm:$0xf0]  ;;  %v7976_v8 = vmul.f32 %v7879_v3, %v13927_v18  ;;  %v10808_v18 = vld [vmem:[#allocation2 + $0xab8] sm:$0xf] }
 0x64f   :  { %v12021_v54 = vld [vmem:[#allocation2 + $0x8b4] sm:$0xf]  ;;  %v10037_v20 = vor.u32 %v11893_v15, %v10034_v33  ;;  %7000 = vmatpush.bf16.msra.mxu3 %v11125_v38  ;;  %6962 = vmatpush.bf16.msra.mxu0 %v9525_v4  ;;  %v10425_v15 = vor.u32 %v11998_v51, %v10424_v13  ;;  %v10937_v33 = vor.u32 %v12126_v34, %v10936_v23  ;;  %v9720_v2 = vld [vmem:[#allocation2 + $0x238] sm:$0xf] }
 0x650   :  { %v10546_v44 = vld [vmem:[#allocation2 + $0x8f0] sm:$0xf0]  ;;  %v11449_v38 = vor.u32 %v12254_v30, %v11448_v41  ;;  %v8026_v35 = vmul.f32 %v7994_v58, %v7976_v8  ;;  %v11822_v34 = vld [vmem:[#allocation2 + $0x274] sm:$0xf0] }
 0x651   :  { %v12149_v12 = vld [vmem:[#allocation2 + $0xcb4] sm:$0xf]  ;;  %v10549_v56 = vor.u32 %v12021_v54, %v10546_v44  ;;  %6975 = vmatpush.bf16.msra.mxu1 %v10037_v20  ;;  %v11982_v54 = vld [vmem:[#allocation2 + $0x774] sm:$0xf0]  ;;  %v14037_v32 = vpop.eup %12331 }
 0x652   :  { %v11058_v50 = vld [vmem:[#allocation2 + $0xcf0] sm:$0xf0]  ;;  %v10872_v44 = vld [vmem:[#allocation2 + $0xb38] sm:$0xf]  ;;  %v10361_v17 = vor.u32 %v11982_v54, %v10360_v19  ;;  %vm7887_vm5 = vweird.f32 %v14037_v32  ;;  %v6770_v54 = vpop.f32.mrf.mxu1 }
 0x653   :  { %v11749_v16 = vld [vmem:[#allocation2 + $0x34] sm:$0xf]  ;;  %v11061_v45 = vor.u32 %v12149_v12, %v11058_v50  ;;  %6988 = vmatpush.bf16.msra.mxu2 %v10549_v56  ;;  %v12238_v12 = vld [vmem:[#allocation2 + $0xf74] sm:$0xf0]  ;;  %v10873_v4 = vor.u32 %v12110_v28, %v10872_v44  ;;  %vm14076_vm6 = vmor %vm7886_vm4, %vm7887_vm5 }
 0x654   :  { %v9458_v5 = vld [vmem:[#allocation2 + $0x70] sm:$0xf0]  ;;  %v11385_v20 = vor.u32 %v12238_v12, %v11384_v47  ;;  %v11966_v56 = vld [vmem:[#allocation2 + $0x6f4] sm:$0xf0]  ;;  %v6771_v12 = vadd.f32 %v6770_v54, %v6757_v63 }
 0x655   :  { %v11877_v48 = vld [vmem:[#allocation2 + $0x434] sm:$0xf]  ;;  %v9461_v52 = vor.u32 %v11749_v16, %v9458_v5  ;;  %7001 = vmatpush.bf16.msra.mxu3 %v11061_v45  ;;  %v9784_v16 = vld [vmem:[#allocation2 + $0x2b8] sm:$0xf]  ;;  %v14047_v45 = vld [vmem:[#allocation24] sm:$0xff] }
 0x656   :  { %v9970_v26 = vld [vmem:[#allocation2 + $0x470] sm:$0xf0]  ;;  %v11838_v5 = vld [vmem:[#allocation2 + $0x2f4] sm:$0xf0] }
 0x657   :  { %v12005_v57 = vld [vmem:[#allocation2 + $0x834] sm:$0xf]  ;;  %v9973_v43 = vor.u32 %v11877_v48, %v9970_v26  ;;  %6963 = vmatpush.bf16.msra.mxu0 %v9461_v52  ;;  %v10296_v48 = vld [vmem:[#allocation2 + $0x6b8] sm:$0xf]  ;;  %v9785_v61 = vor.u32 %v11838_v5, %v9784_v16 }
 0x658   :  { %v10482_v14 = vld [vmem:[#allocation2 + $0x870] sm:$0xf0]  ;;  %v12094_v26 = vld [vmem:[#allocation2 + $0xaf4] sm:$0xf0]  ;;  %v10297_v52 = vor.u32 %v11966_v56, %v10296_v48 }
 0x659   :  { %v12133_v1 = vld [vmem:[#allocation2 + $0xc34] sm:$0xf]  ;;  %v10485_v49 = vor.u32 %v12005_v57, %v10482_v14  ;;  %6976 = vmatpush.bf16.msra.mxu1 %v9973_v43  ;;  %v7881_v14 = vmul.f32 %v14037_v32, %v14015_v60  ;;  %v10809_v23 = vor.u32 %v12094_v26, %v10808_v18  ;;  %v11950_v43 = vld [vmem:[#allocation2 + $0x674] sm:$0xf0] }
 0x65a   :  { %v10994_v55 = vld [vmem:[#allocation2 + $0xc70] sm:$0xf0]  ;;  %6964 = vmatmul.bf16.vlgmr.msra.gmra.mxu0 %v13640_v0  ;;  %v10744_v41 = vld [vmem:[#allocation2 + $0xa38] sm:$0xf] }
 0x65b   :  { %v14017_v6 = vld [vmem:[#allocation23] sm:$0xff]  ;;  %v10997_v24 = vor.u32 %v12133_v1, %v10994_v55  ;;  %6989 = vmatpush.bf16.msra.mxu2 %v10485_v49  ;;  %7008 = vmatpush.bf16.msrb.mxu0 %v9913_v39  ;;  %v8142_v1 = vperm.slane %v14047_v45, 4  ;;  %v14050_v55 = vpop.permute.xlu1 %7347  ;;  %v14052_v29 = vld [vmem:[#allocation20 + $0x8] sm:$0xff]  ;;  %v7882_v40 = vmul.f32 %v14037_v32, %v7881_v14  ;;  %v11321_v49 = vor.u32 %v12222_v11, %v11320_v36 }
 0x65c   :  { %v8042_v10 = vperm.slane %v14017_v6, 4  ;;  %v8043_v37 = vperm.slane %v14017_v6, 5  ;;  %6977 = vmatmul.bf16.vlgmr.msra.gmra.mxu1 %v13644_v31  ;;  %v8044_v13 = vperm.slane %v14017_v6, 6  ;;  %v12078_v30 = vld [vmem:[#allocation2 + $0xa74] sm:$0xf0]  ;;  %v7494_v39 = vperm.slane %v14052_v29, 0 }
 0x65d   :  { %7002 = vmatpush.bf16.msra.mxu3 %v10997_v24  ;;  %7021 = vmatpush.bf16.msrb.mxu1 %v10425_v15  ;;  %v7883_v25 = vmul.f32 0.5, %v7882_v40  ;;  %v7474_v24 = vmul.f32 %v14050_v55, %v13991_v46  ;;  %v12206_v3 = vld [vmem:[#allocation2 + $0xe74] sm:$0xf0]  ;;  %v9721_v15 = vor.u32 %v11822_v34, %v9720_v2  ;;  %v10745_v46 = vor.u32 %v12078_v30, %v10744_v41  ;;  %v6783_v2 = vpop.f32.mrf.mxu2 }
 0x65e   :  { %v14033_v50 = vadd.f32 %v8042_v10, %v8024_v22  ;;  %6990 = vmatmul.bf16.vlgmr.msra.gmra.mxu2 %v13632_v62  ;;  %v14040_v57 = vadd.f32 %v8043_v37, %v8025_v7  ;;  %v10232_v22 = vld [vmem:[#allocation2 + $0x638] sm:$0xf]  ;;  %v8143_v10 = vperm.slane %v14047_v45, 5  ;;  %v8076_v19 = vadd.f32 %v8044_v13, %v8026_v35 }
 0x65f   :  { %7034 = vmatpush.bf16.msrb.mxu2 %v10937_v33  ;;  %7009 = vmatpush.bf16.msrb.mxu0 %v9849_v21  ;;  %v11256_v37 = vld [vmem:[#allocation2 + $0xe38] sm:$0xf]  ;;  %v10233_v33 = vor.u32 %v11950_v43, %v10232_v22  ;;  %v7995_v14 = vperm.slane %v13994_v27, 7  ;;  %v6784_v40 = vadd.f32 %v6783_v2, %v6771_v12  ;;  %v8045_v34 = vperm.slane %v14017_v6, 7  ;;  %v6759_v6 = vpop.f32.mrf.mxu0 }
 0x660   :  { %7003 = vmatmul.bf16.vlgmr.msra.gmra.mxu3 %v13636_v59  ;;  %vm8090_vm1 = vcmp.ge.f32.partialorder %v14033_v50, 0.0  ;;  %v8106_v51 = vmul.f32 0.2, %v14033_v50  ;;  %vm8091_vm3 = vcmp.ge.f32.partialorder %v14040_v57, 0.0  ;;  %v9656_v53 = vld [vmem:[#allocation2 + $0x1b8] sm:$0xf]  ;;  %v11257_v47 = vor.u32 %v12206_v3, %v11256_v37 }
 0x661   :  { %7047 = vmatpush.bf16.msrb.mxu3 %v11449_v38  ;;  %7022 = vmatpush.bf16.msrb.mxu1 %v10361_v17  ;;  %v8107_v7 = vmul.f32 0.2, %v14040_v57  ;;  %v7884_v38 = vsub.f32 1.5, %v7883_v25  ;;  %v11806_v44 = vld [vmem:[#allocation2 + $0x1f4] sm:$0xf0]  ;;  %vm8092_vm7 = vcmp.ge.f32.partialorder %v8076_v19, 0.0 }
 0x662   :  { %v10168_v28 = vld [vmem:[#allocation2 + $0x5b8] sm:$0xf]  ;;  %v9657_v18 = vor.u32 %v11806_v44, %v9656_v53  ;;  %v8108_v36 = vmul.f32 0.2, %v8076_v19  ;;  %v8144_v41 = vperm.slane %v14047_v45, 6  ;;  %v7495_v25 = vperm.slane %v14052_v29, 1 }
 0x663   :  { %7035 = vmatpush.bf16.msrb.mxu2 %v10873_v4  ;;  %7010 = vmatpush.bf16.msrb.mxu0 %v9785_v61  ;;  %v11934_v8 = vld [vmem:[#allocation2 + $0x5f4] sm:$0xf0]  ;;  %v7885_v17 = vmul.f32 %v14037_v32, %v7884_v38  ;;  %v14067_v4 = vadd.f32 %v7494_v39, %v7474_v24  ;;  %v8123_v11 = vsel %vm8091_vm3, %v14040_v57, %v8107_v7  ;;  %v6772_v38 = vpop.f32.mrf.mxu1 }
 0x664   :  { %v10680_v21 = vld [vmem:[#allocation2 + $0x9b8] sm:$0xf]  ;;  %v10169_v60 = vor.u32 %v11934_v8, %v10168_v28  ;;  %v8175_v30 = vmul.f32 %v8143_v10, %v8123_v11  ;;  %v8124_v3 = vsel %vm8092_vm7, %v8076_v19, %v8108_v36  ;;  %v10874_v38 = vld [vmem:[#allocation2 + $0xb78] sm:$0xf0] }
 0x665   :  { %7048 = vmatpush.bf16.msrb.mxu3 %v11385_v20  ;;  %7023 = vmatpush.bf16.msrb.mxu1 %v10297_v52  ;;  %v12062_v58 = vld [vmem:[#allocation2 + $0x9f4] sm:$0xf0]  ;;  %v8122_v20 = vsel %vm8090_vm1, %v14033_v50, %v8106_v51  ;;  %v7889_v50 = vsel %vm14076_vm6, %v14037_v32, %v7885_v17  ;;  %v6796_v52 = vpop.f32.mrf.mxu3  ;;  %v7586_v32 = vrot.slane %v14067_v4, 4  ;;  %v6785_v11 = vpop.f32.mrf.mxu2 }
 0x666   :  { %v11192_v16 = vld [vmem:[#allocation2 + $0xdb8] sm:$0xf]  ;;  %v10681_v61 = vor.u32 %v12062_v58, %v10680_v21  ;;  %v7977_v51 = vmul.f32 %v7889_v50, %v13968_v9  ;;  %v6797_v9 = vadd.f32 %v6796_v52, %v6784_v40  ;;  %v8174_v10 = vmul.f32 %v8142_v1, %v8122_v20 }
 0x667   :  { %7036 = vmatpush.bf16.msrb.mxu2 %v10809_v23  ;;  %v12190_v5 = vld [vmem:[#allocation2 + $0xdf4] sm:$0xf0]  ;;  %7011 = vmatpush.bf16.msrb.mxu0 %v9721_v15  ;;  %v8145_v21 = vperm.slane %v14047_v45, 7  ;;  %v8176_v58 = vmul.f32 %v8144_v41, %v8124_v3  ;;  %v7587_v20 = vadd.f32 %v7586_v32, %v14067_v4  ;;  %v12118_v32 = vld [vmem:[#allocation2 + $0xbbc] sm:$0xf] }
 0x668   :  { %v9592_v48 = vld [vmem:[#allocation2 + $0x138] sm:$0xf]  ;;  %v11193_v27 = vor.u32 %v12190_v5, %v11192_v16  ;;  %v8027_v37 = vmul.f32 %v7995_v14, %v7977_v51  ;;  %v8194_v17 = vadd.f32 %v8175_v30, %v8174_v10  ;;  %v9914_v51 = vld [vmem:[#allocation2 + $0x3f8] sm:$0xf0] }
 0x669   :  { %7049 = vmatpush.bf16.msrb.mxu3 %v11321_v49  ;;  %v11790_v26 = vld [vmem:[#allocation2 + $0x174] sm:$0xf0]  ;;  %7024 = vmatpush.bf16.msrb.mxu1 %v10233_v33  ;;  %v12246_v30 = vld [vmem:[#allocation2 + $0xfbc] sm:$0xf] }
 0x66a   :  { %v10104_v35 = vld [vmem:[#allocation2 + $0x538] sm:$0xf]  ;;  %v9593_v22 = vor.u32 %v11790_v26, %v9592_v48  ;;  %v8077_v19 = vadd.f32 %v8045_v34, %v8027_v37  ;;  %v8195_v52 = vadd.f32 %v8194_v17, %v8176_v58  ;;  %v10426_v34 = vld [vmem:[#allocation2 + $0x7f8] sm:$0xf0] }
 0x66b   :  { %7037 = vmatpush.bf16.msrb.mxu2 %v10745_v46  ;;  %v11918_v13 = vld [vmem:[#allocation2 + $0x574] sm:$0xf0]  ;;  %7012 = vmatpush.bf16.msrb.mxu0 %v9657_v18  ;;  %v7475_v46 = vmul.f32 %v14050_v55, %v6797_v9  ;;  %v11450_v9 = vld [vmem:[#allocation2 + $0xff8] sm:$0xf0] }
 0x66c   :  { %v10616_v23 = vld [vmem:[#allocation2 + $0x938] sm:$0xf]  ;;  %v10105_v15 = vor.u32 %v11918_v13, %v10104_v35  ;;  %vm8093_vm8 = vcmp.ge.f32.partialorder %v8077_v19, 0.0  ;;  %v8109_v48 = vmul.f32 0.2, %v8077_v19 }
 0x66d   :  { %7050 = vmatpush.bf16.msrb.mxu3 %v11257_v47  ;;  %v12046_v57 = vld [vmem:[#allocation2 + $0x974] sm:$0xf0]  ;;  %7025 = vmatpush.bf16.msrb.mxu1 %v10169_v60  ;;  %v14099_v16 = vadd.f32 %v7495_v25, %v7475_v46  ;;  %v6798_v35 = vpop.f32.mrf.mxu3  ;;  %v11862_v13 = vld [vmem:[#allocation2 + $0x3bc] sm:$0xf] }
 0x66e   :  { %v11128_v43 = vld [vmem:[#allocation2 + $0xd38] sm:$0xf]  ;;  %v10617_v33 = vor.u32 %v12046_v57, %v10616_v23  ;;  %v8125_v2 = vsel %vm8093_vm8, %v8077_v19, %v8109_v48  ;;  %v9917_v37 = vor.u32 %v11862_v13, %v9914_v51  ;;  %v12102_v10 = vld [vmem:[#allocation2 + $0xb3c] sm:$0xf] }
 0x66f   :  { %v12174_v49 = vld [vmem:[#allocation2 + $0xd74] sm:$0xf0]  ;;  %7038 = vmatpush.bf16.msrb.mxu2 %v10681_v61  ;;  %7013 = vmatpush.bf16.msrb.mxu0 %v9593_v22  ;;  %v7592_v45 = vrot.slane %v14099_v16, 4  ;;  %v8177_v40 = vmul.f32 %v8145_v21, %v8125_v2  ;;  %v10938_v22 = vld [vmem:[#allocation2 + $0xbf8] sm:$0xf0] }
 0x670   :  { %v9528_v24 = vld [vmem:[#allocation2 + $0xb8] sm:$0xf]  ;;  %v11129_v54 = vor.u32 %v12174_v49, %v11128_v43  ;;  %v7588_v43 = vrot.slane %v7587_v20, 2  ;;  %v10941_v6 = vor.u32 %v12118_v32, %v10938_v22  ;;  %v9786_v21 = vld [vmem:[#allocation2 + $0x2f8] sm:$0xf0]  ;;  %v6822_v22 = vpop.f32.mrf.mxu1 }
 0x671   :  { %v11774_v39 = vld [vmem:[#allocation2 + $0xf4] sm:$0xf0]  ;;  %7051 = vmatpush.bf16.msrb.mxu3 %v11193_v27  ;;  %7026 = vmatpush.bf16.msrb.mxu1 %v10105_v15  ;;  %v11990_v27 = vld [vmem:[#allocation2 + $0x7bc] sm:$0xf]  ;;  %v7593_v23 = vadd.f32 %v7592_v45, %v14099_v16  ;;  %v8196_v25 = vadd.f32 %v8195_v52, %v8177_v40 }
 0x672   :  { %v10040_v63 = vld [vmem:[#allocation2 + $0x4b8] sm:$0xf]  ;;  %v9529_v5 = vor.u32 %v11774_v39, %v9528_v24  ;;  %v10429_v3 = vor.u32 %v11990_v27, %v10426_v34  ;;  %v11846_v15 = vld [vmem:[#allocation2 + $0x33c] sm:$0xf]  ;;  %v7589_v46 = vadd.f32 %v7588_v43, %v7587_v20 }
 0x673   :  { %v11902_v53 = vld [vmem:[#allocation2 + $0x4f4] sm:$0xf0]  ;;  %7039 = vmatpush.bf16.msrb.mxu2 %v10617_v33  ;;  %v7594_v24 = vrot.slane %v7593_v23, 2  ;;  %v9850_v33 = vld [vmem:[#allocation2 + $0x378] sm:$0xf0]  ;;  %8197 = vadd.xlane.f32.xlu2 %v8196_v25 }
 0x674   :  { %v10552_v7 = vld [vmem:[#allocation2 + $0x8b8] sm:$0xf]  ;;  %v10041_v56 = vor.u32 %v11902_v53, %v10040_v63  ;;  %7014 = vmatpush.bf16.msrb.mxu0 %v9529_v5  ;;  %v11974_v63 = vld [vmem:[#allocation2 + $0x73c] sm:$0xf]  ;;  %v11453_v53 = vor.u32 %v12246_v30, %v11450_v9  ;;  %v7590_v20 = vrot.slane %v7589_v46, 1 }
 0x675   :  { %v12030_v44 = vld [vmem:[#allocation2 + $0x8f4] sm:$0xf0]  ;;  %7052 = vmatpush.bf16.msrb.mxu3 %v11129_v54  ;;  %v12230_v54 = vld [vmem:[#allocation2 + $0xf3c] sm:$0xf] }
 0x676   :  { %v11064_v28 = vld [vmem:[#allocation2 + $0xcb8] sm:$0xf]  ;;  %v10553_v18 = vor.u32 %v12030_v44, %v10552_v7  ;;  %7027 = vmatpush.bf16.msrb.mxu1 %v10041_v56  ;;  %v10362_v7 = vld [vmem:[#allocation2 + $0x778] sm:$0xf0]  ;;  %v7591_v51 = vadd.f32 %v7590_v20, %v7589_v46 }
 0x677   :  { %v12158_v47 = vld [vmem:[#allocation2 + $0xcf4] sm:$0xf0]  ;;  %v11386_v44 = vld [vmem:[#allocation2 + $0xf78] sm:$0xf0]  ;;  %v10365_v19 = vor.u32 %v11974_v63, %v10362_v7  ;;  %v6835_v7 = vpop.f32.mrf.mxu2 }
 0x678   :  { %v9464_v12 = vld [vmem:[#allocation2 + $0x38] sm:$0xf]  ;;  %v11065_v50 = vor.u32 %v12158_v47, %v11064_v28  ;;  %7040 = vmatpush.bf16.msrb.mxu2 %v10553_v18  ;;  %v7595_v28 = vadd.f32 %v7594_v24, %v7593_v23  ;;  %v9853_v47 = vor.u32 %v11846_v15, %v9850_v33  ;;  %v11958_v58 = vld [vmem:[#allocation2 + $0x6bc] sm:$0xf]  ;;  %v11389_v17 = vor.u32 %v12230_v54, %v11386_v44 }
 0x679   :  { %v11758_v8 = vld [vmem:[#allocation2 + $0x74] sm:$0xf0]  ;;  %v10298_v5 = vld [vmem:[#allocation2 + $0x6f8] sm:$0xf0] }
 0x67a   :  { %v9976_v1 = vld [vmem:[#allocation2 + $0x438] sm:$0xf]  ;;  %v9465_v57 = vor.u32 %v11758_v8, %v9464_v12  ;;  %7053 = vmatpush.bf16.msrb.mxu3 %v11065_v50  ;;  %v10877_v12 = vor.u32 %v12102_v10, %v10874_v38  ;;  %v11830_v8 = vld [vmem:[#allocation2 + $0x2bc] sm:$0xf] }
 0x67b   :  { %v11886_v26 = vld [vmem:[#allocation2 + $0x474] sm:$0xf0]  ;;  %v10810_v48 = vld [vmem:[#allocation2 + $0xaf8] sm:$0xf0] }
 0x67c   :  { %v10488_v14 = vld [vmem:[#allocation2 + $0x838] sm:$0xf]  ;;  %v9977_v49 = vor.u32 %v11886_v26, %v9976_v1  ;;  %7015 = vmatpush.bf16.msrb.mxu0 %v9465_v57  ;;  %v12086_v1 = vld [vmem:[#allocation2 + $0xabc] sm:$0xf]  ;;  %v7596_v26 = vrot.slane %v7595_v28, 1  ;;  %v6809_v57 = vpop.f32.mrf.mxu0 }
 0x67d   :  { %v12014_v36 = vld [vmem:[#allocation2 + $0x874] sm:$0xf0]  ;;  %v12214_v56 = vld [vmem:[#allocation2 + $0xebc] sm:$0xf]  ;;  %v10813_v11 = vor.u32 %v12086_v1, %v10810_v48  ;;  %v6823_v9 = vadd.f32 %v6822_v22, %v6809_v57  ;;  %v7496_v1 = vperm.slane %v14052_v29, 2 }
 0x67e   :  { %v11000_v60 = vld [vmem:[#allocation2 + $0xc38] sm:$0xf]  ;;  %v10489_v41 = vor.u32 %v12014_v36, %v10488_v14  ;;  %7028 = vmatpush.bf16.msrb.mxu1 %v9977_v49  ;;  %v11322_v18 = vld [vmem:[#allocation2 + $0xef8] sm:$0xf0]  ;;  %v9789_v14 = vor.u32 %v11830_v8, %v9786_v21  ;;  %v10301_v36 = vor.u32 %v11958_v58, %v10298_v5  ;;  %v7597_v52 = vadd.f32 %v7596_v26, %v7595_v28  ;;  %v6848_v28 = vpop.f32.mrf.mxu3 }
 0x67f   :  { %v12142_v61 = vld [vmem:[#allocation2 + $0xc74] sm:$0xf0]  ;;  %7016 = vmatmul.bf16.vlgmr.msrb.gmra.mxu0 %v13640_v0  ;;  %v11814_v45 = vld [vmem:[#allocation2 + $0x23c] sm:$0xf]  ;;  %v6836_v44 = vadd.f32 %v6835_v7, %v6823_v9  ;;  %v6837_v22 = vpop.f32.mrf.mxu2 }
 0x680   :  { %v11001_v39 = vor.u32 %v12142_v61, %v11000_v60  ;;  %7041 = vmatpush.bf16.msrb.mxu2 %v10489_v41  ;;  %7060 = vmatpush.bf16.msra.mxu0 %v9917_v37  ;;  %v9722_v50 = vld [vmem:[#allocation2 + $0x278] sm:$0xf0]  ;;  %v11325_v61 = vor.u32 %v12214_v56, %v11322_v18  ;;  %v7642_v37 = vmul.f32 %v7591_v51, %v12959_v42 }
 0x681   :  { %7029 = vmatmul.bf16.vlgmr.msrb.gmra.mxu1 %v13644_v31  ;;  %v11942_v60 = vld [vmem:[#allocation2 + $0x63c] sm:$0xf]  ;;  %v9725_v23 = vor.u32 %v11814_v45, %v9722_v50  ;;  %v7643_v15 = vmul.f32 %v7597_v52, %v12959_v42  ;;  %v6849_v5 = vadd.f32 %v6848_v28, %v6836_v44 }
 0x682   :  { %7054 = vmatpush.bf16.msrb.mxu3 %v11001_v39  ;;  %7073 = vmatpush.bf16.msra.mxu1 %v10429_v3  ;;  %v10234_v2 = vld [vmem:[#allocation2 + $0x678] sm:$0xf0]  ;;  %v14112_v8 = vsub.f32 %v14067_v4, %v7642_v37  ;;  %v6824_v4 = vpop.f32.mrf.mxu1 }
 0x683   :  { %7042 = vmatmul.bf16.vlgmr.msrb.gmra.mxu2 %v13632_v62  ;;  %v12070_v35 = vld [vmem:[#allocation2 + $0xa3c] sm:$0xf]  ;;  %v10237_v34 = vor.u32 %v11942_v60, %v10234_v2 }
 0x684   :  { %7086 = vmatpush.bf16.msra.mxu2 %v10941_v6  ;;  %7061 = vmatpush.bf16.msra.mxu0 %v9853_v47  ;;  %v10746_v13 = vld [vmem:[#allocation2 + $0xa78] sm:$0xf0]  ;;  %v6811_v20 = vpop.f32.mrf.mxu0 }
 0x685   :  { %7055 = vmatmul.bf16.vlgmr.msrb.gmra.mxu3 %v13636_v59  ;;  %v12198_v27 = vld [vmem:[#allocation2 + $0xe3c] sm:$0xf]  ;;  %v10749_v32 = vor.u32 %v12070_v35, %v10746_v13 }
 0x686   :  { %7099 = vmatpush.bf16.msra.mxu3 %v11453_v53  ;;  %7074 = vmatpush.bf16.msra.mxu1 %v10365_v19  ;;  %v11258_v40 = vld [vmem:[#allocation2 + $0xe78] sm:$0xf0]  ;;  %v6850_v9 = vpop.f32.mrf.mxu3 }
 0x687   :  { %v11798_v43 = vld [vmem:[#allocation2 + $0x1bc] sm:$0xf]  ;;  %v11261_v30 = vor.u32 %v12198_v27, %v11258_v40 }
 0x688   :  { %7087 = vmatpush.bf16.msra.mxu2 %v10877_v12  ;;  %7062 = vmatpush.bf16.msra.mxu0 %v9789_v14  ;;  %v9658_v49 = vld [vmem:[#allocation2 + $0x1f8] sm:$0xf0] }
 0x689   :  { %v11926_v41 = vld [vmem:[#allocation2 + $0x5bc] sm:$0xf]  ;;  %v9661_v33 = vor.u32 %v11798_v43, %v9658_v49 }
 0x68a   :  { %7100 = vmatpush.bf16.msra.mxu3 %v11389_v17  ;;  %7075 = vmatpush.bf16.msra.mxu1 %v10301_v36  ;;  %v10170_v25 = vld [vmem:[#allocation2 + $0x5f8] sm:$0xf0]  ;;  %v14115_v17 = vsub.f32 %v14099_v16, %v7643_v15 }
 0x68b   :  { %v12054_v24 = vld [vmem:[#allocation2 + $0x9bc] sm:$0xf]  ;;  %v10173_v63 = vor.u32 %v11926_v41, %v10170_v25 }
 0x68c   :  { %7088 = vmatpush.bf16.msra.mxu2 %v10813_v11  ;;  %v10682_v39 = vld [vmem:[#allocation2 + $0x9f8] sm:$0xf0]  ;;  %7063 = vmatpush.bf16.msra.mxu0 %v9725_v23  ;;  %v7476_v11 = vmul.f32 %v14050_v55, %v6849_v5  ;;  %v7675_v13 = vmul.f32 %v14115_v17, %v14115_v17  ;;  %v6861_v5 = vpop.f32.mrf.mxu0 }
 0x68d   :  { %v12182_v3 = vld [vmem:[#allocation2 + $0xdbc] sm:$0xf]  ;;  %v10685_v53 = vor.u32 %v12054_v24, %v10682_v39 }
 0x68e   :  { %7101 = vmatpush.bf16.msra.mxu3 %v11325_v61  ;;  %v11194_v6 = vld [vmem:[#allocation2 + $0xdf8] sm:$0xf0]  ;;  %7076 = vmatpush.bf16.msra.mxu1 %v10237_v34  ;;  %v7674_v61 = vmul.f32 %v14112_v8, %v14112_v8  ;;  %v7528_v51 = vadd.f32 %v7496_v1, %v7476_v11  ;;  %v7736_v37 = vrot.slane %v7675_v13, 4 }
 0x68f   :  { %v11782_v10 = vld [vmem:[#allocation2 + $0x13c] sm:$0xf]  ;;  %v11197_v54 = vor.u32 %v12182_v3, %v11194_v6 }
 0x690   :  { %7089 = vmatpush.bf16.msra.mxu2 %v10749_v32  ;;  %v9594_v38 = vld [vmem:[#allocation2 + $0x178] sm:$0xf0]  ;;  %7064 = vmatpush.bf16.msra.mxu0 %v9661_v33  ;;  %v7598_v43 = vrot.slane %v7528_v51, 4  ;;  %v7730_v25 = vrot.slane %v7674_v61, 4 }
 0x691   :  { %v11910_v46 = vld [vmem:[#allocation2 + $0x53c] sm:$0xf]  ;;  %v9597_v48 = vor.u32 %v11782_v10, %v9594_v38  ;;  %v7737_v10 = vadd.f32 %v7736_v37, %v7675_v13 }
 0x692   :  { %7102 = vmatpush.bf16.msra.mxu3 %v11261_v30  ;;  %v10106_v47 = vld [vmem:[#allocation2 + $0x578] sm:$0xf0]  ;;  %7077 = vmatpush.bf16.msra.mxu1 %v10173_v63  ;;  %v7599_v3 = vadd.f32 %v7598_v43, %v7528_v51  ;;  %v7731_v7 = vadd.f32 %v7730_v25, %v7674_v61 }
 0x693   :  { %v12038_v19 = vld [vmem:[#allocation2 + $0x93c] sm:$0xf]  ;;  %v10109_v56 = vor.u32 %v11910_v46, %v10106_v47  ;;  %v7738_v44 = vrot.slane %v7737_v10, 2 }
 0x694   :  { %v10618_v12 = vld [vmem:[#allocation2 + $0x978] sm:$0xf0]  ;;  %7090 = vmatpush.bf16.msra.mxu2 %v10685_v53  ;;  %7065 = vmatpush.bf16.msra.mxu0 %v9597_v48  ;;  %v7600_v63 = vrot.slane %v7599_v3, 2 }
 0x695   :  { %v12166_v21 = vld [vmem:[#allocation2 + $0xd3c] sm:$0xf]  ;;  %v10621_v18 = vor.u32 %v12038_v19, %v10618_v12  ;;  %v7739_v12 = vadd.f32 %v7738_v44, %v7737_v10 }
 0x696   :  { %v11130_v58 = vld [vmem:[#allocation2 + $0xd78] sm:$0xf0]  ;;  %7103 = vmatpush.bf16.msra.mxu3 %v11197_v54  ;;  %7078 = vmatpush.bf16.msra.mxu1 %v10109_v56  ;;  %v7601_v38 = vadd.f32 %v7600_v63, %v7599_v3  ;;  %v7732_v54 = vrot.slane %v7731_v7, 2 }
 0x697   :  { %v11766_v26 = vld [vmem:[#allocation2 + $0xbc] sm:$0xf]  ;;  %v11133_v45 = vor.u32 %v12166_v21, %v11130_v58  ;;  %v7740_v48 = vrot.slane %v7739_v12, 1 }
 0x698   :  { %v9530_v14 = vld [vmem:[#allocation2 + $0xf8] sm:$0xf0]  ;;  %7091 = vmatpush.bf16.msra.mxu2 %v10621_v18  ;;  %v7602_v46 = vrot.slane %v7601_v38, 1  ;;  %v7733_v19 = vadd.f32 %v7732_v54, %v7731_v7 }
 0x699   :  { %v11894_v36 = vld [vmem:[#allocation2 + $0x4bc] sm:$0xf]  ;;  %v9533_v27 = vor.u32 %v11766_v26, %v9530_v14  ;;  %v7741_v26 = vadd.f32 %v7740_v48, %v7739_v12 }
 0x69a   :  { %v10042_v16 = vld [vmem:[#allocation2 + $0x4f8] sm:$0xf0]  ;;  %7104 = vmatpush.bf16.msra.mxu3 %v11133_v45  ;;  %v7603_v28 = vadd.f32 %v7602_v46, %v7601_v38  ;;  %v7734_v1 = vrot.slane %v7733_v19, 1  ;;  %v7497_v45 = vperm.slane %v14052_v29, 3 }
 0x69b   :  { %v12022_v50 = vld [vmem:[#allocation2 + $0x8bc] sm:$0xf]  ;;  %v10045_v52 = vor.u32 %v11894_v36, %v10042_v16  ;;  %7066 = vmatpush.bf16.msra.mxu0 %v9533_v27  ;;  %v6900_v36 = vpop.f32.mrf.mxu3  ;;  %v6863_v16 = vpop.f32.mrf.mxu0  ;;  %v7787_v61 = vmul.f32 %v7741_v26, %v12959_v42 }
 0x69c   :  { %v10554_v60 = vld [vmem:[#allocation2 + $0x8f8] sm:$0xf0]  ;;  %v7644_v47 = vmul.f32 %v7603_v28, %v12959_v42  ;;  %v7735_v18 = vadd.f32 %v7734_v1, %v7733_v19 }
 0x69d   :  { %v12150_v2 = vld [vmem:[#allocation2 + $0xcbc] sm:$0xf]  ;;  %v10557_v23 = vor.u32 %v12022_v50, %v10554_v60  ;;  %7079 = vmatpush.bf16.msra.mxu1 %v10045_v52  ;;  %v7803_v52 = vadd.f32 1e-05, %v7787_v61 }
 0x69e   :  { %v11066_v35 = vld [vmem:[#allocation2 + $0xcf8] sm:$0xf0]  ;;  %v14128_v21 = vsub.f32 %v7528_v51, %v7644_v47  ;;  %v7786_v50 = vmul.f32 %v7735_v18, %v12959_v42 }
 0x69f   :  { %v11750_v40 = vld [vmem:[#allocation2 + $0x3c] sm:$0xf]  ;;  %v11069_v49 = vor.u32 %v12150_v2, %v11066_v35  ;;  %7092 = vmatpush.bf16.msra.mxu2 %v10557_v23  ;;  %vm7906_vm11 = vweird.f32 %v7803_v52 }
 0x6a0   :  { %v9466_v57 = vld [vmem:[#allocation2 + $0x78] sm:$0xf0]  ;;  %v7676_v58 = vmul.f32 %v14128_v21, %v14128_v21  ;;  %v7802_v27 = vadd.f32 1e-05, %v7786_v50 }
 0x6a1   :  { %v11878_v34 = vld [vmem:[#allocation2 + $0x43c] sm:$0xf]  ;;  %v9469_v6 = vor.u32 %v11750_v40, %v9466_v57  ;;  %7105 = vmatpush.bf16.msra.mxu3 %v11069_v49 }
 0x6a2   :  { %v9978_v32 = vld [vmem:[#allocation2 + $0x478] sm:$0xf0]  ;;  %v7742_v20 = vrot.slane %v7676_v58, 4  ;;  %12333 = vrsqrt.f32 %v7802_v27  ;;  %vm7896_vm9 = vweird.f32 %v7802_v27 }
 0x6a3   :  { %v12006_v41 = vld [vmem:[#allocation2 + $0x83c] sm:$0xf]  ;;  %v9981_v15 = vor.u32 %v11878_v34, %v9978_v32  ;;  %7067 = vmatpush.bf16.msra.mxu0 %v9469_v6  ;;  %v6902_v34 = vpop.f32.mrf.mxu3  ;;  %12335 = vrsqrt.f32 %v7803_v52 }
 0x6a4   :  { %v10490_v30 = vld [vmem:[#allocation2 + $0x878] sm:$0xf0] }
 0x6a5   :  { %v12134_v24 = vld [vmem:[#allocation2 + $0xc3c] sm:$0xf]  ;;  %v10493_v33 = vor.u32 %v12006_v41, %v10490_v30  ;;  %7080 = vmatpush.bf16.msra.mxu1 %v9981_v15 }
 0x6a6   :  { %v11002_v39 = vld [vmem:[#allocation2 + $0xc78] sm:$0xf0]  ;;  %7068 = vmatmul.bf16.vlgmr.msra.gmra.mxu0 %v13640_v0  ;;  %v6874_v0 = vpop.f32.mrf.mxu1 }
 0x6a7   :  { %v11005_v53 = vor.u32 %v12134_v24, %v11002_v39  ;;  %7093 = vmatpush.bf16.msra.mxu2 %v10493_v33  ;;  %v6875_v56 = vadd.f32 %v6874_v0, %v6861_v5 }
 0x6a8   :  { %7081 = vmatmul.bf16.vlgmr.msra.gmra.mxu1 %v13644_v31  ;;  %v7743_v31 = vadd.f32 %v7742_v20, %v7676_v58  ;;  %v12334_v30 = vpop.eup %12333 }
 0x6a9   :  { %7106 = vmatpush.bf16.msra.mxu3 %v11005_v53  ;;  %v12336_v9 = vpop.eup %12335  ;;  %v7891_v39 = vmul.f32 %v12334_v30, %v7802_v27  ;;  %vm7897_vm10 = vweird.f32 %v12334_v30 }
 0x6aa   :  { %7094 = vmatmul.bf16.vlgmr.msra.gmra.mxu2 %v13632_v62  ;;  %v6887_v62 = vpop.f32.mrf.mxu2  ;;  %v7901_v37 = vmul.f32 %v12336_v9, %v7803_v52  ;;  %vm7907_vm12 = vweird.f32 %v12336_v9  ;;  %vm7898_vm13 = vmor %vm7896_vm9, %vm7897_vm10 }
 0x6ab   :  { %v6888_v14 = vadd.f32 %v6887_v62, %v6875_v56  ;;  %v7892_v63 = vmul.f32 %v12334_v30, %v7891_v39  ;;  %vm7908_vm0 = vmor %vm7906_vm11, %vm7907_vm12 }
 0x6ac   :  { %7107 = vmatmul.bf16.vlgmr.msra.gmra.mxu3 %v13636_v59  ;;  %v7744_v59 = vrot.slane %v7743_v31, 2  ;;  %v7902_v53 = vmul.f32 %v12336_v9, %v7901_v37 }
 0x6ad   :  { %v6901_v11 = vadd.f32 %v6900_v36, %v6888_v14  ;;  %v7893_v44 = vmul.f32 0.5, %v7892_v63 }
 0x6ae   :  { %v7745_v4 = vadd.f32 %v7744_v59, %v7743_v31  ;;  %v6876_v60 = vpop.f32.mrf.mxu1  ;;  %v7903_v28 = vmul.f32 0.5, %v7902_v53 }
 0x6af   :  { %v7477_v35 = vmul.f32 %v14050_v55, %v6901_v11  ;;  %v7894_v20 = vsub.f32 1.5, %v7893_v44  ;;  %v14143_v60 = vld [vmem:[#allocation21 + $0x8] sm:$0xff] }
 0x6b0   :  { %v7746_v2 = vrot.slane %v7745_v4, 1  ;;  %v7904_v56 = vsub.f32 1.5, %v7903_v28  ;;  %v7996_v27 = vperm.slane %v14143_v60, 0 }
 0x6b1   :  { %v7529_v51 = vadd.f32 %v7497_v45, %v7477_v35  ;;  %v6913_v33 = vpop.f32.mrf.mxu0  ;;  %v7895_v59 = vmul.f32 %v12334_v30, %v7894_v20 }
 0x6b2   :  { %v7747_v13 = vadd.f32 %v7746_v2, %v7745_v4  ;;  %v6889_v40 = vpop.f32.mrf.mxu2  ;;  %v7905_v14 = vmul.f32 %v12336_v9, %v7904_v56 }
 0x6b3   :  { %v7604_v57 = vrot.slane %v7529_v51, 4  ;;  %v7899_v50 = vsel %vm7898_vm13, %v12334_v30, %v7895_v59  ;;  %v14149_v40 = vld [vmem:[#allocation23 + $0x8] sm:$0xff] }
 0x6b4   :  { %v7788_v23 = vmul.f32 %v7747_v13, %v12959_v42  ;;  %v7909_v61 = vsel %vm7908_vm0, %v12336_v9, %v7905_v14  ;;  %v7978_v35 = vmul.f32 %v7899_v50, %v14112_v8 }
 0x6b5   :  { %v7605_v22 = vadd.f32 %v7604_v57, %v7529_v51  ;;  %v7979_v13 = vmul.f32 %v7909_v61, %v14115_v17  ;;  %v8048_v17 = vperm.slane %v14149_v40, 2 }
 0x6b6   :  { %v7804_v32 = vadd.f32 1e-05, %v7788_v23  ;;  %v6926_v7 = vpop.f32.mrf.mxu1  ;;  %v7998_v23 = vperm.slane %v14143_v60, 2 }
 0x6b7   :  { %v7606_v43 = vrot.slane %v7605_v22, 2  ;;  %v6927_v38 = vadd.f32 %v6926_v7, %v6913_v33  ;;  %v7498_v7 = vperm.slane %v14052_v29, 4 }
 0x6b8   :  { %12337 = vrsqrt.f32 %v7804_v32  ;;  %vm7916_vm14 = vweird.f32 %v7804_v32 }
 0x6b9   :  { %v7607_v49 = vadd.f32 %v7606_v43, %v7605_v22  ;;  %v6915_v48 = vpop.f32.mrf.mxu0  ;;  %v8046_v22 = vperm.slane %v14149_v40, 0  ;;  %v8047_v43 = vperm.slane %v14149_v40, 1 }
 0x6bb   :  { %v7608_v41 = vrot.slane %v7607_v49, 1  ;;  %v6939_v47 = vpop.f32.mrf.mxu2 }
 0x6bc   :  { %v6940_v12 = vadd.f32 %v6939_v47, %v6927_v38 }
 0x6bd   :  { %v7609_v55 = vadd.f32 %v7608_v41, %v7607_v49  ;;  %v6952_v58 = vpop.f32.mrf.mxu3 }
 0x6be   :  { %v12338_v25 = vpop.eup %12337  ;;  %v6953_v0 = vadd.f32 %v6952_v58, %v6940_v12  ;;  %v6928_v31 = vpop.f32.mrf.mxu1  ;;  %v8049_v58 = vperm.slane %v14149_v40, 3 }
 0x6bf   :  { %v7645_v24 = vmul.f32 %v7609_v55, %v12959_v42  ;;  %v7911_v6 = vmul.f32 %v12338_v25, %v7804_v32  ;;  %vm7917_vm15 = vweird.f32 %v12338_v25  ;;  %v8028_v32 = vmul.f32 %v7996_v27, %v7978_v35 }
 0x6c0   :  { %vm7918_vm1 = vmor %vm7916_vm14, %vm7917_vm15  ;;  %v7499_v31 = vperm.slane %v14052_v29, 5 }
 0x6c1   :  { %v14138_v3 = vsub.f32 %v7529_v51, %v7645_v24  ;;  %v7912_v46 = vmul.f32 %v12338_v25, %v7911_v6  ;;  %v7997_v51 = vperm.slane %v14143_v60, 1  ;;  %v8078_v30 = vadd.f32 %v8046_v22, %v8028_v32 }
 0x6c3   :  { %v7677_v15 = vmul.f32 %v14138_v3, %v14138_v3  ;;  %v7913_v5 = vmul.f32 0.5, %v7912_v46  ;;  %v6941_v36 = vpop.f32.mrf.mxu2  ;;  %v8029_v34 = vmul.f32 %v7997_v51, %v7979_v13  ;;  %vm8094_vm7 = vcmp.ge.f32.partialorder %v8078_v30, 0.0  ;;  %v14161_v46 = vld [vmem:[#allocation24 + $0x8] sm:$0xff] }
 0x6c4   :  { %v8147_v28 = vperm.slane %v14161_v46, 1  ;;  %v8146_v48 = vperm.slane %v14161_v46, 0  ;;  %v8148_v20 = vperm.slane %v14161_v46, 2 }
 0x6c5   :  { %v7748_v10 = vrot.slane %v7677_v15, 4  ;;  %v7914_v62 = vsub.f32 1.5, %v7913_v5  ;;  %v6954_v11 = vpop.f32.mrf.mxu3  ;;  %v8079_v9 = vadd.f32 %v8047_v43, %v8029_v34 }
 0x6c6   :  { %v8149_v11 = vperm.slane %v14161_v46, 3 }
 0x6c7   :  { %v7749_v54 = vadd.f32 %v7748_v10, %v7677_v15  ;;  %v7915_v45 = vmul.f32 %v12338_v25, %v7914_v62  ;;  %v8110_v15 = vmul.f32 0.2, %v8078_v30  ;;  %v8111_v33 = vmul.f32 0.2, %v8079_v9 }
 0x6c8   :  { %vm8095_vm5 = vcmp.ge.f32.partialorder %v8079_v9, 0.0  ;;  %v7999_v10 = vperm.slane %v14143_v60, 3 }
 0x6c9   :  { %v7750_v19 = vrot.slane %v7749_v54, 2  ;;  %v7919_v2 = vsel %vm7918_vm1, %v12338_v25, %v7915_v45  ;;  %v14156_v25 = vpop.permute.xlu1 %7431  ;;  %v8127_v5 = vsel %vm8095_vm5, %v8079_v9, %v8111_v33 }
 0x6ca   :  { %v7980_v52 = vmul.f32 %v7919_v2, %v14128_v21  ;;  %v7478_v53 = vmul.f32 %v14156_v25, %v6953_v0  ;;  %v8126_v0 = vsel %vm8094_vm7, %v8078_v30, %v8110_v15  ;;  %v8179_v59 = vmul.f32 %v8147_v28, %v8127_v5 }
 0x6cb   :  { %v7751_v1 = vadd.f32 %v7750_v19, %v7749_v54  ;;  %v8178_v45 = vmul.f32 %v8146_v48, %v8126_v0 }
 0x6cc   :  { %v8030_v49 = vmul.f32 %v7998_v23, %v7980_v52 }
 0x6cd   :  { %v7752_v18 = vrot.slane %v7751_v1, 1  ;;  %v8202_v2 = vadd.f32 %v8179_v59, %v8178_v45 }
 0x6ce   :  { %v8080_v24 = vadd.f32 %v8048_v17, %v8030_v49 }
 0x6cf   :  { %v7753_v26 = vadd.f32 %v7752_v18, %v7751_v1  ;;  %v7530_v1 = vadd.f32 %v7498_v7, %v7478_v53  ;;  %v12353_v53 = vld [vmem:[#allocation20 + $0x8] sm:$0xff] }
 0x6d0   :  { %v8112_v38 = vmul.f32 0.2, %v8080_v24  ;;  %vm8096_vm8 = vcmp.ge.f32.partialorder %v8080_v24, 0.0  ;;  %v7500_v7 = vperm.slane %v12353_v53, 6 }
 0x6d1   :  { %v7789_v4 = vmul.f32 %v7753_v26, %v12959_v42 }
 0x6d2   :  { %v8128_v62 = vsel %vm8096_vm8, %v8080_v24, %v8112_v38 }
 0x6d3   :  { %v7805_v16 = vadd.f32 1e-05, %v7789_v4  ;;  %v7610_v4 = vrot.slane %v7530_v1, 4 }
 0x6d5   :  { %12339 = vrsqrt.f32 %v7805_v16  ;;  %vm7926_vm3 = vweird.f32 %v7805_v16  ;;  %v7611_v27 = vadd.f32 %v7610_v4, %v7530_v1 }
 0x6d7   :  { %v6965_v21 = vpop.f32.mrf.mxu0  ;;  %v7612_v22 = vrot.slane %v7611_v27, 2 }
 0x6d9   :  { %v6978_v37 = vpop.f32.mrf.mxu1 }
 0x6da   :  { %v6979_v6 = vadd.f32 %v6978_v37, %v6965_v21 }
 0x6db   :  { %v12340_v57 = vpop.eup %12339 }
 0x6dc   :  { %v7921_v8 = vmul.f32 %v12340_v57, %v7805_v16  ;;  %vm7927_vm4 = vweird.f32 %v12340_v57  ;;  %v8180_v16 = vmul.f32 %v8148_v20, %v8128_v62 }
 0x6dd   :  { %vm7928_vm6 = vmor %vm7926_vm3, %vm7927_vm4 }
 0x6de   :  { %v7922_v41 = vmul.f32 %v12340_v57, %v7921_v8  ;;  %v8203_v23 = vadd.f32 %v8202_v2, %v8180_v16  ;;  %v7613_v8 = vadd.f32 %v7612_v22, %v7611_v27 }
 0x6df   :  { %v6967_v26 = vpop.f32.mrf.mxu0 }
 0x6e0   :  { %v7923_v55 = vmul.f32 0.5, %v7922_v41  ;;  %v7614_v17 = vrot.slane %v7613_v8, 1 }
 0x6e1   :  { %v6991_v44 = vpop.f32.mrf.mxu2  ;;  %v6980_v14 = vpop.f32.mrf.mxu1 }
 0x6e2   :  { %v7924_v39 = vsub.f32 1.5, %v7923_v55  ;;  %v6992_v19 = vadd.f32 %v6991_v44, %v6979_v6  ;;  %v7615_v9 = vadd.f32 %v7614_v17, %v7613_v8 }
 0x6e3   :  { %v7004_v12 = vpop.f32.mrf.mxu3 }
 0x6e4   :  { %v7925_v63 = vmul.f32 %v12340_v57, %v7924_v39  ;;  %v7005_v56 = vadd.f32 %v7004_v12, %v6992_v19  ;;  %v7646_v39 = vmul.f32 %v7615_v9, %v12959_v42 }
 0x6e6   :  { %v7929_v54 = vsel %vm7928_vm6, %v12340_v57, %v7925_v63  ;;  %v14175_v38 = vsub.f32 %v7530_v1, %v7646_v39 }
 0x6e7   :  { %v7981_v47 = vmul.f32 %v7929_v54, %v14138_v3  ;;  %v7479_v3 = vmul.f32 %v14156_v25, %v7005_v56 }
 0x6e8   :  { %v7678_v19 = vmul.f32 %v14175_v38, %v14175_v38 }
 0x6e9   :  { %v8031_v18 = vmul.f32 %v7999_v10, %v7981_v47  ;;  %v7531_v50 = vadd.f32 %v7499_v31, %v7479_v3  ;;  %v6993_v35 = vpop.f32.mrf.mxu2 }
 0x6ea   :  { %v7754_v20 = vrot.slane %v7678_v19, 4 }
 0x6eb   :  { %v8081_v36 = vadd.f32 %v8049_v58, %v8031_v18  ;;  %v7616_v13 = vrot.slane %v7531_v50, 4  ;;  %v7006_v51 = vpop.f32.mrf.mxu3 }
 0x6ec   :  { %v7755_v18 = vadd.f32 %v7754_v20, %v7678_v19 }
 0x6ed   :  { %vm8097_vm9 = vcmp.ge.f32.partialorder %v8081_v36, 0.0  ;;  %v8113_v61 = vmul.f32 0.2, %v8081_v36  ;;  %v7617_v57 = vadd.f32 %v7616_v13, %v7531_v50 }
 0x6ee   :  { %v7756_v14 = vrot.slane %v7755_v18, 2 }
 0x6ef   :  { %v8129_v29 = vsel %vm8097_vm9, %v8081_v36, %v8113_v61  ;;  %v7618_v32 = vrot.slane %v7617_v57, 2 }
 0x6f0   :  { %v8181_v52 = vmul.f32 %v8149_v11, %v8129_v29  ;;  %v7757_v45 = vadd.f32 %v7756_v14, %v7755_v18 }
 0x6f1   :  { %v7619_v43 = vadd.f32 %v7618_v32, %v7617_v57 }
 0x6f2   :  { %v8204_v34 = vadd.f32 %v8203_v23, %v8181_v52  ;;  %v7758_v13 = vrot.slane %v7757_v45, 1 }
 0x6f3   :  { %v7620_v49 = vrot.slane %v7619_v43, 1 }
 0x6f4   :  { %8205 = vadd.xlane.f32.xlu1 %v8204_v34  ;;  %v7759_v32 = vadd.f32 %v7758_v13, %v7757_v45 }
 0x6f5   :  { %v7621_v41 = vadd.f32 %v7620_v49, %v7619_v43  ;;  %v7501_v49 = vperm.slane %v12353_v53, 7 }
 0x6f6   :  { %v7790_v9 = vmul.f32 %v7759_v32, %v12959_v42 }
 0x6f7   :  { %v7647_v24 = vmul.f32 %v7621_v41, %v12959_v42 }
 0x6f9   :  { %v14173_v33 = vsub.f32 %v7531_v50, %v7647_v24 }
 0x6fb   :  { %v7679_v28 = vmul.f32 %v14173_v33, %v14173_v33 }
 0x6fc   :  { %v7017_v30 = vpop.f32.mrf.mxu0 }
 0x6fd   :  { %v7760_v0 = vrot.slane %v7679_v28, 4 }
 0x6fe   :  { %v7030_v55 = vpop.f32.mrf.mxu1 }
 0x6ff   :  { %v7031_v21 = vadd.f32 %v7030_v55, %v7017_v30  ;;  %v7761_v31 = vadd.f32 %v7760_v0, %v7679_v28 }
 0x701   :  { %v7762_v26 = vrot.slane %v7761_v31, 2 }
 0x703   :  { %v7763_v36 = vadd.f32 %v7762_v26, %v7761_v31 }
 0x704   :  { %v7019_v10 = vpop.f32.mrf.mxu0 }
 0x705   :  { %v7764_v61 = vrot.slane %v7763_v36, 1 }
 0x706   :  { %v7043_v37 = vpop.f32.mrf.mxu2  ;;  %v7032_v54 = vpop.f32.mrf.mxu1 }
 0x707   :  { %v7044_v6 = vadd.f32 %v7043_v37, %v7031_v21  ;;  %v7765_v27 = vadd.f32 %v7764_v61, %v7763_v36 }
 0x708   :  { %v7056_v15 = vpop.f32.mrf.mxu3 }
 0x709   :  { %v7057_v63 = vadd.f32 %v7056_v15, %v7044_v6  ;;  %v7791_v17 = vmul.f32 %v7765_v27, %v12959_v42 }
 0x70b   :  { %v7480_v44 = vmul.f32 %v14156_v25, %v7057_v63  ;;  %v7807_v39 = vadd.f32 1e-05, %v7791_v17  ;;  %v7806_v63 = vadd.f32 1e-05, %v7790_v9  ;;  %v8051_v17 = vperm.slane %v14149_v40, 5 }
 0x70d   :  { %v7532_v47 = vadd.f32 %v7500_v7, %v7480_v44  ;;  %12341 = vrsqrt.f32 %v7807_v39  ;;  %vm7946_vm10 = vweird.f32 %v7807_v39  ;;  %vm7936_vm12 = vweird.f32 %v7806_v63 }
 0x70e   :  { %v7045_v12 = vpop.f32.mrf.mxu2  ;;  %12343 = vrsqrt.f32 %v7806_v63 }
 0x70f   :  { %v7622_v58 = vrot.slane %v7532_v47, 4 }
 0x710   :  { %v7058_v5 = vpop.f32.mrf.mxu3 }
 0x711   :  { %v7623_v48 = vadd.f32 %v7622_v58, %v7532_v47 }
 0x713   :  { %v7624_v56 = vrot.slane %v7623_v48, 2 }
 0x715   :  { %v7625_v1 = vadd.f32 %v7624_v56, %v7623_v48 }
 0x717   :  { %v7626_v62 = vrot.slane %v7625_v1, 1 }
 0x719   :  { %v7627_v59 = vadd.f32 %v7626_v62, %v7625_v1 }
 0x71b   :  { %v7648_v3 = vmul.f32 %v7627_v59, %v12959_v42 }
 0x71d   :  { %v14183_v4 = vsub.f32 %v7532_v47, %v7648_v3 }
 0x71f   :  { %v7680_v50 = vmul.f32 %v14183_v4, %v14183_v4 }
 0x721   :  { %v7766_v2 = vrot.slane %v7680_v50, 4 }
 0x723   :  { %v7069_v11 = vpop.f32.mrf.mxu0  ;;  %v7767_v29 = vadd.f32 %v7766_v2, %v7680_v50 }
 0x725   :  { %v7082_v16 = vpop.f32.mrf.mxu1  ;;  %v7768_v52 = vrot.slane %v7767_v29, 2 }
 0x726   :  { %v7083_v35 = vadd.f32 %v7082_v16, %v7069_v11 }
 0x727   :  { %v7769_v43 = vadd.f32 %v7768_v52, %v7767_v29 }
 0x729   :  { %v7770_v41 = vrot.slane %v7769_v43, 1 }
 0x72b   :  { %v7071_v34 = vpop.f32.mrf.mxu0  ;;  %v7771_v55 = vadd.f32 %v7770_v41, %v7769_v43  ;;  %v8002_v43 = vperm.slane %v14143_v60, 6 }
 0x72c   :  { %v8001_v34 = vperm.slane %v14143_v60, 5 }
 0x72d   :  { %v7095_v51 = vpop.f32.mrf.mxu2  ;;  %v7084_v22 = vpop.f32.mrf.mxu1  ;;  %v7792_v37 = vmul.f32 %v7771_v55, %v12959_v42  ;;  %v8050_v55 = vperm.slane %v14149_v40, 4 }
 0x72e   :  { %v7096_v23 = vadd.f32 %v7095_v51, %v7083_v35  ;;  %v8000_v22 = vperm.slane %v14143_v60, 4 }
 0x72f   :  { %v7108_v57 = vpop.f32.mrf.mxu3  ;;  %v7808_v7 = vadd.f32 1e-05, %v7792_v37 }
 0x730   :  { %v7109_v8 = vadd.f32 %v7108_v57, %v7096_v23 }
 0x731   :  { %12345 = vrsqrt.f32 %v7808_v7  ;;  %vm7956_vm1 = vweird.f32 %v7808_v7 }
 0x732   :  { %v7481_v30 = vmul.f32 %v14156_v25, %v7109_v8  ;;  %v12342_v25 = vpop.eup %12341 }
 0x733   :  { %v12344_v47 = vpop.eup %12343  ;;  %v7941_v58 = vmul.f32 %v12342_v25, %v7807_v39  ;;  %vm7947_vm11 = vweird.f32 %v12342_v25 }
 0x734   :  { %v7533_v21 = vadd.f32 %v7501_v49, %v7481_v30  ;;  %v7931_v0 = vmul.f32 %v12344_v47, %v7806_v63  ;;  %vm7937_vm13 = vweird.f32 %v12344_v47  ;;  %vm7948_vm15 = vmor %vm7946_vm10, %vm7947_vm11  ;;  %v8003_v63 = vperm.slane %v14143_v60, 7 }
 0x735   :  { %v7097_v24 = vpop.f32.mrf.mxu2  ;;  %v7942_v56 = vmul.f32 %v12342_v25, %v7941_v58  ;;  %vm7938_vm0 = vmor %vm7936_vm12, %vm7937_vm13 }
 0x736   :  { %v7628_v6 = vrot.slane %v7533_v21, 4  ;;  %v7932_v1 = vmul.f32 %v12344_v47, %v7931_v0 }
 0x737   :  { %v7110_v15 = vpop.f32.mrf.mxu3  ;;  %v12346_v19 = vpop.eup %12345  ;;  %v7943_v26 = vmul.f32 0.5, %v7942_v56 }
 0x738   :  { %v7629_v10 = vadd.f32 %v7628_v6, %v7533_v21  ;;  %v7951_v48 = vmul.f32 %v12346_v19, %v7808_v7  ;;  %v7933_v14 = vmul.f32 0.5, %v7932_v1  ;;  %vm7957_vm14 = vweird.f32 %v12346_v19 }
 0x739   :  { %v7944_v11 = vsub.f32 1.5, %v7943_v26  ;;  %vm7958_vm3 = vmor %vm7956_vm1, %vm7957_vm14 }
 0x73a   :  { %v7630_v53 = vrot.slane %v7629_v10, 2  ;;  %v7952_v18 = vmul.f32 %v12346_v19, %v7951_v48  ;;  %v7934_v16 = vsub.f32 1.5, %v7933_v14  ;;  %v7112_v14 = vlaneseq }
 0x73b   :  { %v7945_v2 = vmul.f32 %v12342_v25, %v7944_v11 }
 0x73c   :  { %v7631_v54 = vadd.f32 %v7630_v53, %v7629_v10  ;;  %v7953_v3 = vmul.f32 0.5, %v7952_v18  ;;  %v7935_v13 = vmul.f32 %v12344_v47, %v7934_v16 }
 0x73d   :  { %v7949_v27 = vsel %vm7948_vm15, %v12342_v25, %v7945_v2  ;;  %v8053_v25 = vperm.slane %v14149_v40, 7  ;;  %v12316_v2 = vld [vmem:[#allocation26] ss:$0 sm:$0xff] }
 0x73e   :  { %v7632_v44 = vrot.slane %v7631_v54, 1  ;;  %v7954_v50 = vsub.f32 1.5, %v7953_v3  ;;  %v7939_v52 = vsel %vm7938_vm0, %v12344_v47, %v7935_v13  ;;  %v7983_v57 = vmul.f32 %v7949_v27, %v14173_v33 }
 0x73f   :  { %v7982_v32 = vmul.f32 %v7939_v52, %v14175_v38  ;;  %v8052_v33 = vperm.slane %v14149_v40, 6  ;;  %v8150_v47 = vperm.slane %v14161_v46, 4  ;;  %v7113_v3 = vand.u32 127, %v7112_v14 }
 0x740   :  { %v7633_v28 = vadd.f32 %v7632_v44, %v7631_v54  ;;  %v7955_v29 = vmul.f32 %v12346_v19, %v7954_v50  ;;  %v8033_v49 = vmul.f32 %v8001_v34, %v7983_v57  ;;  %v8151_v54 = vperm.slane %v14161_v46, 5 }
 0x741   :  { %v8032_v30 = vmul.f32 %v8000_v22, %v7982_v32  ;;  %vm8199_vm11 = vcmp.eq.s32.totalorder %v7113_v3, 1  ;;  %vm8191_vm12 = vcmp.eq.s32.totalorder %v7113_v3, 0  ;;  %vm8207_vm13 = vcmp.eq.s32.totalorder %v7113_v3, 2 }
 0x742   :  { %v7649_v12 = vmul.f32 %v7633_v28, %v12959_v42  ;;  %v7959_v23 = vsel %vm7958_vm3, %v12346_v19, %v7955_v29  ;;  %v8083_v24 = vadd.f32 %v8051_v17, %v8033_v49  ;;  %v8152_v19 = vperm.slane %v14161_v46, 6 }
 0x743   :  { %v8082_v39 = vadd.f32 %v8050_v55, %v8032_v30  ;;  %vm8215_vm14 = vcmp.eq.s32.totalorder %v7113_v3, 3 }
 0x744   :  { %v14192_v5 = vsub.f32 %v7533_v21, %v7649_v12  ;;  %v8115_v6 = vmul.f32 0.2, %v8083_v24  ;;  %vm8099_vm6 = vcmp.ge.f32.partialorder %v8083_v24, 0.0 }
 0x745   :  { %v8114_v7 = vmul.f32 0.2, %v8082_v39  ;;  %vm8098_vm8 = vcmp.ge.f32.partialorder %v8082_v39, 0.0 }
 0x746   :  { %v7681_v20 = vmul.f32 %v14192_v5, %v14192_v5  ;;  %v8131_v28 = vsel %vm8099_vm6, %v8083_v24, %v8115_v6 }
 0x747   :  { %v8130_v58 = vsel %vm8098_vm8, %v8082_v39, %v8114_v7  ;;  %v8183_v60 = vmul.f32 %v8151_v54, %v8131_v28 }
 0x748   :  { %v7772_v31 = vrot.slane %v7681_v20, 4  ;;  %v8182_v56 = vmul.f32 %v8150_v47, %v8130_v58 }
 0x74a   :  { %v7773_v62 = vadd.f32 %v7772_v31, %v7681_v20  ;;  %v8153_v20 = vperm.slane %v14161_v46, 7  ;;  %v8210_v18 = vadd.f32 %v8183_v60, %v8182_v56 }
 0x74c   :  { %v7774_v59 = vrot.slane %v7773_v62, 2 }
 0x74e   :  { %v7775_v36 = vadd.f32 %v7774_v59, %v7773_v62  ;;  %v8190_v59 = vpop.xlane.xlu2 %8189 }
 0x74f   :  { %v8192_v46 = vsel %vm8191_vm12, %v8190_v59, 0.0 }
 0x750   :  { %v7776_v45 = vrot.slane %v7775_v36, 1 }
 0x752   :  { %v7777_v61 = vadd.f32 %v7776_v45, %v7775_v36 }
 0x754   :  { %v7793_v35 = vmul.f32 %v7777_v61, %v12959_v42  ;;  %v7984_v42 = vmul.f32 %v7959_v23, %v14183_v4 }
 0x756   :  { %v7809_v51 = vadd.f32 1e-05, %v7793_v35  ;;  %v8034_v9 = vmul.f32 %v8002_v43, %v7984_v42  ;;  %v8198_v36 = vpop.xlane.xlu2 %8197 }
 0x757   :  { %v8200_v45 = vsel %vm8199_vm11, %v8198_v36, 0.0 }
 0x758   :  { %12347 = vrsqrt.f32 %v7809_v51  ;;  %v8084_v4 = vadd.f32 %v8052_v33, %v8034_v9  ;;  %vm7966_vm5 = vweird.f32 %v7809_v51  ;;  %v8201_v50 = vadd.f32 %v8200_v45, %v8192_v46 }
 0x75a   :  { %v8116_v10 = vmul.f32 0.2, %v8084_v4  ;;  %vm8100_vm9 = vcmp.ge.f32.partialorder %v8084_v4, 0.0 }
 0x75c   :  { %v8132_v0 = vsel %vm8100_vm9, %v8084_v4, %v8116_v10 }
 0x75d   :  { %v8184_v31 = vmul.f32 %v8152_v19, %v8132_v0 }
 0x75e   :  { %v12348_v8 = vpop.eup %12347 }
 0x75f   :  { %v7961_v41 = vmul.f32 %v12348_v8, %v7809_v51  ;;  %vm7967_vm4 = vweird.f32 %v12348_v8  ;;  %v8211_v40 = vadd.f32 %v8210_v18, %v8184_v31 }
 0x760   :  { %vm7968_vm7 = vmor %vm7966_vm5, %vm7967_vm4 }
 0x761   :  { %v7962_v21 = vmul.f32 %v12348_v8, %v7961_v41 }
 0x763   :  { %v7963_v38 = vmul.f32 0.5, %v7962_v21 }
 0x765   :  { %v7964_v37 = vsub.f32 1.5, %v7963_v38 }
 0x767   :  { %v7965_v15 = vmul.f32 %v12348_v8, %v7964_v37  ;;  %v8206_v11 = vpop.xlane.xlu1 %8205 }
 0x768   :  { %v8208_v16 = vsel %vm8207_vm13, %v8206_v11, 0.0 }
 0x769   :  { %v7969_v53 = vsel %vm7968_vm7, %v12348_v8, %v7965_v15  ;;  %v8209_v61 = vadd.f32 %v8208_v16, %v8201_v50 }
 0x76a   :  { %v7985_v44 = vmul.f32 %v7969_v53, %v14192_v5 }
 0x76c   :  { %v8035_v12 = vmul.f32 %v8003_v63, %v7985_v44 }
 0x76e   :  { %v8085_v48 = vadd.f32 %v8053_v25, %v8035_v12 }
 0x770   :  { %vm8101_vm10 = vcmp.ge.f32.partialorder %v8085_v48, 0.0  ;;  %v8117_v1 = vmul.f32 0.2, %v8085_v48 }
 0x772   :  { %v8133_v5 = vsel %vm8101_vm10, %v8085_v48, %v8117_v1 }
 0x773   :  { %v8185_v62 = vmul.f32 %v8153_v20, %v8133_v5 }
 0x775   :  { %v8212_v26 = vadd.f32 %v8211_v40, %v8185_v62 }
 0x777   :  { %8213 = vadd.xlane.f32.xlu2 %v8212_v26 }
 0x7ea   :  { %v8214_v35 = vpop.xlane.xlu2 %8213 }
 0x7eb   :  { %v8216_v13 = vsel %vm8215_vm14, %v8214_v35, 0.0 }
 0x7ec   :  { %v8217_v29 = vadd.f32 %v8216_v13, %v8209_v61 }
 0x7ee   :  { %v8222_v51 = vadd.f32 %v12316_v2, %v8217_v29 }
 0x7f0   :  { %8223 = vst.msk [vmem:[%s14273_s23] sm:$0xff] %vm3174_vm2, %v8222_v51 }
 0x7f1   :  { %8232 = vsyncpa [#allocation5], 1 }
 0x7f2   :  { %8233 = vsyncpa [#allocation7], 1 }
 0x7f3   :  { %8234 = vsyncpa [#allocation10], 1 }
 0x7f4   :  { %8235 = vsyncpa [#allocation13], 1 }
 0x7f5   :  { %8236 = vsyncpa [#allocation16], 1 }
 0x7f6   :  { %8237 = vsyncpa [#allocation19], 1 }
 0x7f7   :  { %8238 = vsyncpa [#allocation22], 1 }
 0x7f8   :  { %8239 = vsyncpa [#allocation25], 1 }
 0x7f9   :  { %8240 = vsyncmov [#allocation3] }
 0x7fc   :  { %s8241_s24 = vpop.sfrf %8240 }
 0x7fd   :  { %p11454_p0 = scmp.ne.s32.totalorder %s8241_s24, 0 }
 0x7ff   :  { %8245 = shalt.err (%p11454_p0)  }

</bundles_post_ra>
